<compile_context>
chip_gen: v6e
topology: v6e:2x2x1
jax: 0.10.0
libtpu: 0.0.40
codegen_flags: <defaults>
</compile_context>

<pallas_src>
import math
import functools

import jax
import jax.numpy as jnp
from jax.experimental import pallas as pl
from jax.experimental.pallas import tpu as pltpu


# MXU operand dtype; accumulation stays f32 via preferred_element_type.
_MM_DTYPE = jnp.bfloat16
_LN_EPS = 1e-5


def _round_up(x, m):
    return ((x + m - 1) // m) * m


@functools.lru_cache(maxsize=None)
def _vmem_budgets():
    """Generation-aware budgets (v5e/v6e: 128 MiB VMEM, v7x: 64 MiB per TensorCore)."""
    cap = 64 * 1024 * 1024                                   # conservative default (v7x-safe)
    try:
        info = pltpu.get_tpu_info()
        cap = int(getattr(info, "vmem_capacity_bytes", cap))
    except Exception:
        pass
    vmem_limit = min(96 * 1024 * 1024, (cap * 3) // 4)       # 96 MiB v5e/v6e, 48 MiB v7x
    emb_budget = vmem_limit // 4                             # one (double-buffered) RPE block
    tm_pref = 256 if emb_budget >= 16 * 1024 * 1024 else 128
    return vmem_limit, emb_budget, tm_pref


def _compiler_params(semantics):
    vmem_limit, _, _ = _vmem_budgets()
    return pltpu.CompilerParams(dimension_semantics=semantics,
                                vmem_limit_bytes=vmem_limit)


def _choose_attn_tiles(N, M, C, with_rpe, emb_esize, emb_budget, tm_pref):
    """TM first (lane axis of the score tiles / MXU N-dim), shrink TN to fit the emb block."""
    TM = min(tm_pref, _round_up(M, 8))
    TN = min(128, _round_up(N, 8))
    if with_rpe:
        while TN > 8 and TN * TM * C * emb_esize > emb_budget:
            TN = max(8, _round_up(TN // 2, 8))
        while TM > 128 and TN * TM * C * emb_esize > emb_budget:
            TM = max(128, _round_up(TM // 2, 8))
    # give the q-tile grid axis >= 2 steps so megacore (v7x, 2 TCs) can split it
    if _round_up(N, TN) // TN < 2 and TN >= 128:
        TN //= 2
    return TN, TM


# ----------------------------- Pallas kernels ------------------------------

def _linear_kernel(x_ref, w_ref, b_ref, o_ref):
    o_ref[...] = jnp.dot(x_ref[...].astype(_MM_DTYPE), w_ref[...].astype(_MM_DTYPE),
                         preferred_element_type=jnp.float32) + b_ref[...]


def _ffn_ln_kernel(x_ref, w1_ref, b1_ref, w2_ref, b2_ref, g_ref, beta_ref, o_ref):
    # LayerNorm(x + Linear2(ReLU(Linear1(x))))   (AttentionOutput, dropout=None)
    x = x_ref[...]
    h = jnp.dot(x.astype(_MM_DTYPE), w1_ref[...].astype(_MM_DTYPE),
                preferred_element_type=jnp.float32) + b1_ref[...]
    h = jnp.maximum(h, 0.0)
    h = jnp.dot(h.astype(_MM_DTYPE), w2_ref[...].astype(_MM_DTYPE),
                preferred_element_type=jnp.float32) + b2_ref[...]
    z = x + h
    mu = jnp.mean(z, axis=-1, keepdims=True)
    var = jnp.mean((z - mu) ** 2, axis=-1, keepdims=True)
    o_ref[...] = (z - mu) * jax.lax.rsqrt(var + _LN_EPS) * g_ref[...] + beta_ref[...]


def _fused_attn_kernel(*refs, num_heads, scale, with_rpe, kv_len, kv_len_padded):
    # Multi-head (optionally RPE) attention, online softmax across the kv grid axis,
    # fused with the output projection + residual + LayerNorm in the epilogue.
    if with_rpe:
        (x_ref, q_ref, k_ref, v_ref, emb_ref, a_ref,
         wo_ref, bo_ref, g_ref, beta_ref, o_ref,
         m_sc, l_sc, acc_sc, qs_sc, wq_sc) = refs
    else:
        (x_ref, q_ref, k_ref, v_ref,
         wo_ref, bo_ref, g_ref, beta_ref, o_ref,
         m_sc, l_sc, acc_sc, qs_sc) = refs
        emb_ref = a_ref = wq_sc = None

    ki = pl.program_id(2)
    TN, C = q_ref.shape[1], q_ref.shape[2]
    TM = k_ref.shape[1]
    H = num_heads
    dh = C // H

    @pl.when(ki == 0)
    def _init():
        m_sc[...] = jnp.full_like(m_sc, -jnp.inf)
        l_sc[...] = jnp.zeros_like(l_sc)
        acc_sc[...] = jnp.zeros_like(acc_sc)
        # 1/sqrt(dh) folded into q once (every score term is linear in q); computed once per
        # (batch, q-tile) instead of once per kv step.
        q_scaled = (q_ref[0] * scale).astype(_MM_DTYPE)
        qs_sc[...] = q_scaled
        if with_rpe:
            # Reassociated RPE:  q_h . (emb @ Wp_h)  ==  emb . (Wp_h^T q_h).
            # a_ref is the block-diagonal expansion of Wp, so Wp_h^T q_h for ALL heads comes
            # out of one lane-dense matmul.  (proj_p bias is a per-query-row constant ->
            # cancels in softmax -> dropped; scores are never exported.)
            wq = jnp.dot(q_scaled, a_ref[...],
                         preferred_element_type=jnp.float32)            # (TN, H*C)
            wq_sc[...] = wq.reshape(TN, H, C).astype(wq_sc.dtype)

    qs = qs_sc[...]                              # (TN, C)  bf16, pre-scaled
    k = k_ref[0].astype(_MM_DTYPE)               # (TM, C)
    v = v_ref[0].astype(_MM_DTYPE)               # (TM, C)

    if with_rpe:
        # ONE pass over the streamed emb block for all heads (no broadcast temporary):
        #   rpe[n, h, m] = sum_c wq[n, h, c] * emb[n, m, c]
        rpe = jax.lax.dot_general(
            wq_sc[...], emb_ref[0].astype(_MM_DTYPE),
            (((2,), (2,)), ((0,), (0,))),
            preferred_element_type=jnp.float32)                         # (TN, H, TM)

    need_mask = kv_len != kv_len_padded
    if need_mask:
        col = ki * TM + jax.lax.broadcasted_iota(jnp.int32, (TN, TM), 1)
        kv_valid = col < kv_len

    for h in range(H):            # static unroll; score tiles stay TM-wide on the lane axis
        hs = h * dh
        s = jax.lax.dot_general(qs[:, hs:hs + dh], k[:, hs:hs + dh],
                                (((1,), (1,)), ((), ())),
                                preferred_element_type=jnp.float32)     # (TN, TM)
        if with_rpe:
            s = s + rpe[:, h, :]
        if need_mask:
            s = jnp.where(kv_valid, s, -1e30)

        m_prev = m_sc[:, h:h + 1]
        m_new = jnp.maximum(m_prev, jnp.max(s, axis=-1, keepdims=True))
        alpha = jnp.exp(m_prev - m_new)
        p = jnp.exp(s - m_new)
        l_sc[:, h:h + 1] = alpha * l_sc[:, h:h + 1] + jnp.sum(p, axis=-1, keepdims=True)
        acc_sc[:, hs:hs + dh] = alpha * acc_sc[:, hs:hs + dh] + jnp.dot(
            p.astype(_MM_DTYPE), v[:, hs:hs + dh], preferred_element_type=jnp.float32)
        m_sc[:, h:h + 1] = m_new

    @pl.when(ki == pl.num_programs(2) - 1)
    def _finalize():
        inv_l = pl.reciprocal(l_sc[...], approx=True)                   # (TN, H)
        hidden = (acc_sc[...].reshape(TN, H, dh) * inv_l[:, :, None]).reshape(TN, C)
        h2 = jnp.dot(hidden.astype(_MM_DTYPE), wo_ref[...].astype(_MM_DTYPE),
                     preferred_element_type=jnp.float32) + bo_ref[...]
        z = h2 + x_ref[0]
        mu = jnp.mean(z, axis=-1, keepdims=True)
        var = jnp.mean((z - mu) ** 2, axis=-1, keepdims=True)
        o_ref[0] = (z - mu) * jax.lax.rsqrt(var + _LN_EPS) * g_ref[...] + beta_ref[...]


# ----------------------------- kernel wrappers ------------------------------

def linear_rows(x2d, w, b, *, row_tile=256):
    """Row-tiled, pipelined  y = x @ w + b  (rows padded to the tile multiple)."""
    R0, Din = x2d.shape
    Dout = w.shape[1]
    TR = min(row_tile, _round_up(R0, 8))
    R = _round_up(R0, TR)
    if R != R0:
        x2d = jnp.pad(x2d, ((0, R - R0), (0, 0)))
    out = pl.pallas_call(
        _linear_kernel,
        out_shape=jax.ShapeDtypeStruct((R, Dout), jnp.float32),
        grid=(R // TR,),
        in_specs=[
            pl.BlockSpec((TR, Din), lambda i: (i, 0)),
            pl.BlockSpec((Din, Dout), lambda i: (0, 0)),
            pl.BlockSpec((1, Dout), lambda i: (0, 0)),
        ],
        out_specs=pl.BlockSpec((TR, Dout), lambda i: (i, 0)),
        compiler_params=_compiler_params(("parallel",)),
    )(x2d, w, b.reshape(1, Dout))
    return out[:R0] if R != R0 else out


def ffn_ln_rows(x2d, w1, b1, w2, b2, gamma, beta, *, row_tile=256):
    """Row-tiled, pipelined  LayerNorm(x + Linear2(ReLU(Linear1(x))))."""
    R0, C = x2d.shape
    Dh = w1.shape[1]
    TR = min(row_tile, _round_up(R0, 8))
    R = _round_up(R0, TR)
    if R != R0:
        x2d = jnp.pad(x2d, ((0, R - R0), (0, 0)))
    out = pl.pallas_call(
        _ffn_ln_kernel,
        out_shape=jax.ShapeDtypeStruct((R, C), jnp.float32),
        grid=(R // TR,),
        in_specs=[
            pl.BlockSpec((TR, C), lambda i: (i, 0)),
            pl.BlockSpec((C, Dh), lambda i: (0, 0)),
            pl.BlockSpec((1, Dh), lambda i: (0, 0)),
            pl.BlockSpec((Dh, C), lambda i: (0, 0)),
            pl.BlockSpec((1, C), lambda i: (0, 0)),
            pl.BlockSpec((1, C), lambda i: (0, 0)),
            pl.BlockSpec((1, C), lambda i: (0, 0)),
        ],
        out_specs=pl.BlockSpec((TR, C), lambda i: (i, 0)),
        compiler_params=_compiler_params(("parallel",)),
    )(x2d, w1, b1.reshape(1, Dh), w2, b2.reshape(1, C),
      gamma.reshape(1, C), beta.reshape(1, C))
    return out[:R0] if R != R0 else out


def fused_attention(x, q, k, v, emb, wp, wo, bo, gamma, beta, *, num_heads):
    """LayerNorm(x + Linear(MHA(q, k, v [, RPE emb])))  — one pallas_call."""
    B, N, C = q.shape
    M = k.shape[1]
    dh = C // num_heads
    scale = 1.0 / math.sqrt(dh)
    with_rpe = emb is not None

    _, emb_budget, tm_pref = _vmem_budgets()
    emb_esize = jnp.dtype(_MM_DTYPE).itemsize
    TN, TM = _choose_attn_tiles(N, M, C, with_rpe, emb_esize, emb_budget, tm_pref)
    N_pad, M_pad = _round_up(N, TN), _round_up(M, TM)

    if N_pad != N:
        x = jnp.pad(x, ((0, 0), (0, N_pad - N), (0, 0)))
        q = jnp.pad(q, ((0, 0), (0, N_pad - N), (0, 0)))
    if M_pad != M:
        k = jnp.pad(k, ((0, 0), (0, M_pad - M), (0, 0)))
        v = jnp.pad(v, ((0, 0), (0, M_pad - M), (0, 0)))

    in_specs = [
        pl.BlockSpec((1, TN, C), lambda b, qi, ki: (b, qi, 0)),    # x (residual)
        pl.BlockSpec((1, TN, C), lambda b, qi, ki: (b, qi, 0)),    # q
        pl.BlockSpec((1, TM, C), lambda b, qi, ki: (b, ki, 0)),    # k
        pl.BlockSpec((1, TM, C), lambda b, qi, ki: (b, ki, 0)),    # v
    ]
    args = [x, q, k, v]

    if with_rpe:
        emb = emb.astype(_MM_DTYPE)                                # bf16 stream (O(N^2 C))
        if N_pad != N or M_pad != M:
            emb = jnp.pad(emb, ((0, 0), (0, N_pad - N), (0, M_pad - M), (0, 0)))
        # Block-diagonal expansion of Wp:  A[o, h, i] = Wp[i, o] * [o // dh == h],
        # flattened to (C, H*C) so  q_scaled @ A  gives Wp_h^T q_h for all heads at once.
        sel = ((jnp.arange(C) // dh)[:, None] == jnp.arange(num_heads)[None, :])
        a_mat = (wp.T[:, None, :] * sel[:, :, None].astype(wp.dtype))
        a_mat = a_mat.reshape(C, num_heads * C).astype(_MM_DTYPE)
        in_specs += [
            pl.BlockSpec((1, TN, TM, C), lambda b, qi, ki: (b, qi, ki, 0)),   # RPE embeddings
            pl.BlockSpec((C, num_heads * C), lambda b, qi, ki: (0, 0)),       # expanded Wp
        ]
        args += [emb, a_mat]

    in_specs += [
        pl.BlockSpec((C, C), lambda b, qi, ki: (0, 0)),    # Wo
        pl.BlockSpec((1, C), lambda b, qi, ki: (0, 0)),    # bo
        pl.BlockSpec((1, C), lambda b, qi, ki: (0, 0)),    # LN gamma
        pl.BlockSpec((1, C), lambda b, qi, ki: (0, 0)),    # LN beta
    ]
    args += [wo, bo.reshape(1, C), gamma.reshape(1, C), beta.reshape(1, C)]

    scratch = [
        pltpu.VMEM((TN, num_heads), jnp.float32),          # running max (per head)
        pltpu.VMEM((TN, num_heads), jnp.float32),          # running denom (per head)
        pltpu.VMEM((TN, C), jnp.float32),                  # output accumulator (heads concat)
        pltpu.VMEM((TN, C), _MM_DTYPE),                    # q * scale   (kv-invariant)
    ]
    if with_rpe:
        scratch.append(pltpu.VMEM((TN, num_heads, C), _MM_DTYPE))   # Wp_h^T q_h (kv-invariant)

    kernel = functools.partial(_fused_attn_kernel, num_heads=num_heads, scale=scale,
                               with_rpe=with_rpe, kv_len=M, kv_len_padded=M_pad)

    out = pl.pallas_call(
        kernel,
        out_shape=jax.ShapeDtypeStruct((B, N_pad, C), jnp.float32),
        grid=(B, N_pad // TN, M_pad // TM),
        in_specs=in_specs,
        out_specs=pl.BlockSpec((1, TN, C), lambda b, qi, ki: (b, qi, 0)),
        scratch_shapes=scratch,
        compiler_params=_compiler_params(("parallel", "parallel", "arbitrary")),
    )(*args)
    return out[:, :N, :] if N_pad != N else out


# ----------------------------- model glue -----------------------------------

def transformer_layer(p, x, mem, emb, num_heads, block):
    """block='self' (RPE) or 'cross' (plain MHA).  dropout=None -> identity."""
    B, N, C = x.shape
    M = mem.shape[1]
    if block == "self":    # fused QKV projection in one matmul
        qkv = linear_rows(x.reshape(B * N, C), p["Wqkv"], p["bqkv"]).reshape(B, N, 3 * C)
        q, k, v = qkv[..., :C], qkv[..., C:2 * C], qkv[..., 2 * C:]
    else:                  # q from x, fused KV from mem
        q = linear_rows(x.reshape(B * N, C), p["Wq"], p["bq"]).reshape(B, N, C)
        kv = linear_rows(mem.reshape(B * M, C), p["Wkv"], p["bkv"]).reshape(B, M, 2 * C)
        k, v = kv[..., :C], kv[..., C:]
    attn = fused_attention(x, q, k, v, emb if block == "self" else None,
                           p["Wp"], p["Wo"], p["bo"], p["ln1_g"], p["ln1_b"],
                           num_heads=num_heads)
    out = ffn_ln_rows(attn.reshape(B * N, C), p["W1"], p["b1"], p["W2"], p["b2"],
                      p["ln2_g"], p["ln2_b"]).reshape(B, N, C)
    return out


def rpe_conditional_transformer(layer_params, blocks, num_heads, feats0, feats1,
                                embeddings0, embeddings1, masks0=None, masks1=None):
    # TODO(synk): memory_masks / memory_weights / attention_factors not implemented and
    #             attention scores are not materialized (return_attention_scores=False path).
    assert masks0 is None and masks1 is None
    embeddings0 = embeddings0.astype(_MM_DTYPE)   # cast the big RPE stream once, reused by
    embeddings1 = embeddings1.astype(_MM_DTYPE)   # every 'self' block
    for i, block in enumerate(blocks):
        p = layer_params[i]
        if block == "self":
            feats0 = transformer_layer(p, feats0, feats0, embeddings0, num_heads, "self")
            feats1 = transformer_layer(p, feats1, feats1, embeddings1, num_heads, "self")
        else:  # 'cross'; with_cross_pos_embed=False -> no positional embeddings.
            # Sequential update (feats1 sees the updated feats0), matching the torch reference.
            feats0 = transformer_layer(p, feats0, feats1, None, num_heads, "cross")
            feats1 = transformer_layer(p, feats1, feats0, None, num_heads, "cross")
    return feats0, feats1


def ppf_transformer(params, ref_feats, src_feats, ref_embeddings, src_embeddings,
                    *, blocks, num_heads, ref_masks=None, src_masks=None):
    """PPFTransformer.forward.

    # TODO(synk): PPFStructualEmbedding (ppf -> pairwise RPE embedding) is not given in the
    # reference source; this wrapper consumes the (N, N, hidden) / (M, M, hidden) embeddings
    # it would produce.
    """
    d_model = params["in_proj_w"].shape[1]
    out_dim = params["out_proj_w"].shape[1]
    cin = ref_feats.shape[-1]
    N, M = ref_feats.shape[0], src_feats.shape[0]

    emb0 = ref_embeddings[None]   # (1, N, N, d_model)
    emb1 = src_embeddings[None]   # (1, M, M, d_model)
    ref = linear_rows(ref_feats.reshape(-1, cin),
                      params["in_proj_w"], params["in_proj_b"]).reshape(1, N, d_model)
    src = linear_rows(src_feats.reshape(-1, cin),
                      params["in_proj_w"], params["in_proj_b"]).reshape(1, M, d_model)
    ref, src = rpe_conditional_transformer(params["layers"], blocks, num_heads,
                                           ref, src, emb0, emb1,
                                           masks0=ref_masks, masks1=src_masks)
    ref = linear_rows(ref.reshape(N, d_model),
                      params["out_proj_w"], params["out_proj_b"]).reshape(N, out_dim)
    src = linear_rows(src.reshape(M, d_model),
                      params["out_proj_w"], params["out_proj_b"]).reshape(M, out_dim)
    return ref, src


# ----------------------------- deterministic params -------------------------

def init_params(key, blocks, input_dim, d_model, output_dim):
    def w(k, din, dout):
        return 0.02 * jax.random.normal(k, (din, dout), dtype=jnp.float32)

    def bias(k, n):
        return 0.01 * jax.random.normal(k, (n,), dtype=jnp.float32)

    ones = lambda n: jnp.ones((n,), jnp.float32)
    zeros = lambda n: jnp.zeros((n,), jnp.float32)

    key, kin, kin_b, kout, kout_b = jax.random.split(key, 5)
    layers = []
    for _ in blocks:
        key, *ks = jax.random.split(key, 15)
        Wq, Wk, Wv = (w(ks[0], d_model, d_model), w(ks[1], d_model, d_model),
                      w(ks[2], d_model, d_model))
        bq, bk, bv = bias(ks[3], d_model), bias(ks[4], d_model), bias(ks[5], d_model)
        layers.append(dict(
            Wq=Wq, bq=bq,
            Wqkv=jnp.concatenate([Wq, Wk, Wv], axis=1),
            bqkv=jnp.concatenate([bq, bk, bv], axis=0),
            Wkv=jnp.concatenate([Wk, Wv], axis=1),
            bkv=jnp.concatenate([bk, bv], axis=0),
            # bp (proj_p bias) is kept for parity with the torch module but is unused: a
            # per-query-row score constant cancels in the softmax.
            Wp=w(ks[6], d_model, d_model), bp=bias(ks[7], d_model),
            Wo=w(ks[8], d_model, d_model), bo=bias(ks[9], d_model),
            ln1_g=ones(d_model), ln1_b=zeros(d_model),
            W1=w(ks[10], d_model, 2 * d_model), b1=bias(ks[11], 2 * d_model),
            W2=w(ks[12], 2 * d_model, d_model), b2=bias(ks[13], d_model),
            ln2_g=ones(d_model), ln2_b=zeros(d_model),
        ))
    return dict(
        in_proj_w=w(kin, input_dim, d_model), in_proj_b=bias(kin_b, d_model),
        out_proj_w=w(kout, d_model, output_dim), out_proj_b=bias(kout_b, output_dim),
        layers=layers,
    )


# ----------------------------- main ------------------------------------------

if __name__ == "__main__":
    N, M = 16, 12
    input_dim, hidden_dim, output_dim, num_heads = 16, 32, 32, 4
    blocks = ["self", "cross"]

    key = jax.random.PRNGKey(0)
    k1, k2, k3, k4, kp = jax.random.split(key, 5)
    ref_feats = jax.random.normal(k1, (N, input_dim), jnp.float32)
    src_feats = jax.random.normal(k2, (M, input_dim), jnp.float32)
    ref_embeddings = jax.random.normal(k3, (N, N, hidden_dim), jnp.float32)
    src_embeddings = jax.random.normal(k4, (M, M, hidden_dim), jnp.float32)

    params = init_params(kp, blocks, input_dim, hidden_dim, output_dim)

    fwd = jax.jit(functools.partial(ppf_transformer, blocks=blocks, num_heads=num_heads))
    ref_out, src_out = fwd(params, ref_feats, src_feats, ref_embeddings, src_embeddings)
    jax.block_until_ready((ref_out, src_out))

    assert ref_out.shape == (N, output_dim) and src_out.shape == (M, output_dim)
    assert bool(jnp.all(jnp.isfinite(ref_out))) and bool(jnp.all(jnp.isfinite(src_out)))
    print("KERNEL_OK")
</pallas_src>

<mosaic_0001>
module attributes {stable_mosaic.version = 11 : i64} {
  func.func @_linear_kernel(%arg0: i32, %arg1: memref<16x32xf32, #tpu.memory_space<vmem>>, %arg2: memref<32x96xf32, #tpu.memory_space<vmem>>, %arg3: memref<1x96xf32, #tpu.memory_space<vmem>>, %arg4: memref<16x96xf32, #tpu.memory_space<vmem>>) attributes {dimension_semantics = [#tpu.dimension_semantics<parallel>], iteration_bounds = array<i64: 1>, scalar_prefetch = 0 : i64, scratch_operands = 0 : i64, tpu.core_type = #tpu.core_type<tc>, window_params = [{transform_indices = @transform_0, window_bounds = array<i64: 16, 32>}, {pipeline_mode = #tpu.pipeline_mode<synchronous>, transform_indices = @transform_1, window_bounds = array<i64: 32, 96>}, {pipeline_mode = #tpu.pipeline_mode<synchronous>, transform_indices = @transform_2, window_bounds = array<i64: 1, 96>}, {transform_indices = @transform_3, window_bounds = array<i64: 16, 96>}]} {
    %c0 = arith.constant 0 : index
    %c0_0 = arith.constant 0 : index
    %0 = vector.load %arg1[%c0, %c0_0] : memref<16x32xf32, #tpu.memory_space<vmem>>, vector<16x32xf32>
    %1 = arith.truncf %0 : vector<16x32xf32> to vector<16x32xbf16>
    %c0_1 = arith.constant 0 : index
    %c0_2 = arith.constant 0 : index
    %2 = vector.load %arg2[%c0_1, %c0_2] : memref<32x96xf32, #tpu.memory_space<vmem>>, vector<32x96xf32>
    %3 = arith.truncf %2 : vector<32x96xf32> to vector<32x96xbf16>
    %cst = arith.constant dense<0.000000e+00> : vector<16x96xf32>
    %4 = tpu.matmul %1, %3, %cst {dimension_numbers = #tpu.dot_dimension_numbers<[1], [0], [0], [1], [0, 0, 1, 1], [], []>} : vector<16x32xbf16>, vector<32x96xbf16>, vector<16x96xf32> -> vector<16x96xf32>
    %c0_3 = arith.constant 0 : index
    %c0_4 = arith.constant 0 : index
    %5 = vector.load %arg3[%c0_3, %c0_4] : memref<1x96xf32, #tpu.memory_space<vmem>>, vector<1x96xf32>
    %6 = vector.broadcast %5 : vector<1x96xf32> to vector<16x96xf32>
    %7 = arith.addf %4, %6 : vector<16x96xf32>
    %c0_5 = arith.constant 0 : index
    %c0_6 = arith.constant 0 : index
    %8 = vector.load %arg4[%c0_5, %c0_6] : memref<16x96xf32, #tpu.memory_space<vmem>>, vector<16x96xf32>
    tpu.vector_store %arg4[%c0_5, %c0_6], %7 {strides = array<i32>} : memref<16x96xf32, #tpu.memory_space<vmem>>, vector<16x96xf32>,
    return
  }
  func.func @transform_0(%arg0: i32) -> (i32, i32) {
    %c0_i32 = arith.constant 0 : i32
    %c0_i32_0 = arith.constant 0 : i32
    return %arg0, %c0_i32 : i32, i32
  }
  func.func @transform_1(%arg0: i32) -> (i32, i32) {
    %c0_i32 = arith.constant 0 : i32
    %c0_i32_0 = arith.constant 0 : i32
    %c0_i32_1 = arith.constant 0 : i32
    return %c0_i32, %c0_i32_0 : i32, i32
  }
  func.func @transform_2(%arg0: i32) -> (i32, i32) {
    %c0_i32 = arith.constant 0 : i32
    %c0_i32_0 = arith.constant 0 : i32
    %c0_i32_1 = arith.constant 0 : i32
    return %c0_i32, %c0_i32_0 : i32, i32
  }
  func.func @transform_3(%arg0: i32) -> (i32, i32) {
    %c0_i32 = arith.constant 0 : i32
    %c0_i32_0 = arith.constant 0 : i32
    return %arg0, %c0_i32 : i32, i32
  }
}

module attributes {stable_mosaic.version = 11 : i64} {
  func.func @_linear_kernel(%arg0: i32, %arg1: memref<16x16xf32, #tpu.memory_space<vmem>>, %arg2: memref<16x32xf32, #tpu.memory_space<vmem>>, %arg3: memref<1x32xf32, #tpu.memory_space<vmem>>, %arg4: memref<16x32xf32, #tpu.memory_space<vmem>>) attributes {dimension_semantics = [#tpu.dimension_semantics<parallel>], iteration_bounds = array<i64: 1>, scalar_prefetch = 0 : i64, scratch_operands = 0 : i64, tpu.core_type = #tpu.core_type<tc>, window_params = [{transform_indices = @transform_0, window_bounds = array<i64: 16, 16>}, {pipeline_mode = #tpu.pipeline_mode<synchronous>, transform_indices = @transform_1, window_bounds = array<i64: 16, 32>}, {pipeline_mode = #tpu.pipeline_mode<synchronous>, transform_indices = @transform_2, window_bounds = array<i64: 1, 32>}, {transform_indices = @transform_3, window_bounds = array<i64: 16, 32>}]} {
    %c0 = arith.constant 0 : index
    %c0_0 = arith.constant 0 : index
    %0 = vector.load %arg1[%c0, %c0_0] : memref<16x16xf32, #tpu.memory_space<vmem>>, vector<16x16xf32>
    %1 = arith.truncf %0 : vector<16x16xf32> to vector<16x16xbf16>
    %c0_1 = arith.constant 0 : index
    %c0_2 = arith.constant 0 : index
    %2 = vector.load %arg2[%c0_1, %c0_2] : memref<16x32xf32, #tpu.memory_space<vmem>>, vector<16x32xf32>
    %3 = arith.truncf %2 : vector<16x32xf32> to vector<16x32xbf16>
    %cst = arith.constant dense<0.000000e+00> : vector<16x32xf32>
    %4 = tpu.matmul %1, %3, %cst {dimension_numbers = #tpu.dot_dimension_numbers<[1], [0], [0], [1], [0, 0, 1, 1], [], []>} : vector<16x16xbf16>, vector<16x32xbf16>, vector<16x32xf32> -> vector<16x32xf32>
    %c0_3 = arith.constant 0 : index
    %c0_4 = arith.constant 0 : index
    %5 = vector.load %arg3[%c0_3, %c0_4] : memref<1x32xf32, #tpu.memory_space<vmem>>, vector<1x32xf32>
    %6 = vector.broadcast %5 : vector<1x32xf32> to vector<16x32xf32>
    %7 = arith.addf %4, %6 : vector<16x32xf32>
    %c0_5 = arith.constant 0 : index
    %c0_6 = arith.constant 0 : index
    %8 = vector.load %arg4[%c0_5, %c0_6] : memref<16x32xf32, #tpu.memory_space<vmem>>, vector<16x32xf32>
    tpu.vector_store %arg4[%c0_5, %c0_6], %7 {strides = array<i32>} : memref<16x32xf32, #tpu.memory_space<vmem>>, vector<16x32xf32>,
    return
  }
  func.func @transform_0(%arg0: i32) -> (i32, i32) {
    %c0_i32 = arith.constant 0 : i32
    %c0_i32_0 = arith.constant 0 : i32
    return %arg0, %c0_i32 : i32, i32
  }
  func.func @transform_1(%arg0: i32) -> (i32, i32) {
    %c0_i32 = arith.constant 0 : i32
    %c0_i32_0 = arith.constant 0 : i32
    %c0_i32_1 = arith.constant 0 : i32
    return %c0_i32, %c0_i32_0 : i32, i32
  }
  func.func @transform_2(%arg0: i32) -> (i32, i32) {
    %c0_i32 = arith.constant 0 : i32
    %c0_i32_0 = arith.constant 0 : i32
    %c0_i32_1 = arith.constant 0 : i32
    return %c0_i32, %c0_i32_0 : i32, i32
  }
  func.func @transform_3(%arg0: i32) -> (i32, i32) {
    %c0_i32 = arith.constant 0 : i32
    %c0_i32_0 = arith.constant 0 : i32
    return %arg0, %c0_i32 : i32, i32
  }
}

module attributes {stable_mosaic.version = 11 : i64} {
  func.func @_fused_attn_kernel(%arg0: i32, %arg1: i32, %arg2: i32, %arg3: memref<1x16x32xf32, #tpu.memory_space<vmem>>, %arg4: memref<1x16x32xf32, #tpu.memory_space<vmem>>, %arg5: memref<1x16x32xf32, #tpu.memory_space<vmem>>, %arg6: memref<1x16x32xf32, #tpu.memory_space<vmem>>, %arg7: memref<1x16x16x32xbf16, #tpu.memory_space<vmem>>, %arg8: memref<32x128xbf16, #tpu.memory_space<vmem>>, %arg9: memref<32x32xf32, #tpu.memory_space<vmem>>, %arg10: memref<1x32xf32, #tpu.memory_space<vmem>>, %arg11: memref<1x32xf32, #tpu.memory_space<vmem>>, %arg12: memref<1x32xf32, #tpu.memory_space<vmem>>, %arg13: memref<1x16x32xf32, #tpu.memory_space<vmem>>, %arg14: memref<16x4xf32, #tpu.memory_space<vmem>>, %arg15: memref<16x4xf32, #tpu.memory_space<vmem>>, %arg16: memref<16x32xf32, #tpu.memory_space<vmem>>, %arg17: memref<16x32xbf16, #tpu.memory_space<vmem>>, %arg18: memref<16x4x32xbf16, #tpu.memory_space<vmem>>) attributes {dimension_semantics = [#tpu.dimension_semantics<parallel>, #tpu.dimension_semantics<parallel>, #tpu.dimension_semantics<arbitrary>], iteration_bounds = array<i64: 1, 1, 1>, scalar_prefetch = 0 : i64, scratch_operands = 5 : i64, tpu.core_type = #tpu.core_type<tc>, window_params = [{transform_indices = @transform_0, window_bounds = array<i64: 1, 16, 32>}, {transform_indices = @transform_1, window_bounds = array<i64: 1, 16, 32>}, {transform_indices = @transform_2, window_bounds = array<i64: 1, 16, 32>}, {transform_indices = @transform_3, window_bounds = array<i64: 1, 16, 32>}, {transform_indices = @transform_4, window_bounds = array<i64: 1, 16, 16, 32>}, {pipeline_mode = #tpu.pipeline_mode<synchronous>, transform_indices = @transform_5, window_bounds = array<i64: 32, 128>}, {pipeline_mode = #tpu.pipeline_mode<synchronous>, transform_indices = @transform_6, window_bounds = array<i64: 32, 32>}, {pipeline_mode = #tpu.pipeline_mode<synchronous>, transform_indices = @transform_7, window_bounds = array<i64: 1, 32>}, {pipeline_mode = #tpu.pipeline_mode<synchronous>, transform_indices = @transform_8, window_bounds = array<i64: 1, 32>}, {pipeline_mode = #tpu.pipeline_mode<synchronous>, transform_indices = @transform_9, window_bounds = array<i64: 1, 32>}, {transform_indices = @transform_10, window_bounds = array<i64: 1, 16, 32>}]} {
    %c0_i32 = arith.constant 0 : i32
    %0 = arith.cmpi eq, %arg2, %c0_i32 : i32
    %1 = arith.extui %0 : i1 to i32
    %c0_i32_0 = arith.constant 0 : i32
    %2 = arith.cmpi ne, %1, %c0_i32_0 : i32
    scf.if %2 {
      %cst_79 = arith.constant 0xFF800000 : f32
      %151 = vector.broadcast %cst_79 : f32 to vector<16x4xf32>
      %c0_80 = arith.constant 0 : index
      %c0_81 = arith.constant 0 : index
      %152 = vector.load %arg14[%c0_80, %c0_81] : memref<16x4xf32, #tpu.memory_space<vmem>>, vector<16x4xf32>
      tpu.vector_store %arg14[%c0_80, %c0_81], %151 {strides = array<i32>} : memref<16x4xf32, #tpu.memory_space<vmem>>, vector<16x4xf32>,
      %cst_82 = arith.constant 0.000000e+00 : f32
      %153 = vector.broadcast %cst_82 : f32 to vector<16x4xf32>
      %c0_83 = arith.constant 0 : index
      %c0_84 = arith.constant 0 : index
      %154 = vector.load %arg15[%c0_83, %c0_84] : memref<16x4xf32, #tpu.memory_space<vmem>>, vector<16x4xf32>
      tpu.vector_store %arg15[%c0_83, %c0_84], %153 {strides = array<i32>} : memref<16x4xf32, #tpu.memory_space<vmem>>, vector<16x4xf32>,
      %cst_85 = arith.constant 0.000000e+00 : f32
      %155 = vector.broadcast %cst_85 : f32 to vector<16x32xf32>
      %c0_86 = arith.constant 0 : index
      %c0_87 = arith.constant 0 : index
      %156 = vector.load %arg16[%c0_86, %c0_87] : memref<16x32xf32, #tpu.memory_space<vmem>>, vector<16x32xf32>
      tpu.vector_store %arg16[%c0_86, %c0_87], %155 {strides = array<i32>} : memref<16x32xf32, #tpu.memory_space<vmem>>, vector<16x32xf32>,
      %c0_88 = arith.constant 0 : index
      %c0_89 = arith.constant 0 : index
      %c0_90 = arith.constant 0 : index
      %157 = vector.load %arg4[%c0_88, %c0_89, %c0_90] : memref<1x16x32xf32, #tpu.memory_space<vmem>>, vector<1x16x32xf32>
      %158 = vector.shape_cast %157 : vector<1x16x32xf32> to vector<16x32xf32>
      %cst_91 = arith.constant 0.353553385 : f32
      %159 = vector.broadcast %cst_91 : f32 to vector<16x32xf32>
      %160 = arith.mulf %158, %159 : vector<16x32xf32>
      %161 = arith.truncf %160 : vector<16x32xf32> to vector<16x32xbf16>
      %c0_92 = arith.constant 0 : index
      %c0_93 = arith.constant 0 : index
      %162 = vector.load %arg17[%c0_92, %c0_93] : memref<16x32xbf16, #tpu.memory_space<vmem>>, vector<16x32xbf16>
      tpu.vector_store %arg17[%c0_92, %c0_93], %161 {strides = array<i32>} : memref<16x32xbf16, #tpu.memory_space<vmem>>, vector<16x32xbf16>,
      %c0_94 = arith.constant 0 : index
      %c0_95 = arith.constant 0 : index
      %163 = vector.load %arg8[%c0_94, %c0_95] : memref<32x128xbf16, #tpu.memory_space<vmem>>, vector<32x128xbf16>
      %cst_96 = arith.constant dense<0.000000e+00> : vector<16x128xf32>
      %164 = tpu.matmul %161, %163, %cst_96 {dimension_numbers = #tpu.dot_dimension_numbers<[1], [0], [0], [1], [0, 0, 1, 1], [], []>} : vector<16x32xbf16>, vector<32x128xbf16>, vector<16x128xf32> -> vector<16x128xf32>
      %165 = vector.shape_cast %164 : vector<16x128xf32> to vector<16x4x32xf32>
      %166 = arith.truncf %165 : vector<16x4x32xf32> to vector<16x4x32xbf16>
      %c0_97 = arith.constant 0 : index
      %c0_98 = arith.constant 0 : index
      %c0_99 = arith.constant 0 : index
      %167 = vector.load %arg18[%c0_97, %c0_98, %c0_99] : memref<16x4x32xbf16, #tpu.memory_space<vmem>>, vector<16x4x32xbf16>
      tpu.vector_store %arg18[%c0_97, %c0_98, %c0_99], %166 {strides = array<i32>} : memref<16x4x32xbf16, #tpu.memory_space<vmem>>, vector<16x4x32xbf16>,
    } else {
    }
    %c0 = arith.constant 0 : index
    %c0_1 = arith.constant 0 : index
    %3 = vector.load %arg17[%c0, %c0_1] : memref<16x32xbf16, #tpu.memory_space<vmem>>, vector<16x32xbf16>
    %c0_2 = arith.constant 0 : index
    %c0_3 = arith.constant 0 : index
    %c0_4 = arith.constant 0 : index
    %4 = vector.load %arg5[%c0_2, %c0_3, %c0_4] : memref<1x16x32xf32, #tpu.memory_space<vmem>>, vector<1x16x32xf32>
    %5 = vector.shape_cast %4 : vector<1x16x32xf32> to vector<16x32xf32>
    %6 = arith.truncf %5 : vector<16x32xf32> to vector<16x32xbf16>
    %c0_5 = arith.constant 0 : index
    %c0_6 = arith.constant 0 : index
    %c0_7 = arith.constant 0 : index
    %7 = vector.load %arg6[%c0_5, %c0_6, %c0_7] : memref<1x16x32xf32, #tpu.memory_space<vmem>>, vector<1x16x32xf32>
    %8 = vector.shape_cast %7 : vector<1x16x32xf32> to vector<16x32xf32>
    %9 = arith.truncf %8 : vector<16x32xf32> to vector<16x32xbf16>
    %c0_8 = arith.constant 0 : index
    %c0_9 = arith.constant 0 : index
    %c0_10 = arith.constant 0 : index
    %10 = vector.load %arg18[%c0_8, %c0_9, %c0_10] : memref<16x4x32xbf16, #tpu.memory_space<vmem>>, vector<16x4x32xbf16>
    %c0_11 = arith.constant 0 : index
    %c0_12 = arith.constant 0 : index
    %c0_13 = arith.constant 0 : index
    %c0_14 = arith.constant 0 : index
    %11 = vector.load %arg7[%c0_11, %c0_12, %c0_13, %c0_14] : memref<1x16x16x32xbf16, #tpu.memory_space<vmem>>, vector<1x16x16x32xbf16>
    %12 = vector.shape_cast %11 : vector<1x16x16x32xbf16> to vector<16x16x32xbf16>
    %cst = arith.constant dense<0.000000e+00> : vector<16x4x16xf32>
    %13 = tpu.matmul %10, %12, %cst {dimension_numbers = #tpu.dot_dimension_numbers<[2], [2], [1], [1], [0, 0, 0, 1, 1, 1], [0], [0]>} : vector<16x4x32xbf16>, vector<16x16x32xbf16>, vector<16x4x16xf32> -> vector<16x4x16xf32>
    %c16_i32 = arith.constant 16 : i32
    %14 = arith.muli %arg2, %c16_i32 : i32
    %15 = tpu.iota {dimensions = array<i32: 1>} : vector<16x16xi32>
    %16 = vector.broadcast %14 : i32 to vector<16x16xi32>
    %17 = arith.addi %16, %15 : vector<16x16xi32>
    %c12_i32 = arith.constant 12 : i32
    %18 = vector.broadcast %c12_i32 : i32 to vector<16x16xi32>
    %19 = arith.cmpi slt, %17, %18 : vector<16x16xi32>
    %20 = vector.extract_strided_slice %3 {offsets = [0, 0], sizes = [16, 8], strides = [1, 1]} : vector<16x32xbf16> to vector<16x8xbf16>
    %21 = vector.extract_strided_slice %6 {offsets = [0, 0], sizes = [16, 8], strides = [1, 1]} : vector<16x32xbf16> to vector<16x8xbf16>
    %cst_15 = arith.constant dense<0.000000e+00> : vector<16x16xf32>
    %22 = tpu.matmul %20, %21, %cst_15 {dimension_numbers = #tpu.dot_dimension_numbers<[1], [1], [0], [0], [0, 0, 1, 0], [], []>} : vector<16x8xbf16>, vector<16x8xbf16>, vector<16x16xf32> -> vector<16x16xf32>
    %23 = vector.extract_strided_slice %13 {offsets = [0, 0, 0], sizes = [16, 1, 16], strides = [1, 1, 1]} : vector<16x4x16xf32> to vector<16x1x16xf32>
    %24 = vector.shape_cast %23 : vector<16x1x16xf32> to vector<16x16xf32>
    %25 = arith.addf %22, %24 : vector<16x16xf32>
    %cst_16 = arith.constant -1.000000e+30 : f32
    %26 = vector.broadcast %cst_16 : f32 to vector<16x16xf32>
    %27 = arith.select %19, %25, %26 : vector<16x16xi1>, vector<16x16xf32>
    %c0_17 = arith.constant 0 : index
    %c0_18 = arith.constant 0 : index
    %28 = vector.load %arg14[%c0_17, %c0_18] : memref<16x4xf32, #tpu.memory_space<vmem>>, vector<16x1xf32>
    %cst_19 = arith.constant dense<0xFF800000> : vector<16xf32>
    %29 = vector.multi_reduction <maximumf>, %27, %cst_19 [1] : vector<16x16xf32> to vector<16xf32>
    %30 = vector.shape_cast %29 : vector<16xf32> to vector<16x1xf32>
    %31 = arith.maximumf %28, %30 : vector<16x1xf32>
    %32 = arith.subf %28, %31 : vector<16x1xf32>
    %33 = math.exp %32 : vector<16x1xf32>
    %34 = vector.broadcast %31 : vector<16x1xf32> to vector<16x16xf32>
    %35 = arith.subf %27, %34 : vector<16x16xf32>
    %36 = math.exp %35 : vector<16x16xf32>
    %c0_20 = arith.constant 0 : index
    %c0_21 = arith.constant 0 : index
    %37 = vector.load %arg15[%c0_20, %c0_21] : memref<16x4xf32, #tpu.memory_space<vmem>>, vector<16x1xf32>
    %38 = arith.mulf %33, %37 : vector<16x1xf32>
    %cst_22 = arith.constant dense<0.000000e+00> : vector<16xf32>
    %39 = vector.multi_reduction <add>, %36, %cst_22 [1] : vector<16x16xf32> to vector<16xf32>
    %40 = vector.shape_cast %39 : vector<16xf32> to vector<16x1xf32>
    %41 = arith.addf %38, %40 : vector<16x1xf32>
    %c0_23 = arith.constant 0 : index
    %c0_24 = arith.constant 0 : index
    %42 = vector.load %arg15[%c0_23, %c0_24] : memref<16x4xf32, #tpu.memory_space<vmem>>, vector<16x1xf32>
    tpu.vector_store %arg15[%c0_23, %c0_24], %41 {strides = array<i32>} : memref<16x4xf32, #tpu.memory_space<vmem>>, vector<16x1xf32>,
    %c0_25 = arith.constant 0 : index
    %c0_26 = arith.constant 0 : index
    %43 = vector.load %arg16[%c0_25, %c0_26] : memref<16x32xf32, #tpu.memory_space<vmem>>, vector<16x8xf32>
    %44 = vector.broadcast %33 : vector<16x1xf32> to vector<16x8xf32>
    %45 = arith.mulf %44, %43 : vector<16x8xf32>
    %46 = arith.truncf %36 : vector<16x16xf32> to vector<16x16xbf16>
    %47 = vector.extract_strided_slice %9 {offsets = [0, 0], sizes = [16, 8], strides = [1, 1]} : vector<16x32xbf16> to vector<16x8xbf16>
    %cst_27 = arith.constant dense<0.000000e+00> : vector<16x8xf32>
    %48 = tpu.matmul %46, %47, %cst_27 {dimension_numbers = #tpu.dot_dimension_numbers<[1], [0], [0], [1], [0, 0, 1, 1], [], []>} : vector<16x16xbf16>, vector<16x8xbf16>, vector<16x8xf32> -> vector<16x8xf32>
    %49 = arith.addf %45, %48 : vector<16x8xf32>
    %c0_28 = arith.constant 0 : index
    %c0_29 = arith.constant 0 : index
    %50 = vector.load %arg16[%c0_28, %c0_29] : memref<16x32xf32, #tpu.memory_space<vmem>>, vector<16x8xf32>
    tpu.vector_store %arg16[%c0_28, %c0_29], %49 {strides = array<i32>} : memref<16x32xf32, #tpu.memory_space<vmem>>, vector<16x8xf32>,
    %c0_30 = arith.constant 0 : index
    %c0_31 = arith.constant 0 : index
    %51 = vector.load %arg14[%c0_30, %c0_31] : memref<16x4xf32, #tpu.memory_space<vmem>>, vector<16x1xf32>
    tpu.vector_store %arg14[%c0_30, %c0_31], %31 {strides = array<i32>} : memref<16x4xf32, #tpu.memory_space<vmem>>, vector<16x1xf32>,
    %52 = vector.extract_strided_slice %3 {offsets = [0, 8], sizes = [16, 8], strides = [1, 1]} : vector<16x32xbf16> to vector<16x8xbf16>
    %53 = vector.extract_strided_slice %6 {offsets = [0, 8], sizes = [16, 8], strides = [1, 1]} : vector<16x32xbf16> to vector<16x8xbf16>
    %cst_32 = arith.constant dense<0.000000e+00> : vector<16x16xf32>
    %54 = tpu.matmul %52, %53, %cst_32 {dimension_numbers = #tpu.dot_dimension_numbers<[1], [1], [0], [0], [0, 0, 1, 0], [], []>} : vector<16x8xbf16>, vector<16x8xbf16>, vector<16x16xf32> -> vector<16x16xf32>
    %55 = vector.extract_strided_slice %13 {offsets = [0, 1, 0], sizes = [16, 1, 16], strides = [1, 1, 1]} : vector<16x4x16xf32> to vector<16x1x16xf32>
    %56 = vector.shape_cast %55 : vector<16x1x16xf32> to vector<16x16xf32>
    %57 = arith.addf %54, %56 : vector<16x16xf32>
    %cst_33 = arith.constant -1.000000e+30 : f32
    %58 = vector.broadcast %cst_33 : f32 to vector<16x16xf32>
    %59 = arith.select %19, %57, %58 : vector<16x16xi1>, vector<16x16xf32>
    %c0_34 = arith.constant 0 : index
    %c1 = arith.constant 1 : index
    %60 = vector.load %arg14[%c0_34, %c1] : memref<16x4xf32, #tpu.memory_space<vmem>>, vector<16x1xf32>
    %cst_35 = arith.constant dense<0xFF800000> : vector<16xf32>
    %61 = vector.multi_reduction <maximumf>, %59, %cst_35 [1] : vector<16x16xf32> to vector<16xf32>
    %62 = vector.shape_cast %61 : vector<16xf32> to vector<16x1xf32>
    %63 = arith.maximumf %60, %62 : vector<16x1xf32>
    %64 = arith.subf %60, %63 : vector<16x1xf32>
    %65 = math.exp %64 : vector<16x1xf32>
    %66 = vector.broadcast %63 : vector<16x1xf32> to vector<16x16xf32>
    %67 = arith.subf %59, %66 : vector<16x16xf32>
    %68 = math.exp %67 : vector<16x16xf32>
    %c0_36 = arith.constant 0 : index
    %c1_37 = arith.constant 1 : index
    %69 = vector.load %arg15[%c0_36, %c1_37] : memref<16x4xf32, #tpu.memory_space<vmem>>, vector<16x1xf32>
    %70 = arith.mulf %65, %69 : vector<16x1xf32>
    %cst_38 = arith.constant dense<0.000000e+00> : vector<16xf32>
    %71 = vector.multi_reduction <add>, %68, %cst_38 [1] : vector<16x16xf32> to vector<16xf32>
    %72 = vector.shape_cast %71 : vector<16xf32> to vector<16x1xf32>
    %73 = arith.addf %70, %72 : vector<16x1xf32>
    %c0_39 = arith.constant 0 : index
    %c1_40 = arith.constant 1 : index
    %74 = vector.load %arg15[%c0_39, %c1_40] : memref<16x4xf32, #tpu.memory_space<vmem>>, vector<16x1xf32>
    tpu.vector_store %arg15[%c0_39, %c1_40], %73 {strides = array<i32>} : memref<16x4xf32, #tpu.memory_space<vmem>>, vector<16x1xf32>,
    %c0_41 = arith.constant 0 : index
    %c8 = arith.constant 8 : index
    %75 = vector.load %arg16[%c0_41, %c8] : memref<16x32xf32, #tpu.memory_space<vmem>>, vector<16x8xf32>
    %76 = vector.broadcast %65 : vector<16x1xf32> to vector<16x8xf32>
    %77 = arith.mulf %76, %75 : vector<16x8xf32>
    %78 = arith.truncf %68 : vector<16x16xf32> to vector<16x16xbf16>
    %79 = vector.extract_strided_slice %9 {offsets = [0, 8], sizes = [16, 8], strides = [1, 1]} : vector<16x32xbf16> to vector<16x8xbf16>
    %cst_42 = arith.constant dense<0.000000e+00> : vector<16x8xf32>
    %80 = tpu.matmul %78, %79, %cst_42 {dimension_numbers = #tpu.dot_dimension_numbers<[1], [0], [0], [1], [0, 0, 1, 1], [], []>} : vector<16x16xbf16>, vector<16x8xbf16>, vector<16x8xf32> -> vector<16x8xf32>
    %81 = arith.addf %77, %80 : vector<16x8xf32>
    %c0_43 = arith.constant 0 : index
    %c8_44 = arith.constant 8 : index
    %82 = vector.load %arg16[%c0_43, %c8_44] : memref<16x32xf32, #tpu.memory_space<vmem>>, vector<16x8xf32>
    tpu.vector_store %arg16[%c0_43, %c8_44], %81 {strides = array<i32>} : memref<16x32xf32, #tpu.memory_space<vmem>>, vector<16x8xf32>,
    %c0_45 = arith.constant 0 : index
    %c1_46 = arith.constant 1 : index
    %83 = vector.load %arg14[%c0_45, %c1_46] : memref<16x4xf32, #tpu.memory_space<vmem>>, vector<16x1xf32>
    tpu.vector_store %arg14[%c0_45, %c1_46], %63 {strides = array<i32>} : memref<16x4xf32, #tpu.memory_space<vmem>>, vector<16x1xf32>,
    %84 = vector.extract_strided_slice %3 {offsets = [0, 16], sizes = [16, 8], strides = [1, 1]} : vector<16x32xbf16> to vector<16x8xbf16>
    %85 = vector.extract_strided_slice %6 {offsets = [0, 16], sizes = [16, 8], strides = [1, 1]} : vector<16x32xbf16> to vector<16x8xbf16>
    %cst_47 = arith.constant dense<0.000000e+00> : vector<16x16xf32>
    %86 = tpu.matmul %84, %85, %cst_47 {dimension_numbers = #tpu.dot_dimension_numbers<[1], [1], [0], [0], [0, 0, 1, 0], [], []>} : vector<16x8xbf16>, vector<16x8xbf16>, vector<16x16xf32> -> vector<16x16xf32>
    %87 = vector.extract_strided_slice %13 {offsets = [0, 2, 0], sizes = [16, 1, 16], strides = [1, 1, 1]} : vector<16x4x16xf32> to vector<16x1x16xf32>
    %88 = vector.shape_cast %87 : vector<16x1x16xf32> to vector<16x16xf32>
    %89 = arith.addf %86, %88 : vector<16x16xf32>
    %cst_48 = arith.constant -1.000000e+30 : f32
    %90 = vector.broadcast %cst_48 : f32 to vector<16x16xf32>
    %91 = arith.select %19, %89, %90 : vector<16x16xi1>, vector<16x16xf32>
    %c0_49 = arith.constant 0 : index
    %c2 = arith.constant 2 : index
    %92 = vector.load %arg14[%c0_49, %c2] : memref<16x4xf32, #tpu.memory_space<vmem>>, vector<16x1xf32>
    %cst_50 = arith.constant dense<0xFF800000> : vector<16xf32>
    %93 = vector.multi_reduction <maximumf>, %91, %cst_50 [1] : vector<16x16xf32> to vector<16xf32>
    %94 = vector.shape_cast %93 : vector<16xf32> to vector<16x1xf32>
    %95 = arith.maximumf %92, %94 : vector<16x1xf32>
    %96 = arith.subf %92, %95 : vector<16x1xf32>
    %97 = math.exp %96 : vector<16x1xf32>
    %98 = vector.broadcast %95 : vector<16x1xf32> to vector<16x16xf32>
    %99 = arith.subf %91, %98 : vector<16x16xf32>
    %100 = math.exp %99 : vector<16x16xf32>
    %c0_51 = arith.constant 0 : index
    %c2_52 = arith.constant 2 : index
    %101 = vector.load %arg15[%c0_51, %c2_52] : memref<16x4xf32, #tpu.memory_space<vmem>>, vector<16x1xf32>
    %102 = arith.mulf %97, %101 : vector<16x1xf32>
    %cst_53 = arith.constant dense<0.000000e+00> : vector<16xf32>
    %103 = vector.multi_reduction <add>, %100, %cst_53 [1] : vector<16x16xf32> to vector<16xf32>
    %104 = vector.shape_cast %103 : vector<16xf32> to vector<16x1xf32>
    %105 = arith.addf %102, %104 : vector<16x1xf32>
    %c0_54 = arith.constant 0 : index
    %c2_55 = arith.constant 2 : index
    %106 = vector.load %arg15[%c0_54, %c2_55] : memref<16x4xf32, #tpu.memory_space<vmem>>, vector<16x1xf32>
    tpu.vector_store %arg15[%c0_54, %c2_55], %105 {strides = array<i32>} : memref<16x4xf32, #tpu.memory_space<vmem>>, vector<16x1xf32>,
    %c0_56 = arith.constant 0 : index
    %c16 = arith.constant 16 : index
    %107 = vector.load %arg16[%c0_56, %c16] : memref<16x32xf32, #tpu.memory_space<vmem>>, vector<16x8xf32>
    %108 = vector.broadcast %97 : vector<16x1xf32> to vector<16x8xf32>
    %109 = arith.mulf %108, %107 : vector<16x8xf32>
    %110 = arith.truncf %100 : vector<16x16xf32> to vector<16x16xbf16>
    %111 = vector.extract_strided_slice %9 {offsets = [0, 16], sizes = [16, 8], strides = [1, 1]} : vector<16x32xbf16> to vector<16x8xbf16>
    %cst_57 = arith.constant dense<0.000000e+00> : vector<16x8xf32>
    %112 = tpu.matmul %110, %111, %cst_57 {dimension_numbers = #tpu.dot_dimension_numbers<[1], [0], [0], [1], [0, 0, 1, 1], [], []>} : vector<16x16xbf16>, vector<16x8xbf16>, vector<16x8xf32> -> vector<16x8xf32>
    %113 = arith.addf %109, %112 : vector<16x8xf32>
    %c0_58 = arith.constant 0 : index
    %c16_59 = arith.constant 16 : index
    %114 = vector.load %arg16[%c0_58, %c16_59] : memref<16x32xf32, #tpu.memory_space<vmem>>, vector<16x8xf32>
    tpu.vector_store %arg16[%c0_58, %c16_59], %113 {strides = array<i32>} : memref<16x32xf32, #tpu.memory_space<vmem>>, vector<16x8xf32>,
    %c0_60 = arith.constant 0 : index
    %c2_61 = arith.constant 2 : index
    %115 = vector.load %arg14[%c0_60, %c2_61] : memref<16x4xf32, #tpu.memory_space<vmem>>, vector<16x1xf32>
    tpu.vector_store %arg14[%c0_60, %c2_61], %95 {strides = array<i32>} : memref<16x4xf32, #tpu.memory_space<vmem>>, vector<16x1xf32>,
    %116 = vector.extract_strided_slice %3 {offsets = [0, 24], sizes = [16, 8], strides = [1, 1]} : vector<16x32xbf16> to vector<16x8xbf16>
    %117 = vector.extract_strided_slice %6 {offsets = [0, 24], sizes = [16, 8], strides = [1, 1]} : vector<16x32xbf16> to vector<16x8xbf16>
    %cst_62 = arith.constant dense<0.000000e+00> : vector<16x16xf32>
    %118 = tpu.matmul %116, %117, %cst_62 {dimension_numbers = #tpu.dot_dimension_numbers<[1], [1], [0], [0], [0, 0, 1, 0], [], []>} : vector<16x8xbf16>, vector<16x8xbf16>, vector<16x16xf32> -> vector<16x16xf32>
    %119 = vector.extract_strided_slice %13 {offsets = [0, 3, 0], sizes = [16, 1, 16], strides = [1, 1, 1]} : vector<16x4x16xf32> to vector<16x1x16xf32>
    %120 = vector.shape_cast %119 : vector<16x1x16xf32> to vector<16x16xf32>
    %121 = arith.addf %118, %120 : vector<16x16xf32>
    %cst_63 = arith.constant -1.000000e+30 : f32
    %122 = vector.broadcast %cst_63 : f32 to vector<16x16xf32>
    %123 = arith.select %19, %121, %122 : vector<16x16xi1>, vector<16x16xf32>
    %c0_64 = arith.constant 0 : index
    %c3 = arith.constant 3 : index
    %124 = vector.load %arg14[%c0_64, %c3] : memref<16x4xf32, #tpu.memory_space<vmem>>, vector<16x1xf32>
    %cst_65 = arith.constant dense<0xFF800000> : vector<16xf32>
    %125 = vector.multi_reduction <maximumf>, %123, %cst_65 [1] : vector<16x16xf32> to vector<16xf32>
    %126 = vector.shape_cast %125 : vector<16xf32> to vector<16x1xf32>
    %127 = arith.maximumf %124, %126 : vector<16x1xf32>
    %128 = arith.subf %124, %127 : vector<16x1xf32>
    %129 = math.exp %128 : vector<16x1xf32>
    %130 = vector.broadcast %127 : vector<16x1xf32> to vector<16x16xf32>
    %131 = arith.subf %123, %130 : vector<16x16xf32>
    %132 = math.exp %131 : vector<16x16xf32>
    %c0_66 = arith.constant 0 : index
    %c3_67 = arith.constant 3 : index
    %133 = vector.load %arg15[%c0_66, %c3_67] : memref<16x4xf32, #tpu.memory_space<vmem>>, vector<16x1xf32>
    %134 = arith.mulf %129, %133 : vector<16x1xf32>
    %cst_68 = arith.constant dense<0.000000e+00> : vector<16xf32>
    %135 = vector.multi_reduction <add>, %132, %cst_68 [1] : vector<16x16xf32> to vector<16xf32>
    %136 = vector.shape_cast %135 : vector<16xf32> to vector<16x1xf32>
    %137 = arith.addf %134, %136 : vector<16x1xf32>
    %c0_69 = arith.constant 0 : index
    %c3_70 = arith.constant 3 : index
    %138 = vector.load %arg15[%c0_69, %c3_70] : memref<16x4xf32, #tpu.memory_space<vmem>>, vector<16x1xf32>
    tpu.vector_store %arg15[%c0_69, %c3_70], %137 {strides = array<i32>} : memref<16x4xf32, #tpu.memory_space<vmem>>, vector<16x1xf32>,
    %c0_71 = arith.constant 0 : index
    %c24 = arith.constant 24 : index
    %139 = vector.load %arg16[%c0_71, %c24] : memref<16x32xf32, #tpu.memory_space<vmem>>, vector<16x8xf32>
    %140 = vector.broadcast %129 : vector<16x1xf32> to vector<16x8xf32>
    %141 = arith.mulf %140, %139 : vector<16x8xf32>
    %142 = arith.truncf %132 : vector<16x16xf32> to vector<16x16xbf16>
    %143 = vector.extract_strided_slice %9 {offsets = [0, 24], sizes = [16, 8], strides = [1, 1]} : vector<16x32xbf16> to vector<16x8xbf16>
    %cst_72 = arith.constant dense<0.000000e+00> : vector<16x8xf32>
    %144 = tpu.matmul %142, %143, %cst_72 {dimension_numbers = #tpu.dot_dimension_numbers<[1], [0], [0], [1], [0, 0, 1, 1], [], []>} : vector<16x16xbf16>, vector<16x8xbf16>, vector<16x8xf32> -> vector<16x8xf32>
    %145 = arith.addf %141, %144 : vector<16x8xf32>
    %c0_73 = arith.constant 0 : index
    %c24_74 = arith.constant 24 : index
    %146 = vector.load %arg16[%c0_73, %c24_74] : memref<16x32xf32, #tpu.memory_space<vmem>>, vector<16x8xf32>
    tpu.vector_store %arg16[%c0_73, %c24_74], %145 {strides = array<i32>} : memref<16x32xf32, #tpu.memory_space<vmem>>, vector<16x8xf32>,
    %c0_75 = arith.constant 0 : index
    %c3_76 = arith.constant 3 : index
    %147 = vector.load %arg14[%c0_75, %c3_76] : memref<16x4xf32, #tpu.memory_space<vmem>>, vector<16x1xf32>
    tpu.vector_store %arg14[%c0_75, %c3_76], %127 {strides = array<i32>} : memref<16x4xf32, #tpu.memory_space<vmem>>, vector<16x1xf32>,
    %c0_i32_77 = arith.constant 0 : i32
    %148 = arith.cmpi eq, %arg2, %c0_i32_77 : i32
    %149 = arith.extui %148 : i1 to i32
    %c0_i32_78 = arith.constant 0 : i32
    %150 = arith.cmpi ne, %149, %c0_i32_78 : i32
    scf.if %150 {
      %c0_79 = arith.constant 0 : index
      %c0_80 = arith.constant 0 : index
      %151 = vector.load %arg15[%c0_79, %c0_80] : memref<16x4xf32, #tpu.memory_space<vmem>>, vector<16x4xf32>
      %152 = tpu.reciprocal %151 {approx = true} : vector<16x4xf32> -> vector<16x4xf32>
      %c0_81 = arith.constant 0 : index
      %c0_82 = arith.constant 0 : index
      %153 = vector.load %arg16[%c0_81, %c0_82] : memref<16x32xf32, #tpu.memory_space<vmem>>, vector<16x32xf32>
      %154 = vector.shape_cast %153 : vector<16x32xf32> to vector<16x4x8xf32>
      %155 = vector.shape_cast %152 : vector<16x4xf32> to vector<16x4x1xf32>
      %156 = vector.broadcast %155 : vector<16x4x1xf32> to vector<16x4x8xf32>
      %157 = arith.mulf %154, %156 : vector<16x4x8xf32>
      %158 = vector.shape_cast %157 : vector<16x4x8xf32> to vector<16x32xf32>
      %159 = arith.truncf %158 : vector<16x32xf32> to vector<16x32xbf16>
      %c0_83 = arith.constant 0 : index
      %c0_84 = arith.constant 0 : index
      %160 = vector.load %arg9[%c0_83, %c0_84] : memref<32x32xf32, #tpu.memory_space<vmem>>, vector<32x32xf32>
      %161 = arith.truncf %160 : vector<32x32xf32> to vector<32x32xbf16>
      %cst_85 = arith.constant dense<0.000000e+00> : vector<16x32xf32>
      %162 = tpu.matmul %159, %161, %cst_85 {dimension_numbers = #tpu.dot_dimension_numbers<[1], [0], [0], [1], [0, 0, 1, 1], [], []>} : vector<16x32xbf16>, vector<32x32xbf16>, vector<16x32xf32> -> vector<16x32xf32>
      %c0_86 = arith.constant 0 : index
      %c0_87 = arith.constant 0 : index
      %163 = vector.load %arg10[%c0_86, %c0_87] : memref<1x32xf32, #tpu.memory_space<vmem>>, vector<1x32xf32>
      %164 = vector.broadcast %163 : vector<1x32xf32> to vector<16x32xf32>
      %165 = arith.addf %162, %164 : vector<16x32xf32>
      %c0_88 = arith.constant 0 : index
      %c0_89 = arith.constant 0 : index
      %c0_90 = arith.constant 0 : index
      %166 = vector.load %arg3[%c0_88, %c0_89, %c0_90] : memref<1x16x32xf32, #tpu.memory_space<vmem>>, vector<1x16x32xf32>
      %167 = vector.shape_cast %166 : vector<1x16x32xf32> to vector<16x32xf32>
      %168 = arith.addf %165, %167 : vector<16x32xf32>
      %cst_91 = arith.constant dense<0.000000e+00> : vector<16xf32>
      %169 = vector.multi_reduction <add>, %168, %cst_91 [1] : vector<16x32xf32> to vector<16xf32>
      %170 = vector.shape_cast %169 : vector<16xf32> to vector<16x1xf32>
      %cst_92 = arith.constant 3.200000e+01 : f32
      %171 = vector.broadcast %cst_92 : f32 to vector<16x1xf32>
      %172 = arith.divf %170, %171 : vector<16x1xf32>
      %173 = vector.broadcast %172 : vector<16x1xf32> to vector<16x32xf32>
      %174 = arith.subf %168, %173 : vector<16x32xf32>
      %175 = arith.mulf %174, %174 : vector<16x32xf32>
      %cst_93 = arith.constant dense<0.000000e+00> : vector<16xf32>
      %176 = vector.multi_reduction <add>, %175, %cst_93 [1] : vector<16x32xf32> to vector<16xf32>
      %177 = vector.shape_cast %176 : vector<16xf32> to vector<16x1xf32>
      %cst_94 = arith.constant 3.200000e+01 : f32
      %178 = vector.broadcast %cst_94 : f32 to vector<16x1xf32>
      %179 = arith.divf %177, %178 : vector<16x1xf32>
      %180 = vector.broadcast %172 : vector<16x1xf32> to vector<16x32xf32>
      %181 = arith.subf %168, %180 : vector<16x32xf32>
      %cst_95 = arith.constant 9.99999974E-6 : f32
      %182 = vector.broadcast %cst_95 : f32 to vector<16x1xf32>
      %183 = arith.addf %179, %182 : vector<16x1xf32>
      %184 = math.rsqrt %183 : vector<16x1xf32>
      %185 = vector.broadcast %184 : vector<16x1xf32> to vector<16x32xf32>
      %186 = arith.mulf %181, %185 : vector<16x32xf32>
      %c0_96 = arith.constant 0 : index
      %c0_97 = arith.constant 0 : index
      %187 = vector.load %arg11[%c0_96, %c0_97] : memref<1x32xf32, #tpu.memory_space<vmem>>, vector<1x32xf32>
      %188 = vector.broadcast %187 : vector<1x32xf32> to vector<16x32xf32>
      %189 = arith.mulf %186, %188 : vector<16x32xf32>
      %c0_98 = arith.constant 0 : index
      %c0_99 = arith.constant 0 : index
      %190 = vector.load %arg12[%c0_98, %c0_99] : memref<1x32xf32, #tpu.memory_space<vmem>>, vector<1x32xf32>
      %191 = vector.broadcast %190 : vector<1x32xf32> to vector<16x32xf32>
      %192 = arith.addf %189, %191 : vector<16x32xf32>
      %c0_100 = arith.constant 0 : index
      %c0_101 = arith.constant 0 : index
      %c0_102 = arith.constant 0 : index
      %193 = vector.load %arg13[%c0_100, %c0_101, %c0_102] : memref<1x16x32xf32, #tpu.memory_space<vmem>>, vector<1x16x32xf32>
      %194 = vector.shape_cast %193 : vector<1x16x32xf32> to vector<16x32xf32>
      %195 = vector.shape_cast %192 : vector<16x32xf32> to vector<1x16x32xf32>
      tpu.vector_store %arg13[%c0_100, %c0_101, %c0_102], %195 {strides = array<i32>} : memref<1x16x32xf32, #tpu.memory_space<vmem>>, vector<1x16x32xf32>,
    } else {
    }
    return
  }
  func.func @transform_0(%arg0: i32, %arg1: i32, %arg2: i32) -> (i32, i32, i32) {
    %c0_i32 = arith.constant 0 : i32
    %c0_i32_0 = arith.constant 0 : i32
    return %arg0, %arg1, %c0_i32 : i32, i32, i32
  }
  func.func @transform_1(%arg0: i32, %arg1: i32, %arg2: i32) -> (i32, i32, i32) {
    %c0_i32 = arith.constant 0 : i32
    %c0_i32_0 = arith.constant 0 : i32
    return %arg0, %arg1, %c0_i32 : i32, i32, i32
  }
  func.func @transform_2(%arg0: i32, %arg1: i32, %arg2: i32) -> (i32, i32, i32) {
    %c0_i32 = arith.constant 0 : i32
    %c0_i32_0 = arith.constant 0 : i32
    return %arg0, %arg2, %c0_i32 : i32, i32, i32
  }
  func.func @transform_3(%arg0: i32, %arg1: i32, %arg2: i32) -> (i32, i32, i32) {
    %c0_i32 = arith.constant 0 : i32
    %c0_i32_0 = arith.constant 0 : i32
    return %arg0, %arg2, %c0_i32 : i32, i32, i32
  }
  func.func @transform_4(%arg0: i32, %arg1: i32, %arg2: i32) -> (i32, i32, i32, i32) {
    %c0_i32 = arith.constant 0 : i32
    %c0_i32_0 = arith.constant 0 : i32
    return %arg0, %arg1, %arg2, %c0_i32 : i32, i32, i32, i32
  }
  func.func @transform_5(%arg0: i32, %arg1: i32, %arg2: i32) -> (i32, i32) {
    %c0_i32 = arith.constant 0 : i32
    %c0_i32_0 = arith.constant 0 : i32
    %c0_i32_1 = arith.constant 0 : i32
    return %c0_i32, %c0_i32_0 : i32, i32
  }
  func.func @transform_6(%arg0: i32, %arg1: i32, %arg2: i32) -> (i32, i32) {
    %c0_i32 = arith.constant 0 : i32
    %c0_i32_0 = arith.constant 0 : i32
    %c0_i32_1 = arith.constant 0 : i32
    return %c0_i32, %c0_i32_0 : i32, i32
  }
  func.func @transform_7(%arg0: i32, %arg1: i32, %arg2: i32) -> (i32, i32) {
    %c0_i32 = arith.constant 0 : i32
    %c0_i32_0 = arith.constant 0 : i32
    %c0_i32_1 = arith.constant 0 : i32
    return %c0_i32, %c0_i32_0 : i32, i32
  }
  func.func @transform_8(%arg0: i32, %arg1: i32, %arg2: i32) -> (i32, i32) {
    %c0_i32 = arith.constant 0 : i32
    %c0_i32_0 = arith.constant 0 : i32
    %c0_i32_1 = arith.constant 0 : i32
    return %c0_i32, %c0_i32_0 : i32, i32
  }
  func.func @transform_9(%arg0: i32, %arg1: i32, %arg2: i32) -> (i32, i32) {
    %c0_i32 = arith.constant 0 : i32
    %c0_i32_0 = arith.constant 0 : i32
    %c0_i32_1 = arith.constant 0 : i32
    return %c0_i32, %c0_i32_0 : i32, i32
  }
  func.func @transform_10(%arg0: i32, %arg1: i32, %arg2: i32) -> (i32, i32, i32) {
    %c0_i32 = arith.constant 0 : i32
    %c0_i32_0 = arith.constant 0 : i32
    return %arg0, %arg1, %c0_i32 : i32, i32, i32
  }
}

module attributes {stable_mosaic.version = 11 : i64} {
  func.func @_ffn_ln_kernel(%arg0: i32, %arg1: memref<16x32xf32, #tpu.memory_space<vmem>>, %arg2: memref<32x64xf32, #tpu.memory_space<vmem>>, %arg3: memref<1x64xf32, #tpu.memory_space<vmem>>, %arg4: memref<64x32xf32, #tpu.memory_space<vmem>>, %arg5: memref<1x32xf32, #tpu.memory_space<vmem>>, %arg6: memref<1x32xf32, #tpu.memory_space<vmem>>, %arg7: memref<1x32xf32, #tpu.memory_space<vmem>>, %arg8: memref<16x32xf32, #tpu.memory_space<vmem>>) attributes {dimension_semantics = [#tpu.dimension_semantics<parallel>], iteration_bounds = array<i64: 1>, scalar_prefetch = 0 : i64, scratch_operands = 0 : i64, tpu.core_type = #tpu.core_type<tc>, window_params = [{transform_indices = @transform_0, window_bounds = array<i64: 16, 32>}, {pipeline_mode = #tpu.pipeline_mode<synchronous>, transform_indices = @transform_1, window_bounds = array<i64: 32, 64>}, {pipeline_mode = #tpu.pipeline_mode<synchronous>, transform_indices = @transform_2, window_bounds = array<i64: 1, 64>}, {pipeline_mode = #tpu.pipeline_mode<synchronous>, transform_indices = @transform_3, window_bounds = array<i64: 64, 32>}, {pipeline_mode = #tpu.pipeline_mode<synchronous>, transform_indices = @transform_4, window_bounds = array<i64: 1, 32>}, {pipeline_mode = #tpu.pipeline_mode<synchronous>, transform_indices = @transform_5, window_bounds = array<i64: 1, 32>}, {pipeline_mode = #tpu.pipeline_mode<synchronous>, transform_indices = @transform_6, window_bounds = array<i64: 1, 32>}, {transform_indices = @transform_7, window_bounds = array<i64: 16, 32>}]} {
    %c0 = arith.constant 0 : index
    %c0_0 = arith.constant 0 : index
    %0 = vector.load %arg1[%c0, %c0_0] : memref<16x32xf32, #tpu.memory_space<vmem>>, vector<16x32xf32>
    %1 = arith.truncf %0 : vector<16x32xf32> to vector<16x32xbf16>
    %c0_1 = arith.constant 0 : index
    %c0_2 = arith.constant 0 : index
    %2 = vector.load %arg2[%c0_1, %c0_2] : memref<32x64xf32, #tpu.memory_space<vmem>>, vector<32x64xf32>
    %3 = arith.truncf %2 : vector<32x64xf32> to vector<32x64xbf16>
    %cst = arith.constant dense<0.000000e+00> : vector<16x64xf32>
    %4 = tpu.matmul %1, %3, %cst {dimension_numbers = #tpu.dot_dimension_numbers<[1], [0], [0], [1], [0, 0, 1, 1], [], []>} : vector<16x32xbf16>, vector<32x64xbf16>, vector<16x64xf32> -> vector<16x64xf32>
    %c0_3 = arith.constant 0 : index
    %c0_4 = arith.constant 0 : index
    %5 = vector.load %arg3[%c0_3, %c0_4] : memref<1x64xf32, #tpu.memory_space<vmem>>, vector<1x64xf32>
    %6 = vector.broadcast %5 : vector<1x64xf32> to vector<16x64xf32>
    %7 = arith.addf %4, %6 : vector<16x64xf32>
    %cst_5 = arith.constant 0.000000e+00 : f32
    %8 = vector.broadcast %cst_5 : f32 to vector<16x64xf32>
    %9 = arith.maximumf %7, %8 : vector<16x64xf32>
    %10 = arith.truncf %9 : vector<16x64xf32> to vector<16x64xbf16>
    %c0_6 = arith.constant 0 : index
    %c0_7 = arith.constant 0 : index
    %11 = vector.load %arg4[%c0_6, %c0_7] : memref<64x32xf32, #tpu.memory_space<vmem>>, vector<64x32xf32>
    %12 = arith.truncf %11 : vector<64x32xf32> to vector<64x32xbf16>
    %cst_8 = arith.constant dense<0.000000e+00> : vector<16x32xf32>
    %13 = tpu.matmul %10, %12, %cst_8 {dimension_numbers = #tpu.dot_dimension_numbers<[1], [0], [0], [1], [0, 0, 1, 1], [], []>} : vector<16x64xbf16>, vector<64x32xbf16>, vector<16x32xf32> -> vector<16x32xf32>
    %c0_9 = arith.constant 0 : index
    %c0_10 = arith.constant 0 : index
    %14 = vector.load %arg5[%c0_9, %c0_10] : memref<1x32xf32, #tpu.memory_space<vmem>>, vector<1x32xf32>
    %15 = vector.broadcast %14 : vector<1x32xf32> to vector<16x32xf32>
    %16 = arith.addf %13, %15 : vector<16x32xf32>
    %17 = arith.addf %0, %16 : vector<16x32xf32>
    %cst_11 = arith.constant dense<0.000000e+00> : vector<16xf32>
    %18 = vector.multi_reduction <add>, %17, %cst_11 [1] : vector<16x32xf32> to vector<16xf32>
    %19 = vector.shape_cast %18 : vector<16xf32> to vector<16x1xf32>
    %cst_12 = arith.constant 3.200000e+01 : f32
    %20 = vector.broadcast %cst_12 : f32 to vector<16x1xf32>
    %21 = arith.divf %19, %20 : vector<16x1xf32>
    %22 = vector.broadcast %21 : vector<16x1xf32> to vector<16x32xf32>
    %23 = arith.subf %17, %22 : vector<16x32xf32>
    %24 = arith.mulf %23, %23 : vector<16x32xf32>
    %cst_13 = arith.constant dense<0.000000e+00> : vector<16xf32>
    %25 = vector.multi_reduction <add>, %24, %cst_13 [1] : vector<16x32xf32> to vector<16xf32>
    %26 = vector.shape_cast %25 : vector<16xf32> to vector<16x1xf32>
    %cst_14 = arith.constant 3.200000e+01 : f32
    %27 = vector.broadcast %cst_14 : f32 to vector<16x1xf32>
    %28 = arith.divf %26, %27 : vector<16x1xf32>
    %29 = vector.broadcast %21 : vector<16x1xf32> to vector<16x32xf32>
    %30 = arith.subf %17, %29 : vector<16x32xf32>
    %cst_15 = arith.constant 9.99999974E-6 : f32
    %31 = vector.broadcast %cst_15 : f32 to vector<16x1xf32>
    %32 = arith.addf %28, %31 : vector<16x1xf32>
    %33 = math.rsqrt %32 : vector<16x1xf32>
    %34 = vector.broadcast %33 : vector<16x1xf32> to vector<16x32xf32>
    %35 = arith.mulf %30, %34 : vector<16x32xf32>
    %c0_16 = arith.constant 0 : index
    %c0_17 = arith.constant 0 : index
    %36 = vector.load %arg6[%c0_16, %c0_17] : memref<1x32xf32, #tpu.memory_space<vmem>>, vector<1x32xf32>
    %37 = vector.broadcast %36 : vector<1x32xf32> to vector<16x32xf32>
    %38 = arith.mulf %35, %37 : vector<16x32xf32>
    %c0_18 = arith.constant 0 : index
    %c0_19 = arith.constant 0 : index
    %39 = vector.load %arg7[%c0_18, %c0_19] : memref<1x32xf32, #tpu.memory_space<vmem>>, vector<1x32xf32>
    %40 = vector.broadcast %39 : vector<1x32xf32> to vector<16x32xf32>
    %41 = arith.addf %38, %40 : vector<16x32xf32>
    %c0_20 = arith.constant 0 : index
    %c0_21 = arith.constant 0 : index
    %42 = vector.load %arg8[%c0_20, %c0_21] : memref<16x32xf32, #tpu.memory_space<vmem>>, vector<16x32xf32>
    tpu.vector_store %arg8[%c0_20, %c0_21], %41 {strides = array<i32>} : memref<16x32xf32, #tpu.memory_space<vmem>>, vector<16x32xf32>,
    return
  }
  func.func @transform_0(%arg0: i32) -> (i32, i32) {
    %c0_i32 = arith.constant 0 : i32
    %c0_i32_0 = arith.constant 0 : i32
    return %arg0, %c0_i32 : i32, i32
  }
  func.func @transform_1(%arg0: i32) -> (i32, i32) {
    %c0_i32 = arith.constant 0 : i32
    %c0_i32_0 = arith.constant 0 : i32
    %c0_i32_1 = arith.constant 0 : i32
    return %c0_i32, %c0_i32_0 : i32, i32
  }
  func.func @transform_2(%arg0: i32) -> (i32, i32) {
    %c0_i32 = arith.constant 0 : i32
    %c0_i32_0 = arith.constant 0 : i32
    %c0_i32_1 = arith.constant 0 : i32
    return %c0_i32, %c0_i32_0 : i32, i32
  }
  func.func @transform_3(%arg0: i32) -> (i32, i32) {
    %c0_i32 = arith.constant 0 : i32
    %c0_i32_0 = arith.constant 0 : i32
    %c0_i32_1 = arith.constant 0 : i32
    return %c0_i32, %c0_i32_0 : i32, i32
  }
  func.func @transform_4(%arg0: i32) -> (i32, i32) {
    %c0_i32 = arith.constant 0 : i32
    %c0_i32_0 = arith.constant 0 : i32
    %c0_i32_1 = arith.constant 0 : i32
    return %c0_i32, %c0_i32_0 : i32, i32
  }
  func.func @transform_5(%arg0: i32) -> (i32, i32) {
    %c0_i32 = arith.constant 0 : i32
    %c0_i32_0 = arith.constant 0 : i32
    %c0_i32_1 = arith.constant 0 : i32
    return %c0_i32, %c0_i32_0 : i32, i32
  }
  func.func @transform_6(%arg0: i32) -> (i32, i32) {
    %c0_i32 = arith.constant 0 : i32
    %c0_i32_0 = arith.constant 0 : i32
    %c0_i32_1 = arith.constant 0 : i32
    return %c0_i32, %c0_i32_0 : i32, i32
  }
  func.func @transform_7(%arg0: i32) -> (i32, i32) {
    %c0_i32 = arith.constant 0 : i32
    %c0_i32_0 = arith.constant 0 : i32
    return %arg0, %c0_i32 : i32, i32
  }
}

module attributes {stable_mosaic.version = 11 : i64} {
  func.func @_linear_kernel(%arg0: i32, %arg1: memref<16x32xf32, #tpu.memory_space<vmem>>, %arg2: memref<32x64xf32, #tpu.memory_space<vmem>>, %arg3: memref<1x64xf32, #tpu.memory_space<vmem>>, %arg4: memref<16x64xf32, #tpu.memory_space<vmem>>) attributes {dimension_semantics = [#tpu.dimension_semantics<parallel>], iteration_bounds = array<i64: 1>, scalar_prefetch = 0 : i64, scratch_operands = 0 : i64, tpu.core_type = #tpu.core_type<tc>, window_params = [{transform_indices = @transform_0, window_bounds = array<i64: 16, 32>}, {pipeline_mode = #tpu.pipeline_mode<synchronous>, transform_indices = @transform_1, window_bounds = array<i64: 32, 64>}, {pipeline_mode = #tpu.pipeline_mode<synchronous>, transform_indices = @transform_2, window_bounds = array<i64: 1, 64>}, {transform_indices = @transform_3, window_bounds = array<i64: 16, 64>}]} {
    %c0 = arith.constant 0 : index
    %c0_0 = arith.constant 0 : index
    %0 = vector.load %arg1[%c0, %c0_0] : memref<16x32xf32, #tpu.memory_space<vmem>>, vector<16x32xf32>
    %1 = arith.truncf %0 : vector<16x32xf32> to vector<16x32xbf16>
    %c0_1 = arith.constant 0 : index
    %c0_2 = arith.constant 0 : index
    %2 = vector.load %arg2[%c0_1, %c0_2] : memref<32x64xf32, #tpu.memory_space<vmem>>, vector<32x64xf32>
    %3 = arith.truncf %2 : vector<32x64xf32> to vector<32x64xbf16>
    %cst = arith.constant dense<0.000000e+00> : vector<16x64xf32>
    %4 = tpu.matmul %1, %3, %cst {dimension_numbers = #tpu.dot_dimension_numbers<[1], [0], [0], [1], [0, 0, 1, 1], [], []>} : vector<16x32xbf16>, vector<32x64xbf16>, vector<16x64xf32> -> vector<16x64xf32>
    %c0_3 = arith.constant 0 : index
    %c0_4 = arith.constant 0 : index
    %5 = vector.load %arg3[%c0_3, %c0_4] : memref<1x64xf32, #tpu.memory_space<vmem>>, vector<1x64xf32>
    %6 = vector.broadcast %5 : vector<1x64xf32> to vector<16x64xf32>
    %7 = arith.addf %4, %6 : vector<16x64xf32>
    %c0_5 = arith.constant 0 : index
    %c0_6 = arith.constant 0 : index
    %8 = vector.load %arg4[%c0_5, %c0_6] : memref<16x64xf32, #tpu.memory_space<vmem>>, vector<16x64xf32>
    tpu.vector_store %arg4[%c0_5, %c0_6], %7 {strides = array<i32>} : memref<16x64xf32, #tpu.memory_space<vmem>>, vector<16x64xf32>,
    return
  }
  func.func @transform_0(%arg0: i32) -> (i32, i32) {
    %c0_i32 = arith.constant 0 : i32
    %c0_i32_0 = arith.constant 0 : i32
    return %arg0, %c0_i32 : i32, i32
  }
  func.func @transform_1(%arg0: i32) -> (i32, i32) {
    %c0_i32 = arith.constant 0 : i32
    %c0_i32_0 = arith.constant 0 : i32
    %c0_i32_1 = arith.constant 0 : i32
    return %c0_i32, %c0_i32_0 : i32, i32
  }
  func.func @transform_2(%arg0: i32) -> (i32, i32) {
    %c0_i32 = arith.constant 0 : i32
    %c0_i32_0 = arith.constant 0 : i32
    %c0_i32_1 = arith.constant 0 : i32
    return %c0_i32, %c0_i32_0 : i32, i32
  }
  func.func @transform_3(%arg0: i32) -> (i32, i32) {
    %c0_i32 = arith.constant 0 : i32
    %c0_i32_0 = arith.constant 0 : i32
    return %arg0, %c0_i32 : i32, i32
  }
}

module attributes {stable_mosaic.version = 11 : i64} {
  func.func @_fused_attn_kernel(%arg0: i32, %arg1: i32, %arg2: i32, %arg3: memref<1x16x32xf32, #tpu.memory_space<vmem>>, %arg4: memref<1x16x32xf32, #tpu.memory_space<vmem>>, %arg5: memref<1x16x32xf32, #tpu.memory_space<vmem>>, %arg6: memref<1x16x32xf32, #tpu.memory_space<vmem>>, %arg7: memref<1x16x16x32xbf16, #tpu.memory_space<vmem>>, %arg8: memref<32x128xbf16, #tpu.memory_space<vmem>>, %arg9: memref<32x32xf32, #tpu.memory_space<vmem>>, %arg10: memref<1x32xf32, #tpu.memory_space<vmem>>, %arg11: memref<1x32xf32, #tpu.memory_space<vmem>>, %arg12: memref<1x32xf32, #tpu.memory_space<vmem>>, %arg13: memref<1x16x32xf32, #tpu.memory_space<vmem>>, %arg14: memref<16x4xf32, #tpu.memory_space<vmem>>, %arg15: memref<16x4xf32, #tpu.memory_space<vmem>>, %arg16: memref<16x32xf32, #tpu.memory_space<vmem>>, %arg17: memref<16x32xbf16, #tpu.memory_space<vmem>>, %arg18: memref<16x4x32xbf16, #tpu.memory_space<vmem>>) attributes {dimension_semantics = [#tpu.dimension_semantics<parallel>, #tpu.dimension_semantics<parallel>, #tpu.dimension_semantics<arbitrary>], iteration_bounds = array<i64: 1, 1, 1>, scalar_prefetch = 0 : i64, scratch_operands = 5 : i64, tpu.core_type = #tpu.core_type<tc>, window_params = [{transform_indices = @transform_0, window_bounds = array<i64: 1, 16, 32>}, {transform_indices = @transform_1, window_bounds = array<i64: 1, 16, 32>}, {transform_indices = @transform_2, window_bounds = array<i64: 1, 16, 32>}, {transform_indices = @transform_3, window_bounds = array<i64: 1, 16, 32>}, {transform_indices = @transform_4, window_bounds = array<i64: 1, 16, 16, 32>}, {pipeline_mode = #tpu.pipeline_mode<synchronous>, transform_indices = @transform_5, window_bounds = array<i64: 32, 128>}, {pipeline_mode = #tpu.pipeline_mode<synchronous>, transform_indices = @transform_6, window_bounds = array<i64: 32, 32>}, {pipeline_mode = #tpu.pipeline_mode<synchronous>, transform_indices = @transform_7, window_bounds = array<i64: 1, 32>}, {pipeline_mode = #tpu.pipeline_mode<synchronous>, transform_indices = @transform_8, window_bounds = array<i64: 1, 32>}, {pipeline_mode = #tpu.pipeline_mode<synchronous>, transform_indices = @transform_9, window_bounds = array<i64: 1, 32>}, {transform_indices = @transform_10, window_bounds = array<i64: 1, 16, 32>}]} {
    %c0_i32 = arith.constant 0 : i32
    %0 = arith.cmpi eq, %arg2, %c0_i32 : i32
    %1 = arith.extui %0 : i1 to i32
    %c0_i32_0 = arith.constant 0 : i32
    %2 = arith.cmpi ne, %1, %c0_i32_0 : i32
    scf.if %2 {
      %cst_75 = arith.constant 0xFF800000 : f32
      %137 = vector.broadcast %cst_75 : f32 to vector<16x4xf32>
      %c0_76 = arith.constant 0 : index
      %c0_77 = arith.constant 0 : index
      %138 = vector.load %arg14[%c0_76, %c0_77] : memref<16x4xf32, #tpu.memory_space<vmem>>, vector<16x4xf32>
      tpu.vector_store %arg14[%c0_76, %c0_77], %137 {strides = array<i32>} : memref<16x4xf32, #tpu.memory_space<vmem>>, vector<16x4xf32>,
      %cst_78 = arith.constant 0.000000e+00 : f32
      %139 = vector.broadcast %cst_78 : f32 to vector<16x4xf32>
      %c0_79 = arith.constant 0 : index
      %c0_80 = arith.constant 0 : index
      %140 = vector.load %arg15[%c0_79, %c0_80] : memref<16x4xf32, #tpu.memory_space<vmem>>, vector<16x4xf32>
      tpu.vector_store %arg15[%c0_79, %c0_80], %139 {strides = array<i32>} : memref<16x4xf32, #tpu.memory_space<vmem>>, vector<16x4xf32>,
      %cst_81 = arith.constant 0.000000e+00 : f32
      %141 = vector.broadcast %cst_81 : f32 to vector<16x32xf32>
      %c0_82 = arith.constant 0 : index
      %c0_83 = arith.constant 0 : index
      %142 = vector.load %arg16[%c0_82, %c0_83] : memref<16x32xf32, #tpu.memory_space<vmem>>, vector<16x32xf32>
      tpu.vector_store %arg16[%c0_82, %c0_83], %141 {strides = array<i32>} : memref<16x32xf32, #tpu.memory_space<vmem>>, vector<16x32xf32>,
      %c0_84 = arith.constant 0 : index
      %c0_85 = arith.constant 0 : index
      %c0_86 = arith.constant 0 : index
      %143 = vector.load %arg4[%c0_84, %c0_85, %c0_86] : memref<1x16x32xf32, #tpu.memory_space<vmem>>, vector<1x16x32xf32>
      %144 = vector.shape_cast %143 : vector<1x16x32xf32> to vector<16x32xf32>
      %cst_87 = arith.constant 0.353553385 : f32
      %145 = vector.broadcast %cst_87 : f32 to vector<16x32xf32>
      %146 = arith.mulf %144, %145 : vector<16x32xf32>
      %147 = arith.truncf %146 : vector<16x32xf32> to vector<16x32xbf16>
      %c0_88 = arith.constant 0 : index
      %c0_89 = arith.constant 0 : index
      %148 = vector.load %arg17[%c0_88, %c0_89] : memref<16x32xbf16, #tpu.memory_space<vmem>>, vector<16x32xbf16>
      tpu.vector_store %arg17[%c0_88, %c0_89], %147 {strides = array<i32>} : memref<16x32xbf16, #tpu.memory_space<vmem>>, vector<16x32xbf16>,
      %c0_90 = arith.constant 0 : index
      %c0_91 = arith.constant 0 : index
      %149 = vector.load %arg8[%c0_90, %c0_91] : memref<32x128xbf16, #tpu.memory_space<vmem>>, vector<32x128xbf16>
      %cst_92 = arith.constant dense<0.000000e+00> : vector<16x128xf32>
      %150 = tpu.matmul %147, %149, %cst_92 {dimension_numbers = #tpu.dot_dimension_numbers<[1], [0], [0], [1], [0, 0, 1, 1], [], []>} : vector<16x32xbf16>, vector<32x128xbf16>, vector<16x128xf32> -> vector<16x128xf32>
      %151 = vector.shape_cast %150 : vector<16x128xf32> to vector<16x4x32xf32>
      %152 = arith.truncf %151 : vector<16x4x32xf32> to vector<16x4x32xbf16>
      %c0_93 = arith.constant 0 : index
      %c0_94 = arith.constant 0 : index
      %c0_95 = arith.constant 0 : index
      %153 = vector.load %arg18[%c0_93, %c0_94, %c0_95] : memref<16x4x32xbf16, #tpu.memory_space<vmem>>, vector<16x4x32xbf16>
      tpu.vector_store %arg18[%c0_93, %c0_94, %c0_95], %152 {strides = array<i32>} : memref<16x4x32xbf16, #tpu.memory_space<vmem>>, vector<16x4x32xbf16>,
    } else {
    }
    %c0 = arith.constant 0 : index
    %c0_1 = arith.constant 0 : index
    %3 = vector.load %arg17[%c0, %c0_1] : memref<16x32xbf16, #tpu.memory_space<vmem>>, vector<16x32xbf16>
    %c0_2 = arith.constant 0 : index
    %c0_3 = arith.constant 0 : index
    %c0_4 = arith.constant 0 : index
    %4 = vector.load %arg5[%c0_2, %c0_3, %c0_4] : memref<1x16x32xf32, #tpu.memory_space<vmem>>, vector<1x16x32xf32>
    %5 = vector.shape_cast %4 : vector<1x16x32xf32> to vector<16x32xf32>
    %6 = arith.truncf %5 : vector<16x32xf32> to vector<16x32xbf16>
    %c0_5 = arith.constant 0 : index
    %c0_6 = arith.constant 0 : index
    %c0_7 = arith.constant 0 : index
    %7 = vector.load %arg6[%c0_5, %c0_6, %c0_7] : memref<1x16x32xf32, #tpu.memory_space<vmem>>, vector<1x16x32xf32>
    %8 = vector.shape_cast %7 : vector<1x16x32xf32> to vector<16x32xf32>
    %9 = arith.truncf %8 : vector<16x32xf32> to vector<16x32xbf16>
    %c0_8 = arith.constant 0 : index
    %c0_9 = arith.constant 0 : index
    %c0_10 = arith.constant 0 : index
    %10 = vector.load %arg18[%c0_8, %c0_9, %c0_10] : memref<16x4x32xbf16, #tpu.memory_space<vmem>>, vector<16x4x32xbf16>
    %c0_11 = arith.constant 0 : index
    %c0_12 = arith.constant 0 : index
    %c0_13 = arith.constant 0 : index
    %c0_14 = arith.constant 0 : index
    %11 = vector.load %arg7[%c0_11, %c0_12, %c0_13, %c0_14] : memref<1x16x16x32xbf16, #tpu.memory_space<vmem>>, vector<1x16x16x32xbf16>
    %12 = vector.shape_cast %11 : vector<1x16x16x32xbf16> to vector<16x16x32xbf16>
    %cst = arith.constant dense<0.000000e+00> : vector<16x4x16xf32>
    %13 = tpu.matmul %10, %12, %cst {dimension_numbers = #tpu.dot_dimension_numbers<[2], [2], [1], [1], [0, 0, 0, 1, 1, 1], [0], [0]>} : vector<16x4x32xbf16>, vector<16x16x32xbf16>, vector<16x4x16xf32> -> vector<16x4x16xf32>
    %14 = vector.extract_strided_slice %3 {offsets = [0, 0], sizes = [16, 8], strides = [1, 1]} : vector<16x32xbf16> to vector<16x8xbf16>
    %15 = vector.extract_strided_slice %6 {offsets = [0, 0], sizes = [16, 8], strides = [1, 1]} : vector<16x32xbf16> to vector<16x8xbf16>
    %cst_15 = arith.constant dense<0.000000e+00> : vector<16x16xf32>
    %16 = tpu.matmul %14, %15, %cst_15 {dimension_numbers = #tpu.dot_dimension_numbers<[1], [1], [0], [0], [0, 0, 1, 0], [], []>} : vector<16x8xbf16>, vector<16x8xbf16>, vector<16x16xf32> -> vector<16x16xf32>
    %17 = vector.extract_strided_slice %13 {offsets = [0, 0, 0], sizes = [16, 1, 16], strides = [1, 1, 1]} : vector<16x4x16xf32> to vector<16x1x16xf32>
    %18 = vector.shape_cast %17 : vector<16x1x16xf32> to vector<16x16xf32>
    %19 = arith.addf %16, %18 : vector<16x16xf32>
    %c0_16 = arith.constant 0 : index
    %c0_17 = arith.constant 0 : index
    %20 = vector.load %arg14[%c0_16, %c0_17] : memref<16x4xf32, #tpu.memory_space<vmem>>, vector<16x1xf32>
    %cst_18 = arith.constant dense<0xFF800000> : vector<16xf32>
    %21 = vector.multi_reduction <maximumf>, %19, %cst_18 [1] : vector<16x16xf32> to vector<16xf32>
    %22 = vector.shape_cast %21 : vector<16xf32> to vector<16x1xf32>
    %23 = arith.maximumf %20, %22 : vector<16x1xf32>
    %24 = arith.subf %20, %23 : vector<16x1xf32>
    %25 = math.exp %24 : vector<16x1xf32>
    %26 = vector.broadcast %23 : vector<16x1xf32> to vector<16x16xf32>
    %27 = arith.subf %19, %26 : vector<16x16xf32>
    %28 = math.exp %27 : vector<16x16xf32>
    %c0_19 = arith.constant 0 : index
    %c0_20 = arith.constant 0 : index
    %29 = vector.load %arg15[%c0_19, %c0_20] : memref<16x4xf32, #tpu.memory_space<vmem>>, vector<16x1xf32>
    %30 = arith.mulf %25, %29 : vector<16x1xf32>
    %cst_21 = arith.constant dense<0.000000e+00> : vector<16xf32>
    %31 = vector.multi_reduction <add>, %28, %cst_21 [1] : vector<16x16xf32> to vector<16xf32>
    %32 = vector.shape_cast %31 : vector<16xf32> to vector<16x1xf32>
    %33 = arith.addf %30, %32 : vector<16x1xf32>
    %c0_22 = arith.constant 0 : index
    %c0_23 = arith.constant 0 : index
    %34 = vector.load %arg15[%c0_22, %c0_23] : memref<16x4xf32, #tpu.memory_space<vmem>>, vector<16x1xf32>
    tpu.vector_store %arg15[%c0_22, %c0_23], %33 {strides = array<i32>} : memref<16x4xf32, #tpu.memory_space<vmem>>, vector<16x1xf32>,
    %c0_24 = arith.constant 0 : index
    %c0_25 = arith.constant 0 : index
    %35 = vector.load %arg16[%c0_24, %c0_25] : memref<16x32xf32, #tpu.memory_space<vmem>>, vector<16x8xf32>
    %36 = vector.broadcast %25 : vector<16x1xf32> to vector<16x8xf32>
    %37 = arith.mulf %36, %35 : vector<16x8xf32>
    %38 = arith.truncf %28 : vector<16x16xf32> to vector<16x16xbf16>
    %39 = vector.extract_strided_slice %9 {offsets = [0, 0], sizes = [16, 8], strides = [1, 1]} : vector<16x32xbf16> to vector<16x8xbf16>
    %cst_26 = arith.constant dense<0.000000e+00> : vector<16x8xf32>
    %40 = tpu.matmul %38, %39, %cst_26 {dimension_numbers = #tpu.dot_dimension_numbers<[1], [0], [0], [1], [0, 0, 1, 1], [], []>} : vector<16x16xbf16>, vector<16x8xbf16>, vector<16x8xf32> -> vector<16x8xf32>
    %41 = arith.addf %37, %40 : vector<16x8xf32>
    %c0_27 = arith.constant 0 : index
    %c0_28 = arith.constant 0 : index
    %42 = vector.load %arg16[%c0_27, %c0_28] : memref<16x32xf32, #tpu.memory_space<vmem>>, vector<16x8xf32>
    tpu.vector_store %arg16[%c0_27, %c0_28], %41 {strides = array<i32>} : memref<16x32xf32, #tpu.memory_space<vmem>>, vector<16x8xf32>,
    %c0_29 = arith.constant 0 : index
    %c0_30 = arith.constant 0 : index
    %43 = vector.load %arg14[%c0_29, %c0_30] : memref<16x4xf32, #tpu.memory_space<vmem>>, vector<16x1xf32>
    tpu.vector_store %arg14[%c0_29, %c0_30], %23 {strides = array<i32>} : memref<16x4xf32, #tpu.memory_space<vmem>>, vector<16x1xf32>,
    %44 = vector.extract_strided_slice %3 {offsets = [0, 8], sizes = [16, 8], strides = [1, 1]} : vector<16x32xbf16> to vector<16x8xbf16>
    %45 = vector.extract_strided_slice %6 {offsets = [0, 8], sizes = [16, 8], strides = [1, 1]} : vector<16x32xbf16> to vector<16x8xbf16>
    %cst_31 = arith.constant dense<0.000000e+00> : vector<16x16xf32>
    %46 = tpu.matmul %44, %45, %cst_31 {dimension_numbers = #tpu.dot_dimension_numbers<[1], [1], [0], [0], [0, 0, 1, 0], [], []>} : vector<16x8xbf16>, vector<16x8xbf16>, vector<16x16xf32> -> vector<16x16xf32>
    %47 = vector.extract_strided_slice %13 {offsets = [0, 1, 0], sizes = [16, 1, 16], strides = [1, 1, 1]} : vector<16x4x16xf32> to vector<16x1x16xf32>
    %48 = vector.shape_cast %47 : vector<16x1x16xf32> to vector<16x16xf32>
    %49 = arith.addf %46, %48 : vector<16x16xf32>
    %c0_32 = arith.constant 0 : index
    %c1 = arith.constant 1 : index
    %50 = vector.load %arg14[%c0_32, %c1] : memref<16x4xf32, #tpu.memory_space<vmem>>, vector<16x1xf32>
    %cst_33 = arith.constant dense<0xFF800000> : vector<16xf32>
    %51 = vector.multi_reduction <maximumf>, %49, %cst_33 [1] : vector<16x16xf32> to vector<16xf32>
    %52 = vector.shape_cast %51 : vector<16xf32> to vector<16x1xf32>
    %53 = arith.maximumf %50, %52 : vector<16x1xf32>
    %54 = arith.subf %50, %53 : vector<16x1xf32>
    %55 = math.exp %54 : vector<16x1xf32>
    %56 = vector.broadcast %53 : vector<16x1xf32> to vector<16x16xf32>
    %57 = arith.subf %49, %56 : vector<16x16xf32>
    %58 = math.exp %57 : vector<16x16xf32>
    %c0_34 = arith.constant 0 : index
    %c1_35 = arith.constant 1 : index
    %59 = vector.load %arg15[%c0_34, %c1_35] : memref<16x4xf32, #tpu.memory_space<vmem>>, vector<16x1xf32>
    %60 = arith.mulf %55, %59 : vector<16x1xf32>
    %cst_36 = arith.constant dense<0.000000e+00> : vector<16xf32>
    %61 = vector.multi_reduction <add>, %58, %cst_36 [1] : vector<16x16xf32> to vector<16xf32>
    %62 = vector.shape_cast %61 : vector<16xf32> to vector<16x1xf32>
    %63 = arith.addf %60, %62 : vector<16x1xf32>
    %c0_37 = arith.constant 0 : index
    %c1_38 = arith.constant 1 : index
    %64 = vector.load %arg15[%c0_37, %c1_38] : memref<16x4xf32, #tpu.memory_space<vmem>>, vector<16x1xf32>
    tpu.vector_store %arg15[%c0_37, %c1_38], %63 {strides = array<i32>} : memref<16x4xf32, #tpu.memory_space<vmem>>, vector<16x1xf32>,
    %c0_39 = arith.constant 0 : index
    %c8 = arith.constant 8 : index
    %65 = vector.load %arg16[%c0_39, %c8] : memref<16x32xf32, #tpu.memory_space<vmem>>, vector<16x8xf32>
    %66 = vector.broadcast %55 : vector<16x1xf32> to vector<16x8xf32>
    %67 = arith.mulf %66, %65 : vector<16x8xf32>
    %68 = arith.truncf %58 : vector<16x16xf32> to vector<16x16xbf16>
    %69 = vector.extract_strided_slice %9 {offsets = [0, 8], sizes = [16, 8], strides = [1, 1]} : vector<16x32xbf16> to vector<16x8xbf16>
    %cst_40 = arith.constant dense<0.000000e+00> : vector<16x8xf32>
    %70 = tpu.matmul %68, %69, %cst_40 {dimension_numbers = #tpu.dot_dimension_numbers<[1], [0], [0], [1], [0, 0, 1, 1], [], []>} : vector<16x16xbf16>, vector<16x8xbf16>, vector<16x8xf32> -> vector<16x8xf32>
    %71 = arith.addf %67, %70 : vector<16x8xf32>
    %c0_41 = arith.constant 0 : index
    %c8_42 = arith.constant 8 : index
    %72 = vector.load %arg16[%c0_41, %c8_42] : memref<16x32xf32, #tpu.memory_space<vmem>>, vector<16x8xf32>
    tpu.vector_store %arg16[%c0_41, %c8_42], %71 {strides = array<i32>} : memref<16x32xf32, #tpu.memory_space<vmem>>, vector<16x8xf32>,
    %c0_43 = arith.constant 0 : index
    %c1_44 = arith.constant 1 : index
    %73 = vector.load %arg14[%c0_43, %c1_44] : memref<16x4xf32, #tpu.memory_space<vmem>>, vector<16x1xf32>
    tpu.vector_store %arg14[%c0_43, %c1_44], %53 {strides = array<i32>} : memref<16x4xf32, #tpu.memory_space<vmem>>, vector<16x1xf32>,
    %74 = vector.extract_strided_slice %3 {offsets = [0, 16], sizes = [16, 8], strides = [1, 1]} : vector<16x32xbf16> to vector<16x8xbf16>
    %75 = vector.extract_strided_slice %6 {offsets = [0, 16], sizes = [16, 8], strides = [1, 1]} : vector<16x32xbf16> to vector<16x8xbf16>
    %cst_45 = arith.constant dense<0.000000e+00> : vector<16x16xf32>
    %76 = tpu.matmul %74, %75, %cst_45 {dimension_numbers = #tpu.dot_dimension_numbers<[1], [1], [0], [0], [0, 0, 1, 0], [], []>} : vector<16x8xbf16>, vector<16x8xbf16>, vector<16x16xf32> -> vector<16x16xf32>
    %77 = vector.extract_strided_slice %13 {offsets = [0, 2, 0], sizes = [16, 1, 16], strides = [1, 1, 1]} : vector<16x4x16xf32> to vector<16x1x16xf32>
    %78 = vector.shape_cast %77 : vector<16x1x16xf32> to vector<16x16xf32>
    %79 = arith.addf %76, %78 : vector<16x16xf32>
    %c0_46 = arith.constant 0 : index
    %c2 = arith.constant 2 : index
    %80 = vector.load %arg14[%c0_46, %c2] : memref<16x4xf32, #tpu.memory_space<vmem>>, vector<16x1xf32>
    %cst_47 = arith.constant dense<0xFF800000> : vector<16xf32>
    %81 = vector.multi_reduction <maximumf>, %79, %cst_47 [1] : vector<16x16xf32> to vector<16xf32>
    %82 = vector.shape_cast %81 : vector<16xf32> to vector<16x1xf32>
    %83 = arith.maximumf %80, %82 : vector<16x1xf32>
    %84 = arith.subf %80, %83 : vector<16x1xf32>
    %85 = math.exp %84 : vector<16x1xf32>
    %86 = vector.broadcast %83 : vector<16x1xf32> to vector<16x16xf32>
    %87 = arith.subf %79, %86 : vector<16x16xf32>
    %88 = math.exp %87 : vector<16x16xf32>
    %c0_48 = arith.constant 0 : index
    %c2_49 = arith.constant 2 : index
    %89 = vector.load %arg15[%c0_48, %c2_49] : memref<16x4xf32, #tpu.memory_space<vmem>>, vector<16x1xf32>
    %90 = arith.mulf %85, %89 : vector<16x1xf32>
    %cst_50 = arith.constant dense<0.000000e+00> : vector<16xf32>
    %91 = vector.multi_reduction <add>, %88, %cst_50 [1] : vector<16x16xf32> to vector<16xf32>
    %92 = vector.shape_cast %91 : vector<16xf32> to vector<16x1xf32>
    %93 = arith.addf %90, %92 : vector<16x1xf32>
    %c0_51 = arith.constant 0 : index
    %c2_52 = arith.constant 2 : index
    %94 = vector.load %arg15[%c0_51, %c2_52] : memref<16x4xf32, #tpu.memory_space<vmem>>, vector<16x1xf32>
    tpu.vector_store %arg15[%c0_51, %c2_52], %93 {strides = array<i32>} : memref<16x4xf32, #tpu.memory_space<vmem>>, vector<16x1xf32>,
    %c0_53 = arith.constant 0 : index
    %c16 = arith.constant 16 : index
    %95 = vector.load %arg16[%c0_53, %c16] : memref<16x32xf32, #tpu.memory_space<vmem>>, vector<16x8xf32>
    %96 = vector.broadcast %85 : vector<16x1xf32> to vector<16x8xf32>
    %97 = arith.mulf %96, %95 : vector<16x8xf32>
    %98 = arith.truncf %88 : vector<16x16xf32> to vector<16x16xbf16>
    %99 = vector.extract_strided_slice %9 {offsets = [0, 16], sizes = [16, 8], strides = [1, 1]} : vector<16x32xbf16> to vector<16x8xbf16>
    %cst_54 = arith.constant dense<0.000000e+00> : vector<16x8xf32>
    %100 = tpu.matmul %98, %99, %cst_54 {dimension_numbers = #tpu.dot_dimension_numbers<[1], [0], [0], [1], [0, 0, 1, 1], [], []>} : vector<16x16xbf16>, vector<16x8xbf16>, vector<16x8xf32> -> vector<16x8xf32>
    %101 = arith.addf %97, %100 : vector<16x8xf32>
    %c0_55 = arith.constant 0 : index
    %c16_56 = arith.constant 16 : index
    %102 = vector.load %arg16[%c0_55, %c16_56] : memref<16x32xf32, #tpu.memory_space<vmem>>, vector<16x8xf32>
    tpu.vector_store %arg16[%c0_55, %c16_56], %101 {strides = array<i32>} : memref<16x32xf32, #tpu.memory_space<vmem>>, vector<16x8xf32>,
    %c0_57 = arith.constant 0 : index
    %c2_58 = arith.constant 2 : index
    %103 = vector.load %arg14[%c0_57, %c2_58] : memref<16x4xf32, #tpu.memory_space<vmem>>, vector<16x1xf32>
    tpu.vector_store %arg14[%c0_57, %c2_58], %83 {strides = array<i32>} : memref<16x4xf32, #tpu.memory_space<vmem>>, vector<16x1xf32>,
    %104 = vector.extract_strided_slice %3 {offsets = [0, 24], sizes = [16, 8], strides = [1, 1]} : vector<16x32xbf16> to vector<16x8xbf16>
    %105 = vector.extract_strided_slice %6 {offsets = [0, 24], sizes = [16, 8], strides = [1, 1]} : vector<16x32xbf16> to vector<16x8xbf16>
    %cst_59 = arith.constant dense<0.000000e+00> : vector<16x16xf32>
    %106 = tpu.matmul %104, %105, %cst_59 {dimension_numbers = #tpu.dot_dimension_numbers<[1], [1], [0], [0], [0, 0, 1, 0], [], []>} : vector<16x8xbf16>, vector<16x8xbf16>, vector<16x16xf32> -> vector<16x16xf32>
    %107 = vector.extract_strided_slice %13 {offsets = [0, 3, 0], sizes = [16, 1, 16], strides = [1, 1, 1]} : vector<16x4x16xf32> to vector<16x1x16xf32>
    %108 = vector.shape_cast %107 : vector<16x1x16xf32> to vector<16x16xf32>
    %109 = arith.addf %106, %108 : vector<16x16xf32>
    %c0_60 = arith.constant 0 : index
    %c3 = arith.constant 3 : index
    %110 = vector.load %arg14[%c0_60, %c3] : memref<16x4xf32, #tpu.memory_space<vmem>>, vector<16x1xf32>
    %cst_61 = arith.constant dense<0xFF800000> : vector<16xf32>
    %111 = vector.multi_reduction <maximumf>, %109, %cst_61 [1] : vector<16x16xf32> to vector<16xf32>
    %112 = vector.shape_cast %111 : vector<16xf32> to vector<16x1xf32>
    %113 = arith.maximumf %110, %112 : vector<16x1xf32>
    %114 = arith.subf %110, %113 : vector<16x1xf32>
    %115 = math.exp %114 : vector<16x1xf32>
    %116 = vector.broadcast %113 : vector<16x1xf32> to vector<16x16xf32>
    %117 = arith.subf %109, %116 : vector<16x16xf32>
    %118 = math.exp %117 : vector<16x16xf32>
    %c0_62 = arith.constant 0 : index
    %c3_63 = arith.constant 3 : index
    %119 = vector.load %arg15[%c0_62, %c3_63] : memref<16x4xf32, #tpu.memory_space<vmem>>, vector<16x1xf32>
    %120 = arith.mulf %115, %119 : vector<16x1xf32>
    %cst_64 = arith.constant dense<0.000000e+00> : vector<16xf32>
    %121 = vector.multi_reduction <add>, %118, %cst_64 [1] : vector<16x16xf32> to vector<16xf32>
    %122 = vector.shape_cast %121 : vector<16xf32> to vector<16x1xf32>
    %123 = arith.addf %120, %122 : vector<16x1xf32>
    %c0_65 = arith.constant 0 : index
    %c3_66 = arith.constant 3 : index
    %124 = vector.load %arg15[%c0_65, %c3_66] : memref<16x4xf32, #tpu.memory_space<vmem>>, vector<16x1xf32>
    tpu.vector_store %arg15[%c0_65, %c3_66], %123 {strides = array<i32>} : memref<16x4xf32, #tpu.memory_space<vmem>>, vector<16x1xf32>,
    %c0_67 = arith.constant 0 : index
    %c24 = arith.constant 24 : index
    %125 = vector.load %arg16[%c0_67, %c24] : memref<16x32xf32, #tpu.memory_space<vmem>>, vector<16x8xf32>
    %126 = vector.broadcast %115 : vector<16x1xf32> to vector<16x8xf32>
    %127 = arith.mulf %126, %125 : vector<16x8xf32>
    %128 = arith.truncf %118 : vector<16x16xf32> to vector<16x16xbf16>
    %129 = vector.extract_strided_slice %9 {offsets = [0, 24], sizes = [16, 8], strides = [1, 1]} : vector<16x32xbf16> to vector<16x8xbf16>
    %cst_68 = arith.constant dense<0.000000e+00> : vector<16x8xf32>
    %130 = tpu.matmul %128, %129, %cst_68 {dimension_numbers = #tpu.dot_dimension_numbers<[1], [0], [0], [1], [0, 0, 1, 1], [], []>} : vector<16x16xbf16>, vector<16x8xbf16>, vector<16x8xf32> -> vector<16x8xf32>
    %131 = arith.addf %127, %130 : vector<16x8xf32>
    %c0_69 = arith.constant 0 : index
    %c24_70 = arith.constant 24 : index
    %132 = vector.load %arg16[%c0_69, %c24_70] : memref<16x32xf32, #tpu.memory_space<vmem>>, vector<16x8xf32>
    tpu.vector_store %arg16[%c0_69, %c24_70], %131 {strides = array<i32>} : memref<16x32xf32, #tpu.memory_space<vmem>>, vector<16x8xf32>,
    %c0_71 = arith.constant 0 : index
    %c3_72 = arith.constant 3 : index
    %133 = vector.load %arg14[%c0_71, %c3_72] : memref<16x4xf32, #tpu.memory_space<vmem>>, vector<16x1xf32>
    tpu.vector_store %arg14[%c0_71, %c3_72], %113 {strides = array<i32>} : memref<16x4xf32, #tpu.memory_space<vmem>>, vector<16x1xf32>,
    %c0_i32_73 = arith.constant 0 : i32
    %134 = arith.cmpi eq, %arg2, %c0_i32_73 : i32
    %135 = arith.extui %134 : i1 to i32
    %c0_i32_74 = arith.constant 0 : i32
    %136 = arith.cmpi ne, %135, %c0_i32_74 : i32
    scf.if %136 {
      %c0_75 = arith.constant 0 : index
      %c0_76 = arith.constant 0 : index
      %137 = vector.load %arg15[%c0_75, %c0_76] : memref<16x4xf32, #tpu.memory_space<vmem>>, vector<16x4xf32>
      %138 = tpu.reciprocal %137 {approx = true} : vector<16x4xf32> -> vector<16x4xf32>
      %c0_77 = arith.constant 0 : index
      %c0_78 = arith.constant 0 : index
      %139 = vector.load %arg16[%c0_77, %c0_78] : memref<16x32xf32, #tpu.memory_space<vmem>>, vector<16x32xf32>
      %140 = vector.shape_cast %139 : vector<16x32xf32> to vector<16x4x8xf32>
      %141 = vector.shape_cast %138 : vector<16x4xf32> to vector<16x4x1xf32>
      %142 = vector.broadcast %141 : vector<16x4x1xf32> to vector<16x4x8xf32>
      %143 = arith.mulf %140, %142 : vector<16x4x8xf32>
      %144 = vector.shape_cast %143 : vector<16x4x8xf32> to vector<16x32xf32>
      %145 = arith.truncf %144 : vector<16x32xf32> to vector<16x32xbf16>
      %c0_79 = arith.constant 0 : index
      %c0_80 = arith.constant 0 : index
      %146 = vector.load %arg9[%c0_79, %c0_80] : memref<32x32xf32, #tpu.memory_space<vmem>>, vector<32x32xf32>
      %147 = arith.truncf %146 : vector<32x32xf32> to vector<32x32xbf16>
      %cst_81 = arith.constant dense<0.000000e+00> : vector<16x32xf32>
      %148 = tpu.matmul %145, %147, %cst_81 {dimension_numbers = #tpu.dot_dimension_numbers<[1], [0], [0], [1], [0, 0, 1, 1], [], []>} : vector<16x32xbf16>, vector<32x32xbf16>, vector<16x32xf32> -> vector<16x32xf32>
      %c0_82 = arith.constant 0 : index
      %c0_83 = arith.constant 0 : index
      %149 = vector.load %arg10[%c0_82, %c0_83] : memref<1x32xf32, #tpu.memory_space<vmem>>, vector<1x32xf32>
      %150 = vector.broadcast %149 : vector<1x32xf32> to vector<16x32xf32>
      %151 = arith.addf %148, %150 : vector<16x32xf32>
      %c0_84 = arith.constant 0 : index
      %c0_85 = arith.constant 0 : index
      %c0_86 = arith.constant 0 : index
      %152 = vector.load %arg3[%c0_84, %c0_85, %c0_86] : memref<1x16x32xf32, #tpu.memory_space<vmem>>, vector<1x16x32xf32>
      %153 = vector.shape_cast %152 : vector<1x16x32xf32> to vector<16x32xf32>
      %154 = arith.addf %151, %153 : vector<16x32xf32>
      %cst_87 = arith.constant dense<0.000000e+00> : vector<16xf32>
      %155 = vector.multi_reduction <add>, %154, %cst_87 [1] : vector<16x32xf32> to vector<16xf32>
      %156 = vector.shape_cast %155 : vector<16xf32> to vector<16x1xf32>
      %cst_88 = arith.constant 3.200000e+01 : f32
      %157 = vector.broadcast %cst_88 : f32 to vector<16x1xf32>
      %158 = arith.divf %156, %157 : vector<16x1xf32>
      %159 = vector.broadcast %158 : vector<16x1xf32> to vector<16x32xf32>
      %160 = arith.subf %154, %159 : vector<16x32xf32>
      %161 = arith.mulf %160, %160 : vector<16x32xf32>
      %cst_89 = arith.constant dense<0.000000e+00> : vector<16xf32>
      %162 = vector.multi_reduction <add>, %161, %cst_89 [1] : vector<16x32xf32> to vector<16xf32>
      %163 = vector.shape_cast %162 : vector<16xf32> to vector<16x1xf32>
      %cst_90 = arith.constant 3.200000e+01 : f32
      %164 = vector.broadcast %cst_90 : f32 to vector<16x1xf32>
      %165 = arith.divf %163, %164 : vector<16x1xf32>
      %166 = vector.broadcast %158 : vector<16x1xf32> to vector<16x32xf32>
      %167 = arith.subf %154, %166 : vector<16x32xf32>
      %cst_91 = arith.constant 9.99999974E-6 : f32
      %168 = vector.broadcast %cst_91 : f32 to vector<16x1xf32>
      %169 = arith.addf %165, %168 : vector<16x1xf32>
      %170 = math.rsqrt %169 : vector<16x1xf32>
      %171 = vector.broadcast %170 : vector<16x1xf32> to vector<16x32xf32>
      %172 = arith.mulf %167, %171 : vector<16x32xf32>
      %c0_92 = arith.constant 0 : index
      %c0_93 = arith.constant 0 : index
      %173 = vector.load %arg11[%c0_92, %c0_93] : memref<1x32xf32, #tpu.memory_space<vmem>>, vector<1x32xf32>
      %174 = vector.broadcast %173 : vector<1x32xf32> to vector<16x32xf32>
      %175 = arith.mulf %172, %174 : vector<16x32xf32>
      %c0_94 = arith.constant 0 : index
      %c0_95 = arith.constant 0 : index
      %176 = vector.load %arg12[%c0_94, %c0_95] : memref<1x32xf32, #tpu.memory_space<vmem>>, vector<1x32xf32>
      %177 = vector.broadcast %176 : vector<1x32xf32> to vector<16x32xf32>
      %178 = arith.addf %175, %177 : vector<16x32xf32>
      %c0_96 = arith.constant 0 : index
      %c0_97 = arith.constant 0 : index
      %c0_98 = arith.constant 0 : index
      %179 = vector.load %arg13[%c0_96, %c0_97, %c0_98] : memref<1x16x32xf32, #tpu.memory_space<vmem>>, vector<1x16x32xf32>
      %180 = vector.shape_cast %179 : vector<1x16x32xf32> to vector<16x32xf32>
      %181 = vector.shape_cast %178 : vector<16x32xf32> to vector<1x16x32xf32>
      tpu.vector_store %arg13[%c0_96, %c0_97, %c0_98], %181 {strides = array<i32>} : memref<1x16x32xf32, #tpu.memory_space<vmem>>, vector<1x16x32xf32>,
    } else {
    }
    return
  }
  func.func @transform_0(%arg0: i32, %arg1: i32, %arg2: i32) -> (i32, i32, i32) {
    %c0_i32 = arith.constant 0 : i32
    %c0_i32_0 = arith.constant 0 : i32
    return %arg0, %arg1, %c0_i32 : i32, i32, i32
  }
  func.func @transform_1(%arg0: i32, %arg1: i32, %arg2: i32) -> (i32, i32, i32) {
    %c0_i32 = arith.constant 0 : i32
    %c0_i32_0 = arith.constant 0 : i32
    return %arg0, %arg1, %c0_i32 : i32, i32, i32
  }
  func.func @transform_2(%arg0: i32, %arg1: i32, %arg2: i32) -> (i32, i32, i32) {
    %c0_i32 = arith.constant 0 : i32
    %c0_i32_0 = arith.constant 0 : i32
    return %arg0, %arg2, %c0_i32 : i32, i32, i32
  }
  func.func @transform_3(%arg0: i32, %arg1: i32, %arg2: i32) -> (i32, i32, i32) {
    %c0_i32 = arith.constant 0 : i32
    %c0_i32_0 = arith.constant 0 : i32
    return %arg0, %arg2, %c0_i32 : i32, i32, i32
  }
  func.func @transform_4(%arg0: i32, %arg1: i32, %arg2: i32) -> (i32, i32, i32, i32) {
    %c0_i32 = arith.constant 0 : i32
    %c0_i32_0 = arith.constant 0 : i32
    return %arg0, %arg1, %arg2, %c0_i32 : i32, i32, i32, i32
  }
  func.func @transform_5(%arg0: i32, %arg1: i32, %arg2: i32) -> (i32, i32) {
    %c0_i32 = arith.constant 0 : i32
    %c0_i32_0 = arith.constant 0 : i32
    %c0_i32_1 = arith.constant 0 : i32
    return %c0_i32, %c0_i32_0 : i32, i32
  }
  func.func @transform_6(%arg0: i32, %arg1: i32, %arg2: i32) -> (i32, i32) {
    %c0_i32 = arith.constant 0 : i32
    %c0_i32_0 = arith.constant 0 : i32
    %c0_i32_1 = arith.constant 0 : i32
    return %c0_i32, %c0_i32_0 : i32, i32
  }
  func.func @transform_7(%arg0: i32, %arg1: i32, %arg2: i32) -> (i32, i32) {
    %c0_i32 = arith.constant 0 : i32
    %c0_i32_0 = arith.constant 0 : i32
    %c0_i32_1 = arith.constant 0 : i32
    return %c0_i32, %c0_i32_0 : i32, i32
  }
  func.func @transform_8(%arg0: i32, %arg1: i32, %arg2: i32) -> (i32, i32) {
    %c0_i32 = arith.constant 0 : i32
    %c0_i32_0 = arith.constant 0 : i32
    %c0_i32_1 = arith.constant 0 : i32
    return %c0_i32, %c0_i32_0 : i32, i32
  }
  func.func @transform_9(%arg0: i32, %arg1: i32, %arg2: i32) -> (i32, i32) {
    %c0_i32 = arith.constant 0 : i32
    %c0_i32_0 = arith.constant 0 : i32
    %c0_i32_1 = arith.constant 0 : i32
    return %c0_i32, %c0_i32_0 : i32, i32
  }
  func.func @transform_10(%arg0: i32, %arg1: i32, %arg2: i32) -> (i32, i32, i32) {
    %c0_i32 = arith.constant 0 : i32
    %c0_i32_0 = arith.constant 0 : i32
    return %arg0, %arg1, %c0_i32 : i32, i32, i32
  }
}

module attributes {stable_mosaic.version = 11 : i64} {
  func.func @_linear_kernel(%arg0: i32, %arg1: memref<16x32xf32, #tpu.memory_space<vmem>>, %arg2: memref<32x32xf32, #tpu.memory_space<vmem>>, %arg3: memref<1x32xf32, #tpu.memory_space<vmem>>, %arg4: memref<16x32xf32, #tpu.memory_space<vmem>>) attributes {dimension_semantics = [#tpu.dimension_semantics<parallel>], iteration_bounds = array<i64: 1>, scalar_prefetch = 0 : i64, scratch_operands = 0 : i64, tpu.core_type = #tpu.core_type<tc>, window_params = [{transform_indices = @transform_0, window_bounds = array<i64: 16, 32>}, {pipeline_mode = #tpu.pipeline_mode<synchronous>, transform_indices = @transform_1, window_bounds = array<i64: 32, 32>}, {pipeline_mode = #tpu.pipeline_mode<synchronous>, transform_indices = @transform_2, window_bounds = array<i64: 1, 32>}, {transform_indices = @transform_3, window_bounds = array<i64: 16, 32>}]} {
    %c0 = arith.constant 0 : index
    %c0_0 = arith.constant 0 : index
    %0 = vector.load %arg1[%c0, %c0_0] : memref<16x32xf32, #tpu.memory_space<vmem>>, vector<16x32xf32>
    %1 = arith.truncf %0 : vector<16x32xf32> to vector<16x32xbf16>
    %c0_1 = arith.constant 0 : index
    %c0_2 = arith.constant 0 : index
    %2 = vector.load %arg2[%c0_1, %c0_2] : memref<32x32xf32, #tpu.memory_space<vmem>>, vector<32x32xf32>
    %3 = arith.truncf %2 : vector<32x32xf32> to vector<32x32xbf16>
    %cst = arith.constant dense<0.000000e+00> : vector<16x32xf32>
    %4 = tpu.matmul %1, %3, %cst {dimension_numbers = #tpu.dot_dimension_numbers<[1], [0], [0], [1], [0, 0, 1, 1], [], []>} : vector<16x32xbf16>, vector<32x32xbf16>, vector<16x32xf32> -> vector<16x32xf32>
    %c0_3 = arith.constant 0 : index
    %c0_4 = arith.constant 0 : index
    %5 = vector.load %arg3[%c0_3, %c0_4] : memref<1x32xf32, #tpu.memory_space<vmem>>, vector<1x32xf32>
    %6 = vector.broadcast %5 : vector<1x32xf32> to vector<16x32xf32>
    %7 = arith.addf %4, %6 : vector<16x32xf32>
    %c0_5 = arith.constant 0 : index
    %c0_6 = arith.constant 0 : index
    %8 = vector.load %arg4[%c0_5, %c0_6] : memref<16x32xf32, #tpu.memory_space<vmem>>, vector<16x32xf32>
    tpu.vector_store %arg4[%c0_5, %c0_6], %7 {strides = array<i32>} : memref<16x32xf32, #tpu.memory_space<vmem>>, vector<16x32xf32>,
    return
  }
  func.func @transform_0(%arg0: i32) -> (i32, i32) {
    %c0_i32 = arith.constant 0 : i32
    %c0_i32_0 = arith.constant 0 : i32
    return %arg0, %c0_i32 : i32, i32
  }
  func.func @transform_1(%arg0: i32) -> (i32, i32) {
    %c0_i32 = arith.constant 0 : i32
    %c0_i32_0 = arith.constant 0 : i32
    %c0_i32_1 = arith.constant 0 : i32
    return %c0_i32, %c0_i32_0 : i32, i32
  }
  func.func @transform_2(%arg0: i32) -> (i32, i32) {
    %c0_i32 = arith.constant 0 : i32
    %c0_i32_0 = arith.constant 0 : i32
    %c0_i32_1 = arith.constant 0 : i32
    return %c0_i32, %c0_i32_0 : i32, i32
  }
  func.func @transform_3(%arg0: i32) -> (i32, i32) {
    %c0_i32 = arith.constant 0 : i32
    %c0_i32_0 = arith.constant 0 : i32
    return %arg0, %c0_i32 : i32, i32
  }
}

module attributes {stable_mosaic.version = 11 : i64} {
  func.func @_fused_attn_kernel(%arg0: i32, %arg1: i32, %arg2: i32, %arg3: memref<1x16x32xf32, #tpu.memory_space<vmem>>, %arg4: memref<1x16x32xf32, #tpu.memory_space<vmem>>, %arg5: memref<1x16x32xf32, #tpu.memory_space<vmem>>, %arg6: memref<1x16x32xf32, #tpu.memory_space<vmem>>, %arg7: memref<32x32xf32, #tpu.memory_space<vmem>>, %arg8: memref<1x32xf32, #tpu.memory_space<vmem>>, %arg9: memref<1x32xf32, #tpu.memory_space<vmem>>, %arg10: memref<1x32xf32, #tpu.memory_space<vmem>>, %arg11: memref<1x16x32xf32, #tpu.memory_space<vmem>>, %arg12: memref<16x4xf32, #tpu.memory_space<vmem>>, %arg13: memref<16x4xf32, #tpu.memory_space<vmem>>, %arg14: memref<16x32xf32, #tpu.memory_space<vmem>>, %arg15: memref<16x32xbf16, #tpu.memory_space<vmem>>) attributes {dimension_semantics = [#tpu.dimension_semantics<parallel>, #tpu.dimension_semantics<parallel>, #tpu.dimension_semantics<arbitrary>], iteration_bounds = array<i64: 1, 1, 1>, scalar_prefetch = 0 : i64, scratch_operands = 4 : i64, tpu.core_type = #tpu.core_type<tc>, window_params = [{transform_indices = @transform_0, window_bounds = array<i64: 1, 16, 32>}, {transform_indices = @transform_1, window_bounds = array<i64: 1, 16, 32>}, {transform_indices = @transform_2, window_bounds = array<i64: 1, 16, 32>}, {transform_indices = @transform_3, window_bounds = array<i64: 1, 16, 32>}, {pipeline_mode = #tpu.pipeline_mode<synchronous>, transform_indices = @transform_4, window_bounds = array<i64: 32, 32>}, {pipeline_mode = #tpu.pipeline_mode<synchronous>, transform_indices = @transform_5, window_bounds = array<i64: 1, 32>}, {pipeline_mode = #tpu.pipeline_mode<synchronous>, transform_indices = @transform_6, window_bounds = array<i64: 1, 32>}, {pipeline_mode = #tpu.pipeline_mode<synchronous>, transform_indices = @transform_7, window_bounds = array<i64: 1, 32>}, {transform_indices = @transform_8, window_bounds = array<i64: 1, 16, 32>}]} {
    %c0_i32 = arith.constant 0 : i32
    %0 = arith.cmpi eq, %arg2, %c0_i32 : i32
    %1 = arith.extui %0 : i1 to i32
    %c0_i32_0 = arith.constant 0 : i32
    %2 = arith.cmpi ne, %1, %c0_i32_0 : i32
    scf.if %2 {
      %cst_71 = arith.constant 0xFF800000 : f32
      %135 = vector.broadcast %cst_71 : f32 to vector<16x4xf32>
      %c0_72 = arith.constant 0 : index
      %c0_73 = arith.constant 0 : index
      %136 = vector.load %arg12[%c0_72, %c0_73] : memref<16x4xf32, #tpu.memory_space<vmem>>, vector<16x4xf32>
      tpu.vector_store %arg12[%c0_72, %c0_73], %135 {strides = array<i32>} : memref<16x4xf32, #tpu.memory_space<vmem>>, vector<16x4xf32>,
      %cst_74 = arith.constant 0.000000e+00 : f32
      %137 = vector.broadcast %cst_74 : f32 to vector<16x4xf32>
      %c0_75 = arith.constant 0 : index
      %c0_76 = arith.constant 0 : index
      %138 = vector.load %arg13[%c0_75, %c0_76] : memref<16x4xf32, #tpu.memory_space<vmem>>, vector<16x4xf32>
      tpu.vector_store %arg13[%c0_75, %c0_76], %137 {strides = array<i32>} : memref<16x4xf32, #tpu.memory_space<vmem>>, vector<16x4xf32>,
      %cst_77 = arith.constant 0.000000e+00 : f32
      %139 = vector.broadcast %cst_77 : f32 to vector<16x32xf32>
      %c0_78 = arith.constant 0 : index
      %c0_79 = arith.constant 0 : index
      %140 = vector.load %arg14[%c0_78, %c0_79] : memref<16x32xf32, #tpu.memory_space<vmem>>, vector<16x32xf32>
      tpu.vector_store %arg14[%c0_78, %c0_79], %139 {strides = array<i32>} : memref<16x32xf32, #tpu.memory_space<vmem>>, vector<16x32xf32>,
      %c0_80 = arith.constant 0 : index
      %c0_81 = arith.constant 0 : index
      %c0_82 = arith.constant 0 : index
      %141 = vector.load %arg4[%c0_80, %c0_81, %c0_82] : memref<1x16x32xf32, #tpu.memory_space<vmem>>, vector<1x16x32xf32>
      %142 = vector.shape_cast %141 : vector<1x16x32xf32> to vector<16x32xf32>
      %cst_83 = arith.constant 0.353553385 : f32
      %143 = vector.broadcast %cst_83 : f32 to vector<16x32xf32>
      %144 = arith.mulf %142, %143 : vector<16x32xf32>
      %145 = arith.truncf %144 : vector<16x32xf32> to vector<16x32xbf16>
      %c0_84 = arith.constant 0 : index
      %c0_85 = arith.constant 0 : index
      %146 = vector.load %arg15[%c0_84, %c0_85] : memref<16x32xbf16, #tpu.memory_space<vmem>>, vector<16x32xbf16>
      tpu.vector_store %arg15[%c0_84, %c0_85], %145 {strides = array<i32>} : memref<16x32xbf16, #tpu.memory_space<vmem>>, vector<16x32xbf16>,
    } else {
    }
    %c0 = arith.constant 0 : index
    %c0_1 = arith.constant 0 : index
    %3 = vector.load %arg15[%c0, %c0_1] : memref<16x32xbf16, #tpu.memory_space<vmem>>, vector<16x32xbf16>
    %c0_2 = arith.constant 0 : index
    %c0_3 = arith.constant 0 : index
    %c0_4 = arith.constant 0 : index
    %4 = vector.load %arg5[%c0_2, %c0_3, %c0_4] : memref<1x16x32xf32, #tpu.memory_space<vmem>>, vector<1x16x32xf32>
    %5 = vector.shape_cast %4 : vector<1x16x32xf32> to vector<16x32xf32>
    %6 = arith.truncf %5 : vector<16x32xf32> to vector<16x32xbf16>
    %c0_5 = arith.constant 0 : index
    %c0_6 = arith.constant 0 : index
    %c0_7 = arith.constant 0 : index
    %7 = vector.load %arg6[%c0_5, %c0_6, %c0_7] : memref<1x16x32xf32, #tpu.memory_space<vmem>>, vector<1x16x32xf32>
    %8 = vector.shape_cast %7 : vector<1x16x32xf32> to vector<16x32xf32>
    %9 = arith.truncf %8 : vector<16x32xf32> to vector<16x32xbf16>
    %c16_i32 = arith.constant 16 : i32
    %10 = arith.muli %arg2, %c16_i32 : i32
    %11 = tpu.iota {dimensions = array<i32: 1>} : vector<16x16xi32>
    %12 = vector.broadcast %10 : i32 to vector<16x16xi32>
    %13 = arith.addi %12, %11 : vector<16x16xi32>
    %c12_i32 = arith.constant 12 : i32
    %14 = vector.broadcast %c12_i32 : i32 to vector<16x16xi32>
    %15 = arith.cmpi slt, %13, %14 : vector<16x16xi32>
    %16 = vector.extract_strided_slice %3 {offsets = [0, 0], sizes = [16, 8], strides = [1, 1]} : vector<16x32xbf16> to vector<16x8xbf16>
    %17 = vector.extract_strided_slice %6 {offsets = [0, 0], sizes = [16, 8], strides = [1, 1]} : vector<16x32xbf16> to vector<16x8xbf16>
    %cst = arith.constant dense<0.000000e+00> : vector<16x16xf32>
    %18 = tpu.matmul %16, %17, %cst {dimension_numbers = #tpu.dot_dimension_numbers<[1], [1], [0], [0], [0, 0, 1, 0], [], []>} : vector<16x8xbf16>, vector<16x8xbf16>, vector<16x16xf32> -> vector<16x16xf32>
    %cst_8 = arith.constant -1.000000e+30 : f32
    %19 = vector.broadcast %cst_8 : f32 to vector<16x16xf32>
    %20 = arith.select %15, %18, %19 : vector<16x16xi1>, vector<16x16xf32>
    %c0_9 = arith.constant 0 : index
    %c0_10 = arith.constant 0 : index
    %21 = vector.load %arg12[%c0_9, %c0_10] : memref<16x4xf32, #tpu.memory_space<vmem>>, vector<16x1xf32>
    %cst_11 = arith.constant dense<0xFF800000> : vector<16xf32>
    %22 = vector.multi_reduction <maximumf>, %20, %cst_11 [1] : vector<16x16xf32> to vector<16xf32>
    %23 = vector.shape_cast %22 : vector<16xf32> to vector<16x1xf32>
    %24 = arith.maximumf %21, %23 : vector<16x1xf32>
    %25 = arith.subf %21, %24 : vector<16x1xf32>
    %26 = math.exp %25 : vector<16x1xf32>
    %27 = vector.broadcast %24 : vector<16x1xf32> to vector<16x16xf32>
    %28 = arith.subf %20, %27 : vector<16x16xf32>
    %29 = math.exp %28 : vector<16x16xf32>
    %c0_12 = arith.constant 0 : index
    %c0_13 = arith.constant 0 : index
    %30 = vector.load %arg13[%c0_12, %c0_13] : memref<16x4xf32, #tpu.memory_space<vmem>>, vector<16x1xf32>
    %31 = arith.mulf %26, %30 : vector<16x1xf32>
    %cst_14 = arith.constant dense<0.000000e+00> : vector<16xf32>
    %32 = vector.multi_reduction <add>, %29, %cst_14 [1] : vector<16x16xf32> to vector<16xf32>
    %33 = vector.shape_cast %32 : vector<16xf32> to vector<16x1xf32>
    %34 = arith.addf %31, %33 : vector<16x1xf32>
    %c0_15 = arith.constant 0 : index
    %c0_16 = arith.constant 0 : index
    %35 = vector.load %arg13[%c0_15, %c0_16] : memref<16x4xf32, #tpu.memory_space<vmem>>, vector<16x1xf32>
    tpu.vector_store %arg13[%c0_15, %c0_16], %34 {strides = array<i32>} : memref<16x4xf32, #tpu.memory_space<vmem>>, vector<16x1xf32>,
    %c0_17 = arith.constant 0 : index
    %c0_18 = arith.constant 0 : index
    %36 = vector.load %arg14[%c0_17, %c0_18] : memref<16x32xf32, #tpu.memory_space<vmem>>, vector<16x8xf32>
    %37 = vector.broadcast %26 : vector<16x1xf32> to vector<16x8xf32>
    %38 = arith.mulf %37, %36 : vector<16x8xf32>
    %39 = arith.truncf %29 : vector<16x16xf32> to vector<16x16xbf16>
    %40 = vector.extract_strided_slice %9 {offsets = [0, 0], sizes = [16, 8], strides = [1, 1]} : vector<16x32xbf16> to vector<16x8xbf16>
    %cst_19 = arith.constant dense<0.000000e+00> : vector<16x8xf32>
    %41 = tpu.matmul %39, %40, %cst_19 {dimension_numbers = #tpu.dot_dimension_numbers<[1], [0], [0], [1], [0, 0, 1, 1], [], []>} : vector<16x16xbf16>, vector<16x8xbf16>, vector<16x8xf32> -> vector<16x8xf32>
    %42 = arith.addf %38, %41 : vector<16x8xf32>
    %c0_20 = arith.constant 0 : index
    %c0_21 = arith.constant 0 : index
    %43 = vector.load %arg14[%c0_20, %c0_21] : memref<16x32xf32, #tpu.memory_space<vmem>>, vector<16x8xf32>
    tpu.vector_store %arg14[%c0_20, %c0_21], %42 {strides = array<i32>} : memref<16x32xf32, #tpu.memory_space<vmem>>, vector<16x8xf32>,
    %c0_22 = arith.constant 0 : index
    %c0_23 = arith.constant 0 : index
    %44 = vector.load %arg12[%c0_22, %c0_23] : memref<16x4xf32, #tpu.memory_space<vmem>>, vector<16x1xf32>
    tpu.vector_store %arg12[%c0_22, %c0_23], %24 {strides = array<i32>} : memref<16x4xf32, #tpu.memory_space<vmem>>, vector<16x1xf32>,
    %45 = vector.extract_strided_slice %3 {offsets = [0, 8], sizes = [16, 8], strides = [1, 1]} : vector<16x32xbf16> to vector<16x8xbf16>
    %46 = vector.extract_strided_slice %6 {offsets = [0, 8], sizes = [16, 8], strides = [1, 1]} : vector<16x32xbf16> to vector<16x8xbf16>
    %cst_24 = arith.constant dense<0.000000e+00> : vector<16x16xf32>
    %47 = tpu.matmul %45, %46, %cst_24 {dimension_numbers = #tpu.dot_dimension_numbers<[1], [1], [0], [0], [0, 0, 1, 0], [], []>} : vector<16x8xbf16>, vector<16x8xbf16>, vector<16x16xf32> -> vector<16x16xf32>
    %cst_25 = arith.constant -1.000000e+30 : f32
    %48 = vector.broadcast %cst_25 : f32 to vector<16x16xf32>
    %49 = arith.select %15, %47, %48 : vector<16x16xi1>, vector<16x16xf32>
    %c0_26 = arith.constant 0 : index
    %c1 = arith.constant 1 : index
    %50 = vector.load %arg12[%c0_26, %c1] : memref<16x4xf32, #tpu.memory_space<vmem>>, vector<16x1xf32>
    %cst_27 = arith.constant dense<0xFF800000> : vector<16xf32>
    %51 = vector.multi_reduction <maximumf>, %49, %cst_27 [1] : vector<16x16xf32> to vector<16xf32>
    %52 = vector.shape_cast %51 : vector<16xf32> to vector<16x1xf32>
    %53 = arith.maximumf %50, %52 : vector<16x1xf32>
    %54 = arith.subf %50, %53 : vector<16x1xf32>
    %55 = math.exp %54 : vector<16x1xf32>
    %56 = vector.broadcast %53 : vector<16x1xf32> to vector<16x16xf32>
    %57 = arith.subf %49, %56 : vector<16x16xf32>
    %58 = math.exp %57 : vector<16x16xf32>
    %c0_28 = arith.constant 0 : index
    %c1_29 = arith.constant 1 : index
    %59 = vector.load %arg13[%c0_28, %c1_29] : memref<16x4xf32, #tpu.memory_space<vmem>>, vector<16x1xf32>
    %60 = arith.mulf %55, %59 : vector<16x1xf32>
    %cst_30 = arith.constant dense<0.000000e+00> : vector<16xf32>
    %61 = vector.multi_reduction <add>, %58, %cst_30 [1] : vector<16x16xf32> to vector<16xf32>
    %62 = vector.shape_cast %61 : vector<16xf32> to vector<16x1xf32>
    %63 = arith.addf %60, %62 : vector<16x1xf32>
    %c0_31 = arith.constant 0 : index
    %c1_32 = arith.constant 1 : index
    %64 = vector.load %arg13[%c0_31, %c1_32] : memref<16x4xf32, #tpu.memory_space<vmem>>, vector<16x1xf32>
    tpu.vector_store %arg13[%c0_31, %c1_32], %63 {strides = array<i32>} : memref<16x4xf32, #tpu.memory_space<vmem>>, vector<16x1xf32>,
    %c0_33 = arith.constant 0 : index
    %c8 = arith.constant 8 : index
    %65 = vector.load %arg14[%c0_33, %c8] : memref<16x32xf32, #tpu.memory_space<vmem>>, vector<16x8xf32>
    %66 = vector.broadcast %55 : vector<16x1xf32> to vector<16x8xf32>
    %67 = arith.mulf %66, %65 : vector<16x8xf32>
    %68 = arith.truncf %58 : vector<16x16xf32> to vector<16x16xbf16>
    %69 = vector.extract_strided_slice %9 {offsets = [0, 8], sizes = [16, 8], strides = [1, 1]} : vector<16x32xbf16> to vector<16x8xbf16>
    %cst_34 = arith.constant dense<0.000000e+00> : vector<16x8xf32>
    %70 = tpu.matmul %68, %69, %cst_34 {dimension_numbers = #tpu.dot_dimension_numbers<[1], [0], [0], [1], [0, 0, 1, 1], [], []>} : vector<16x16xbf16>, vector<16x8xbf16>, vector<16x8xf32> -> vector<16x8xf32>
    %71 = arith.addf %67, %70 : vector<16x8xf32>
    %c0_35 = arith.constant 0 : index
    %c8_36 = arith.constant 8 : index
    %72 = vector.load %arg14[%c0_35, %c8_36] : memref<16x32xf32, #tpu.memory_space<vmem>>, vector<16x8xf32>
    tpu.vector_store %arg14[%c0_35, %c8_36], %71 {strides = array<i32>} : memref<16x32xf32, #tpu.memory_space<vmem>>, vector<16x8xf32>,
    %c0_37 = arith.constant 0 : index
    %c1_38 = arith.constant 1 : index
    %73 = vector.load %arg12[%c0_37, %c1_38] : memref<16x4xf32, #tpu.memory_space<vmem>>, vector<16x1xf32>
    tpu.vector_store %arg12[%c0_37, %c1_38], %53 {strides = array<i32>} : memref<16x4xf32, #tpu.memory_space<vmem>>, vector<16x1xf32>,
    %74 = vector.extract_strided_slice %3 {offsets = [0, 16], sizes = [16, 8], strides = [1, 1]} : vector<16x32xbf16> to vector<16x8xbf16>
    %75 = vector.extract_strided_slice %6 {offsets = [0, 16], sizes = [16, 8], strides = [1, 1]} : vector<16x32xbf16> to vector<16x8xbf16>
    %cst_39 = arith.constant dense<0.000000e+00> : vector<16x16xf32>
    %76 = tpu.matmul %74, %75, %cst_39 {dimension_numbers = #tpu.dot_dimension_numbers<[1], [1], [0], [0], [0, 0, 1, 0], [], []>} : vector<16x8xbf16>, vector<16x8xbf16>, vector<16x16xf32> -> vector<16x16xf32>
    %cst_40 = arith.constant -1.000000e+30 : f32
    %77 = vector.broadcast %cst_40 : f32 to vector<16x16xf32>
    %78 = arith.select %15, %76, %77 : vector<16x16xi1>, vector<16x16xf32>
    %c0_41 = arith.constant 0 : index
    %c2 = arith.constant 2 : index
    %79 = vector.load %arg12[%c0_41, %c2] : memref<16x4xf32, #tpu.memory_space<vmem>>, vector<16x1xf32>
    %cst_42 = arith.constant dense<0xFF800000> : vector<16xf32>
    %80 = vector.multi_reduction <maximumf>, %78, %cst_42 [1] : vector<16x16xf32> to vector<16xf32>
    %81 = vector.shape_cast %80 : vector<16xf32> to vector<16x1xf32>
    %82 = arith.maximumf %79, %81 : vector<16x1xf32>
    %83 = arith.subf %79, %82 : vector<16x1xf32>
    %84 = math.exp %83 : vector<16x1xf32>
    %85 = vector.broadcast %82 : vector<16x1xf32> to vector<16x16xf32>
    %86 = arith.subf %78, %85 : vector<16x16xf32>
    %87 = math.exp %86 : vector<16x16xf32>
    %c0_43 = arith.constant 0 : index
    %c2_44 = arith.constant 2 : index
    %88 = vector.load %arg13[%c0_43, %c2_44] : memref<16x4xf32, #tpu.memory_space<vmem>>, vector<16x1xf32>
    %89 = arith.mulf %84, %88 : vector<16x1xf32>
    %cst_45 = arith.constant dense<0.000000e+00> : vector<16xf32>
    %90 = vector.multi_reduction <add>, %87, %cst_45 [1] : vector<16x16xf32> to vector<16xf32>
    %91 = vector.shape_cast %90 : vector<16xf32> to vector<16x1xf32>
    %92 = arith.addf %89, %91 : vector<16x1xf32>
    %c0_46 = arith.constant 0 : index
    %c2_47 = arith.constant 2 : index
    %93 = vector.load %arg13[%c0_46, %c2_47] : memref<16x4xf32, #tpu.memory_space<vmem>>, vector<16x1xf32>
    tpu.vector_store %arg13[%c0_46, %c2_47], %92 {strides = array<i32>} : memref<16x4xf32, #tpu.memory_space<vmem>>, vector<16x1xf32>,
    %c0_48 = arith.constant 0 : index
    %c16 = arith.constant 16 : index
    %94 = vector.load %arg14[%c0_48, %c16] : memref<16x32xf32, #tpu.memory_space<vmem>>, vector<16x8xf32>
    %95 = vector.broadcast %84 : vector<16x1xf32> to vector<16x8xf32>
    %96 = arith.mulf %95, %94 : vector<16x8xf32>
    %97 = arith.truncf %87 : vector<16x16xf32> to vector<16x16xbf16>
    %98 = vector.extract_strided_slice %9 {offsets = [0, 16], sizes = [16, 8], strides = [1, 1]} : vector<16x32xbf16> to vector<16x8xbf16>
    %cst_49 = arith.constant dense<0.000000e+00> : vector<16x8xf32>
    %99 = tpu.matmul %97, %98, %cst_49 {dimension_numbers = #tpu.dot_dimension_numbers<[1], [0], [0], [1], [0, 0, 1, 1], [], []>} : vector<16x16xbf16>, vector<16x8xbf16>, vector<16x8xf32> -> vector<16x8xf32>
    %100 = arith.addf %96, %99 : vector<16x8xf32>
    %c0_50 = arith.constant 0 : index
    %c16_51 = arith.constant 16 : index
    %101 = vector.load %arg14[%c0_50, %c16_51] : memref<16x32xf32, #tpu.memory_space<vmem>>, vector<16x8xf32>
    tpu.vector_store %arg14[%c0_50, %c16_51], %100 {strides = array<i32>} : memref<16x32xf32, #tpu.memory_space<vmem>>, vector<16x8xf32>,
    %c0_52 = arith.constant 0 : index
    %c2_53 = arith.constant 2 : index
    %102 = vector.load %arg12[%c0_52, %c2_53] : memref<16x4xf32, #tpu.memory_space<vmem>>, vector<16x1xf32>
    tpu.vector_store %arg12[%c0_52, %c2_53], %82 {strides = array<i32>} : memref<16x4xf32, #tpu.memory_space<vmem>>, vector<16x1xf32>,
    %103 = vector.extract_strided_slice %3 {offsets = [0, 24], sizes = [16, 8], strides = [1, 1]} : vector<16x32xbf16> to vector<16x8xbf16>
    %104 = vector.extract_strided_slice %6 {offsets = [0, 24], sizes = [16, 8], strides = [1, 1]} : vector<16x32xbf16> to vector<16x8xbf16>
    %cst_54 = arith.constant dense<0.000000e+00> : vector<16x16xf32>
    %105 = tpu.matmul %103, %104, %cst_54 {dimension_numbers = #tpu.dot_dimension_numbers<[1], [1], [0], [0], [0, 0, 1, 0], [], []>} : vector<16x8xbf16>, vector<16x8xbf16>, vector<16x16xf32> -> vector<16x16xf32>
    %cst_55 = arith.constant -1.000000e+30 : f32
    %106 = vector.broadcast %cst_55 : f32 to vector<16x16xf32>
    %107 = arith.select %15, %105, %106 : vector<16x16xi1>, vector<16x16xf32>
    %c0_56 = arith.constant 0 : index
    %c3 = arith.constant 3 : index
    %108 = vector.load %arg12[%c0_56, %c3] : memref<16x4xf32, #tpu.memory_space<vmem>>, vector<16x1xf32>
    %cst_57 = arith.constant dense<0xFF800000> : vector<16xf32>
    %109 = vector.multi_reduction <maximumf>, %107, %cst_57 [1] : vector<16x16xf32> to vector<16xf32>
    %110 = vector.shape_cast %109 : vector<16xf32> to vector<16x1xf32>
    %111 = arith.maximumf %108, %110 : vector<16x1xf32>
    %112 = arith.subf %108, %111 : vector<16x1xf32>
    %113 = math.exp %112 : vector<16x1xf32>
    %114 = vector.broadcast %111 : vector<16x1xf32> to vector<16x16xf32>
    %115 = arith.subf %107, %114 : vector<16x16xf32>
    %116 = math.exp %115 : vector<16x16xf32>
    %c0_58 = arith.constant 0 : index
    %c3_59 = arith.constant 3 : index
    %117 = vector.load %arg13[%c0_58, %c3_59] : memref<16x4xf32, #tpu.memory_space<vmem>>, vector<16x1xf32>
    %118 = arith.mulf %113, %117 : vector<16x1xf32>
    %cst_60 = arith.constant dense<0.000000e+00> : vector<16xf32>
    %119 = vector.multi_reduction <add>, %116, %cst_60 [1] : vector<16x16xf32> to vector<16xf32>
    %120 = vector.shape_cast %119 : vector<16xf32> to vector<16x1xf32>
    %121 = arith.addf %118, %120 : vector<16x1xf32>
    %c0_61 = arith.constant 0 : index
    %c3_62 = arith.constant 3 : index
    %122 = vector.load %arg13[%c0_61, %c3_62] : memref<16x4xf32, #tpu.memory_space<vmem>>, vector<16x1xf32>
    tpu.vector_store %arg13[%c0_61, %c3_62], %121 {strides = array<i32>} : memref<16x4xf32, #tpu.memory_space<vmem>>, vector<16x1xf32>,
    %c0_63 = arith.constant 0 : index
    %c24 = arith.constant 24 : index
    %123 = vector.load %arg14[%c0_63, %c24] : memref<16x32xf32, #tpu.memory_space<vmem>>, vector<16x8xf32>
    %124 = vector.broadcast %113 : vector<16x1xf32> to vector<16x8xf32>
    %125 = arith.mulf %124, %123 : vector<16x8xf32>
    %126 = arith.truncf %116 : vector<16x16xf32> to vector<16x16xbf16>
    %127 = vector.extract_strided_slice %9 {offsets = [0, 24], sizes = [16, 8], strides = [1, 1]} : vector<16x32xbf16> to vector<16x8xbf16>
    %cst_64 = arith.constant dense<0.000000e+00> : vector<16x8xf32>
    %128 = tpu.matmul %126, %127, %cst_64 {dimension_numbers = #tpu.dot_dimension_numbers<[1], [0], [0], [1], [0, 0, 1, 1], [], []>} : vector<16x16xbf16>, vector<16x8xbf16>, vector<16x8xf32> -> vector<16x8xf32>
    %129 = arith.addf %125, %128 : vector<16x8xf32>
    %c0_65 = arith.constant 0 : index
    %c24_66 = arith.constant 24 : index
    %130 = vector.load %arg14[%c0_65, %c24_66] : memref<16x32xf32, #tpu.memory_space<vmem>>, vector<16x8xf32>
    tpu.vector_store %arg14[%c0_65, %c24_66], %129 {strides = array<i32>} : memref<16x32xf32, #tpu.memory_space<vmem>>, vector<16x8xf32>,
    %c0_67 = arith.constant 0 : index
    %c3_68 = arith.constant 3 : index
    %131 = vector.load %arg12[%c0_67, %c3_68] : memref<16x4xf32, #tpu.memory_space<vmem>>, vector<16x1xf32>
    tpu.vector_store %arg12[%c0_67, %c3_68], %111 {strides = array<i32>} : memref<16x4xf32, #tpu.memory_space<vmem>>, vector<16x1xf32>,
    %c0_i32_69 = arith.constant 0 : i32
    %132 = arith.cmpi eq, %arg2, %c0_i32_69 : i32
    %133 = arith.extui %132 : i1 to i32
    %c0_i32_70 = arith.constant 0 : i32
    %134 = arith.cmpi ne, %133, %c0_i32_70 : i32
    scf.if %134 {
      %c0_71 = arith.constant 0 : index
      %c0_72 = arith.constant 0 : index
      %135 = vector.load %arg13[%c0_71, %c0_72] : memref<16x4xf32, #tpu.memory_space<vmem>>, vector<16x4xf32>
      %136 = tpu.reciprocal %135 {approx = true} : vector<16x4xf32> -> vector<16x4xf32>
      %c0_73 = arith.constant 0 : index
      %c0_74 = arith.constant 0 : index
      %137 = vector.load %arg14[%c0_73, %c0_74] : memref<16x32xf32, #tpu.memory_space<vmem>>, vector<16x32xf32>
      %138 = vector.shape_cast %137 : vector<16x32xf32> to vector<16x4x8xf32>
      %139 = vector.shape_cast %136 : vector<16x4xf32> to vector<16x4x1xf32>
      %140 = vector.broadcast %139 : vector<16x4x1xf32> to vector<16x4x8xf32>
      %141 = arith.mulf %138, %140 : vector<16x4x8xf32>
      %142 = vector.shape_cast %141 : vector<16x4x8xf32> to vector<16x32xf32>
      %143 = arith.truncf %142 : vector<16x32xf32> to vector<16x32xbf16>
      %c0_75 = arith.constant 0 : index
      %c0_76 = arith.constant 0 : index
      %144 = vector.load %arg7[%c0_75, %c0_76] : memref<32x32xf32, #tpu.memory_space<vmem>>, vector<32x32xf32>
      %145 = arith.truncf %144 : vector<32x32xf32> to vector<32x32xbf16>
      %cst_77 = arith.constant dense<0.000000e+00> : vector<16x32xf32>
      %146 = tpu.matmul %143, %145, %cst_77 {dimension_numbers = #tpu.dot_dimension_numbers<[1], [0], [0], [1], [0, 0, 1, 1], [], []>} : vector<16x32xbf16>, vector<32x32xbf16>, vector<16x32xf32> -> vector<16x32xf32>
      %c0_78 = arith.constant 0 : index
      %c0_79 = arith.constant 0 : index
      %147 = vector.load %arg8[%c0_78, %c0_79] : memref<1x32xf32, #tpu.memory_space<vmem>>, vector<1x32xf32>
      %148 = vector.broadcast %147 : vector<1x32xf32> to vector<16x32xf32>
      %149 = arith.addf %146, %148 : vector<16x32xf32>
      %c0_80 = arith.constant 0 : index
      %c0_81 = arith.constant 0 : index
      %c0_82 = arith.constant 0 : index
      %150 = vector.load %arg3[%c0_80, %c0_81, %c0_82] : memref<1x16x32xf32, #tpu.memory_space<vmem>>, vector<1x16x32xf32>
      %151 = vector.shape_cast %150 : vector<1x16x32xf32> to vector<16x32xf32>
      %152 = arith.addf %149, %151 : vector<16x32xf32>
      %cst_83 = arith.constant dense<0.000000e+00> : vector<16xf32>
      %153 = vector.multi_reduction <add>, %152, %cst_83 [1] : vector<16x32xf32> to vector<16xf32>
      %154 = vector.shape_cast %153 : vector<16xf32> to vector<16x1xf32>
      %cst_84 = arith.constant 3.200000e+01 : f32
      %155 = vector.broadcast %cst_84 : f32 to vector<16x1xf32>
      %156 = arith.divf %154, %155 : vector<16x1xf32>
      %157 = vector.broadcast %156 : vector<16x1xf32> to vector<16x32xf32>
      %158 = arith.subf %152, %157 : vector<16x32xf32>
      %159 = arith.mulf %158, %158 : vector<16x32xf32>
      %cst_85 = arith.constant dense<0.000000e+00> : vector<16xf32>
      %160 = vector.multi_reduction <add>, %159, %cst_85 [1] : vector<16x32xf32> to vector<16xf32>
      %161 = vector.shape_cast %160 : vector<16xf32> to vector<16x1xf32>
      %cst_86 = arith.constant 3.200000e+01 : f32
      %162 = vector.broadcast %cst_86 : f32 to vector<16x1xf32>
      %163 = arith.divf %161, %162 : vector<16x1xf32>
      %164 = vector.broadcast %156 : vector<16x1xf32> to vector<16x32xf32>
      %165 = arith.subf %152, %164 : vector<16x32xf32>
      %cst_87 = arith.constant 9.99999974E-6 : f32
      %166 = vector.broadcast %cst_87 : f32 to vector<16x1xf32>
      %167 = arith.addf %163, %166 : vector<16x1xf32>
      %168 = math.rsqrt %167 : vector<16x1xf32>
      %169 = vector.broadcast %168 : vector<16x1xf32> to vector<16x32xf32>
      %170 = arith.mulf %165, %169 : vector<16x32xf32>
      %c0_88 = arith.constant 0 : index
      %c0_89 = arith.constant 0 : index
      %171 = vector.load %arg9[%c0_88, %c0_89] : memref<1x32xf32, #tpu.memory_space<vmem>>, vector<1x32xf32>
      %172 = vector.broadcast %171 : vector<1x32xf32> to vector<16x32xf32>
      %173 = arith.mulf %170, %172 : vector<16x32xf32>
      %c0_90 = arith.constant 0 : index
      %c0_91 = arith.constant 0 : index
      %174 = vector.load %arg10[%c0_90, %c0_91] : memref<1x32xf32, #tpu.memory_space<vmem>>, vector<1x32xf32>
      %175 = vector.broadcast %174 : vector<1x32xf32> to vector<16x32xf32>
      %176 = arith.addf %173, %175 : vector<16x32xf32>
      %c0_92 = arith.constant 0 : index
      %c0_93 = arith.constant 0 : index
      %c0_94 = arith.constant 0 : index
      %177 = vector.load %arg11[%c0_92, %c0_93, %c0_94] : memref<1x16x32xf32, #tpu.memory_space<vmem>>, vector<1x16x32xf32>
      %178 = vector.shape_cast %177 : vector<1x16x32xf32> to vector<16x32xf32>
      %179 = vector.shape_cast %176 : vector<16x32xf32> to vector<1x16x32xf32>
      tpu.vector_store %arg11[%c0_92, %c0_93, %c0_94], %179 {strides = array<i32>} : memref<1x16x32xf32, #tpu.memory_space<vmem>>, vector<1x16x32xf32>,
    } else {
    }
    return
  }
  func.func @transform_0(%arg0: i32, %arg1: i32, %arg2: i32) -> (i32, i32, i32) {
    %c0_i32 = arith.constant 0 : i32
    %c0_i32_0 = arith.constant 0 : i32
    return %arg0, %arg1, %c0_i32 : i32, i32, i32
  }
  func.func @transform_1(%arg0: i32, %arg1: i32, %arg2: i32) -> (i32, i32, i32) {
    %c0_i32 = arith.constant 0 : i32
    %c0_i32_0 = arith.constant 0 : i32
    return %arg0, %arg1, %c0_i32 : i32, i32, i32
  }
  func.func @transform_2(%arg0: i32, %arg1: i32, %arg2: i32) -> (i32, i32, i32) {
    %c0_i32 = arith.constant 0 : i32
    %c0_i32_0 = arith.constant 0 : i32
    return %arg0, %arg2, %c0_i32 : i32, i32, i32
  }
  func.func @transform_3(%arg0: i32, %arg1: i32, %arg2: i32) -> (i32, i32, i32) {
    %c0_i32 = arith.constant 0 : i32
    %c0_i32_0 = arith.constant 0 : i32
    return %arg0, %arg2, %c0_i32 : i32, i32, i32
  }
  func.func @transform_4(%arg0: i32, %arg1: i32, %arg2: i32) -> (i32, i32) {
    %c0_i32 = arith.constant 0 : i32
    %c0_i32_0 = arith.constant 0 : i32
    %c0_i32_1 = arith.constant 0 : i32
    return %c0_i32, %c0_i32_0 : i32, i32
  }
  func.func @transform_5(%arg0: i32, %arg1: i32, %arg2: i32) -> (i32, i32) {
    %c0_i32 = arith.constant 0 : i32
    %c0_i32_0 = arith.constant 0 : i32
    %c0_i32_1 = arith.constant 0 : i32
    return %c0_i32, %c0_i32_0 : i32, i32
  }
  func.func @transform_6(%arg0: i32, %arg1: i32, %arg2: i32) -> (i32, i32) {
    %c0_i32 = arith.constant 0 : i32
    %c0_i32_0 = arith.constant 0 : i32
    %c0_i32_1 = arith.constant 0 : i32
    return %c0_i32, %c0_i32_0 : i32, i32
  }
  func.func @transform_7(%arg0: i32, %arg1: i32, %arg2: i32) -> (i32, i32) {
    %c0_i32 = arith.constant 0 : i32
    %c0_i32_0 = arith.constant 0 : i32
    %c0_i32_1 = arith.constant 0 : i32
    return %c0_i32, %c0_i32_0 : i32, i32
  }
  func.func @transform_8(%arg0: i32, %arg1: i32, %arg2: i32) -> (i32, i32, i32) {
    %c0_i32 = arith.constant 0 : i32
    %c0_i32_0 = arith.constant 0 : i32
    return %arg0, %arg1, %c0_i32 : i32, i32, i32
  }
}

module attributes {stable_mosaic.version = 11 : i64} {
  func.func @_fused_attn_kernel(%arg0: i32, %arg1: i32, %arg2: i32, %arg3: memref<1x16x32xf32, #tpu.memory_space<vmem>>, %arg4: memref<1x16x32xf32, #tpu.memory_space<vmem>>, %arg5: memref<1x16x32xf32, #tpu.memory_space<vmem>>, %arg6: memref<1x16x32xf32, #tpu.memory_space<vmem>>, %arg7: memref<32x32xf32, #tpu.memory_space<vmem>>, %arg8: memref<1x32xf32, #tpu.memory_space<vmem>>, %arg9: memref<1x32xf32, #tpu.memory_space<vmem>>, %arg10: memref<1x32xf32, #tpu.memory_space<vmem>>, %arg11: memref<1x16x32xf32, #tpu.memory_space<vmem>>, %arg12: memref<16x4xf32, #tpu.memory_space<vmem>>, %arg13: memref<16x4xf32, #tpu.memory_space<vmem>>, %arg14: memref<16x32xf32, #tpu.memory_space<vmem>>, %arg15: memref<16x32xbf16, #tpu.memory_space<vmem>>) attributes {dimension_semantics = [#tpu.dimension_semantics<parallel>, #tpu.dimension_semantics<parallel>, #tpu.dimension_semantics<arbitrary>], iteration_bounds = array<i64: 1, 1, 1>, scalar_prefetch = 0 : i64, scratch_operands = 4 : i64, tpu.core_type = #tpu.core_type<tc>, window_params = [{transform_indices = @transform_0, window_bounds = array<i64: 1, 16, 32>}, {transform_indices = @transform_1, window_bounds = array<i64: 1, 16, 32>}, {transform_indices = @transform_2, window_bounds = array<i64: 1, 16, 32>}, {transform_indices = @transform_3, window_bounds = array<i64: 1, 16, 32>}, {pipeline_mode = #tpu.pipeline_mode<synchronous>, transform_indices = @transform_4, window_bounds = array<i64: 32, 32>}, {pipeline_mode = #tpu.pipeline_mode<synchronous>, transform_indices = @transform_5, window_bounds = array<i64: 1, 32>}, {pipeline_mode = #tpu.pipeline_mode<synchronous>, transform_indices = @transform_6, window_bounds = array<i64: 1, 32>}, {pipeline_mode = #tpu.pipeline_mode<synchronous>, transform_indices = @transform_7, window_bounds = array<i64: 1, 32>}, {transform_indices = @transform_8, window_bounds = array<i64: 1, 16, 32>}]} {
    %c0_i32 = arith.constant 0 : i32
    %0 = arith.cmpi eq, %arg2, %c0_i32 : i32
    %1 = arith.extui %0 : i1 to i32
    %c0_i32_0 = arith.constant 0 : i32
    %2 = arith.cmpi ne, %1, %c0_i32_0 : i32
    scf.if %2 {
      %cst_67 = arith.constant 0xFF800000 : f32
      %121 = vector.broadcast %cst_67 : f32 to vector<16x4xf32>
      %c0_68 = arith.constant 0 : index
      %c0_69 = arith.constant 0 : index
      %122 = vector.load %arg12[%c0_68, %c0_69] : memref<16x4xf32, #tpu.memory_space<vmem>>, vector<16x4xf32>
      tpu.vector_store %arg12[%c0_68, %c0_69], %121 {strides = array<i32>} : memref<16x4xf32, #tpu.memory_space<vmem>>, vector<16x4xf32>,
      %cst_70 = arith.constant 0.000000e+00 : f32
      %123 = vector.broadcast %cst_70 : f32 to vector<16x4xf32>
      %c0_71 = arith.constant 0 : index
      %c0_72 = arith.constant 0 : index
      %124 = vector.load %arg13[%c0_71, %c0_72] : memref<16x4xf32, #tpu.memory_space<vmem>>, vector<16x4xf32>
      tpu.vector_store %arg13[%c0_71, %c0_72], %123 {strides = array<i32>} : memref<16x4xf32, #tpu.memory_space<vmem>>, vector<16x4xf32>,
      %cst_73 = arith.constant 0.000000e+00 : f32
      %125 = vector.broadcast %cst_73 : f32 to vector<16x32xf32>
      %c0_74 = arith.constant 0 : index
      %c0_75 = arith.constant 0 : index
      %126 = vector.load %arg14[%c0_74, %c0_75] : memref<16x32xf32, #tpu.memory_space<vmem>>, vector<16x32xf32>
      tpu.vector_store %arg14[%c0_74, %c0_75], %125 {strides = array<i32>} : memref<16x32xf32, #tpu.memory_space<vmem>>, vector<16x32xf32>,
      %c0_76 = arith.constant 0 : index
      %c0_77 = arith.constant 0 : index
      %c0_78 = arith.constant 0 : index
      %127 = vector.load %arg4[%c0_76, %c0_77, %c0_78] : memref<1x16x32xf32, #tpu.memory_space<vmem>>, vector<1x16x32xf32>
      %128 = vector.shape_cast %127 : vector<1x16x32xf32> to vector<16x32xf32>
      %cst_79 = arith.constant 0.353553385 : f32
      %129 = vector.broadcast %cst_79 : f32 to vector<16x32xf32>
      %130 = arith.mulf %128, %129 : vector<16x32xf32>
      %131 = arith.truncf %130 : vector<16x32xf32> to vector<16x32xbf16>
      %c0_80 = arith.constant 0 : index
      %c0_81 = arith.constant 0 : index
      %132 = vector.load %arg15[%c0_80, %c0_81] : memref<16x32xbf16, #tpu.memory_space<vmem>>, vector<16x32xbf16>
      tpu.vector_store %arg15[%c0_80, %c0_81], %131 {strides = array<i32>} : memref<16x32xbf16, #tpu.memory_space<vmem>>, vector<16x32xbf16>,
    } else {
    }
    %c0 = arith.constant 0 : index
    %c0_1 = arith.constant 0 : index
    %3 = vector.load %arg15[%c0, %c0_1] : memref<16x32xbf16, #tpu.memory_space<vmem>>, vector<16x32xbf16>
    %c0_2 = arith.constant 0 : index
    %c0_3 = arith.constant 0 : index
    %c0_4 = arith.constant 0 : index
    %4 = vector.load %arg5[%c0_2, %c0_3, %c0_4] : memref<1x16x32xf32, #tpu.memory_space<vmem>>, vector<1x16x32xf32>
    %5 = vector.shape_cast %4 : vector<1x16x32xf32> to vector<16x32xf32>
    %6 = arith.truncf %5 : vector<16x32xf32> to vector<16x32xbf16>
    %c0_5 = arith.constant 0 : index
    %c0_6 = arith.constant 0 : index
    %c0_7 = arith.constant 0 : index
    %7 = vector.load %arg6[%c0_5, %c0_6, %c0_7] : memref<1x16x32xf32, #tpu.memory_space<vmem>>, vector<1x16x32xf32>
    %8 = vector.shape_cast %7 : vector<1x16x32xf32> to vector<16x32xf32>
    %9 = arith.truncf %8 : vector<16x32xf32> to vector<16x32xbf16>
    %10 = vector.extract_strided_slice %3 {offsets = [0, 0], sizes = [16, 8], strides = [1, 1]} : vector<16x32xbf16> to vector<16x8xbf16>
    %11 = vector.extract_strided_slice %6 {offsets = [0, 0], sizes = [16, 8], strides = [1, 1]} : vector<16x32xbf16> to vector<16x8xbf16>
    %cst = arith.constant dense<0.000000e+00> : vector<16x16xf32>
    %12 = tpu.matmul %10, %11, %cst {dimension_numbers = #tpu.dot_dimension_numbers<[1], [1], [0], [0], [0, 0, 1, 0], [], []>} : vector<16x8xbf16>, vector<16x8xbf16>, vector<16x16xf32> -> vector<16x16xf32>
    %c0_8 = arith.constant 0 : index
    %c0_9 = arith.constant 0 : index
    %13 = vector.load %arg12[%c0_8, %c0_9] : memref<16x4xf32, #tpu.memory_space<vmem>>, vector<16x1xf32>
    %cst_10 = arith.constant dense<0xFF800000> : vector<16xf32>
    %14 = vector.multi_reduction <maximumf>, %12, %cst_10 [1] : vector<16x16xf32> to vector<16xf32>
    %15 = vector.shape_cast %14 : vector<16xf32> to vector<16x1xf32>
    %16 = arith.maximumf %13, %15 : vector<16x1xf32>
    %17 = arith.subf %13, %16 : vector<16x1xf32>
    %18 = math.exp %17 : vector<16x1xf32>
    %19 = vector.broadcast %16 : vector<16x1xf32> to vector<16x16xf32>
    %20 = arith.subf %12, %19 : vector<16x16xf32>
    %21 = math.exp %20 : vector<16x16xf32>
    %c0_11 = arith.constant 0 : index
    %c0_12 = arith.constant 0 : index
    %22 = vector.load %arg13[%c0_11, %c0_12] : memref<16x4xf32, #tpu.memory_space<vmem>>, vector<16x1xf32>
    %23 = arith.mulf %18, %22 : vector<16x1xf32>
    %cst_13 = arith.constant dense<0.000000e+00> : vector<16xf32>
    %24 = vector.multi_reduction <add>, %21, %cst_13 [1] : vector<16x16xf32> to vector<16xf32>
    %25 = vector.shape_cast %24 : vector<16xf32> to vector<16x1xf32>
    %26 = arith.addf %23, %25 : vector<16x1xf32>
    %c0_14 = arith.constant 0 : index
    %c0_15 = arith.constant 0 : index
    %27 = vector.load %arg13[%c0_14, %c0_15] : memref<16x4xf32, #tpu.memory_space<vmem>>, vector<16x1xf32>
    tpu.vector_store %arg13[%c0_14, %c0_15], %26 {strides = array<i32>} : memref<16x4xf32, #tpu.memory_space<vmem>>, vector<16x1xf32>,
    %c0_16 = arith.constant 0 : index
    %c0_17 = arith.constant 0 : index
    %28 = vector.load %arg14[%c0_16, %c0_17] : memref<16x32xf32, #tpu.memory_space<vmem>>, vector<16x8xf32>
    %29 = vector.broadcast %18 : vector<16x1xf32> to vector<16x8xf32>
    %30 = arith.mulf %29, %28 : vector<16x8xf32>
    %31 = arith.truncf %21 : vector<16x16xf32> to vector<16x16xbf16>
    %32 = vector.extract_strided_slice %9 {offsets = [0, 0], sizes = [16, 8], strides = [1, 1]} : vector<16x32xbf16> to vector<16x8xbf16>
    %cst_18 = arith.constant dense<0.000000e+00> : vector<16x8xf32>
    %33 = tpu.matmul %31, %32, %cst_18 {dimension_numbers = #tpu.dot_dimension_numbers<[1], [0], [0], [1], [0, 0, 1, 1], [], []>} : vector<16x16xbf16>, vector<16x8xbf16>, vector<16x8xf32> -> vector<16x8xf32>
    %34 = arith.addf %30, %33 : vector<16x8xf32>
    %c0_19 = arith.constant 0 : index
    %c0_20 = arith.constant 0 : index
    %35 = vector.load %arg14[%c0_19, %c0_20] : memref<16x32xf32, #tpu.memory_space<vmem>>, vector<16x8xf32>
    tpu.vector_store %arg14[%c0_19, %c0_20], %34 {strides = array<i32>} : memref<16x32xf32, #tpu.memory_space<vmem>>, vector<16x8xf32>,
    %c0_21 = arith.constant 0 : index
    %c0_22 = arith.constant 0 : index
    %36 = vector.load %arg12[%c0_21, %c0_22] : memref<16x4xf32, #tpu.memory_space<vmem>>, vector<16x1xf32>
    tpu.vector_store %arg12[%c0_21, %c0_22], %16 {strides = array<i32>} : memref<16x4xf32, #tpu.memory_space<vmem>>, vector<16x1xf32>,
    %37 = vector.extract_strided_slice %3 {offsets = [0, 8], sizes = [16, 8], strides = [1, 1]} : vector<16x32xbf16> to vector<16x8xbf16>
    %38 = vector.extract_strided_slice %6 {offsets = [0, 8], sizes = [16, 8], strides = [1, 1]} : vector<16x32xbf16> to vector<16x8xbf16>
    %cst_23 = arith.constant dense<0.000000e+00> : vector<16x16xf32>
    %39 = tpu.matmul %37, %38, %cst_23 {dimension_numbers = #tpu.dot_dimension_numbers<[1], [1], [0], [0], [0, 0, 1, 0], [], []>} : vector<16x8xbf16>, vector<16x8xbf16>, vector<16x16xf32> -> vector<16x16xf32>
    %c0_24 = arith.constant 0 : index
    %c1 = arith.constant 1 : index
    %40 = vector.load %arg12[%c0_24, %c1] : memref<16x4xf32, #tpu.memory_space<vmem>>, vector<16x1xf32>
    %cst_25 = arith.constant dense<0xFF800000> : vector<16xf32>
    %41 = vector.multi_reduction <maximumf>, %39, %cst_25 [1] : vector<16x16xf32> to vector<16xf32>
    %42 = vector.shape_cast %41 : vector<16xf32> to vector<16x1xf32>
    %43 = arith.maximumf %40, %42 : vector<16x1xf32>
    %44 = arith.subf %40, %43 : vector<16x1xf32>
    %45 = math.exp %44 : vector<16x1xf32>
    %46 = vector.broadcast %43 : vector<16x1xf32> to vector<16x16xf32>
    %47 = arith.subf %39, %46 : vector<16x16xf32>
    %48 = math.exp %47 : vector<16x16xf32>
    %c0_26 = arith.constant 0 : index
    %c1_27 = arith.constant 1 : index
    %49 = vector.load %arg13[%c0_26, %c1_27] : memref<16x4xf32, #tpu.memory_space<vmem>>, vector<16x1xf32>
    %50 = arith.mulf %45, %49 : vector<16x1xf32>
    %cst_28 = arith.constant dense<0.000000e+00> : vector<16xf32>
    %51 = vector.multi_reduction <add>, %48, %cst_28 [1] : vector<16x16xf32> to vector<16xf32>
    %52 = vector.shape_cast %51 : vector<16xf32> to vector<16x1xf32>
    %53 = arith.addf %50, %52 : vector<16x1xf32>
    %c0_29 = arith.constant 0 : index
    %c1_30 = arith.constant 1 : index
    %54 = vector.load %arg13[%c0_29, %c1_30] : memref<16x4xf32, #tpu.memory_space<vmem>>, vector<16x1xf32>
    tpu.vector_store %arg13[%c0_29, %c1_30], %53 {strides = array<i32>} : memref<16x4xf32, #tpu.memory_space<vmem>>, vector<16x1xf32>,
    %c0_31 = arith.constant 0 : index
    %c8 = arith.constant 8 : index
    %55 = vector.load %arg14[%c0_31, %c8] : memref<16x32xf32, #tpu.memory_space<vmem>>, vector<16x8xf32>
    %56 = vector.broadcast %45 : vector<16x1xf32> to vector<16x8xf32>
    %57 = arith.mulf %56, %55 : vector<16x8xf32>
    %58 = arith.truncf %48 : vector<16x16xf32> to vector<16x16xbf16>
    %59 = vector.extract_strided_slice %9 {offsets = [0, 8], sizes = [16, 8], strides = [1, 1]} : vector<16x32xbf16> to vector<16x8xbf16>
    %cst_32 = arith.constant dense<0.000000e+00> : vector<16x8xf32>
    %60 = tpu.matmul %58, %59, %cst_32 {dimension_numbers = #tpu.dot_dimension_numbers<[1], [0], [0], [1], [0, 0, 1, 1], [], []>} : vector<16x16xbf16>, vector<16x8xbf16>, vector<16x8xf32> -> vector<16x8xf32>
    %61 = arith.addf %57, %60 : vector<16x8xf32>
    %c0_33 = arith.constant 0 : index
    %c8_34 = arith.constant 8 : index
    %62 = vector.load %arg14[%c0_33, %c8_34] : memref<16x32xf32, #tpu.memory_space<vmem>>, vector<16x8xf32>
    tpu.vector_store %arg14[%c0_33, %c8_34], %61 {strides = array<i32>} : memref<16x32xf32, #tpu.memory_space<vmem>>, vector<16x8xf32>,
    %c0_35 = arith.constant 0 : index
    %c1_36 = arith.constant 1 : index
    %63 = vector.load %arg12[%c0_35, %c1_36] : memref<16x4xf32, #tpu.memory_space<vmem>>, vector<16x1xf32>
    tpu.vector_store %arg12[%c0_35, %c1_36], %43 {strides = array<i32>} : memref<16x4xf32, #tpu.memory_space<vmem>>, vector<16x1xf32>,
    %64 = vector.extract_strided_slice %3 {offsets = [0, 16], sizes = [16, 8], strides = [1, 1]} : vector<16x32xbf16> to vector<16x8xbf16>
    %65 = vector.extract_strided_slice %6 {offsets = [0, 16], sizes = [16, 8], strides = [1, 1]} : vector<16x32xbf16> to vector<16x8xbf16>
    %cst_37 = arith.constant dense<0.000000e+00> : vector<16x16xf32>
    %66 = tpu.matmul %64, %65, %cst_37 {dimension_numbers = #tpu.dot_dimension_numbers<[1], [1], [0], [0], [0, 0, 1, 0], [], []>} : vector<16x8xbf16>, vector<16x8xbf16>, vector<16x16xf32> -> vector<16x16xf32>
    %c0_38 = arith.constant 0 : index
    %c2 = arith.constant 2 : index
    %67 = vector.load %arg12[%c0_38, %c2] : memref<16x4xf32, #tpu.memory_space<vmem>>, vector<16x1xf32>
    %cst_39 = arith.constant dense<0xFF800000> : vector<16xf32>
    %68 = vector.multi_reduction <maximumf>, %66, %cst_39 [1] : vector<16x16xf32> to vector<16xf32>
    %69 = vector.shape_cast %68 : vector<16xf32> to vector<16x1xf32>
    %70 = arith.maximumf %67, %69 : vector<16x1xf32>
    %71 = arith.subf %67, %70 : vector<16x1xf32>
    %72 = math.exp %71 : vector<16x1xf32>
    %73 = vector.broadcast %70 : vector<16x1xf32> to vector<16x16xf32>
    %74 = arith.subf %66, %73 : vector<16x16xf32>
    %75 = math.exp %74 : vector<16x16xf32>
    %c0_40 = arith.constant 0 : index
    %c2_41 = arith.constant 2 : index
    %76 = vector.load %arg13[%c0_40, %c2_41] : memref<16x4xf32, #tpu.memory_space<vmem>>, vector<16x1xf32>
    %77 = arith.mulf %72, %76 : vector<16x1xf32>
    %cst_42 = arith.constant dense<0.000000e+00> : vector<16xf32>
    %78 = vector.multi_reduction <add>, %75, %cst_42 [1] : vector<16x16xf32> to vector<16xf32>
    %79 = vector.shape_cast %78 : vector<16xf32> to vector<16x1xf32>
    %80 = arith.addf %77, %79 : vector<16x1xf32>
    %c0_43 = arith.constant 0 : index
    %c2_44 = arith.constant 2 : index
    %81 = vector.load %arg13[%c0_43, %c2_44] : memref<16x4xf32, #tpu.memory_space<vmem>>, vector<16x1xf32>
    tpu.vector_store %arg13[%c0_43, %c2_44], %80 {strides = array<i32>} : memref<16x4xf32, #tpu.memory_space<vmem>>, vector<16x1xf32>,
    %c0_45 = arith.constant 0 : index
    %c16 = arith.constant 16 : index
    %82 = vector.load %arg14[%c0_45, %c16] : memref<16x32xf32, #tpu.memory_space<vmem>>, vector<16x8xf32>
    %83 = vector.broadcast %72 : vector<16x1xf32> to vector<16x8xf32>
    %84 = arith.mulf %83, %82 : vector<16x8xf32>
    %85 = arith.truncf %75 : vector<16x16xf32> to vector<16x16xbf16>
    %86 = vector.extract_strided_slice %9 {offsets = [0, 16], sizes = [16, 8], strides = [1, 1]} : vector<16x32xbf16> to vector<16x8xbf16>
    %cst_46 = arith.constant dense<0.000000e+00> : vector<16x8xf32>
    %87 = tpu.matmul %85, %86, %cst_46 {dimension_numbers = #tpu.dot_dimension_numbers<[1], [0], [0], [1], [0, 0, 1, 1], [], []>} : vector<16x16xbf16>, vector<16x8xbf16>, vector<16x8xf32> -> vector<16x8xf32>
    %88 = arith.addf %84, %87 : vector<16x8xf32>
    %c0_47 = arith.constant 0 : index
    %c16_48 = arith.constant 16 : index
    %89 = vector.load %arg14[%c0_47, %c16_48] : memref<16x32xf32, #tpu.memory_space<vmem>>, vector<16x8xf32>
    tpu.vector_store %arg14[%c0_47, %c16_48], %88 {strides = array<i32>} : memref<16x32xf32, #tpu.memory_space<vmem>>, vector<16x8xf32>,
    %c0_49 = arith.constant 0 : index
    %c2_50 = arith.constant 2 : index
    %90 = vector.load %arg12[%c0_49, %c2_50] : memref<16x4xf32, #tpu.memory_space<vmem>>, vector<16x1xf32>
    tpu.vector_store %arg12[%c0_49, %c2_50], %70 {strides = array<i32>} : memref<16x4xf32, #tpu.memory_space<vmem>>, vector<16x1xf32>,
    %91 = vector.extract_strided_slice %3 {offsets = [0, 24], sizes = [16, 8], strides = [1, 1]} : vector<16x32xbf16> to vector<16x8xbf16>
    %92 = vector.extract_strided_slice %6 {offsets = [0, 24], sizes = [16, 8], strides = [1, 1]} : vector<16x32xbf16> to vector<16x8xbf16>
    %cst_51 = arith.constant dense<0.000000e+00> : vector<16x16xf32>
    %93 = tpu.matmul %91, %92, %cst_51 {dimension_numbers = #tpu.dot_dimension_numbers<[1], [1], [0], [0], [0, 0, 1, 0], [], []>} : vector<16x8xbf16>, vector<16x8xbf16>, vector<16x16xf32> -> vector<16x16xf32>
    %c0_52 = arith.constant 0 : index
    %c3 = arith.constant 3 : index
    %94 = vector.load %arg12[%c0_52, %c3] : memref<16x4xf32, #tpu.memory_space<vmem>>, vector<16x1xf32>
    %cst_53 = arith.constant dense<0xFF800000> : vector<16xf32>
    %95 = vector.multi_reduction <maximumf>, %93, %cst_53 [1] : vector<16x16xf32> to vector<16xf32>
    %96 = vector.shape_cast %95 : vector<16xf32> to vector<16x1xf32>
    %97 = arith.maximumf %94, %96 : vector<16x1xf32>
    %98 = arith.subf %94, %97 : vector<16x1xf32>
    %99 = math.exp %98 : vector<16x1xf32>
    %100 = vector.broadcast %97 : vector<16x1xf32> to vector<16x16xf32>
    %101 = arith.subf %93, %100 : vector<16x16xf32>
    %102 = math.exp %101 : vector<16x16xf32>
    %c0_54 = arith.constant 0 : index
    %c3_55 = arith.constant 3 : index
    %103 = vector.load %arg13[%c0_54, %c3_55] : memref<16x4xf32, #tpu.memory_space<vmem>>, vector<16x1xf32>
    %104 = arith.mulf %99, %103 : vector<16x1xf32>
    %cst_56 = arith.constant dense<0.000000e+00> : vector<16xf32>
    %105 = vector.multi_reduction <add>, %102, %cst_56 [1] : vector<16x16xf32> to vector<16xf32>
    %106 = vector.shape_cast %105 : vector<16xf32> to vector<16x1xf32>
    %107 = arith.addf %104, %106 : vector<16x1xf32>
    %c0_57 = arith.constant 0 : index
    %c3_58 = arith.constant 3 : index
    %108 = vector.load %arg13[%c0_57, %c3_58] : memref<16x4xf32, #tpu.memory_space<vmem>>, vector<16x1xf32>
    tpu.vector_store %arg13[%c0_57, %c3_58], %107 {strides = array<i32>} : memref<16x4xf32, #tpu.memory_space<vmem>>, vector<16x1xf32>,
    %c0_59 = arith.constant 0 : index
    %c24 = arith.constant 24 : index
    %109 = vector.load %arg14[%c0_59, %c24] : memref<16x32xf32, #tpu.memory_space<vmem>>, vector<16x8xf32>
    %110 = vector.broadcast %99 : vector<16x1xf32> to vector<16x8xf32>
    %111 = arith.mulf %110, %109 : vector<16x8xf32>
    %112 = arith.truncf %102 : vector<16x16xf32> to vector<16x16xbf16>
    %113 = vector.extract_strided_slice %9 {offsets = [0, 24], sizes = [16, 8], strides = [1, 1]} : vector<16x32xbf16> to vector<16x8xbf16>
    %cst_60 = arith.constant dense<0.000000e+00> : vector<16x8xf32>
    %114 = tpu.matmul %112, %113, %cst_60 {dimension_numbers = #tpu.dot_dimension_numbers<[1], [0], [0], [1], [0, 0, 1, 1], [], []>} : vector<16x16xbf16>, vector<16x8xbf16>, vector<16x8xf32> -> vector<16x8xf32>
    %115 = arith.addf %111, %114 : vector<16x8xf32>
    %c0_61 = arith.constant 0 : index
    %c24_62 = arith.constant 24 : index
    %116 = vector.load %arg14[%c0_61, %c24_62] : memref<16x32xf32, #tpu.memory_space<vmem>>, vector<16x8xf32>
    tpu.vector_store %arg14[%c0_61, %c24_62], %115 {strides = array<i32>} : memref<16x32xf32, #tpu.memory_space<vmem>>, vector<16x8xf32>,
    %c0_63 = arith.constant 0 : index
    %c3_64 = arith.constant 3 : index
    %117 = vector.load %arg12[%c0_63, %c3_64] : memref<16x4xf32, #tpu.memory_space<vmem>>, vector<16x1xf32>
    tpu.vector_store %arg12[%c0_63, %c3_64], %97 {strides = array<i32>} : memref<16x4xf32, #tpu.memory_space<vmem>>, vector<16x1xf32>,
    %c0_i32_65 = arith.constant 0 : i32
    %118 = arith.cmpi eq, %arg2, %c0_i32_65 : i32
    %119 = arith.extui %118 : i1 to i32
    %c0_i32_66 = arith.constant 0 : i32
    %120 = arith.cmpi ne, %119, %c0_i32_66 : i32
    scf.if %120 {
      %c0_67 = arith.constant 0 : index
      %c0_68 = arith.constant 0 : index
      %121 = vector.load %arg13[%c0_67, %c0_68] : memref<16x4xf32, #tpu.memory_space<vmem>>, vector<16x4xf32>
      %122 = tpu.reciprocal %121 {approx = true} : vector<16x4xf32> -> vector<16x4xf32>
      %c0_69 = arith.constant 0 : index
      %c0_70 = arith.constant 0 : index
      %123 = vector.load %arg14[%c0_69, %c0_70] : memref<16x32xf32, #tpu.memory_space<vmem>>, vector<16x32xf32>
      %124 = vector.shape_cast %123 : vector<16x32xf32> to vector<16x4x8xf32>
      %125 = vector.shape_cast %122 : vector<16x4xf32> to vector<16x4x1xf32>
      %126 = vector.broadcast %125 : vector<16x4x1xf32> to vector<16x4x8xf32>
      %127 = arith.mulf %124, %126 : vector<16x4x8xf32>
      %128 = vector.shape_cast %127 : vector<16x4x8xf32> to vector<16x32xf32>
      %129 = arith.truncf %128 : vector<16x32xf32> to vector<16x32xbf16>
      %c0_71 = arith.constant 0 : index
      %c0_72 = arith.constant 0 : index
      %130 = vector.load %arg7[%c0_71, %c0_72] : memref<32x32xf32, #tpu.memory_space<vmem>>, vector<32x32xf32>
      %131 = arith.truncf %130 : vector<32x32xf32> to vector<32x32xbf16>
      %cst_73 = arith.constant dense<0.000000e+00> : vector<16x32xf32>
      %132 = tpu.matmul %129, %131, %cst_73 {dimension_numbers = #tpu.dot_dimension_numbers<[1], [0], [0], [1], [0, 0, 1, 1], [], []>} : vector<16x32xbf16>, vector<32x32xbf16>, vector<16x32xf32> -> vector<16x32xf32>
      %c0_74 = arith.constant 0 : index
      %c0_75 = arith.constant 0 : index
      %133 = vector.load %arg8[%c0_74, %c0_75] : memref<1x32xf32, #tpu.memory_space<vmem>>, vector<1x32xf32>
      %134 = vector.broadcast %133 : vector<1x32xf32> to vector<16x32xf32>
      %135 = arith.addf %132, %134 : vector<16x32xf32>
      %c0_76 = arith.constant 0 : index
      %c0_77 = arith.constant 0 : index
      %c0_78 = arith.constant 0 : index
      %136 = vector.load %arg3[%c0_76, %c0_77, %c0_78] : memref<1x16x32xf32, #tpu.memory_space<vmem>>, vector<1x16x32xf32>
      %137 = vector.shape_cast %136 : vector<1x16x32xf32> to vector<16x32xf32>
      %138 = arith.addf %135, %137 : vector<16x32xf32>
      %cst_79 = arith.constant dense<0.000000e+00> : vector<16xf32>
      %139 = vector.multi_reduction <add>, %138, %cst_79 [1] : vector<16x32xf32> to vector<16xf32>
      %140 = vector.shape_cast %139 : vector<16xf32> to vector<16x1xf32>
      %cst_80 = arith.constant 3.200000e+01 : f32
      %141 = vector.broadcast %cst_80 : f32 to vector<16x1xf32>
      %142 = arith.divf %140, %141 : vector<16x1xf32>
      %143 = vector.broadcast %142 : vector<16x1xf32> to vector<16x32xf32>
      %144 = arith.subf %138, %143 : vector<16x32xf32>
      %145 = arith.mulf %144, %144 : vector<16x32xf32>
      %cst_81 = arith.constant dense<0.000000e+00> : vector<16xf32>
      %146 = vector.multi_reduction <add>, %145, %cst_81 [1] : vector<16x32xf32> to vector<16xf32>
      %147 = vector.shape_cast %146 : vector<16xf32> to vector<16x1xf32>
      %cst_82 = arith.constant 3.200000e+01 : f32
      %148 = vector.broadcast %cst_82 : f32 to vector<16x1xf32>
      %149 = arith.divf %147, %148 : vector<16x1xf32>
      %150 = vector.broadcast %142 : vector<16x1xf32> to vector<16x32xf32>
      %151 = arith.subf %138, %150 : vector<16x32xf32>
      %cst_83 = arith.constant 9.99999974E-6 : f32
      %152 = vector.broadcast %cst_83 : f32 to vector<16x1xf32>
      %153 = arith.addf %149, %152 : vector<16x1xf32>
      %154 = math.rsqrt %153 : vector<16x1xf32>
      %155 = vector.broadcast %154 : vector<16x1xf32> to vector<16x32xf32>
      %156 = arith.mulf %151, %155 : vector<16x32xf32>
      %c0_84 = arith.constant 0 : index
      %c0_85 = arith.constant 0 : index
      %157 = vector.load %arg9[%c0_84, %c0_85] : memref<1x32xf32, #tpu.memory_space<vmem>>, vector<1x32xf32>
      %158 = vector.broadcast %157 : vector<1x32xf32> to vector<16x32xf32>
      %159 = arith.mulf %156, %158 : vector<16x32xf32>
      %c0_86 = arith.constant 0 : index
      %c0_87 = arith.constant 0 : index
      %160 = vector.load %arg10[%c0_86, %c0_87] : memref<1x32xf32, #tpu.memory_space<vmem>>, vector<1x32xf32>
      %161 = vector.broadcast %160 : vector<1x32xf32> to vector<16x32xf32>
      %162 = arith.addf %159, %161 : vector<16x32xf32>
      %c0_88 = arith.constant 0 : index
      %c0_89 = arith.constant 0 : index
      %c0_90 = arith.constant 0 : index
      %163 = vector.load %arg11[%c0_88, %c0_89, %c0_90] : memref<1x16x32xf32, #tpu.memory_space<vmem>>, vector<1x16x32xf32>
      %164 = vector.shape_cast %163 : vector<1x16x32xf32> to vector<16x32xf32>
      %165 = vector.shape_cast %162 : vector<16x32xf32> to vector<1x16x32xf32>
      tpu.vector_store %arg11[%c0_88, %c0_89, %c0_90], %165 {strides = array<i32>} : memref<1x16x32xf32, #tpu.memory_space<vmem>>, vector<1x16x32xf32>,
    } else {
    }
    return
  }
  func.func @transform_0(%arg0: i32, %arg1: i32, %arg2: i32) -> (i32, i32, i32) {
    %c0_i32 = arith.constant 0 : i32
    %c0_i32_0 = arith.constant 0 : i32
    return %arg0, %arg1, %c0_i32 : i32, i32, i32
  }
  func.func @transform_1(%arg0: i32, %arg1: i32, %arg2: i32) -> (i32, i32, i32) {
    %c0_i32 = arith.constant 0 : i32
    %c0_i32_0 = arith.constant 0 : i32
    return %arg0, %arg1, %c0_i32 : i32, i32, i32
  }
  func.func @transform_2(%arg0: i32, %arg1: i32, %arg2: i32) -> (i32, i32, i32) {
    %c0_i32 = arith.constant 0 : i32
    %c0_i32_0 = arith.constant 0 : i32
    return %arg0, %arg2, %c0_i32 : i32, i32, i32
  }
  func.func @transform_3(%arg0: i32, %arg1: i32, %arg2: i32) -> (i32, i32, i32) {
    %c0_i32 = arith.constant 0 : i32
    %c0_i32_0 = arith.constant 0 : i32
    return %arg0, %arg2, %c0_i32 : i32, i32, i32
  }
  func.func @transform_4(%arg0: i32, %arg1: i32, %arg2: i32) -> (i32, i32) {
    %c0_i32 = arith.constant 0 : i32
    %c0_i32_0 = arith.constant 0 : i32
    %c0_i32_1 = arith.constant 0 : i32
    return %c0_i32, %c0_i32_0 : i32, i32
  }
  func.func @transform_5(%arg0: i32, %arg1: i32, %arg2: i32) -> (i32, i32) {
    %c0_i32 = arith.constant 0 : i32
    %c0_i32_0 = arith.constant 0 : i32
    %c0_i32_1 = arith.constant 0 : i32
    return %c0_i32, %c0_i32_0 : i32, i32
  }
  func.func @transform_6(%arg0: i32, %arg1: i32, %arg2: i32) -> (i32, i32) {
    %c0_i32 = arith.constant 0 : i32
    %c0_i32_0 = arith.constant 0 : i32
    %c0_i32_1 = arith.constant 0 : i32
    return %c0_i32, %c0_i32_0 : i32, i32
  }
  func.func @transform_7(%arg0: i32, %arg1: i32, %arg2: i32) -> (i32, i32) {
    %c0_i32 = arith.constant 0 : i32
    %c0_i32_0 = arith.constant 0 : i32
    %c0_i32_1 = arith.constant 0 : i32
    return %c0_i32, %c0_i32_0 : i32, i32
  }
  func.func @transform_8(%arg0: i32, %arg1: i32, %arg2: i32) -> (i32, i32, i32) {
    %c0_i32 = arith.constant 0 : i32
    %c0_i32_0 = arith.constant 0 : i32
    return %arg0, %arg1, %c0_i32 : i32, i32, i32
  }
}

module attributes {stable_mosaic.version = 11 : i64} {
  func.func @_linear_kernel(%arg0: i32, %arg1: memref<16x32xf32, #tpu.memory_space<vmem>>, %arg2: memref<32x32xf32, #tpu.memory_space<vmem>>, %arg3: memref<1x32xf32, #tpu.memory_space<vmem>>, %arg4: memref<16x32xf32, #tpu.memory_space<vmem>>) attributes {dimension_semantics = [#tpu.dimension_semantics<parallel>], iteration_bounds = array<i64: 1>, scalar_prefetch = 0 : i64, scratch_operands = 0 : i64, tpu.core_type = #tpu.core_type<tc>, window_params = [{transform_indices = @transform_0, window_bounds = array<i64: 16, 32>}, {pipeline_mode = #tpu.pipeline_mode<synchronous>, transform_indices = @transform_1, window_bounds = array<i64: 32, 32>}, {pipeline_mode = #tpu.pipeline_mode<synchronous>, transform_indices = @transform_2, window_bounds = array<i64: 1, 32>}, {transform_indices = @transform_3, window_bounds = array<i64: 16, 32>}]} {
    %c0 = arith.constant 0 : index
    %c0_0 = arith.constant 0 : index
    %0 = vector.load %arg1[%c0, %c0_0] : memref<16x32xf32, #tpu.memory_space<vmem>>, vector<16x32xf32>
    %1 = arith.truncf %0 : vector<16x32xf32> to vector<16x32xbf16>
    %c0_1 = arith.constant 0 : index
    %c0_2 = arith.constant 0 : index
    %2 = vector.load %arg2[%c0_1, %c0_2] : memref<32x32xf32, #tpu.memory_space<vmem>>, vector<32x32xf32>
    %3 = arith.truncf %2 : vector<32x32xf32> to vector<32x32xbf16>
    %cst = arith.constant dense<0.000000e+00> : vector<16x32xf32>
    %4 = tpu.matmul %1, %3, %cst {dimension_numbers = #tpu.dot_dimension_numbers<[1], [0], [0], [1], [0, 0, 1, 1], [], []>} : vector<16x32xbf16>, vector<32x32xbf16>, vector<16x32xf32> -> vector<16x32xf32>
    %c0_3 = arith.constant 0 : index
    %c0_4 = arith.constant 0 : index
    %5 = vector.load %arg3[%c0_3, %c0_4] : memref<1x32xf32, #tpu.memory_space<vmem>>, vector<1x32xf32>
    %6 = vector.broadcast %5 : vector<1x32xf32> to vector<16x32xf32>
    %7 = arith.addf %4, %6 : vector<16x32xf32>
    %c0_5 = arith.constant 0 : index
    %c0_6 = arith.constant 0 : index
    %8 = vector.load %arg4[%c0_5, %c0_6] : memref<16x32xf32, #tpu.memory_space<vmem>>, vector<16x32xf32>
    tpu.vector_store %arg4[%c0_5, %c0_6], %7 {strides = array<i32>} : memref<16x32xf32, #tpu.memory_space<vmem>>, vector<16x32xf32>,
    return
  }
  func.func @transform_0(%arg0: i32) -> (i32, i32) {
    %c0_i32 = arith.constant 0 : i32
    %c0_i32_0 = arith.constant 0 : i32
    return %arg0, %c0_i32 : i32, i32
  }
  func.func @transform_1(%arg0: i32) -> (i32, i32) {
    %c0_i32 = arith.constant 0 : i32
    %c0_i32_0 = arith.constant 0 : i32
    %c0_i32_1 = arith.constant 0 : i32
    return %c0_i32, %c0_i32_0 : i32, i32
  }
  func.func @transform_2(%arg0: i32) -> (i32, i32) {
    %c0_i32 = arith.constant 0 : i32
    %c0_i32_0 = arith.constant 0 : i32
    %c0_i32_1 = arith.constant 0 : i32
    return %c0_i32, %c0_i32_0 : i32, i32
  }
  func.func @transform_3(%arg0: i32) -> (i32, i32) {
    %c0_i32 = arith.constant 0 : i32
    %c0_i32_0 = arith.constant 0 : i32
    return %arg0, %c0_i32 : i32, i32
  }
}

</mosaic_0001>

<bundles_post_ra>
// kernel: ppf_transformer.23
= control target key start
LH: loop header
LB: loop body
LE: loop exit
PB: predicated region body
PF: predicated region fallthrough
CT: control target
= control target key end

     0   :  { %v98_v0 = vmov 0.0   ;;  %vm99_vm0 = vmmov 0   ;;  %vm31_vm1 = vcmask 261120   ;;  %vm76_vm2 = vcmask 785408   ;;  %s147_s1 = inlined_call_operand.vmem [shape: f32[32,96], index: 1, kind: input, shape index: {}]   ;;  %s148_s0 = inlined_call_operand.vmem [shape: f32[16,32], index: 0, kind: input, shape index: {}]   ;;  %s149_s2 = inlined_call_operand.vmem [shape: f32[1,96], index: 2, kind: input, shape index: {}]   ;;  %s150_s3 = inlined_call_operand.vmem [shape: f32[16,96], index: 3, kind: output, shape index: {}]  }
   0x1   :  { %88 = vmatprep.subr.bf16.mxu0 %v98_v0  ;;  %v20_v1 = vld [vmem:[%s147_s1 + $0x10] sm:$0xff]  ;;  %v21_v2 = vld [vmem:[%s147_s1 + $0x18] sm:$0xff]  ;;  %v18_v3 = vld [vmem:[%s147_s1] sm:$0xff]  ;;  %92 = vmatprep.mubr.msk.bf16.mxu0 %vm99_vm0, %v98_v0 }
   0x2   :  { %v23_v4 = vpack.c.bf16 %v21_v2, %v20_v1  ;;  %v19_v5 = vld [vmem:[%s147_s1 + $0x8] sm:$0xff]  ;;  %v15_v7 = vld [vmem:[%s148_s0] sm:$0xff] }
   0x3   :  { %v22_v6 = vpack.c.bf16 %v19_v5, %v18_v3  ;;  %v16_v8 = vld [vmem:[%s148_s0 + $0x8] sm:$0xff]  ;;  %v83_v10 = vld [vmem:[%s149_s2] ss:$0 sm:$0xff] }
   0x4   :  { %89 = vmatpush3.bf16.msra.mxu0 %v23_v4  ;;  %v17_v9 = vpack.c.bf16 %v16_v8, %v15_v7 }
   0x5   :  { %90 = vmatprep.subr.bf16.mxu0 %v98_v0 }
   0x8   :  { %91 = vmatpush3.bf16.msra.mxu0 %v22_v6 }
   0xb   :  { %93 = vmatmul.mubr.msk.bf16.vlgmr.msra.gmra.mxu0 %vm31_vm1, %v17_v9 }
  0xcb   :  { %v69_v11 = vpop.f32.mrf.mxu0 }
  0xcc   :  { %v70_v12 = vadd.f32 %v83_v10, %v69_v11 }
  0xcd   :  { %v94_v13 = vpop.f32.mrf.mxu0 }
  0xce   :  { %77 = vst.msk [vmem:[%s150_s3] sm:$0xff] %vm76_vm2, %v70_v12 }
  0xcf   :  { %v72_v14 = vpop.f32.mrf.mxu0 }
  0xd0   :  { %v73_v15 = vadd.f32 %v83_v10, %v72_v14 }
  0xd1   :  { %v95_v16 = vpop.f32.mrf.mxu0 }
  0xd2   :  { %78 = vst.msk [vmem:[%s150_s3 + $0x8] sm:$0xff] %vm76_vm2, %v73_v15 }

// kernel: ppf_transformer.19
= control target key start
LH: loop header
LB: loop body
LE: loop exit
PB: predicated region body
PF: predicated region fallthrough
CT: control target
= control target key end

     0   :  { %v92_v0 = vmov 0.0   ;;  %vm93_vm0 = vmmov 0   ;;  %vm28_vm1 = vcmask 130048   ;;  %vm73_vm2 = vcmask 261120   ;;  %s135_s1 = inlined_call_operand.vmem [shape: f32[16,32], index: 1, kind: input, shape index: {}]   ;;  %s136_s0 = inlined_call_operand.vmem [shape: f32[16,16], index: 0, kind: input, shape index: {}]   ;;  %s137_s2 = inlined_call_operand.vmem [shape: f32[1,32], index: 2, kind: input, shape index: {}]   ;;  %s138_s3 = inlined_call_operand.vmem [shape: f32[16,32], index: 3, kind: output, shape index: {}]  }
   0x1   :  { %84 = vmatprep.subr.bf16.mxu0 %v92_v0  ;;  %v18_v1 = vld [vmem:[%s135_s1] sm:$0xff]  ;;  %v19_v2 = vld [vmem:[%s135_s1 + $0x8] sm:$0xff]  ;;  %86 = vmatprep.mubr.msk.bf16.mxu0 %vm93_vm0, %v92_v0 }
   0x2   :  { %v15_v3 = vld [vmem:[%s136_s0] sm:$0xff]  ;;  %v20_v4 = vpack.c.bf16 %v19_v2, %v18_v1  ;;  %v16_v5 = vld [vmem:[%s136_s0 + $0x8] sm:$0xff] }
   0x3   :  { %v17_v6 = vpack.c.bf16 %v16_v5, %v15_v3  ;;  %v80_v7 = vld [vmem:[%s137_s2] ss:$0 sm:$0xff] }
   0x4   :  { %85 = vmatpush3.bf16.msra.mxu0 %v20_v4 }
   0x7   :  { %87 = vmatmul.mubr.msk.bf16.vlgmr.msra.gmra.mxu0 %vm28_vm1, %v17_v6 }
  0xc7   :  { %v66_v8 = vpop.f32.mrf.mxu0 }
  0xc8   :  { %v67_v9 = vadd.f32 %v80_v7, %v66_v8 }
  0xc9   :  { %v88_v10 = vpop.f32.mrf.mxu0 }
  0xca   :  { %74 = vst.msk [vmem:[%s138_s3] sm:$0xff] %vm73_vm2, %v67_v9 }
  0xcb   :  { %v69_v11 = vpop.f32.mrf.mxu0 }
  0xcc   :  { %v70_v12 = vadd.f32 %v80_v7, %v69_v11 }
  0xcd   :  { %v89_v13 = vpop.f32.mrf.mxu0 }
  0xce   :  { %75 = vst.msk [vmem:[%s138_s3 + $0x8] sm:$0xff] %vm73_vm2, %v70_v12 }

// kernel: ppf_transformer.25
= control target key start
LH: loop header
LB: loop body
LE: loop exit
PB: predicated region body
PF: predicated region fallthrough
CT: control target
= control target key end

     0   :  { %v248_v0 = vmov 0.0   ;;  %vm249_vm0 = vmmov 0   ;;  %vm43_vm1 = vcmask 261120   ;;  %vm110_vm2 = vcmask 523264   ;;  %s357_s1 = inlined_call_operand.vmem [shape: f32[32,64], index: 1, kind: input, shape index: {}]   ;;  %s358_s3 = inlined_call_operand.vmem [shape: f32[64,32], index: 3, kind: input, shape index: {}]   ;;  %s359_s0 = inlined_call_operand.vmem [shape: f32[16,32], index: 0, kind: input, shape index: {}]   ;;  %s360_s2 = inlined_call_operand.vmem [shape: f32[1,64], index: 2, kind: input, shape index: {}]   ;;  %s361_s4 = inlined_call_operand.vmem [shape: f32[1,32], index: 4, kind: input, shape index: {}]   ;;  %s362_s5 = inlined_call_operand.vmem [shape: f32[1,32], index: 5, kind: input, shape index: {}]   ;;  %s363_s6 = inlined_call_operand.vmem [shape: f32[1,32], index: 6, kind: input, shape index: {}]   ;;  %s364_s7 = inlined_call_operand.vmem [shape: f32[16,32], index: 7, kind: output, shape index: {}]  }
   0x1   :  { %222 = vmatprep.subr.bf16.mxu0 %v248_v0  ;;  %v32_v1 = vld [vmem:[%s357_s1 + $0x10] sm:$0xff]  ;;  %v33_v2 = vld [vmem:[%s357_s1 + $0x18] sm:$0xff]  ;;  %v30_v3 = vld [vmem:[%s357_s1] sm:$0xff]  ;;  %226 = vmatprep.mubr.msk.bf16.mxu0 %vm249_vm0, %v248_v0 }
   0x2   :  { %v35_v4 = vpack.c.bf16 %v33_v2, %v32_v1  ;;  %v31_v5 = vld [vmem:[%s357_s1 + $0x8] sm:$0xff]  ;;  %230 = vmatprep.subr.bf16.mxu1 %v248_v0  ;;  %238 = vmatprep.mubr.msk.bf16.mxu1 %vm249_vm0, %v248_v0  ;;  %v97_v6 = vld [vmem:[%s358_s3 + $0x30] sm:$0xff]  ;;  %v98_v7 = vld [vmem:[%s358_s3 + $0x38] sm:$0xff] }
   0x3   :  { %v34_v8 = vpack.c.bf16 %v31_v5, %v30_v3  ;;  %v27_v9 = vld [vmem:[%s359_s0] sm:$0xff]  ;;  %v28_v10 = vld [vmem:[%s359_s0 + $0x8] sm:$0xff]  ;;  %v102_v11 = vpack.c.bf16 %v98_v7, %v97_v6  ;;  %v93_v16 = vld [vmem:[%s358_s3 + $0x10] sm:$0xff] }
   0x4   :  { %223 = vmatpush3.bf16.msra.mxu0 %v35_v4  ;;  %v29_v12 = vpack.c.bf16 %v28_v10, %v27_v9  ;;  %v95_v13 = vld [vmem:[%s358_s3 + $0x20] sm:$0xff]  ;;  %v96_v14 = vld [vmem:[%s358_s3 + $0x28] sm:$0xff]  ;;  %v94_v17 = vld [vmem:[%s358_s3 + $0x18] sm:$0xff] }
   0x5   :  { %224 = vmatprep.subr.bf16.mxu0 %v248_v0  ;;  %231 = vmatpush3.bf16.msra.mxu1 %v102_v11  ;;  %v101_v15 = vpack.c.bf16 %v96_v14, %v95_v13  ;;  %v100_v18 = vpack.c.bf16 %v94_v17, %v93_v16  ;;  %v91_v19 = vld [vmem:[%s358_s3] sm:$0xff]  ;;  %v92_v20 = vld [vmem:[%s358_s3 + $0x8] sm:$0xff] }
   0x6   :  { %232 = vmatprep.subr.bf16.mxu1 %v248_v0  ;;  %v99_v21 = vpack.c.bf16 %v92_v20, %v91_v19  ;;  %v208_v22 = vld [vmem:[%s360_s2] ss:$0 sm:$0xff] }
   0x7   :  { %v210_v32 = vld [vmem:[%s361_s4] ss:$0 sm:$0xff] }
   0x8   :  { %225 = vmatpush3.bf16.msra.mxu0 %v34_v8  ;;  %v212_v60 = vld [vmem:[%s362_s5] ss:$0 sm:$0xff] }
   0x9   :  { %233 = vmatpush3.bf16.msra.mxu1 %v101_v15  ;;  %v213_v62 = vld [vmem:[%s363_s6] ss:$0 sm:$0xff] }
   0xa   :  { %234 = vmatprep.subr.bf16.mxu1 %v248_v0 }
   0xb   :  { %227 = vmatmul.mubr.msk.bf16.vlgmr.msra.gmra.mxu0 %vm43_vm1, %v29_v12 }
   0xd   :  { %235 = vmatpush3.bf16.msra.mxu1 %v100_v18 }
   0xe   :  { %236 = vmatprep.subr.bf16.mxu1 %v248_v0 }
  0x11   :  { %237 = vmatpush3.bf16.msra.mxu1 %v99_v21 }
  0xcb   :  { %v81_v23 = vpop.f32.mrf.mxu0 }
  0xcc   :  { %v82_v25 = vadd.f32 %v208_v22, %v81_v23 }
  0xcd   :  { %v228_v24 = vpop.f32.mrf.mxu0 }
  0xce   :  { %v88_v29 = vmax.f32 %v82_v25, 0.0 }
  0xcf   :  { %v84_v26 = vpop.f32.mrf.mxu0 }
  0xd0   :  { %v85_v27 = vadd.f32 %v208_v22, %v84_v26 }
  0xd1   :  { %v229_v28 = vpop.f32.mrf.mxu0 }
  0xd2   :  { %v89_v30 = vmax.f32 %v85_v27, 0.0 }
  0xd4   :  { %v90_v31 = vpack.c.bf16 %v89_v30, %v88_v29 }
  0xd6   :  { %239 = vmatmul.mubr.msk.bf16.vlgmr.msra.gmra.mxu1 %vm110_vm2, %v90_v31 }
 0x196   :  { %v148_v33 = vpop.f32.mrf.mxu1 }
 0x197   :  { %v149_v34 = vadd.f32 %v210_v32, %v148_v33 }
 0x198   :  { %v240_v35 = vpop.f32.mrf.mxu1 }
 0x199   :  { %v155_v36 = vadd.f32 %v149_v34, %v27_v9 }
 0x19a   :  { %v151_v37 = vpop.f32.mrf.mxu1 }
 0x19b   :  { %v152_v38 = vadd.f32 %v210_v32, %v151_v37  ;;  %v157_v39 = vsel %vm43_vm1, %v155_v36, 0.0 }
 0x19c   :  { %158 = vadd.xlane.f32.xlu0 %v157_v39  ;;  %v241_v40 = vpop.f32.mrf.mxu1 }
 0x19d   :  { %v156_v41 = vadd.f32 %v152_v38, %v28_v10 }
 0x19f   :  { %v160_v42 = vsel %vm43_vm1, %v156_v41, 0.0 }
 0x1a0   :  { %161 = vadd.xlane.f32.xlu0 %v160_v42 }
 0x225   :  { %v159_v43 = vpop.xlane.xlu0 %158 }
 0x226   :  { %v164_v44 = vmul.f32 0.03125, %v159_v43 }
 0x228   :  { %v166_v45 = vsub.f32 %v155_v36, %v164_v44 }
 0x229   :  { %v162_v46 = vpop.xlane.xlu0 %161 }
 0x22a   :  { %v165_v47 = vmul.f32 0.03125, %v162_v46  ;;  %v168_v48 = vmul.f32 %v166_v45, %v166_v45 }
 0x22c   :  { %v167_v49 = vsub.f32 %v156_v41, %v165_v47  ;;  %v170_v50 = vsel %vm43_vm1, %v168_v48, 0.0 }
 0x22d   :  { %171 = vadd.xlane.f32.xlu1 %v170_v50 }
 0x22e   :  { %v169_v51 = vmul.f32 %v167_v49, %v167_v49 }
 0x230   :  { %v173_v52 = vsel %vm43_vm1, %v169_v51, 0.0 }
 0x231   :  { %174 = vadd.xlane.f32.xlu1 %v173_v52 }
 0x2b6   :  { %v172_v53 = vpop.xlane.xlu1 %171 }
 0x2b7   :  { %v176_v54 = vmul.f32 0.03125, %v172_v53 }
 0x2b9   :  { %v178_v55 = vadd.f32 1e-05, %v176_v54 }
 0x2ba   :  { %v175_v56 = vpop.xlane.xlu1 %174 }
 0x2bb   :  { %244 = vrsqrt.f32 %v178_v55  ;;  %v177_v57 = vmul.f32 0.03125, %v175_v56 }
 0x2bd   :  { %v179_v58 = vadd.f32 1e-05, %v177_v57 }
 0x2bf   :  { %246 = vrsqrt.f32 %v179_v58 }
 0x2c8   :  { %v245_v59 = vpop.eup %244 }
 0x2c9   :  { %v182_v61 = vmul.f32 %v245_v59, %v166_v45 }
 0x2cb   :  { %v191_v63 = vmul.f32 %v212_v60, %v182_v61 }
 0x2cc   :  { %v247_v0 = vpop.eup %246 }
 0x2cd   :  { %v200_v1 = vadd.f32 %v213_v62, %v191_v63  ;;  %v183_v2 = vmul.f32 %v247_v0, %v167_v49 }
 0x2cf   :  { %202 = vst.msk [vmem:[%s364_s7] sm:$0xff] %vm43_vm1, %v200_v1  ;;  %v192_v3 = vmul.f32 %v212_v60, %v183_v2 }
 0x2d1   :  { %v201_v4 = vadd.f32 %v213_v62, %v192_v3 }
 0x2d3   :  { %203 = vst.msk [vmem:[%s364_s7 + $0x8] sm:$0xff] %vm43_vm1, %v201_v4 }

// kernel: ppf_transformer.27
= control target key start
LH: loop header
LB: loop body
LE: loop exit
PB: predicated region body
PF: predicated region fallthrough
CT: control target
= control target key end

     0   :  { %v98_v0 = vmov 0.0   ;;  %vm99_vm0 = vmmov 0   ;;  %vm31_vm1 = vcmask 261120   ;;  %vm76_vm2 = vcmask 523264   ;;  %s147_s1 = inlined_call_operand.vmem [shape: f32[32,64], index: 1, kind: input, shape index: {}]   ;;  %s148_s0 = inlined_call_operand.vmem [shape: f32[16,32], index: 0, kind: input, shape index: {}]   ;;  %s149_s2 = inlined_call_operand.vmem [shape: f32[1,64], index: 2, kind: input, shape index: {}]   ;;  %s150_s3 = inlined_call_operand.vmem [shape: f32[16,64], index: 3, kind: output, shape index: {}]  }
   0x1   :  { %88 = vmatprep.subr.bf16.mxu0 %v98_v0  ;;  %v20_v1 = vld [vmem:[%s147_s1 + $0x10] sm:$0xff]  ;;  %v21_v2 = vld [vmem:[%s147_s1 + $0x18] sm:$0xff]  ;;  %v18_v3 = vld [vmem:[%s147_s1] sm:$0xff]  ;;  %92 = vmatprep.mubr.msk.bf16.mxu0 %vm99_vm0, %v98_v0 }
   0x2   :  { %v23_v4 = vpack.c.bf16 %v21_v2, %v20_v1  ;;  %v19_v5 = vld [vmem:[%s147_s1 + $0x8] sm:$0xff]  ;;  %v15_v7 = vld [vmem:[%s148_s0] sm:$0xff] }
   0x3   :  { %v22_v6 = vpack.c.bf16 %v19_v5, %v18_v3  ;;  %v16_v8 = vld [vmem:[%s148_s0 + $0x8] sm:$0xff]  ;;  %v83_v10 = vld [vmem:[%s149_s2] ss:$0 sm:$0xff] }
   0x4   :  { %89 = vmatpush3.bf16.msra.mxu0 %v23_v4  ;;  %v17_v9 = vpack.c.bf16 %v16_v8, %v15_v7 }
   0x5   :  { %90 = vmatprep.subr.bf16.mxu0 %v98_v0 }
   0x8   :  { %91 = vmatpush3.bf16.msra.mxu0 %v22_v6 }
   0xb   :  { %93 = vmatmul.mubr.msk.bf16.vlgmr.msra.gmra.mxu0 %vm31_vm1, %v17_v9 }
  0xcb   :  { %v69_v11 = vpop.f32.mrf.mxu0 }
  0xcc   :  { %v70_v12 = vadd.f32 %v83_v10, %v69_v11 }
  0xcd   :  { %v94_v13 = vpop.f32.mrf.mxu0 }
  0xce   :  { %77 = vst.msk [vmem:[%s150_s3] sm:$0xff] %vm76_vm2, %v70_v12 }
  0xcf   :  { %v72_v14 = vpop.f32.mrf.mxu0 }
  0xd0   :  { %v73_v15 = vadd.f32 %v83_v10, %v72_v14 }
  0xd1   :  { %v95_v16 = vpop.f32.mrf.mxu0 }
  0xd2   :  { %78 = vst.msk [vmem:[%s150_s3 + $0x8] sm:$0xff] %vm76_vm2, %v73_v15 }

// kernel: ppf_transformer.26
= control target key start
LH: loop header
LB: loop body
LE: loop exit
PB: predicated region body
PF: predicated region fallthrough
CT: control target
= control target key end

     0   :  { %v97_v0 = vmov 0.0   ;;  %vm98_vm0 = vmmov 0   ;;  %vm31_vm1 = vcmask 261120   ;;  %s146_s1 = inlined_call_operand.vmem [shape: f32[32,32], index: 1, kind: input, shape index: {}]   ;;  %s147_s0 = inlined_call_operand.vmem [shape: f32[16,32], index: 0, kind: input, shape index: {}]   ;;  %s148_s2 = inlined_call_operand.vmem [shape: f32[1,32], index: 2, kind: input, shape index: {}]   ;;  %s149_s3 = inlined_call_operand.vmem [shape: f32[16,32], index: 3, kind: output, shape index: {}]  }
   0x1   :  { %87 = vmatprep.subr.bf16.mxu0 %v97_v0  ;;  %v20_v1 = vld [vmem:[%s146_s1 + $0x10] sm:$0xff]  ;;  %v21_v2 = vld [vmem:[%s146_s1 + $0x18] sm:$0xff]  ;;  %v18_v3 = vld [vmem:[%s146_s1] sm:$0xff]  ;;  %91 = vmatprep.mubr.msk.bf16.mxu0 %vm98_vm0, %v97_v0 }
   0x2   :  { %v23_v4 = vpack.c.bf16 %v21_v2, %v20_v1  ;;  %v19_v5 = vld [vmem:[%s146_s1 + $0x8] sm:$0xff]  ;;  %v15_v7 = vld [vmem:[%s147_s0] sm:$0xff] }
   0x3   :  { %v22_v6 = vpack.c.bf16 %v19_v5, %v18_v3  ;;  %v16_v8 = vld [vmem:[%s147_s0 + $0x8] sm:$0xff]  ;;  %v82_v10 = vld [vmem:[%s148_s2] ss:$0 sm:$0xff] }
   0x4   :  { %88 = vmatpush3.bf16.msra.mxu0 %v23_v4  ;;  %v17_v9 = vpack.c.bf16 %v16_v8, %v15_v7 }
   0x5   :  { %89 = vmatprep.subr.bf16.mxu0 %v97_v0 }
   0x8   :  { %90 = vmatpush3.bf16.msra.mxu0 %v22_v6 }
   0xb   :  { %92 = vmatmul.mubr.msk.bf16.vlgmr.msra.gmra.mxu0 %vm31_vm1, %v17_v9 }
  0xcb   :  { %v69_v11 = vpop.f32.mrf.mxu0 }
  0xcc   :  { %v70_v12 = vadd.f32 %v82_v10, %v69_v11 }
  0xcd   :  { %v93_v13 = vpop.f32.mrf.mxu0 }
  0xce   :  { %76 = vst.msk [vmem:[%s149_s3] sm:$0xff] %vm31_vm1, %v70_v12 }
  0xcf   :  { %v72_v14 = vpop.f32.mrf.mxu0 }
  0xd0   :  { %v73_v15 = vadd.f32 %v82_v10, %v72_v14 }
  0xd1   :  { %v94_v16 = vpop.f32.mrf.mxu0 }
  0xd2   :  { %77 = vst.msk [vmem:[%s149_s3 + $0x8] sm:$0xff] %vm31_vm1, %v73_v15 }

// kernel: ppf_transformer.24
= control target key start
LH: loop header
LB: loop body
LE: loop exit
PB: predicated region body
PF: predicated region fallthrough
CT: control target
= control target key end

     0   :  { %vm45_vm0 = vcmask 261120   ;;  %v2977_v0 = vmov 0.0   ;;  %vm2978_vm1 = vmmov 0   ;;  %vm60_vm2 = vcmask 257024   ;;  %s2981_s27 = smov 64   ;;  %s2983_s30 = smov 112   ;;  %s3796_s5 = inlined_call_operand.vmem [shape: bf16[32,128], index: 5, kind: input, shape index: {}]   ;;  %s3797_s1 = inlined_call_operand.vmem [shape: f32[1,16,32], index: 1, kind: input, shape index: {}]   ;;  %s3798_s2 = inlined_call_operand.vmem [shape: f32[1,16,32], index: 2, kind: input, shape index: {}]   ;;  %s3799_s4 = inlined_call_operand.vmem [shape: bf16[1,16,16,32], index: 4, kind: input, shape index: {}]   ;;  %s3800_s3 = inlined_call_operand.vmem [shape: f32[1,16,32], index: 3, kind: input, shape index: {}]   ;;  %s3801_s6 = inlined_call_operand.vmem [shape: f32[32,32], index: 6, kind: input, shape index: {}]   ;;  %s3802_s7 = inlined_call_operand.vmem [shape: f32[1,32], index: 7, kind: input, shape index: {}]   ;;  %s3803_s0 = inlined_call_operand.vmem [shape: f32[1,16,32], index: 0, kind: input, shape index: {}]   ;;  %s3804_s8 = inlined_call_operand.vmem [shape: f32[1,32], index: 8, kind: input, shape index: {}]   ;;  %s3805_s9 = inlined_call_operand.vmem [shape: f32[1,32], index: 9, kind: input, shape index: {}]   ;;  %s3806_s10 = inlined_call_operand.vmem [shape: f32[1,16,32], index: 10, kind: output, shape index: {}]  }
   0x1   :  { %2714 = vmatprep.subr.bf16.mxu0 %v2977_v0  ;;  %v2918_v1 = vld [vmem:[%s3796_s5 + $0x8] sm:$0xff]   ;;  %2718 = vmatprep.mubr.msk.bf16.mxu0 %vm2978_vm1, %v2977_v0  ;;  %46 = vst.msk [vmem:[#allocation4] sm:$0xff] %vm45_vm0, %v2977_v0  ;;  %47 = vst.msk [vmem:[#allocation4 + $0x8] sm:$0xff] %vm45_vm0, %v2977_v0  ;;  %v2919_v2 = vld [vmem:[%s3796_s5] sm:$0xff]   ;;  %s2980_s5 = smov 96   ;;  %s2984_s11 = smov 104   ;;  %v148_v24 = vlaneseq }
   0x2   :  { %2722 = vmatprep.subr.bf16.mxu1 %v2977_v0  ;;  %2724 = vmatprep.mubr.msk.bf16.mxu1 %vm2978_vm1, %v2977_v0  ;;  %v48_v3 = vld [vmem:[%s3797_s1] sm:$0xff]  ;;  %v49_v4 = vld [vmem:[%s3797_s1 + $0x8] sm:$0xff]  ;;  %s2979_s1 = smov 32   ;;  %v2985_v22 = vmov 1983009808   ;;  %vm295_vm3 = vcmask 254976  }
   0x3   :  { %2715 = vmatpush3.bf16.msra.mxu0 %v2918_v1  ;;  %v50_v5 = vmul.f32 0.35355338, %v48_v3  ;;  %v51_v6 = vmul.f32 0.35355338, %v49_v4  ;;  %v314_v13 = vld [vmem:[%s3798_s2] sm:$0xff]  ;;  %v315_v14 = vld [vmem:[%s3798_s2 + $0x8] sm:$0xff]  ;;  %v146_v23 = vunpack.c.l.s4 %v2985_v22 }
   0x4   :  { %2716 = vmatprep.subr.bf16.mxu0 %v2977_v0  ;;  %v2921_v15 = vld [vmem:[%s3799_s4] sm:$0xff]   ;;  %v2922_v18 = vld [vmem:[%s3799_s4 + $0x8] sm:$0xff]   ;;  %v3097_v20 = vpack.c.bf16 %v315_v14, %v314_v13  ;;  %s2982_s2 = smov 120   ;;  %v2986_v25 = vmov 1934713408   ;;  %v3115_v28 = vshrl.u32 %v148_v24, 7 }
   0x5   :  { %v52_v7 = vpack.c.bf16 %v51_v6, %v50_v5  ;;  %v2658_v8 = vpack.c.bf16 %v50_v5, %v50_v5  ;;  %v2659_v9 = vpack.c.bf16 %v51_v6, %v51_v6  ;;  %v378_v17 = vsel %vm45_vm0, %v2921_v15, 0  ;;  %s2993_s21 = smov 16   ;;  %s2994_s22 = smov 24  }
   0x6   :  { %2723 = vmatpush3.bf16.xpose.msra.mxu1 %v378_v17  ;;  %v429_v19 = vsel %vm45_vm0, %v2922_v18, 0  ;;  %v178_v26 = vunpack.c.l.s4 %v2986_v25  ;;  %v147_v27 = vunpack.c.0.s8 %v146_v23  ;;  %v2924_v23 = vld [vmem:[%s3799_s4 + $0x18] sm:$0xff]   ;;  %vm1249_vm4 = vcmask 64512  }
   0x7   :  { %2717 = vmatpush3.bf16.msra.mxu0 %v2919_v2  ;;  %61 = vst.msk [vmem:[#allocation5] sm:$0xf] %vm60_vm2, %v2658_v8  ;;  %62 = vst.msk [vmem:[#allocation5 + $0x4] sm:$0xf] %vm60_vm2, %v2659_v9  ;;  %2734 = vmatprep.subr.bf16.mxu1 %v2977_v0  ;;  %vm40_vm5 = vcmask 31744   ;;  %vm1213_vm6 = vcmask 1041409  }
   0x8   :  { %2728 = vmatprep.subr.bf16.mxu0 %v2977_v0  ;;  %v179_v31 = vunpack.c.0.s8 %v178_v26  ;;  %v3118_v32 = vsub.s32 %v147_v27, %v3115_v28  ;;  %43 = vst.msk [vmem:[#allocation3] sm:$0xff] %vm40_vm5, %v2977_v0  ;;  %44 = vst.msk [vmem:[#allocation3 + $0x8] sm:$0xff] %vm40_vm5, %v2977_v0  ;;  %vm1216_vm7 = vcmask 1042434   ;;  %vm1219_vm8 = vcmask 1043459  }
   0x9   :  { %vm1222_vm9 = vcmask 1044484   ;;  %vm1225_vm10 = vcmask 1045509   ;;  %vm1228_vm11 = vcmask 1046534   ;;  %vm1231_vm12 = vcmask 1047559  }
   0xa   :  { %2719 = vmatmul.mubr.msk.bf16.vlgmr.msra.gmra.mxu0 %vm45_vm0, %v52_v7  ;;  %v3121_v39 = vsub.s32 %v179_v31, %v3115_v28  ;;  %vm1301_vm13 = vcmask 130048   ;;  %vm1344_vm15 = vcmask 7168   ;;  %vm1540_vm2 = vcmask 15368  }
   0xb   :  { %2730 = vmatprep.mubr.msk.bf16.mxu0 %vm2978_vm1, %v2977_v0  ;;  %2729 = vmatpush3.bf16.xpose.msra.mxu0 %v429_v19 }
   0xc   :  { %2740 = vmatprep.subr.bf16.mxu0 %v2977_v0 }
   0xe   :  { %v3099_v21 = vld [vmem:[#allocation5] sm:$0xff]  }
  0xca   :  { %v116_v10 = vpop.f32.mrf.mxu0 }
  0xcb   :  { %137 = vrot.lane.b32.xlu1 %v116_v10, %s2979_s1  ;;  %125 = vrot.lane.b32.xlu0 %v116_v10, %s2980_s5 }
  0xcc   :  { %v2720_v11 = vpop.f32.mrf.mxu0 }
  0xcd   :  { %v2923_v11 = vld [vmem:[%s3799_s4 + $0x10] sm:$0xff]  }
  0xce   :  { %v3077_v12 = vpop.f32.mrf.mxu0  ;;  %v480_v22 = vsel %vm45_vm0, %v2923_v11, 0  ;;  %v2936_v11 = vld [vmem:[%s3799_s4 + $0x78] sm:$0xff]  }
  0xcf   :  { %131 = vrot.lane.b32.xlu0 %v116_v10, %s2981_s27  ;;  %127 = vrot.lane.b32.xlu1 %v3077_v12, %s2980_s5 }
  0xd0   :  { %v2721_v16 = vpop.f32.mrf.mxu0 }
  0xd3   :  { %133 = vrot.lane.b32.xlu0 %v3077_v12, %s2981_s27  ;;  %139 = vrot.lane.b32.xlu1 %v3077_v12, %s2979_s1 }
  0xd7   :  { %1415 = vrot.lane.b32.xlu0 %v3097_v20, %s2982_s2  ;;  %1412 = vrot.lane.b32.xlu1 %v3099_v21, %s2982_s2 }
  0xdb   :  { %1623 = vrot.lane.b32.xlu0 %v3097_v20, %s2983_s30  ;;  %1621 = vrot.lane.b32.xlu1 %v3099_v21, %s2983_s30 }
  0xdf   :  { %1830 = vrot.lane.b32.xlu0 %v3097_v20, %s2984_s11  ;;  %1828 = vrot.lane.b32.xlu1 %v3099_v21, %s2984_s11 }
 0x13d   :  { %v138_v29 = vpop.permute.xlu1 %137  ;;  %v126_v30 = vpop.permute.xlu0 %125 }
 0x13e   :  { %v159_v33 = vcombine.low %v126_v30, %v138_v29  ;;  %v160_v34 = vcombine.high %v126_v30, %v138_v29 }
 0x140   :  { %v167_v40 = vrot.slane %v159_v33, %v3118_v32  ;;  %v174_v41 = vrot.slane %v160_v34, %v3118_v32 }
 0x141   :  { %v132_v35 = vpop.permute.xlu0 %131  ;;  %v128_v36 = vpop.permute.xlu1 %127 }
 0x142   :  { %v143_v37 = vcombine.low %v116_v10, %v132_v35  ;;  %v144_v38 = vcombine.high %v116_v10, %v132_v35 }
 0x144   :  { %v151_v42 = vrot.slane %v143_v37, %v3118_v32  ;;  %v158_v43 = vrot.slane %v144_v38, %v3118_v32 }
 0x145   :  { %v134_v44 = vpop.permute.xlu0 %133  ;;  %v140_v45 = vpop.permute.xlu1 %139 }
 0x146   :  { %v175_v46 = vcombine.low %v151_v42, %v167_v40  ;;  %v176_v47 = vcombine.high %v151_v42, %v167_v40  ;;  %v191_v48 = vcombine.low %v158_v43, %v174_v41  ;;  %v192_v49 = vcombine.high %v158_v43, %v174_v41  ;;  %v2925_v43 = vld [vmem:[%s3799_s4 + $0x20] sm:$0xff]  }
 0x147   :  { %v211_v50 = vcombine.low %v3077_v12, %v134_v44  ;;  %v212_v51 = vcombine.high %v3077_v12, %v134_v44  ;;  %v227_v52 = vcombine.low %v128_v36, %v140_v45  ;;  %v228_v53 = vcombine.high %v128_v36, %v140_v45  ;;  %v2926_v44 = vld [vmem:[%s3799_s4 + $0x28] sm:$0xff]  }
 0x148   :  { %v183_v54 = vrot.slane %v175_v46, %v3121_v39  ;;  %v190_v55 = vrot.slane %v176_v47, %v3121_v39  ;;  %v199_v56 = vrot.slane %v191_v48, %v3121_v39  ;;  %v206_v57 = vrot.slane %v192_v49, %v3121_v39  ;;  %v2927_v49 = vld [vmem:[%s3799_s4 + $0x30] sm:$0xff]  }
 0x149   :  { %v219_v58 = vrot.slane %v211_v50, %v3118_v32  ;;  %v226_v59 = vrot.slane %v212_v51, %v3118_v32  ;;  %v235_v60 = vrot.slane %v227_v52, %v3118_v32  ;;  %v242_v61 = vrot.slane %v228_v53, %v3118_v32  ;;  %v2928_v50 = vld [vmem:[%s3799_s4 + $0x38] sm:$0xff]  }
 0x14a   :  { %v207_v62 = vcombine.high %v183_v54, %v2977_v0  ;;  %v208_v63 = vcombine.high %v190_v55, %v2977_v0  ;;  %v209_v1 = vcombine.high %v199_v56, %v2977_v0  ;;  %v210_v2 = vcombine.high %v206_v57, %v2977_v0 }
 0x14b   :  { %v279_v3 = vpack.c.bf16 %v183_v54, %v183_v54  ;;  %v281_v4 = vpack.c.bf16 %v190_v55, %v190_v55  ;;  %v283_v5 = vpack.c.bf16 %v199_v56, %v199_v56  ;;  %v285_v6 = vpack.c.bf16 %v206_v57, %v206_v57  ;;  %v2929_v55 = vld [vmem:[%s3799_s4 + $0x40] sm:$0xff]   ;;  %v2930_v56 = vld [vmem:[%s3799_s4 + $0x48] sm:$0xff]  }
 0x14c   :  { %v280_v7 = vpack.c.bf16 %v207_v62, %v207_v62  ;;  %v282_v8 = vpack.c.bf16 %v208_v63, %v208_v63  ;;  %v284_v9 = vpack.c.bf16 %v209_v1, %v209_v1  ;;  %v286_v10 = vpack.c.bf16 %v210_v2, %v210_v2  ;;  %v2932_v62 = vld [vmem:[%s3799_s4 + $0x58] sm:$0xff]  }
 0x14d   :  { %296 = vst.msk [vmem:[#allocation6] sm:$0x3] %vm295_vm3, %v279_v3  ;;  %298 = vst.msk [vmem:[#allocation6 + $0x4] sm:$0x3] %vm295_vm3, %v281_v4  ;;  %v243_v12 = vcombine.low %v219_v58, %v235_v60  ;;  %v244_v13 = vcombine.high %v219_v58, %v235_v60  ;;  %v259_v14 = vcombine.low %v226_v59, %v242_v61  ;;  %v531_v41 = vsel %vm45_vm0, %v2924_v23, 0  ;;  %v2933_v4 = vld [vmem:[%s3799_s4 + $0x60] sm:$0xff]   ;;  %v1413_v23 = vpop.permute.xlu1 %1412 }
 0x14e   :  { %300 = vst.msk [vmem:[#allocation6 + $0x8] sm:$0x3] %vm295_vm3, %v283_v5  ;;  %302 = vst.msk [vmem:[#allocation6 + $0xc] sm:$0x3] %vm295_vm3, %v285_v6  ;;  %v260_v15 = vcombine.high %v226_v59, %v242_v61  ;;  %v582_v45 = vsel %vm45_vm0, %v2925_v43, 0  ;;  %v633_v47 = vsel %vm45_vm0, %v2926_v44, 0 }
 0x14f   :  { %297 = vst.msk [vmem:[#allocation6 + $0x2] sm:$0x3] %vm295_vm3, %v280_v7  ;;  %299 = vst.msk [vmem:[#allocation6 + $0x6] sm:$0x3] %vm295_vm3, %v282_v8  ;;  %v251_v16 = vrot.slane %v243_v12, %v3121_v39  ;;  %v258_v17 = vrot.slane %v244_v13, %v3121_v39  ;;  %v267_v18 = vrot.slane %v259_v14, %v3121_v39  ;;  %v684_v51 = vsel %vm45_vm0, %v2927_v49, 0  ;;  %v2931_v61 = vld [vmem:[%s3799_s4 + $0x50] sm:$0xff]  }
 0x150   :  { %301 = vst.msk [vmem:[#allocation6 + $0xa] sm:$0x3] %vm295_vm3, %v284_v9  ;;  %303 = vst.msk [vmem:[#allocation6 + $0xe] sm:$0x3] %vm295_vm3, %v286_v10  ;;  %v274_v19 = vrot.slane %v260_v15, %v3121_v39  ;;  %v735_v53 = vsel %vm45_vm0, %v2928_v50, 0  ;;  %v786_v57 = vsel %vm45_vm0, %v2929_v55, 0 }
 0x151   :  { %v275_v25 = vcombine.high %v251_v16, %v2977_v0  ;;  %v276_v26 = vcombine.high %v258_v17, %v2977_v0  ;;  %v277_v27 = vcombine.high %v267_v18, %v2977_v0  ;;  %v287_v30 = vpack.c.bf16 %v251_v16, %v251_v16  ;;  %v2934_v5 = vld [vmem:[%s3799_s4 + $0x68] sm:$0xff]   ;;  %v2935_v10 = vld [vmem:[%s3799_s4 + $0x70] sm:$0xff]  }
 0x152   :  { %v278_v29 = vcombine.high %v274_v19, %v2977_v0  ;;  %v289_v31 = vpack.c.bf16 %v258_v17, %v258_v17  ;;  %v291_v33 = vpack.c.bf16 %v267_v18, %v267_v18  ;;  %v293_v34 = vpack.c.bf16 %v274_v19, %v274_v19  ;;  %v1416_v19 = vpop.permute.xlu0 %1415 }
 0x153   :  { %v288_v35 = vpack.c.bf16 %v275_v25, %v275_v25  ;;  %v290_v36 = vpack.c.bf16 %v276_v26, %v276_v26  ;;  %v292_v37 = vpack.c.bf16 %v277_v27, %v277_v27  ;;  %304 = vst.msk [vmem:[#allocation6 + $0x10] sm:$0x3] %vm295_vm3, %v287_v30  ;;  %v837_v59 = vsel %vm45_vm0, %v2930_v56, 0 }
 0x154   :  { %v294_v38 = vpack.c.bf16 %v278_v29, %v278_v29  ;;  %306 = vst.msk [vmem:[#allocation6 + $0x14] sm:$0x3] %vm295_vm3, %v289_v31  ;;  %308 = vst.msk [vmem:[#allocation6 + $0x18] sm:$0x3] %vm295_vm3, %v291_v33  ;;  %v320_v40 = vld [vmem:[#allocation6] sm:$0x3] }
 0x155   :  { %310 = vst.msk [vmem:[#allocation6 + $0x1c] sm:$0x3] %vm295_vm3, %v293_v34  ;;  %305 = vst.msk [vmem:[#allocation6 + $0x12] sm:$0x3] %vm295_vm3, %v288_v35  ;;  %2725 = vmatmul.mubr.msk.bf16.vlgmr.msra.gmra.mxu1 %vm45_vm0, %v320_v40  ;;  %v322_v46 = vld [vmem:[#allocation6 + $0x4] sm:$0x3] }
 0x156   :  { %307 = vst.msk [vmem:[#allocation6 + $0x16] sm:$0x3] %vm295_vm3, %v290_v36  ;;  %309 = vst.msk [vmem:[#allocation6 + $0x1a] sm:$0x3] %vm295_vm3, %v292_v37  ;;  %v321_v42 = vld [vmem:[#allocation6 + $0x2] sm:$0x3]  ;;  %2735 = vmatpush3.bf16.xpose.msra.mxu1 %v480_v22  ;;  %2736 = vmatprep.mubr.msk.bf16.mxu1 %vm2978_vm1, %v2977_v0 }
 0x157   :  { %311 = vst.msk [vmem:[#allocation6 + $0x1e] sm:$0x3] %vm295_vm3, %v294_v38  ;;  %2731 = vmatmul.mubr.msk.bf16.vlgmr.msra.gmra.mxu0 %vm45_vm0, %v321_v42  ;;  %2746 = vmatprep.subr.bf16.mxu1 %v2977_v0  ;;  %v323_v48 = vld [vmem:[#allocation6 + $0x6] sm:$0x3]  ;;  %v324_v52 = vld [vmem:[#allocation6 + $0x8] sm:$0x3] }
 0x158   :  { %2741 = vmatpush3.bf16.xpose.msra.mxu0 %v531_v41  ;;  %2742 = vmatprep.mubr.msk.bf16.mxu0 %vm2978_vm1, %v2977_v0  ;;  %v325_v54 = vld [vmem:[#allocation6 + $0xa] sm:$0x3]  ;;  %v326_v58 = vld [vmem:[#allocation6 + $0xc] sm:$0x3]  ;;  %v327_v60 = vld [vmem:[#allocation6 + $0xe] sm:$0x3] }
 0x159   :  { %2752 = vmatprep.subr.bf16.mxu0 %v2977_v0  ;;  %v888_v63 = vsel %vm45_vm0, %v2931_v61, 0  ;;  %v939_v2 = vsel %vm45_vm0, %v2932_v62, 0  ;;  %v990_v6 = vsel %vm45_vm0, %v2933_v4, 0  ;;  %v1041_v8 = vsel %vm45_vm0, %v2934_v5, 0 }
 0x15a   :  { %v328_v1 = vld [vmem:[#allocation6 + $0x10] sm:$0x3]  ;;  %v1092_v12 = vsel %vm45_vm0, %v2935_v10, 0  ;;  %v1143_v14 = vsel %vm45_vm0, %v2936_v11, 0  ;;  %v1254_v16 = vsel %vm1249_vm4, %v3097_v20, 0  ;;  %v1451_v22 = vsel %vm1249_vm4, %v1416_v19, 0  ;;  %v1624_v20 = vpop.permute.xlu0 %1623 }
 0x15b   :  { %v330_v7 = vld [vmem:[#allocation6 + $0x14] sm:$0x3]  ;;  %v332_v13 = vld [vmem:[#allocation6 + $0x18] sm:$0x3]  ;;  %v1659_v25 = vsel %vm1249_vm4, %v1624_v20, 0  ;;  %v2987_v30 = vmov -inf  }
 0x15c   :  { %v329_v3 = vld [vmem:[#allocation6 + $0x12] sm:$0x3]  ;;  %v334_v17 = vld [vmem:[#allocation6 + $0x1c] sm:$0x3]  ;;  %41 = vst.msk [vmem:[#allocation2] sm:$0xff] %vm40_vm5, %v2987_v30  ;;  %42 = vst.msk [vmem:[#allocation2 + $0x8] sm:$0xff] %vm40_vm5, %v2987_v30 }
 0x15d   :  { %2737 = vmatmul.mubr.msk.bf16.vlgmr.msra.gmra.mxu1 %vm45_vm0, %v322_v46  ;;  %v331_v9 = vld [vmem:[#allocation6 + $0x16] sm:$0x3]  ;;  %v333_v15 = vld [vmem:[#allocation6 + $0x1a] sm:$0x3]  ;;  %vm1748_vm3 = vcmask 23568   ;;  %vm1955_vm5 = vcmask 31768  }
 0x15e   :  { %2747 = vmatpush3.bf16.xpose.msra.mxu1 %v582_v45  ;;  %2748 = vmatprep.mubr.msk.bf16.mxu1 %vm2978_vm1, %v2977_v0  ;;  %v335_v18 = vld [vmem:[#allocation6 + $0x1e] sm:$0x3]  ;;  %v1831_v26 = vpop.permute.xlu0 %1830 }
 0x15f   :  { %2743 = vmatmul.mubr.msk.bf16.vlgmr.msra.gmra.mxu0 %vm45_vm0, %v323_v48  ;;  %2758 = vmatprep.subr.bf16.mxu1 %v2977_v0  ;;  %v1866_v27 = vsel %vm1249_vm4, %v1831_v26, 0 }
 0x160   :  { %2753 = vmatpush3.bf16.xpose.msra.mxu0 %v633_v47  ;;  %2754 = vmatprep.mubr.msk.bf16.mxu0 %vm2978_vm1, %v2977_v0 }
 0x161   :  { %2764 = vmatprep.subr.bf16.mxu0 %v2977_v0 }
 0x165   :  { %2749 = vmatmul.mubr.msk.bf16.vlgmr.msra.gmra.mxu1 %vm45_vm0, %v324_v52 }
 0x166   :  { %2759 = vmatpush3.bf16.xpose.msra.mxu1 %v684_v51  ;;  %2760 = vmatprep.mubr.msk.bf16.mxu1 %vm2978_vm1, %v2977_v0 }
 0x167   :  { %2755 = vmatmul.mubr.msk.bf16.vlgmr.msra.gmra.mxu0 %vm45_vm0, %v325_v54  ;;  %2770 = vmatprep.subr.bf16.mxu1 %v2977_v0 }
 0x168   :  { %2765 = vmatpush3.bf16.xpose.msra.mxu0 %v735_v53  ;;  %2766 = vmatprep.mubr.msk.bf16.mxu0 %vm2978_vm1, %v2977_v0 }
 0x169   :  { %2776 = vmatprep.subr.bf16.mxu0 %v2977_v0 }
 0x16d   :  { %2761 = vmatmul.mubr.msk.bf16.vlgmr.msra.gmra.mxu1 %vm45_vm0, %v326_v58 }
 0x16e   :  { %2771 = vmatpush3.bf16.xpose.msra.mxu1 %v786_v57  ;;  %2772 = vmatprep.mubr.msk.bf16.mxu1 %vm2978_vm1, %v2977_v0 }
 0x16f   :  { %2767 = vmatmul.mubr.msk.bf16.vlgmr.msra.gmra.mxu0 %vm45_vm0, %v327_v60  ;;  %2782 = vmatprep.subr.bf16.mxu1 %v2977_v0 }
 0x170   :  { %2777 = vmatpush3.bf16.xpose.msra.mxu0 %v837_v59  ;;  %2778 = vmatprep.mubr.msk.bf16.mxu0 %vm2978_vm1, %v2977_v0 }
 0x171   :  { %2788 = vmatprep.subr.bf16.mxu0 %v2977_v0 }
 0x175   :  { %2773 = vmatmul.mubr.msk.bf16.vlgmr.msra.gmra.mxu1 %vm45_vm0, %v328_v1 }
 0x176   :  { %2783 = vmatpush3.bf16.xpose.msra.mxu1 %v888_v63  ;;  %2784 = vmatprep.mubr.msk.bf16.mxu1 %vm2978_vm1, %v2977_v0 }
 0x177   :  { %2779 = vmatmul.mubr.msk.bf16.vlgmr.msra.gmra.mxu0 %vm45_vm0, %v329_v3  ;;  %2794 = vmatprep.subr.bf16.mxu1 %v2977_v0 }
 0x178   :  { %2789 = vmatpush3.bf16.xpose.msra.mxu0 %v939_v2  ;;  %2790 = vmatprep.mubr.msk.bf16.mxu0 %vm2978_vm1, %v2977_v0 }
 0x179   :  { %2800 = vmatprep.subr.bf16.mxu0 %v2977_v0 }
 0x17d   :  { %2785 = vmatmul.mubr.msk.bf16.vlgmr.msra.gmra.mxu1 %vm45_vm0, %v330_v7 }
 0x17e   :  { %2795 = vmatpush3.bf16.xpose.msra.mxu1 %v990_v6  ;;  %2796 = vmatprep.mubr.msk.bf16.mxu1 %vm2978_vm1, %v2977_v0 }
 0x17f   :  { %2791 = vmatmul.mubr.msk.bf16.vlgmr.msra.gmra.mxu0 %vm45_vm0, %v331_v9  ;;  %2806 = vmatprep.subr.bf16.mxu1 %v2977_v0 }
 0x180   :  { %2801 = vmatpush3.bf16.xpose.msra.mxu0 %v1041_v8  ;;  %2802 = vmatprep.mubr.msk.bf16.mxu0 %vm2978_vm1, %v2977_v0 }
 0x181   :  { %2812 = vmatprep.subr.bf16.mxu0 %v2977_v0 }
 0x185   :  { %2797 = vmatmul.mubr.msk.bf16.vlgmr.msra.gmra.mxu1 %vm45_vm0, %v332_v13 }
 0x186   :  { %2807 = vmatpush3.bf16.xpose.msra.mxu1 %v1092_v12  ;;  %2808 = vmatprep.mubr.msk.bf16.mxu1 %vm2978_vm1, %v2977_v0 }
 0x187   :  { %2803 = vmatmul.mubr.msk.bf16.vlgmr.msra.gmra.mxu0 %vm45_vm0, %v333_v15  ;;  %2818 = vmatprep.subr.bf16.mxu1 %v2977_v0 }
 0x188   :  { %2813 = vmatpush3.bf16.xpose.msra.mxu0 %v1143_v14  ;;  %2814 = vmatprep.mubr.msk.bf16.mxu0 %vm2978_vm1, %v2977_v0 }
 0x189   :  { %2824 = vmatprep.subr.bf16.mxu0 %v2977_v0 }
 0x18d   :  { %2809 = vmatmul.mubr.msk.bf16.vlgmr.msra.gmra.mxu1 %vm45_vm0, %v334_v17 }
 0x18e   :  { %2819 = vmatpush3.bf16.xpose.msra.mxu1 %v1254_v16  ;;  %2820 = vmatprep.mubr.msk.bf16.mxu1 %vm2978_vm1, %v2977_v0 }
 0x18f   :  { %2815 = vmatmul.mubr.msk.bf16.vlgmr.msra.gmra.mxu0 %vm45_vm0, %v335_v18  ;;  %2830 = vmatprep.subr.bf16.mxu1 %v2977_v0 }
 0x190   :  { %2826 = vmatprep.mubr.msk.bf16.mxu0 %vm2978_vm1, %v2977_v0 }
 0x195   :  { %2821 = vmatmul.mubr.msk.bf16.vlgmr.msra.gmra.mxu1 %vm1249_vm4, %v3099_v21  ;;  %v1622_v21 = vpop.permute.xlu1 %1621 }
 0x196   :  { %2831 = vmatpush3.bf16.xpose.msra.mxu1 %v1451_v22  ;;  %2832 = vmatprep.mubr.msk.bf16.mxu1 %vm2978_vm1, %v2977_v0 }
 0x197   :  { %2842 = vmatprep.subr.bf16.mxu1 %v2977_v0 }
 0x199   :  { %v1829_v29 = vpop.permute.xlu1 %1828 }
 0x19d   :  { %2833 = vmatmul.mubr.msk.bf16.vlgmr.msra.gmra.mxu1 %vm1249_vm4, %v1413_v23 }
 0x19e   :  { %2843 = vmatpush3.bf16.xpose.msra.mxu1 %v1659_v25  ;;  %2844 = vmatprep.mubr.msk.bf16.mxu1 %vm2978_vm1, %v2977_v0 }
 0x19f   :  { %2854 = vmatprep.subr.bf16.mxu1 %v2977_v0 }
 0x1a5   :  { %2845 = vmatmul.mubr.msk.bf16.vlgmr.msra.gmra.mxu1 %vm1249_vm4, %v1622_v21 }
 0x1a6   :  { %2855 = vmatpush3.bf16.xpose.msra.mxu1 %v1866_v27  ;;  %2856 = vmatprep.mubr.msk.bf16.mxu1 %vm2978_vm1, %v2977_v0 }
 0x1a7   :  { %2866 = vmatprep.subr.bf16.mxu1 %v2977_v0 }
 0x1ad   :  { %2857 = vmatmul.mubr.msk.bf16.vlgmr.msra.gmra.mxu1 %vm1249_vm4, %v1829_v29 }
 0x1ae   :  { %2870 = vmatprep.mubr.msk.bf16.mxu1 %vm2978_vm1, %v2977_v0 }
 0x215   :  { %v3307_v31 = vpop.f32.mrf.mxu1 }
 0x216   :  { %v1625_v34 = vrot.slane %v3307_v31, 2  ;;  %v1832_v35 = vrot.slane %v3307_v31, 3 }
 0x217   :  { %v3309_v33 = vpop.f32.mrf.mxu0  ;;  %v2726_v36 = vpop.f32.mrf.mxu1 }
 0x218   :  { %v1626_v37 = vrot.slane %v3309_v33, 1  ;;  %v1833_v38 = vrot.slane %v3309_v33, 2 }
 0x219   :  { %v2732_v40 = vpop.f32.mrf.mxu0  ;;  %v417_v41 = vpop.f32.mrf.mxu1 }
 0x21a   :  { %v1627_v42 = vsel %vm1213_vm6, %v1626_v37, %v1625_v34  ;;  %v1834_v43 = vsel %vm1213_vm6, %v1833_v38, %v1832_v35  ;;  %v1212_v38 = vrot.slane %v3309_v33, 7 }
 0x21b   :  { %v468_v44 = vpop.f32.mrf.mxu0  ;;  %v2727_v45 = vpop.f32.mrf.mxu1 }
 0x21c   :  { %v1214_v45 = vsel %vm1213_vm6, %v1212_v38, %v3307_v31 }
 0x21d   :  { %v2733_v46 = vpop.f32.mrf.mxu0  ;;  %v3317_v47 = vpop.f32.mrf.mxu1 }
 0x21e   :  { %v1628_v48 = vsel %vm1216_vm7, %v3317_v47, %v1627_v42  ;;  %v1835_v49 = vrot.slane %v3317_v47, 1  ;;  %v1215_v41 = vrot.slane %v3317_v47, 6 }
 0x21f   :  { %v3322_v50 = vpop.f32.mrf.mxu0  ;;  %v2738_v51 = vpop.f32.mrf.mxu1 }
 0x220   :  { %v1629_v52 = vrot.slane %v3322_v50, 7  ;;  %v1836_v53 = vsel %vm1216_vm7, %v1835_v49, %v1834_v43  ;;  %v1218_v46 = vrot.slane %v3322_v50, 5  ;;  %v1217_v49 = vsel %vm1216_vm7, %v1215_v41, %v1214_v45 }
 0x221   :  { %v2744_v54 = vpop.f32.mrf.mxu0  ;;  %v1837_v56 = vsel %vm1219_vm8, %v3322_v50, %v1836_v53  ;;  %v519_v57 = vpop.f32.mrf.mxu1 }
 0x222   :  { %v3327_v55 = vsel %vm1219_vm8, %v1629_v52, %v1628_v48  ;;  %v1417_v57 = vrot.slane %v3307_v31, 1 }
 0x223   :  { %v570_v58 = vpop.f32.mrf.mxu0  ;;  %v2739_v59 = vpop.f32.mrf.mxu1 }
 0x224   :  { %v1419_v59 = vrot.slane %v3317_v47, 7 }
 0x225   :  { %v2745_v60 = vpop.f32.mrf.mxu0  ;;  %v3331_v61 = vpop.f32.mrf.mxu1 }
 0x226   :  { %v1838_v62 = vrot.slane %v3331_v61, 7  ;;  %v1221_v51 = vrot.slane %v3331_v61, 4  ;;  %v1220_v60 = vsel %vm1219_vm8, %v1218_v46, %v1217_v49 }
 0x227   :  { %v3334_v63 = vpop.f32.mrf.mxu0  ;;  %v2750_v1 = vpop.f32.mrf.mxu1 }
 0x228   :  { %v1840_v2 = vrot.slane %v3334_v63, 6  ;;  %v1839_v4 = vsel %vm1222_vm9, %v1838_v62, %v1837_v56  ;;  %v1224_v62 = vrot.slane %v3334_v63, 3 }
 0x229   :  { %v2756_v3 = vpop.f32.mrf.mxu0  ;;  %v621_v5 = vpop.f32.mrf.mxu1 }
 0x22a   :  { %v3339_v6 = vsel %vm1225_vm10, %v1840_v2, %v1839_v4 }
 0x22b   :  { %v672_v7 = vpop.f32.mrf.mxu0  ;;  %v2751_v8 = vpop.f32.mrf.mxu1 }
 0x22c   :  { %v1223_v7 = vsel %vm1222_vm9, %v1221_v51, %v1220_v60 }
 0x22d   :  { %v2757_v9 = vpop.f32.mrf.mxu0  ;;  %v3341_v10 = vpop.f32.mrf.mxu1 }
 0x22e   :  { %v1227_v2 = vrot.slane %v3341_v10, 2  ;;  %v1418_v9 = vsel %vm1213_vm6, %v3309_v33, %v1417_v57  ;;  %v1427_v38 = vrot.slane %v3341_v10, 3  ;;  %v1631_v57 = vrot.slane %v3331_v61, 6 }
 0x22f   :  { %v3343_v11 = vpop.f32.mrf.mxu0  ;;  %v2762_v12 = vpop.f32.mrf.mxu1 }
 0x230   :  { %v1421_v12 = vrot.slane %v3322_v50, 6  ;;  %v1429_v60 = vrot.slane %v3343_v11, 2 }
 0x231   :  { %v2768_v13 = vpop.f32.mrf.mxu0  ;;  %v723_v14 = vpop.f32.mrf.mxu1 }
 0x232   :  { %v3385_v14 = vand.u32 127, %v148_v24 }
 0x233   :  { %v774_v15 = vpop.f32.mrf.mxu0  ;;  %v2763_v16 = vpop.f32.mrf.mxu1 }
 0x234   :  { %v1420_v15 = vsel %vm1216_vm7, %v1419_v59, %v1418_v9  ;;  %v1423_v16 = vrot.slane %v3331_v61, 5  ;;  %vm1190_vm14 = vcmp.lt.s32.totalorder %v3385_v14, 12  ;;  %v1299_v14 = vld [vmem:[#allocation2] sm:$0xff] }
 0x235   :  { %v2769_v17 = vpop.f32.mrf.mxu0  ;;  %v3345_v18 = vpop.f32.mrf.mxu1 }
 0x236   :  { %v1230_v17 = vrot.slane %v3343_v11, 1 }
 0x237   :  { %v3347_v19 = vpop.f32.mrf.mxu0  ;;  %v2774_v22 = vpop.f32.mrf.mxu1 }
 0x238   :  { %v1233_v52 = vrot.slane %v3347_v19, 7 }
 0x239   :  { %v2780_v20 = vpop.f32.mrf.mxu0  ;;  %v825_v23 = vpop.f32.mrf.mxu1 }
 0x23a   :  { %v1234_v3 = vsel %vm1213_vm6, %v1233_v52, %v3345_v18  ;;  %v1226_v20 = vsel %vm1225_vm10, %v1224_v62, %v1223_v7  ;;  %v1431_v23 = vrot.slane %v3345_v18, 1 }
 0x23b   :  { %v876_v25 = vpop.f32.mrf.mxu0  ;;  %v2775_v26 = vpop.f32.mrf.mxu1 }
 0x23c   :  { %v1229_v26 = vsel %vm1228_vm11, %v1227_v2, %v1226_v20  ;;  %v1432_v45 = vsel %vm1213_vm6, %v3347_v19, %v1431_v23 }
 0x23d   :  { %v2781_v21 = vpop.f32.mrf.mxu0  ;;  %v3349_v27 = vpop.f32.mrf.mxu1  ;;  %v1232_v41 = vsel %vm1231_vm12, %v1230_v17, %v1229_v26  ;;  %v1632_v17 = vsel %vm1222_vm9, %v1631_v57, %v3327_v55 }
 0x23e   :  { %v1235_v54 = vrot.slane %v3349_v27, 6  ;;  %v1433_v24 = vrot.slane %v3349_v27, 7 }
 0x23f   :  { %v3351_v29 = vpop.f32.mrf.mxu0  ;;  %v2786_v30 = vpop.f32.mrf.mxu1 }
 0x240   :  { %v1237_v4 = vrot.slane %v3351_v29, 5  ;;  %v1236_v31 = vsel %vm1216_vm7, %v1235_v54, %v1234_v3  ;;  %v1435_v46 = vrot.slane %v3351_v29, 6  ;;  %v1434_v52 = vsel %vm1216_vm7, %v1433_v24, %v1432_v45 }
 0x241   :  { %v2792_v34 = vpop.f32.mrf.mxu0  ;;  %v927_v35 = vpop.f32.mrf.mxu1  ;;  %v1643_v23 = vrot.slane %v3351_v29, 7 }
 0x242   :  { %v1238_v33 = vsel %vm1219_vm8, %v1237_v4, %v1236_v31  ;;  %v1422_v35 = vsel %vm1219_vm8, %v1421_v12, %v1420_v15  ;;  %v1436_v2 = vsel %vm1219_vm8, %v1435_v46, %v1434_v52  ;;  %v1633_v31 = vrot.slane %v3334_v63, 5 }
 0x243   :  { %v978_v36 = vpop.f32.mrf.mxu0  ;;  %v2787_v37 = vpop.f32.mrf.mxu1  ;;  %v1640_v15 = vrot.slane %v3347_v19, 1 }
 0x244   :  { %v1425_v36 = vrot.slane %v3334_v63, 4 }
 0x245   :  { %v2793_v40 = vpop.f32.mrf.mxu0  ;;  %v3355_v42 = vpop.f32.mrf.mxu1 }
 0x246   :  { %v1239_v47 = vrot.slane %v3355_v42, 4  ;;  %v1645_v55 = vrot.slane %v3355_v42, 6 }
 0x247   :  { %v3357_v43 = vpop.f32.mrf.mxu0  ;;  %v2798_v44 = vpop.f32.mrf.mxu1 }
 0x248   :  { %v1241_v50 = vrot.slane %v3357_v43, 3  ;;  %v1240_v34 = vsel %vm1222_vm9, %v1239_v47, %v1238_v33  ;;  %v1424_v44 = vsel %vm1222_vm9, %v1423_v16, %v1422_v35  ;;  %v1439_v3 = vrot.slane %v3357_v43, 4 }
 0x249   :  { %v2804_v48 = vpop.f32.mrf.mxu0  ;;  %v1029_v53 = vpop.f32.mrf.mxu1  ;;  %v1426_v59 = vsel %vm1225_vm10, %v1425_v36, %v1424_v44  ;;  %v1647_v46 = vrot.slane %v3357_v43, 5 }
 0x24a   :  { %v1242_v51 = vsel %vm1225_vm10, %v1241_v50, %v1240_v34  ;;  %v1437_v53 = vrot.slane %v3355_v42, 5  ;;  %v1637_v34 = vrot.slane %v3343_v11, 3 }
 0x24b   :  { %v1080_v56 = vpop.f32.mrf.mxu0  ;;  %v2799_v58 = vpop.f32.mrf.mxu1 }
 0x24c   :  { %v1438_v12 = vsel %vm1222_vm9, %v1437_v53, %v1436_v2 }
 0x24d   :  { %v2805_v1 = vpop.f32.mrf.mxu0  ;;  %v3374_v5 = vpop.f32.mrf.mxu1  ;;  %v1440_v26 = vsel %vm1225_vm10, %v1439_v3, %v1438_v12  ;;  %v1842_v3 = vrot.slane %v3341_v10, 5 }
 0x24e   :  { %v1243_v21 = vrot.slane %v3374_v5, 2  ;;  %v1428_v1 = vsel %vm1228_vm11, %v1427_v38, %v1426_v59  ;;  %v1441_v47 = vrot.slane %v3374_v5, 3  ;;  %v1847_v38 = vrot.slane %v3347_v19, 2 }
 0x24f   :  { %v3379_v8 = vpop.f32.mrf.mxu0  ;;  %v2810_v13 = vpop.f32.mrf.mxu1  ;;  %v1430_v20 = vsel %vm1231_vm12, %v1429_v60, %v1428_v1  ;;  %v1846_v19 = vrot.slane %v3345_v18, 3  ;;  %v1649_v52 = vrot.slane %v3374_v5, 4 }
 0x250   :  { %v1245_v48 = vrot.slane %v3379_v8, 1  ;;  %v1244_v56 = vsel %vm1228_vm11, %v1243_v21, %v1242_v51  ;;  %v1635_v13 = vrot.slane %v3341_v10, 4  ;;  %v1443_v33 = vrot.slane %v3379_v8, 2 }
 0x251   :  { %v2816_v22 = vpop.f32.mrf.mxu0  ;;  %v1131_v25 = vpop.f32.mrf.mxu1  ;;  %v1442_v21 = vsel %vm1228_vm11, %v1441_v47, %v1440_v26  ;;  %v1651_v60 = vrot.slane %v3379_v8, 3  ;;  %v1844_v47 = vrot.slane %v3343_v11, 4  ;;  %v1843_v11 = vsel %vm1228_vm11, %v1842_v3, %v3339_v6 }
 0x252   :  { %v1246_v4 = vsel %vm1231_vm12, %v1245_v48, %v1244_v56  ;;  %v1639_v22 = vrot.slane %v3345_v18, 2  ;;  %v1444_v48 = vsel %vm1231_vm12, %v1443_v33, %v1442_v21  ;;  %v1848_v56 = vsel %vm1213_vm6, %v1847_v38, %v1846_v19  ;;  %v317_v38 = vld [vmem:[%s3800_s3] sm:$0xff] }
 0x253   :  { %v1182_v30 = vpop.f32.mrf.mxu0  ;;  %v2811_v37 = vpop.f32.mrf.mxu1 }
 0x254   :  { %v1634_v30 = vsel %vm1225_vm10, %v1633_v31, %v1632_v17  ;;  %v1641_v35 = vsel %vm1213_vm6, %v1640_v15, %v1639_v22  ;;  %v2988_v22 = vmov 0   ;;  %vm1823_vm6 = vcmask 195712  }
 0x255   :  { %v2817_v40 = vpop.f32.mrf.mxu0  ;;  %v1290_v49 = vpop.f32.mrf.mxu1  ;;  %v1636_v37 = vsel %vm1228_vm11, %v1635_v13, %v1634_v30  ;;  %v1854_v13 = vrot.slane %v3357_v43, 6  ;;  %2893 = vset.pattern.permute.xlu0 %v2988_v22  ;;  %2892 = vset.pattern.permute.xlu1 %v2988_v22 }
 0x256   :  { %v1291_v54 = vadd.f32 %v1290_v49, %v1232_v41  ;;  %v1642_v40 = vsel %vm1216_vm7, %v3349_v27, %v1641_v35  ;;  %v1849_v41 = vrot.slane %v3349_v27, 1  ;;  %v1638_v57 = vsel %vm1231_vm12, %v1637_v34, %v1636_v37 }
 0x257   :  { %v2822_v58 = vpop.f32.mrf.mxu1  ;;  %v1644_v45 = vsel %vm1219_vm8, %v1643_v23, %v1642_v40  ;;  %v1858_v23 = vrot.slane %v3379_v8, 4  ;;  %v318_v40 = vld [vmem:[%s3800_s3 + $0x8] sm:$0xff]  ;;  %s2992_s3 = smov 8  }
 0x258   :  { %v3417_v62 = vsel %vm1190_vm14, %v1291_v54, -1e+30  ;;  %v1646_v27 = vsel %vm1222_vm9, %v1645_v55, %v1644_v45  ;;  %v1850_v59 = vsel %vm1216_vm7, %v1849_v41, %v1848_v56  ;;  %v3525_v41 = vpack.c.bf16 %v318_v40, %v317_v38 }
 0x259   :  { %v1293_v7 = vpop.f32.mrf.mxu1  ;;  %v1302_v61 = vsel %vm1301_vm13, %v3417_v62, -inf  ;;  %v1648_v2 = vsel %vm1225_vm10, %v1647_v46, %v1646_v27  ;;  %vm2030_vm7 = vcmask 261312  }
 0x25a   :  { %v1294_v9 = vadd.f32 %v1293_v7, %v1246_v4  ;;  %1303 = vmax.xlane.f32.xlu0 %v1302_v61  ;;  %v1852_v4 = vrot.slane %v3355_v42, 7  ;;  %v1650_v61 = vsel %vm1228_vm11, %v1649_v52, %v1648_v2  ;;  %2825 = vmatpush3.bf16.msra.mxu0 %v3525_v41 }
 0x25b   :  { %v2823_v16 = vpop.f32.mrf.mxu1  ;;  %v1652_v10 = vsel %vm1231_vm12, %v1651_v60, %v1650_v61  ;;  %2836 = vmatprep.subr.bf16.mxu0 %v2977_v0  ;;  %v2990_v61 = vmov 2  }
 0x25c   :  { %v3436_v63 = vsel %vm1190_vm14, %v1294_v9, -1e+30  ;;  %v1851_v9 = vsel %vm1219_vm8, %v3351_v29, %v1850_v59  ;;  %v1856_v16 = vrot.slane %v3374_v5, 5  ;;  %v1845_v5 = vsel %vm1231_vm12, %v1844_v47, %v1843_v11 }
 0x25d   :  { %v1487_v50 = vpop.f32.mrf.mxu1  ;;  %v1305_v25 = vsel %vm1301_vm13, %v3436_v63, -inf  ;;  %v1853_v29 = vsel %vm1222_vm9, %v1852_v4, %v1851_v9  ;;  %vm2492_vm8 = vcmask 195584  }
 0x25e   :  { %v1488_v24 = vadd.f32 %v1487_v50, %v1430_v20  ;;  %1306 = vmax.xlane.f32.xlu1 %v1305_v25  ;;  %v1855_v50 = vsel %vm1225_vm10, %v1854_v13, %v1853_v29 }
 0x25f   :  { %v2834_v36 = vpop.f32.mrf.mxu1  ;;  %v1857_v26 = vsel %vm1228_vm11, %v1856_v16, %v1855_v50 }
 0x260   :  { %v3455_v44 = vsel %vm1190_vm14, %v1488_v24, -1e+30  ;;  %v1859_v21 = vsel %vm1231_vm12, %v1858_v23, %v1857_v26  ;;  %v2991_v23 = vmov 3  }
 0x261   :  { %v1490_v49 = vpop.f32.mrf.mxu1  ;;  %v1498_v51 = vsel %vm1301_vm13, %v3455_v44, -inf }
 0x262   :  { %v1491_v53 = vadd.f32 %v1490_v49, %v1444_v48  ;;  %1499 = vmax.xlane.f32.xlu0 %v1498_v51  ;;  %v1300_v48 = vld [vmem:[#allocation2 + $0x8] sm:$0xff] }
 0x263   :  { %v2835_v54 = vpop.f32.mrf.mxu1 }
 0x264   :  { %v3469_v58 = vsel %vm1190_vm14, %v1491_v53, -1e+30  ;;  %v2989_v53 = vmov 1  }
 0x265   :  { %v1695_v18 = vpop.f32.mrf.mxu1  ;;  %v1501_v1 = vsel %vm1301_vm13, %v3469_v58, -inf }
 0x266   :  { %v1696_v7 = vadd.f32 %v1695_v18, %v1638_v57  ;;  %1502 = vmax.xlane.f32.xlu0 %v1501_v1 }
 0x267   :  { %v2846_v31 = vpop.f32.mrf.mxu1 }
 0x268   :  { %v3484_v12 = vsel %vm1190_vm14, %v1696_v7, -1e+30 }
 0x269   :  { %v1698_v15 = vpop.f32.mrf.mxu1  ;;  %v1706_v42 = vsel %vm1301_vm13, %v3484_v12, -inf }
 0x26a   :  { %v1699_v17 = vadd.f32 %v1698_v15, %v1652_v10  ;;  %1707 = vmax.xlane.f32.xlu1 %v1706_v42 }
 0x26b   :  { %v2847_v20 = vpop.f32.mrf.mxu1 }
 0x26c   :  { %v3498_v43 = vsel %vm1190_vm14, %v1699_v17, -1e+30 }
 0x26d   :  { %v1902_v33 = vpop.f32.mrf.mxu1  ;;  %v1709_v6 = vsel %vm1301_vm13, %v3498_v43, -inf }
 0x26e   :  { %v1903_v25 = vadd.f32 %v1902_v33, %v1845_v5  ;;  %1710 = vmax.xlane.f32.xlu0 %v1709_v6 }
 0x26f   :  { %v2858_v55 = vpop.f32.mrf.mxu1 }
 0x270   :  { %v3508_v24 = vsel %vm1190_vm14, %v1903_v25, -1e+30 }
 0x271   :  { %v1905_v8 = vpop.f32.mrf.mxu1  ;;  %v1913_v30 = vsel %vm1301_vm13, %v3508_v24, -inf }
 0x272   :  { %v1906_v34 = vadd.f32 %v1905_v8, %v1859_v21  ;;  %1914 = vmax.xlane.f32.xlu1 %v1913_v30 }
 0x273   :  { %v2859_v35 = vpop.f32.mrf.mxu1 }
 0x274   :  { %v3515_v36 = vsel %vm1190_vm14, %v1906_v34, -1e+30 }
 0x275   :  { %v1916_v37 = vsel %vm1301_vm13, %v3515_v36, -inf }
 0x276   :  { %1917 = vmax.xlane.f32.xlu0 %v1916_v37 }
 0x2e3   :  { %v1304_v45 = vpop.xlane.xlu0 %1303 }
 0x2e4   :  { %v1308_v46 = vmax.f32 %v1299_v14, %v1304_v45 }
 0x2e6   :  { %v1310_v49 = vsub.f32 %v1299_v14, %v1308_v46  ;;  %1410 = vst.msk [vmem:[#allocation2] sm:$0xff] %vm1344_vm15, %v1308_v46  ;;  %1318 = vperm.xlu1 %2892, %v1308_v46  }
 0x2e7   :  { %v1307_v51 = vpop.xlane.xlu1 %1306 }
 0x2e8   :  { %v1312_v19 = vmul.f32 1.442695, %v1310_v49  ;;  %v1309_v52 = vmax.f32 %v1300_v48, %v1307_v51 }
 0x2ea   :  { %2937 = vpow2.f32 %v1312_v19  ;;  %1411 = vst.msk [vmem:[#allocation2 + $0x8] sm:$0xff] %vm1344_vm15, %v1309_v52  ;;  %1323 = vperm.xlu0 %2893, %v1309_v52   ;;  %2894 = vset.pattern.permute.xlu1 %v2989_v53  ;;  %v1311_v13 = vsub.f32 %v1300_v48, %v1309_v52 }
 0x2eb   :  { %v1500_v27 = vpop.xlane.xlu0 %1499 }
 0x2ec   :  { %v1314_v42 = vmul.f32 1.442695, %v1311_v13 }
 0x2ed   :  { %v1496_v54 = vld [vmem:[#allocation2] sm:$0xff] }
 0x2ee   :  { %v1504_v56 = vmax.f32 %v1496_v54, %v1500_v27  ;;  %1973 = vrot.lane.b32.xlu0 %v3525_v41, %s2984_s11 }
 0x2ef   :  { %v1503_v59 = vpop.xlane.xlu0 %1502 }
 0x2f0   :  { %v1506_v57 = vsub.f32 %v1496_v54, %v1504_v56  ;;  %1619 = vst.msk [vmem:[#allocation2] sm:$0xff] %vm1540_vm2, %v1504_v56  ;;  %1514 = vperm.xlu1 %2894, %v1504_v56  }
 0x2f1   :  { %v1497_v60 = vld [vmem:[#allocation2 + $0x8] sm:$0xff] }
 0x2f2   :  { %v1508_v18 = vmul.f32 1.442695, %v1506_v57  ;;  %v1505_v1 = vmax.f32 %v1497_v60, %v1503_v59 }
 0x2f3   :  { %v1708_v4 = vpop.xlane.xlu1 %1707 }
 0x2f4   :  { %2939 = vpow2.f32 %v1508_v18  ;;  %1620 = vst.msk [vmem:[#allocation2 + $0x8] sm:$0xff] %vm1540_vm2, %v1505_v1  ;;  %1519 = vperm.xlu1 %2894, %v1505_v1   ;;  %v1507_v17 = vsub.f32 %v1497_v60, %v1505_v1 }
 0x2f6   :  { %v1510_v33 = vmul.f32 1.442695, %v1507_v17 }
 0x2f7   :  { %v3536_v2 = vpop.eup %2937  ;;  %v1704_v3 = vld [vmem:[#allocation2] sm:$0xff]  ;;  %v1711_v47 = vpop.xlane.xlu0 %1710 }
 0x2f8   :  { %v1712_v7 = vmax.f32 %v1704_v3, %v1708_v4  ;;  %1351 = vperm.xlu0 %2893, %v3536_v2   ;;  %2895 = vset.pattern.permute.xlu1 %v2990_v61 }
 0x2fa   :  { %v1714_v31 = vsub.f32 %v1704_v3, %v1712_v7  ;;  %1826 = vst.msk [vmem:[#allocation2] sm:$0xff] %vm1748_vm3, %v1712_v7  ;;  %1722 = vperm.xlu1 %2895, %v1712_v7  }
 0x2fb   :  { %v1705_v9 = vld [vmem:[#allocation2 + $0x8] sm:$0xff]  ;;  %v1915_v29 = vpop.xlane.xlu1 %1914 }
 0x2fc   :  { %v1716_v10 = vmul.f32 1.442695, %v1714_v31  ;;  %v1713_v15 = vmax.f32 %v1705_v9, %v1711_v47  ;;  %2898 = vset.pattern.permute.xlu0 %v2989_v53 }
 0x2fe   :  { %2941 = vpow2.f32 %v1716_v10  ;;  %1827 = vst.msk [vmem:[#allocation2 + $0x8] sm:$0xff] %vm1748_vm3, %v1713_v15  ;;  %1727 = vperm.xlu1 %2895, %v1713_v15   ;;  %v1715_v25 = vsub.f32 %v1705_v9, %v1713_v15 }
 0x2ff   :  { %2943 = vpow2.f32 %v1314_v42  ;;  %v1918_v6 = vpop.xlane.xlu0 %1917 }
 0x300   :  { %2945 = vpow2.f32 %v1510_v33  ;;  %v1718_v21 = vmul.f32 1.442695, %v1715_v25 }
 0x301   :  { %v3542_v16 = vpop.eup %2939  ;;  %v3544_v11 = vld [vmem:[#allocation2] sm:$0xff] }
 0x302   :  { %v3547_v20 = vmax.f32 %v3544_v11, %v1915_v29  ;;  %1547 = vperm.xlu0 %2898, %v3542_v16   ;;  %1559 = vrot.lane.b32.xlu1 %v3525_v41, %s2982_s2  ;;  %2947 = vpow2.f32 %v1718_v21 }
 0x303   :  { %2896 = vset.pattern.permute.xlu1 %v2991_v23 }
 0x304   :  { %v1921_v5 = vsub.f32 %v3544_v11, %v3547_v20  ;;  %2033 = vst.msk [vmem:[#allocation2] sm:$0xff] %vm1955_vm5, %v3547_v20 }
 0x305   :  { %v3556_v50 = vld [vmem:[#allocation2 + $0x8] sm:$0xff] }
 0x306   :  { %v3559_v26 = vmax.f32 %v3556_v50, %v1918_v6  ;;  %1929 = vperm.xlu1 %2896, %v3547_v20   ;;  %2900 = vset.pattern.permute.xlu0 %v2990_v61 }
 0x308   :  { %v1922_v55 = vsub.f32 %v3556_v50, %v3559_v26  ;;  %2034 = vst.msk [vmem:[#allocation2 + $0x8] sm:$0xff] %vm1955_vm5, %v3559_v26 }
 0x30a   :  { %1934 = vperm.xlu1 %2896, %v3559_v26  }
 0x30b   :  { %v3567_v8 = vpop.eup %2941 }
 0x30c   :  { %1755 = vperm.xlu0 %2900, %v3567_v8   ;;  %v3573_v30 = vpop.eup %2943 }
 0x30d   :  { %v3576_v34 = vpop.eup %2945 }
 0x30e   :  { %1766 = vrot.lane.b32.xlu1 %v3525_v41, %s2983_s30 }
 0x30f   :  { %2897 = vset.pattern.permute.xlu1 %v2988_v22  ;;  %v3580_v35 = vpop.eup %2947 }
 0x310   :  { %2902 = vset.pattern.permute.xlu0 %v2991_v23 }
 0x312   :  { %1356 = vperm.xlu1 %2897, %v3573_v30  }
 0x316   :  { %2899 = vset.pattern.permute.xlu1 %v2989_v53 }
 0x317   :  { %1552 = vperm.xlu1 %2899, %v3576_v34  }
 0x31b   :  { %2901 = vset.pattern.permute.xlu1 %v2990_v61 }
 0x31c   :  { %1760 = vperm.xlu1 %2901, %v3580_v35  }
 0x361   :  { %v1319_v37 = vpop.permute.xlu1 %1318 }
 0x362   :  { %v1326_v38 = vsub.f32 %v3417_v62, %v1319_v37 }
 0x364   :  { %v1328_v22 = vmul.f32 1.442695, %v1326_v38 }
 0x365   :  { %v1324_v40 = vpop.permute.xlu0 %1323 }
 0x366   :  { %2949 = vpow2.f32 %v1328_v22  ;;  %v1327_v41 = vsub.f32 %v3436_v63, %v1324_v40  ;;  %v1332_v40 = vld [vmem:[#allocation3] sm:$0xff] }
 0x368   :  { %v1330_v14 = vmul.f32 1.442695, %v1327_v41  ;;  %v1334_v41 = vmul.f32 %v3536_v2, %v1332_v40 }
 0x369   :  { %v1974_v29 = vpop.permute.xlu0 %1973 }
 0x36a   :  { %2951 = vpow2.f32 %v1330_v14 }
 0x36b   :  { %v1515_v45 = vpop.permute.xlu1 %1514 }
 0x36c   :  { %v1522_v46 = vsub.f32 %v3455_v44, %v1515_v45 }
 0x36e   :  { %v1524_v48 = vmul.f32 1.442695, %v1522_v46  ;;  %v1333_v46 = vld [vmem:[#allocation3 + $0x8] sm:$0xff] }
 0x36f   :  { %v1520_v49 = vpop.permute.xlu1 %1519 }
 0x370   :  { %2953 = vpow2.f32 %v1524_v48  ;;  %v1523_v51 = vsub.f32 %v3469_v58, %v1520_v49  ;;  %v1335_v49 = vmul.f32 %v3573_v30, %v1333_v46 }
 0x372   :  { %v1526_v19 = vmul.f32 1.442695, %v1523_v51 }
 0x373   :  { %v2950_v52 = vpop.eup %2949  ;;  %v1352_v37 = vpop.permute.xlu0 %1351 }
 0x374   :  { %2955 = vpow2.f32 %v1526_v19  ;;  %v1336_v62 = vsel %vm1301_vm13, %v2950_v52, 0.0 }
 0x375   :  { %1337 = vadd.xlane.f32.xlu1 %v1336_v62  ;;  %v1723_v53 = vpop.permute.xlu1 %1722 }
 0x376   :  { %v1730_v27 = vsub.f32 %v3484_v12, %v1723_v53 }
 0x377   :  { %v2952_v63 = vpop.eup %2951 }
 0x378   :  { %v1732_v54 = vmul.f32 1.442695, %v1730_v27  ;;  %v1339_v56 = vsel %vm1301_vm13, %v2952_v63, 0.0  ;;  %v1361_v57 = vpack.c.bf16 %v2952_v63, %v2950_v52 }
 0x379   :  { %1340 = vadd.xlane.f32.xlu0 %v1339_v56  ;;  %v1728_v44 = vpop.permute.xlu1 %1727  ;;  %v1923_v56 = vmul.f32 1.442695, %v1921_v5 }
 0x37a   :  { %2957 = vpow2.f32 %v1732_v54  ;;  %v1731_v59 = vsub.f32 %v3498_v43, %v1728_v44  ;;  %2827 = vmatmul.mubr.msk.bf16.vlgmr.msra.gmra.mxu0 %vm1301_vm13, %v1361_v57 }
 0x37b   :  { %2838 = vmatprep.mubr.msk.bf16.mxu0 %vm2978_vm1, %v2977_v0 }
 0x37c   :  { %v1734_v58 = vmul.f32 1.442695, %v1731_v59 }
 0x37d   :  { %v2954_v60 = vpop.eup %2953  ;;  %v1560_v18 = vpop.permute.xlu1 %1559 }
 0x37e   :  { %2959 = vpow2.f32 %v1734_v58  ;;  %2837 = vmatpush3.bf16.msra.mxu0 %v1560_v18  ;;  %v1532_v12 = vsel %vm1301_vm13, %v2954_v60, 0.0  ;;  %v3615_v38 = vpop.permute.xlu0 %1547 }
 0x37f   :  { %1533 = vadd.xlane.f32.xlu1 %v1532_v12  ;;  %2848 = vmatprep.subr.bf16.mxu0 %v2977_v0 }
 0x381   :  { %v2956_v1 = vpop.eup %2955  ;;  %v1930_v3 = vpop.permute.xlu1 %1929 }
 0x382   :  { %v1937_v4 = vsub.f32 %v3508_v24, %v1930_v3  ;;  %v1535_v43 = vsel %vm1301_vm13, %v2956_v1, 0.0  ;;  %v1557_v7 = vpack.c.bf16 %v2956_v1, %v2954_v60  ;;  %v1347_v3 = vld [vmem:[#allocation4] sm:$0xff] }
 0x383   :  { %1536 = vadd.xlane.f32.xlu0 %v1535_v43 }
 0x384   :  { %v1939_v61 = vmul.f32 1.442695, %v1937_v4  ;;  %2839 = vmatmul.mubr.msk.bf16.vlgmr.msra.gmra.mxu0 %vm1301_vm13, %v1557_v7  ;;  %v1348_v4 = vld [vmem:[#allocation4 + $0x8] sm:$0xff] }
 0x385   :  { %v1935_v31 = vpop.permute.xlu1 %1934  ;;  %2850 = vmatprep.mubr.msk.bf16.mxu0 %vm2978_vm1, %v2977_v0 }
 0x386   :  { %2961 = vpow2.f32 %v1939_v61  ;;  %v1938_v47 = vsub.f32 %v3515_v36, %v1935_v31 }
 0x387   :  { %v2958_v9 = vpop.eup %2957  ;;  %v3620_v14 = vpop.permute.xlu0 %1755 }
 0x388   :  { %v1941_v13 = vmul.f32 1.442695, %v1938_v47  ;;  %v1740_v10 = vsel %vm1301_vm13, %v2958_v9, 0.0 }
 0x389   :  { %1741 = vadd.xlane.f32.xlu1 %v1740_v10  ;;  %v1767_v24 = vpop.permute.xlu1 %1766  ;;  %v1925_v10 = vmul.f32 1.442695, %v1922_v55  ;;  %v2202_v55 = vsub.s32 0, %v3115_v28 }
 0x38a   :  { %2963 = vpow2.f32 %v1941_v13  ;;  %2849 = vmatpush3.bf16.msra.mxu0 %v1767_v24 }
 0x38b   :  { %v2960_v15 = vpop.eup %2959  ;;  %2860 = vmatprep.subr.bf16.mxu0 %v2977_v0  ;;  %2965 = vpow2.f32 %v1923_v56  ;;  %v2251_v56 = vsub.s32 7, %v3115_v28 }
 0x38c   :  { %v1743_v42 = vsel %vm1301_vm13, %v2960_v15, 0.0  ;;  %v1765_v17 = vpack.c.bf16 %v2960_v15, %v2958_v9  ;;  %2967 = vpow2.f32 %v1925_v10 }
 0x38d   :  { %1744 = vadd.xlane.f32.xlu0 %v1743_v42  ;;  %v1357_v25 = vpop.permute.xlu1 %1356 }
 0x38e   :  { %2851 = vmatmul.mubr.msk.bf16.vlgmr.msra.gmra.mxu0 %vm1301_vm13, %v1765_v17  ;;  %v1360_v31 = vmul.f32 %v1357_v25, %v1348_v4 }
 0x38f   :  { %2861 = vmatpush3.bf16.msra.mxu0 %v1974_v29  ;;  %2862 = vmatprep.mubr.msk.bf16.mxu0 %vm2978_vm1, %v2977_v0  ;;  %vm1616_vm1 = vcmask 130112  }
 0x392   :  { %v3613_v21 = vpop.permute.xlu1 %1552 }
 0x393   :  { %v2962_v36 = vpop.eup %2961 }
 0x394   :  { %v1947_v23 = vsel %vm1301_vm13, %v2962_v36, 0.0 }
 0x395   :  { %1948 = vadd.xlane.f32.xlu1 %v1947_v23 }
 0x397   :  { %v3609_v33 = vpop.eup %2963  ;;  %v3617_v22 = vpop.permute.xlu1 %1760 }
 0x398   :  { %v1972_v6 = vpack.c.bf16 %v3609_v33, %v2962_v36  ;;  %v2966_v11 = vpop.eup %2965 }
 0x399   :  { %v3645_v26 = vpop.eup %2967 }
 0x39a   :  { %2863 = vmatmul.mubr.msk.bf16.vlgmr.msra.gmra.mxu0 %vm1301_vm13, %v1972_v6 }
 0x3fe   :  { %v1338_v45 = vpop.xlane.xlu1 %1337 }
 0x3ff   :  { %v1342_v48 = vadd.f32 %v1338_v45, %v1334_v41  ;;  %v2216_v41 = vsub.s32 2, %v3115_v28 }
 0x401   :  { %1345 = vst.msk [vmem:[#allocation3] sm:$0xff] %vm1344_vm15, %v1342_v48 }
 0x402   :  { %v1341_v51 = vpop.xlane.xlu0 %1340 }
 0x403   :  { %v1343_v19 = vadd.f32 %v1341_v51, %v1335_v49  ;;  %v2230_v49 = vsub.s32 4, %v3115_v28 }
 0x405   :  { %1346 = vst.msk [vmem:[#allocation3 + $0x8] sm:$0xff] %vm1344_vm15, %v1343_v19  ;;  %v2244_v19 = vsub.s32 6, %v3115_v28 }
 0x408   :  { %v1528_v52 = vld [vmem:[#allocation3] sm:$0xff]  ;;  %v1534_v53 = vpop.xlane.xlu1 %1533 }
 0x409   :  { %v1530_v62 = vmul.f32 %v3542_v16, %v1528_v52 }
 0x40b   :  { %v1538_v27 = vadd.f32 %v1534_v53, %v1530_v62  ;;  %v1950_v62 = vsel %vm1301_vm13, %v3609_v33, 0.0  ;;  %v2209_v53 = vsub.s32 1, %v3115_v28 }
 0x40c   :  { %v1529_v63 = vld [vmem:[#allocation3 + $0x8] sm:$0xff]  ;;  %v1537_v54 = vpop.xlane.xlu0 %1536 }
 0x40d   :  { %1541 = vst.msk [vmem:[#allocation3] sm:$0xff] %vm1540_vm2, %v1538_v27  ;;  %v1531_v2 = vmul.f32 %v3576_v34, %v1529_v63  ;;  %v2223_v63 = vsub.s32 3, %v3115_v28 }
 0x40f   :  { %v1539_v30 = vadd.f32 %v1537_v54, %v1531_v2  ;;  %v2237_v54 = vsub.s32 5, %v3115_v28 }
 0x411   :  { %1542 = vst.msk [vmem:[#allocation3 + $0x8] sm:$0xff] %vm1540_vm2, %v1539_v30 }
 0x412   :  { %v1742_v16 = vpop.xlane.xlu1 %1741 }
 0x414   :  { %v1736_v57 = vld [vmem:[#allocation3] sm:$0xff] }
 0x415   :  { %v1738_v44 = vmul.f32 %v3567_v8, %v1736_v57  ;;  %v1359_v8 = vmul.f32 %v1352_v37, %v1347_v3 }
 0x416   :  { %v1745_v34 = vpop.xlane.xlu0 %1744 }
 0x417   :  { %v1746_v59 = vadd.f32 %v1742_v16, %v1738_v44 }
 0x418   :  { %v1737_v58 = vld [vmem:[#allocation3 + $0x8] sm:$0xff] }
 0x419   :  { %1749 = vst.msk [vmem:[#allocation3] sm:$0xff] %vm1748_vm3, %v1746_v59  ;;  %v1739_v60 = vmul.f32 %v3580_v35, %v1737_v58 }
 0x41b   :  { %v1747_v18 = vadd.f32 %v1745_v34, %v1739_v60 }
 0x41d   :  { %1750 = vst.msk [vmem:[#allocation3 + $0x8] sm:$0xff] %vm1748_vm3, %v1747_v18 }
 0x41e   :  { %v1949_v12 = vpop.xlane.xlu1 %1948 }
 0x420   :  { %v1943_v20 = vld [vmem:[#allocation3] sm:$0xff] }
 0x421   :  { %v1945_v5 = vmul.f32 %v2966_v11, %v1943_v20 }
 0x423   :  { %v1953_v1 = vadd.f32 %v1949_v12, %v1945_v5 }
 0x425   :  { %1956 = vst.msk [vmem:[#allocation3] sm:$0xff] %vm1955_vm5, %v1953_v1 }
 0x42c   :  { %v2038_v42 = vld [vmem:[#allocation3] sm:$0xff] }
 0x42d   :  { %2969 = vrcp.f32 %v2038_v42 }
 0x43a   :  { %v1399_v43 = vpop.f32.mrf.mxu0  ;;  %v2970_v6 = vpop.eup %2969 }
 0x43b   :  { %v1406_v7 = vadd.f32 %v1399_v43, %v1359_v8  ;;  %v2203_v40 = vrot.slane %v2970_v6, %v2202_v55  ;;  %v2217_v48 = vrot.slane %v2970_v6, %v2216_v41  ;;  %v2231_v51 = vrot.slane %v2970_v6, %v2230_v49 }
 0x43c   :  { %v2828_v61 = vpop.f32.mrf.mxu0  ;;  %v2245_v52 = vrot.slane %v2970_v6, %v2244_v19  ;;  %v2210_v27 = vrot.slane %v2970_v6, %v2209_v53  ;;  %v2224_v2 = vrot.slane %v2970_v6, %v2223_v63  ;;  %v2238_v33 = vrot.slane %v2970_v6, %v2237_v54 }
 0x43d   :  { %1408 = vst.msk [vmem:[#allocation4] sm:$0xff] %vm1249_vm4, %v1406_v7  ;;  %v2252_v30 = vrot.slane %v2970_v6, %v2251_v56 }
 0x43e   :  { %v1402_v35 = vpop.f32.mrf.mxu0 }
 0x43f   :  { %v1407_v47 = vadd.f32 %v1402_v35, %v1360_v31 }
 0x440   :  { %v2829_v9 = vpop.f32.mrf.mxu0 }
 0x441   :  { %1409 = vst.msk [vmem:[#allocation4 + $0x8] sm:$0xff] %vm1249_vm4, %v1407_v47 }
 0x444   :  { %v1599_v13 = vpop.f32.mrf.mxu0  ;;  %v1543_v57 = vld [vmem:[#allocation4] sm:$0xff] }
 0x445   :  { %1608 = vrot.lane.b32.xlu1 %v1599_v13, %s2992_s3  ;;  %v1555_v44 = vmul.f32 %v3615_v38, %v1543_v57 }
 0x446   :  { %v2840_v24 = vpop.f32.mrf.mxu0 }
 0x448   :  { %v1602_v15 = vpop.f32.mrf.mxu0  ;;  %v1544_v59 = vld [vmem:[#allocation4 + $0x8] sm:$0xff] }
 0x449   :  { %1610 = vrot.lane.b32.xlu1 %v1602_v15, %s2992_s3  ;;  %v1556_v60 = vmul.f32 %v3613_v21, %v1544_v59  ;;  %v1944_v21 = vld [vmem:[#allocation3 + $0x8] sm:$0xff] }
 0x44a   :  { %v2841_v17 = vpop.f32.mrf.mxu0  ;;  %v1946_v7 = vmul.f32 %v3645_v26, %v1944_v21 }
 0x44e   :  { %v1806_v29 = vpop.f32.mrf.mxu0 }
 0x44f   :  { %1815 = vrot.lane.b32.xlu0 %v1806_v29, %s2993_s21 }
 0x450   :  { %v2852_v36 = vpop.f32.mrf.mxu0 }
 0x452   :  { %v1809_v23 = vpop.f32.mrf.mxu0 }
 0x453   :  { %1962 = vperm.xlu0 %2902, %v2966_v11  }
 0x454   :  { %v2853_v50 = vpop.f32.mrf.mxu0 }
 0x457   :  { %1967 = vperm.xlu0 %2902, %v3645_v26  }
 0x45a   :  { %v2013_v25 = vpop.f32.mrf.mxu0 }
 0x45b   :  { %2022 = vrot.lane.b32.xlu0 %v2013_v25, %s2994_s22 }
 0x45c   :  { %v2864_v37 = vpop.f32.mrf.mxu0 }
 0x45e   :  { %v2016_v45 = vpop.f32.mrf.mxu0 }
 0x45f   :  { %2205 = vbcast.lane.b32.xlu0 %v2203_v40, 256 }
 0x460   :  { %v2865_v46 = vpop.f32.mrf.mxu0 }
 0x463   :  { %2219 = vbcast.lane.b32.xlu0 %v2217_v48, 256 }
 0x467   :  { %2233 = vbcast.lane.b32.xlu0 %v2231_v51, 256 }
 0x46b   :  { %2247 = vbcast.lane.b32.xlu0 %v2245_v52, 256 }
 0x46d   :  { %1951 = vadd.xlane.f32.xlu1 %v1950_v62 }
 0x47e   :  { %1817 = vrot.lane.b32.xlu1 %v1809_v23, %s2993_s21 }
 0x482   :  { %2024 = vrot.lane.b32.xlu1 %v2016_v45, %s2994_s22 }
 0x486   :  { %2212 = vbcast.lane.b32.xlu1 %v2210_v27, 256 }
 0x48a   :  { %2226 = vbcast.lane.b32.xlu1 %v2224_v2, 256 }
 0x48e   :  { %2240 = vbcast.lane.b32.xlu1 %v2238_v33, 256 }
 0x492   :  { %2254 = vbcast.lane.b32.xlu1 %v2252_v30, 256 }
 0x4b7   :  { %v1609_v16 = vpop.permute.xlu1 %1608 }
 0x4b8   :  { %v1614_v58 = vadd.f32 %v1609_v16, %v1555_v44 }
 0x4ba   :  { %1617 = vst.msk [vmem:[#allocation4] sm:$0xff] %vm1616_vm1, %v1614_v58 }
 0x4bb   :  { %v1611_v34 = vpop.permute.xlu1 %1610 }
 0x4bc   :  { %v1615_v18 = vadd.f32 %v1611_v34, %v1556_v60 }
 0x4be   :  { %1618 = vst.msk [vmem:[#allocation4 + $0x8] sm:$0xff] %vm1616_vm1, %v1615_v18 }
 0x4c1   :  { %v1751_v11 = vld [vmem:[#allocation4] sm:$0xff]  ;;  %v1816_v5 = vpop.permute.xlu0 %1815 }
 0x4c2   :  { %v1763_v20 = vmul.f32 %v3620_v14, %v1751_v11 }
 0x4c4   :  { %v1821_v12 = vadd.f32 %v1816_v5, %v1763_v20 }
 0x4c5   :  { %v1752_v31 = vld [vmem:[#allocation4 + $0x8] sm:$0xff] }
 0x4c6   :  { %1824 = vst.msk [vmem:[#allocation4] sm:$0xff] %vm1823_vm6, %v1821_v12  ;;  %v1764_v35 = vmul.f32 %v3617_v22, %v1752_v31 }
 0x4cd   :  { %v1958_v38 = vld [vmem:[#allocation4] sm:$0xff] }
 0x4ce   :  { %v1963_v1 = vpop.permute.xlu0 %1962 }
 0x4cf   :  { %v1970_v8 = vmul.f32 %v1963_v1, %v1958_v38 }
 0x4d2   :  { %v1968_v3 = vpop.permute.xlu0 %1967 }
 0x4d6   :  { %v2023_v4 = vpop.permute.xlu0 %2022 }
 0x4d7   :  { %v2028_v43 = vadd.f32 %v2023_v4, %v1970_v8 }
 0x4d9   :  { %2031 = vst.msk [vmem:[#allocation4] sm:$0xff] %vm2030_vm7, %v2028_v43 }
 0x4da   :  { %v2206_v40 = vpop.permute.xlu0 %2205 }
 0x4de   :  { %v2220_v45 = vpop.permute.xlu0 %2219 }
 0x4e0   :  { %v2042_v22 = vld [vmem:[#allocation4] sm:$0xff] }
 0x4e2   :  { %v2234_v48 = vpop.permute.xlu0 %2233 }
 0x4f6   :  { %v1952_v61 = vpop.xlane.xlu1 %1951 }
 0x4f7   :  { %v1954_v14 = vadd.f32 %v1952_v61, %v1946_v7 }
 0x4f9   :  { %1957 = vst.msk [vmem:[#allocation3 + $0x8] sm:$0xff] %vm1955_vm5, %v1954_v14 }
 0x4fa   :  { %v1818_v47 = vpop.permute.xlu1 %1817 }
 0x4fb   :  { %v1822_v9 = vadd.f32 %v1818_v47, %v1764_v35 }
 0x4fd   :  { %1825 = vst.msk [vmem:[#allocation4 + $0x8] sm:$0xff] %vm1823_vm6, %v1822_v9 }
 0x4fe   :  { %v2025_v15 = vpop.permute.xlu1 %2024 }
 0x500   :  { %v2039_v13 = vld [vmem:[#allocation3 + $0x8] sm:$0xff] }
 0x501   :  { %2971 = vrcp.f32 %v2039_v13 }
 0x504   :  { %v1959_v10 = vld [vmem:[#allocation4 + $0x8] sm:$0xff] }
 0x505   :  { %v1971_v24 = vmul.f32 %v1968_v3, %v1959_v10 }
 0x507   :  { %v2029_v42 = vadd.f32 %v2025_v15, %v1971_v24 }
 0x509   :  { %2032 = vst.msk [vmem:[#allocation4 + $0x8] sm:$0xff] %vm2030_vm7, %v2029_v42 }
 0x50e   :  { %v2972_v17 = vpop.eup %2971 }
 0x50f   :  { %v2259_v29 = vrot.slane %v2972_v17, %v2202_v55  ;;  %v2266_v36 = vrot.slane %v2972_v17, %v2209_v53  ;;  %v2273_v50 = vrot.slane %v2972_v17, %v2216_v41  ;;  %v2280_v26 = vrot.slane %v2972_v17, %v2223_v63  ;;  %v2213_v41 = vpop.permute.xlu1 %2212 }
 0x510   :  { %v2043_v23 = vld [vmem:[#allocation4 + $0x8] sm:$0xff]  ;;  %v2287_v55 = vrot.slane %v2972_v17, %v2230_v49  ;;  %v2294_v6 = vrot.slane %v2972_v17, %v2237_v54  ;;  %v2301_v25 = vrot.slane %v2972_v17, %v2244_v19  ;;  %v2308_v37 = vrot.slane %v2972_v17, %v2251_v56  ;;  %v2248_v49 = vpop.permute.xlu0 %2247 }
 0x511   :  { %2261 = vbcast.lane.b32.xlu0 %v2259_v29, 256  ;;  %2268 = vbcast.lane.b32.xlu1 %v2266_v36, 256 }
 0x513   :  { %v2227_v46 = vpop.permute.xlu1 %2226 }
 0x515   :  { %2046 = vrot.lane.b32.xlu0 %v2042_v22, %s2982_s2  ;;  %2048 = vrot.lane.b32.xlu1 %v2043_v23, %s2982_s2 }
 0x517   :  { %v2241_v51 = vpop.permute.xlu1 %2240 }
 0x519   :  { %2052 = vrot.lane.b32.xlu0 %v2042_v22, %s2983_s30  ;;  %2054 = vrot.lane.b32.xlu1 %v2043_v23, %s2983_s30 }
 0x51b   :  { %v2255_v52 = vpop.permute.xlu1 %2254 }
 0x51d   :  { %2058 = vrot.lane.b32.xlu0 %v2042_v22, %s2984_s11  ;;  %2060 = vrot.lane.b32.xlu1 %v2043_v23, %s2984_s11 }
 0x521   :  { %2275 = vbcast.lane.b32.xlu0 %v2273_v50, 256  ;;  %2282 = vbcast.lane.b32.xlu1 %v2280_v26, 256 }
 0x525   :  { %2289 = vbcast.lane.b32.xlu0 %v2287_v55, 256  ;;  %2296 = vbcast.lane.b32.xlu1 %v2294_v6, 256 }
 0x529   :  { %2303 = vbcast.lane.b32.xlu0 %v2301_v25, 256  ;;  %2310 = vbcast.lane.b32.xlu1 %v2308_v37, 256 }
 0x583   :  { %v2262_v62 = vpop.permute.xlu0 %2261  ;;  %v3705_v53 = vpop.permute.xlu1 %2268 }
 0x587   :  { %v2047_v27 = vpop.permute.xlu0 %2046  ;;  %v2049_v63 = vpop.permute.xlu1 %2048 }
 0x58b   :  { %v2053_v2 = vpop.permute.xlu0 %2052  ;;  %v2055_v19 = vpop.permute.xlu1 %2054 }
 0x58c   :  { %v2064_v54 = vcombine.low %v2042_v22, %v2053_v2  ;;  %v2065_v28 = vcombine.high %v2042_v22, %v2053_v2  ;;  %v2132_v33 = vcombine.low %v2043_v23, %v2055_v19  ;;  %v2133_v56 = vcombine.high %v2043_v23, %v2055_v19 }
 0x58e   :  { %v2072_v60 = vrot.slane %v2064_v54, %v3118_v32  ;;  %v2079_v34 = vrot.slane %v2065_v28, %v3118_v32  ;;  %v2140_v12 = vrot.slane %v2132_v33, %v3118_v32  ;;  %v2147_v1 = vrot.slane %v2133_v56, %v3118_v32 }
 0x58f   :  { %v2059_v30 = vpop.permute.xlu0 %2058  ;;  %v2061_v57 = vpop.permute.xlu1 %2060 }
 0x590   :  { %v2080_v44 = vcombine.low %v2047_v27, %v2059_v30  ;;  %v2081_v16 = vcombine.high %v2047_v27, %v2059_v30  ;;  %v2148_v59 = vcombine.low %v2049_v63, %v2061_v57  ;;  %v2149_v58 = vcombine.high %v2049_v63, %v2061_v57 }
 0x592   :  { %v2088_v18 = vrot.slane %v2080_v44, %v3118_v32  ;;  %v2095_v11 = vrot.slane %v2081_v16, %v3118_v32  ;;  %v2156_v20 = vrot.slane %v2148_v59, %v3118_v32  ;;  %v2163_v5 = vrot.slane %v2149_v58, %v3118_v32 }
 0x593   :  { %v2276_v38 = vpop.permute.xlu0 %2275  ;;  %v2283_v3 = vpop.permute.xlu1 %2282 }
 0x594   :  { %v2096_v8 = vcombine.low %v2072_v60, %v2088_v18  ;;  %v2097_v4 = vcombine.high %v2072_v60, %v2088_v18  ;;  %v2112_v43 = vcombine.low %v2079_v34, %v2095_v11  ;;  %v2113_v21 = vcombine.high %v2079_v34, %v2095_v11 }
 0x595   :  { %v2164_v7 = vcombine.low %v2140_v12, %v2156_v20  ;;  %v2165_v61 = vcombine.high %v2140_v12, %v2156_v20  ;;  %v2180_v31 = vcombine.low %v2147_v1, %v2163_v5  ;;  %v2181_v14 = vcombine.high %v2147_v1, %v2163_v5 }
 0x596   :  { %v2104_v35 = vrot.slane %v2096_v8, %v3121_v39  ;;  %v2111_v47 = vrot.slane %v2097_v4, %v3121_v39  ;;  %v2120_v9 = vrot.slane %v2112_v43, %v3121_v39  ;;  %v2127_v13 = vrot.slane %v2113_v21, %v3121_v39  ;;  %v2498_v43 = vld [vmem:[%s3801_s6 + $0x10] sm:$0xff]  ;;  %v2499_v21 = vld [vmem:[%s3801_s6 + $0x18] sm:$0xff] }
 0x597   :  { %v2172_v10 = vrot.slane %v2164_v7, %v3121_v39  ;;  %v2179_v24 = vrot.slane %v2165_v61, %v3121_v39  ;;  %v2290_v15 = vpop.permute.xlu0 %2289  ;;  %v2188_v42 = vrot.slane %v2180_v31, %v3121_v39  ;;  %v2297_v17 = vpop.permute.xlu1 %2296  ;;  %v2195_v29 = vrot.slane %v2181_v14, %v3121_v39 }
 0x598   :  { %v2128_v36 = vcombine.high %v2104_v35, %v2977_v0  ;;  %v2129_v22 = vcombine.high %v2111_v47, %v2977_v0  ;;  %v2130_v23 = vcombine.high %v2120_v9, %v2977_v0  ;;  %v2131_v50 = vcombine.high %v2127_v13, %v2977_v0 }
 0x599   :  { %v2312_v26 = vmul.f32 %v2206_v40, %v2104_v35  ;;  %v2314_v55 = vmul.f32 %v2220_v45, %v2111_v47  ;;  %v2316_v6 = vmul.f32 %v2234_v48, %v2120_v9  ;;  %v2318_v25 = vmul.f32 %v2248_v49, %v2127_v13 }
 0x59a   :  { %v2313_v37 = vmul.f32 %v2213_v41, %v2128_v36  ;;  %v2315_v27 = vmul.f32 %v2227_v46, %v2129_v22  ;;  %v2317_v63 = vmul.f32 %v2241_v51, %v2130_v23  ;;  %v2319_v2 = vmul.f32 %v2255_v52, %v2131_v50 }
 0x59b   :  { %v2328_v19 = vcombine.low %v2312_v26, %v2314_v55  ;;  %v2344_v54 = vcombine.low %v2316_v6, %v2318_v25  ;;  %v2320_v28 = vmul.f32 %v2262_v62, %v2172_v10  ;;  %v2322_v33 = vmul.f32 %v2276_v38, %v2179_v24  ;;  %v2304_v56 = vpop.permute.xlu0 %2303  ;;  %v2311_v41 = vpop.permute.xlu1 %2310 }
 0x59c   :  { %v2336_v30 = vcombine.low %v2313_v37, %v2315_v27  ;;  %v2352_v57 = vcombine.low %v2317_v63, %v2319_v2  ;;  %v2196_v44 = vcombine.high %v2172_v10, %v2977_v0  ;;  %v2197_v16 = vcombine.high %v2179_v24, %v2977_v0 }
 0x59d   :  { %v2396_v59 = vcombine.low %v2320_v28, %v2322_v33  ;;  %v2324_v40 = vmul.f32 %v2290_v15, %v2188_v42  ;;  %v2198_v45 = vcombine.high %v2188_v42, %v2977_v0  ;;  %v2326_v48 = vmul.f32 %v2304_v56, %v2195_v29  ;;  %v2496_v15 = vld [vmem:[%s3801_s6] sm:$0xff]  ;;  %v2497_v42 = vld [vmem:[%s3801_s6 + $0x8] sm:$0xff] }
 0x59e   :  { %v2321_v46 = vmul.f32 %v3705_v53, %v2196_v44  ;;  %v2323_v51 = vmul.f32 %v2283_v3, %v2197_v16  ;;  %v2199_v49 = vcombine.high %v2195_v29, %v2977_v0  ;;  %v2335_v58 = vrot.slane %v2328_v19, %v3118_v32 }
 0x59f   :  { %v2325_v52 = vmul.f32 %v2297_v17, %v2198_v45  ;;  %v2412_v62 = vcombine.low %v2324_v40, %v2326_v48  ;;  %v2343_v60 = vrot.slane %v2336_v30, %v3118_v32  ;;  %v2351_v11 = vrot.slane %v2344_v54, %v3118_v32 }
 0x5a0   :  { %v2404_v34 = vcombine.low %v2321_v46, %v2323_v51  ;;  %v2327_v18 = vmul.f32 %v2311_v41, %v2199_v49  ;;  %v2359_v20 = vrot.slane %v2352_v57, %v3118_v32  ;;  %v2403_v5 = vrot.slane %v2396_v59, %v3118_v32  ;;  %v2654_v51 = vld [vmem:[%s3802_s7] ss:$0 sm:$0xff] }
 0x5a1   :  { %v2419_v12 = vrot.slane %v2412_v62, %v3118_v32  ;;  %v2361_v53 = vcombine.high %v2335_v58, %v2343_v60  ;;  %v2360_v1 = vcombine.low %v2335_v58, %v2343_v60  ;;  %v2501_v61 = vpack.c.bf16 %v2499_v21, %v2498_v43 }
 0x5a2   :  { %v2411_v38 = vrot.slane %v2404_v34, %v3118_v32  ;;  %v2420_v3 = vcombine.low %v2325_v52, %v2327_v18  ;;  %v2377_v8 = vcombine.high %v2351_v11, %v2359_v20  ;;  %v2376_v4 = vcombine.low %v2351_v11, %v2359_v20  ;;  %v2553_v52 = vld [vmem:[%s3803_s0] sm:$0xff]  ;;  %v2554_v18 = vld [vmem:[%s3803_s0 + $0x8] sm:$0xff] }
 0x5a3   :  { %v2368_v7 = vrot.slane %v2360_v1, %v3121_v39  ;;  %v2375_v47 = vrot.slane %v2361_v53, %v3121_v39  ;;  %2867 = vmatpush3.bf16.msra.mxu1 %v2501_v61  ;;  %v2500_v23 = vpack.c.bf16 %v2497_v42, %v2496_v15  ;;  %v2656_v15 = vld [vmem:[%s3804_s8] ss:$0 sm:$0xff] }
 0x5a4   :  { %v2428_v31 = vcombine.low %v2403_v5, %v2411_v38  ;;  %v2429_v14 = vcombine.high %v2403_v5, %v2411_v38  ;;  %v2427_v35 = vrot.slane %v2420_v3, %v3118_v32  ;;  %v2391_v9 = vrot.slane %v2377_v8, %v3121_v39  ;;  %2868 = vmatprep.subr.bf16.mxu1 %v2977_v0 }
 0x5a5   :  { %v2384_v13 = vrot.slane %v2376_v4, %v3121_v39 }
 0x5a6   :  { %v2444_v10 = vcombine.low %v2419_v12, %v2427_v35  ;;  %v2445_v24 = vcombine.high %v2419_v12, %v2427_v35  ;;  %v2443_v32 = vrot.slane %v2429_v14, %v3121_v39  ;;  %v2436_v36 = vrot.slane %v2428_v31, %v3121_v39 }
 0x5a7   :  { %v2392_v17 = vcombine.low %v2368_v7, %v2384_v13  ;;  %v2394_v50 = vcombine.low %v2375_v47, %v2391_v9  ;;  %v2393_v26 = vcombine.high %v2368_v7, %v2384_v13  ;;  %2869 = vmatpush3.bf16.msra.mxu1 %v2500_v23  ;;  %v2395_v63 = vcombine.high %v2375_v47, %v2391_v9 }
 0x5a8   :  { %v2459_v29 = vrot.slane %v2445_v24, %v3121_v39  ;;  %v2452_v22 = vrot.slane %v2444_v10, %v3121_v39 }
 0x5aa   :  { %v2462_v0 = vcombine.low %v2443_v32, %v2459_v29  ;;  %v2461_v55 = vcombine.high %v2436_v36, %v2452_v22  ;;  %v2460_v6 = vcombine.low %v2436_v36, %v2452_v22  ;;  %v2463_v27 = vcombine.high %v2443_v32, %v2459_v29  ;;  %v2657_v32 = vld [vmem:[%s3805_s9] ss:$0 sm:$0xff] }
 0x5ac   :  { %v2908_v25 = vpack.i.bf16 %v2462_v0, %v2394_v50  ;;  %v2903_v37 = vpack.i.bf16 %v2461_v55, %v2393_v26  ;;  %v2913_v2 = vpack.i.bf16 %v2463_v27, %v2395_v63 }
 0x5ae   :  { %2909 = vrot.lane.b32.xlu1 %v2908_v25, %s2993_s21  ;;  %2904 = vrot.lane.b32.xlu0 %v2903_v37, %s2992_s3 }
 0x5b2   :  { %2914 = vrot.lane.b32.xlu0 %v2913_v2, %s2994_s22 }
 0x620   :  { %v2910_v19 = vpop.permute.xlu1 %2909  ;;  %v2905_v39 = vpop.permute.xlu0 %2904 }
 0x621   :  { %v2907_v54 = vunpack.i.h.bf16 %v2905_v39  ;;  %v2906_v28 = vunpack.i.l.bf16 %v2905_v39  ;;  %v2912_v33 = vunpack.i.h.bf16 %v2910_v19  ;;  %v2911_v56 = vunpack.i.l.bf16 %v2910_v19 }
 0x623   :  { %v2488_v30 = vsel %vm1249_vm4, %v2392_v17, %v2906_v28  ;;  %v2489_v57 = vsel %vm1249_vm4, %v2460_v6, %v2907_v54 }
 0x624   :  { %v2915_v44 = vpop.permute.xlu0 %2914  ;;  %v2490_v40 = vsel %vm1301_vm13, %v2488_v30, %v2911_v56  ;;  %v2491_v45 = vsel %vm1301_vm13, %v2489_v57, %v2912_v33 }
 0x625   :  { %v2917_v16 = vunpack.i.h.bf16 %v2915_v44  ;;  %v2916_v59 = vunpack.i.l.bf16 %v2915_v44 }
 0x627   :  { %v2493_v48 = vsel %vm2492_vm8, %v2490_v40, %v2916_v59  ;;  %v2494_v41 = vsel %vm2492_vm8, %v2491_v45, %v2917_v16 }
 0x628   :  { %v2495_v46 = vpack.c.bf16 %v2494_v41, %v2493_v48 }
 0x62a   :  { %2871 = vmatmul.mubr.msk.bf16.vlgmr.msra.gmra.mxu1 %vm45_vm0, %v2495_v46 }
 0x6ea   :  { %v2546_v49 = vpop.f32.mrf.mxu1 }
 0x6eb   :  { %v2547_v62 = vadd.f32 %v2654_v51, %v2546_v49 }
 0x6ec   :  { %v2872_v58 = vpop.f32.mrf.mxu1 }
 0x6ed   :  { %v2555_v60 = vadd.f32 %v2553_v52, %v2547_v62 }
 0x6ee   :  { %v2549_v34 = vpop.f32.mrf.mxu1 }
 0x6ef   :  { %v2550_v11 = vadd.f32 %v2654_v51, %v2549_v34  ;;  %v2557_v20 = vsel %vm45_vm0, %v2555_v60, 0.0 }
 0x6f0   :  { %v2873_v5 = vpop.f32.mrf.mxu1  ;;  %2558 = vadd.xlane.f32.xlu1 %v2557_v20 }
 0x6f1   :  { %v2556_v12 = vadd.f32 %v2554_v18, %v2550_v11 }
 0x6f3   :  { %v2560_v53 = vsel %vm45_vm0, %v2556_v12, 0.0 }
 0x6f4   :  { %2561 = vadd.xlane.f32.xlu0 %v2560_v53 }
 0x779   :  { %v2559_v1 = vpop.xlane.xlu1 %2558 }
 0x77a   :  { %v2564_v38 = vmul.f32 0.03125, %v2559_v1 }
 0x77c   :  { %v2566_v3 = vsub.f32 %v2555_v60, %v2564_v38 }
 0x77d   :  { %v2562_v8 = vpop.xlane.xlu0 %2561 }
 0x77e   :  { %v2565_v4 = vmul.f32 0.03125, %v2562_v8  ;;  %v2568_v43 = vmul.f32 %v2566_v3, %v2566_v3 }
 0x780   :  { %v2567_v21 = vsub.f32 %v2556_v12, %v2565_v4  ;;  %v2570_v7 = vsel %vm45_vm0, %v2568_v43, 0.0 }
 0x781   :  { %2571 = vadd.xlane.f32.xlu0 %v2570_v7 }
 0x782   :  { %v2569_v61 = vmul.f32 %v2567_v21, %v2567_v21 }
 0x784   :  { %v2573_v31 = vsel %vm45_vm0, %v2569_v61, 0.0 }
 0x785   :  { %2574 = vadd.xlane.f32.xlu0 %v2573_v31 }
 0x80a   :  { %v2572_v14 = vpop.xlane.xlu0 %2571 }
 0x80b   :  { %v2576_v35 = vmul.f32 0.03125, %v2572_v14 }
 0x80d   :  { %v2578_v47 = vadd.f32 1e-05, %v2576_v35 }
 0x80e   :  { %v2575_v9 = vpop.xlane.xlu0 %2574 }
 0x80f   :  { %2973 = vrsqrt.f32 %v2578_v47  ;;  %v2577_v13 = vmul.f32 0.03125, %v2575_v9 }
 0x811   :  { %v2579_v10 = vadd.f32 1e-05, %v2577_v13 }
 0x813   :  { %2975 = vrsqrt.f32 %v2579_v10 }
 0x81c   :  { %v2974_v24 = vpop.eup %2973 }
 0x81d   :  { %v2582_v42 = vmul.f32 %v2974_v24, %v2566_v3 }
 0x81f   :  { %v2591_v17 = vmul.f32 %v2656_v15, %v2582_v42 }
 0x820   :  { %v2976_v29 = vpop.eup %2975 }
 0x821   :  { %v2600_v36 = vadd.f32 %v2657_v32, %v2591_v17  ;;  %v2583_v22 = vmul.f32 %v2976_v29, %v2567_v21 }
 0x823   :  { %2602 = vst.msk [vmem:[%s3806_s10] sm:$0xff] %vm45_vm0, %v2600_v36  ;;  %v2592_v23 = vmul.f32 %v2656_v15, %v2583_v22 }
 0x825   :  { %v2601_v50 = vadd.f32 %v2657_v32, %v2592_v23 }
 0x827   :  { %2603 = vst.msk [vmem:[%s3806_s10 + $0x8] sm:$0xff] %vm45_vm0, %v2601_v50 }

// kernel: ppf_transformer.28
= control target key start
LH: loop header
LB: loop body
LE: loop exit
PB: predicated region body
PF: predicated region fallthrough
CT: control target
= control target key end

     0   :  { %v1520_v0 = vmov 0.0   ;;  %vm76_vm0 = vcmask 64512   ;;  %vm1521_vm1 = vmmov 0   ;;  %vm54_vm2 = vcmask 257024   ;;  %s1525_s16 = smov 112   ;;  %s1526_s17 = smov 104   ;;  %s1997_s2 = inlined_call_operand.vmem [shape: f32[1,16,32], index: 2, kind: input, shape index: {}]   ;;  %s1998_s1 = inlined_call_operand.vmem [shape: f32[1,16,32], index: 1, kind: input, shape index: {}]   ;;  %s1999_s3 = inlined_call_operand.vmem [shape: f32[1,16,32], index: 3, kind: input, shape index: {}]   ;;  %s2000_s4 = inlined_call_operand.vmem [shape: f32[32,32], index: 4, kind: input, shape index: {}]   ;;  %s2001_s5 = inlined_call_operand.vmem [shape: f32[1,32], index: 5, kind: input, shape index: {}]   ;;  %s2002_s0 = inlined_call_operand.vmem [shape: f32[1,16,32], index: 0, kind: input, shape index: {}]   ;;  %s2003_s6 = inlined_call_operand.vmem [shape: f32[1,32], index: 6, kind: input, shape index: {}]   ;;  %s2004_s7 = inlined_call_operand.vmem [shape: f32[1,32], index: 7, kind: input, shape index: {}]   ;;  %s2005_s8 = inlined_call_operand.vmem [shape: f32[1,16,32], index: 8, kind: output, shape index: {}]  }
   0x1   :  { %1382 = vmatprep.subr.bf16.mxu0 %v1520_v0  ;;  %v59_v1 = vld [vmem:[%s1997_s2] sm:$0xff]  ;;  %v60_v2 = vld [vmem:[%s1997_s2 + $0x8] sm:$0xff]  ;;  %1384 = vmatprep.mubr.msk.bf16.mxu0 %vm1521_vm1, %v1520_v0  ;;  %vm34_vm3 = vcmask 31744   ;;  %v1522_v12 = vmov -inf   ;;  %v66_v13 = vlaneseq  ;;  %vm128_vm5 = vcmask 130048   ;;  %s1531_s18 = smov 16  }
   0x2   :  { %v42_v3 = vld [vmem:[%s1998_s1] sm:$0xff]  ;;  %v1592_v4 = vpack.c.bf16 %v60_v2, %v59_v1  ;;  %v43_v5 = vld [vmem:[%s1998_s1 + $0x8] sm:$0xff]  ;;  %1388 = vmatprep.subr.bf16.mxu1 %v1520_v0  ;;  %1390 = vmatprep.mubr.msk.bf16.mxu1 %vm1521_vm1, %v1520_v0  ;;  %35 = vst.msk [vmem:[#allocation2] sm:$0xff] %vm34_vm3, %v1522_v12  ;;  %36 = vst.msk [vmem:[#allocation2 + $0x8] sm:$0xff] %vm34_vm3, %v1522_v12  ;;  %v1523_v23 = vmov 0   ;;  %s1524_s1 = smov 120  }
   0x3   :  { %v44_v6 = vmul.f32 0.35355338, %v42_v3  ;;  %v45_v7 = vmul.f32 0.35355338, %v43_v5  ;;  %37 = vst.msk [vmem:[#allocation3] sm:$0xff] %vm34_vm3, %v1520_v0  ;;  %38 = vst.msk [vmem:[#allocation3 + $0x8] sm:$0xff] %vm34_vm3, %v1520_v0  ;;  %1453 = vset.pattern.permute.xlu1 %v1523_v23 }
   0x4   :  { %v81_v8 = vsel %vm76_vm0, %v1592_v4, 0  ;;  %v1609_v14 = vand.u32 127, %v66_v13  ;;  %vm171_vm6 = vcmask 7168   ;;  %v62_v32 = vld [vmem:[%s1999_s3] sm:$0xff]  ;;  %v63_v33 = vld [vmem:[%s1999_s3 + $0x8] sm:$0xff]  ;;  %vm337_vm7 = vcmask 15368  }
   0x5   :  { %v1361_v9 = vpack.c.bf16 %v44_v6, %v44_v6  ;;  %1383 = vmatpush3.bf16.xpose.msra.mxu0 %v81_v8  ;;  %v1362_v10 = vpack.c.bf16 %v45_v7, %v45_v7  ;;  %v1647_v34 = vpack.c.bf16 %v63_v33, %v62_v32  ;;  %vm515_vm8 = vcmask 23568   ;;  %s1530_s3 = smov 8   ;;  %s1532_s19 = smov 24  }
   0x6   :  { %1400 = vmatprep.subr.bf16.mxu0 %v1520_v0  ;;  %vm70_vm4 = vcmp.lt.s32.totalorder %v1609_v14, 12  ;;  %vm692_vm9 = vcmask 31768   ;;  %vm39_vm10 = vcmask 261120   ;;  %vm413_vm11 = vcmask 130112  }
   0x7   :  { %55 = vst.msk [vmem:[#allocation5] sm:$0xf] %vm54_vm2, %v1361_v9  ;;  %56 = vst.msk [vmem:[#allocation5 + $0x4] sm:$0xf] %vm54_vm2, %v1362_v10  ;;  %1389 = vmatpush3.bf16.msra.mxu1 %v1647_v34  ;;  %v1527_v10 = vmov 1   ;;  %vm590_vm12 = vcmask 195712  }
   0x8   :  { %1394 = vmatprep.subr.bf16.mxu1 %v1520_v0  ;;  %1454 = vset.pattern.permute.xlu0 %v1527_v10  ;;  %40 = vst.msk [vmem:[#allocation4] sm:$0xff] %vm39_vm10, %v1520_v0  ;;  %41 = vst.msk [vmem:[#allocation4 + $0x8] sm:$0xff] %vm39_vm10, %v1520_v0  ;;  %vm767_vm13 = vcmask 261312   ;;  %vm1229_vm14 = vcmask 195584  }
   0x9   :  { %v1621_v24 = vld [vmem:[#allocation2] sm:$0xff]  ;;  %v1626_v27 = vld [vmem:[#allocation2 + $0x8] sm:$0xff] }
   0xe   :  { %v1479_v11 = vld [vmem:[#allocation5] sm:$0xff]  }
   0xf   :  { %1385 = vmatmul.mubr.msk.bf16.vlgmr.msra.gmra.mxu0 %vm76_vm0, %v1479_v11 }
  0x10   :  { %1402 = vmatprep.mubr.msk.bf16.mxu0 %vm1521_vm1, %v1520_v0 }
  0xcf   :  { %v117_v15 = vpop.f32.mrf.mxu0 }
  0xd0   :  { %v124_v16 = vsel %vm70_vm4, %v117_v15, -1e+30 }
  0xd1   :  { %v1386_v17 = vpop.f32.mrf.mxu0  ;;  %v129_v18 = vsel %vm128_vm5, %v124_v16, -inf }
  0xd2   :  { %130 = vmax.xlane.f32.xlu0 %v129_v18 }
  0xd3   :  { %v120_v19 = vpop.f32.mrf.mxu0 }
  0xd4   :  { %v125_v20 = vsel %vm70_vm4, %v120_v19, -1e+30 }
  0xd5   :  { %v1387_v21 = vpop.f32.mrf.mxu0  ;;  %v132_v22 = vsel %vm128_vm5, %v125_v20, -inf }
  0xd6   :  { %133 = vmax.xlane.f32.xlu0 %v132_v22 }
  0xec   :  { %242 = vrot.lane.b32.xlu0 %v1592_v4, %s1524_s1 }
 0x15b   :  { %v131_v25 = vpop.xlane.xlu0 %130 }
 0x15c   :  { %v1624_v26 = vmax.f32 %v1621_v24, %v131_v25 }
 0x15e   :  { %v137_v28 = vsub.f32 %v1621_v24, %v1624_v26  ;;  %237 = vst.msk [vmem:[#allocation2] sm:$0xff] %vm171_vm6, %v1624_v26  ;;  %145 = vperm.xlu1 %1453, %v1624_v26  }
 0x15f   :  { %v134_v29 = vpop.xlane.xlu0 %133 }
 0x160   :  { %v1634_v30 = vmax.f32 %v1626_v27, %v134_v29 }
 0x162   :  { %v138_v31 = vsub.f32 %v1626_v27, %v1634_v30  ;;  %238 = vst.msk [vmem:[#allocation2 + $0x8] sm:$0xff] %vm171_vm6, %v1634_v30  ;;  %150 = vperm.xlu1 %1453, %v1634_v30  }
 0x163   :  { %v243_v41 = vpop.permute.xlu0 %242 }
 0x164   :  { %v248_v45 = vsel %vm76_vm0, %v243_v41, 0  ;;  %v141_v24 = vmul.f32 1.442695, %v138_v31 }
 0x165   :  { %v1724_v21 = vld [vmem:[#allocation2] sm:$0xff] }
 0x166   :  { %239 = vrot.lane.b32.xlu1 %v1479_v11, %s1524_s1 }
 0x167   :  { %1455 = vset.pattern.permute.xlu1 %v1527_v10 }
 0x169   :  { %v294_v14 = vld [vmem:[#allocation2 + $0x8] sm:$0xff] }
 0x16a   :  { %420 = vrot.lane.b32.xlu1 %v1592_v4, %s1525_s16 }
 0x16e   :  { %418 = vrot.lane.b32.xlu1 %v1479_v11, %s1525_s16 }
 0x172   :  { %597 = vrot.lane.b32.xlu1 %v1592_v4, %s1526_s17 }
 0x176   :  { %595 = vrot.lane.b32.xlu1 %v1479_v11, %s1526_s17 }
 0x1d9   :  { %v146_v35 = vpop.permute.xlu1 %145 }
 0x1da   :  { %v153_v36 = vsub.f32 %v124_v16, %v146_v35 }
 0x1dc   :  { %v155_v37 = vmul.f32 1.442695, %v153_v36 }
 0x1dd   :  { %v151_v38 = vpop.permute.xlu1 %150 }
 0x1de   :  { %v154_v39 = vsub.f32 %v125_v20, %v151_v38  ;;  %1480 = vpow2.f32 %v155_v37 }
 0x1e0   :  { %v157_v40 = vmul.f32 1.442695, %v154_v39  ;;  %v1528_v39 = vmov 2  }
 0x1e1   :  { %v240_v42 = vpop.permute.xlu1 %239 }
 0x1e2   :  { %1482 = vpow2.f32 %v157_v40 }
 0x1e5   :  { %v421_v47 = vpop.permute.xlu1 %420 }
 0x1e6   :  { %v426_v49 = vsel %vm76_vm0, %v421_v47, 0 }
 0x1e9   :  { %v419_v48 = vpop.permute.xlu1 %418 }
 0x1eb   :  { %v1658_v43 = vpop.eup %1480 }
 0x1ec   :  { %v163_v26 = vsel %vm128_vm5, %v1658_v43, 0.0 }
 0x1ed   :  { %v598_v50 = vpop.permute.xlu1 %597 }
 0x1ee   :  { %v603_v51 = vsel %vm76_vm0, %v598_v50, 0 }
 0x1ef   :  { %v1660_v44 = vpop.eup %1482 }
 0x1f0   :  { %v188_v46 = vpack.c.bf16 %v1660_v44, %v1658_v43 }
 0x1f1   :  { %v596_v52 = vpop.permute.xlu1 %595 }
 0x1f2   :  { %1391 = vmatmul.mubr.msk.bf16.vlgmr.msra.gmra.mxu1 %vm128_vm5, %v188_v46 }
 0x1f3   :  { %1395 = vmatpush3.bf16.xpose.msra.mxu1 %v248_v45  ;;  %1396 = vmatprep.mubr.msk.bf16.mxu1 %vm1521_vm1, %v1520_v0 }
 0x1f4   :  { %1406 = vmatprep.subr.bf16.mxu1 %v1520_v0 }
 0x1fa   :  { %1397 = vmatmul.mubr.msk.bf16.vlgmr.msra.gmra.mxu1 %vm76_vm0, %v240_v42 }
 0x1fb   :  { %1407 = vmatpush3.bf16.xpose.msra.mxu1 %v426_v49  ;;  %1408 = vmatprep.mubr.msk.bf16.mxu1 %vm1521_vm1, %v1520_v0  ;;  %v1529_v49 = vmov 3  }
 0x1fc   :  { %1418 = vmatprep.subr.bf16.mxu1 %v1520_v0 }
 0x202   :  { %1409 = vmatmul.mubr.msk.bf16.vlgmr.msra.gmra.mxu1 %vm76_vm0, %v419_v48 }
 0x203   :  { %1419 = vmatpush3.bf16.xpose.msra.mxu1 %v603_v51  ;;  %1420 = vmatprep.mubr.msk.bf16.mxu1 %vm1521_vm1, %v1520_v0 }
 0x204   :  { %1430 = vmatprep.subr.bf16.mxu1 %v1520_v0 }
 0x20a   :  { %1421 = vmatmul.mubr.msk.bf16.vlgmr.msra.gmra.mxu1 %vm76_vm0, %v596_v52 }
 0x20b   :  { %1434 = vmatprep.mubr.msk.bf16.mxu1 %vm1521_vm1, %v1520_v0 }
 0x2b2   :  { %v1682_v53 = vpop.f32.mrf.mxu1 }
 0x2b4   :  { %v1392_v54 = vpop.f32.mrf.mxu1 }
 0x2b6   :  { %v1684_v55 = vpop.f32.mrf.mxu1 }
 0x2b8   :  { %v1393_v56 = vpop.f32.mrf.mxu1 }
 0x2ba   :  { %v284_v57 = vpop.f32.mrf.mxu1 }
 0x2bb   :  { %v1688_v58 = vsel %vm70_vm4, %v284_v57, -1e+30  ;;  %v166_v57 = vsel %vm128_vm5, %v1660_v44, 0.0 }
 0x2bc   :  { %v1398_v59 = vpop.f32.mrf.mxu1  ;;  %v295_v60 = vsel %vm128_vm5, %v1688_v58, -inf }
 0x2bd   :  { %296 = vmax.xlane.f32.xlu1 %v295_v60  ;;  %v139_v59 = vmul.f32 1.442695, %v137_v28 }
 0x2be   :  { %v287_v61 = vpop.f32.mrf.mxu1 }
 0x2bf   :  { %v1694_v62 = vsel %vm70_vm4, %v287_v61, -1e+30  ;;  %1484 = vpow2.f32 %v139_v59 }
 0x2c0   :  { %v1399_v63 = vpop.f32.mrf.mxu1  ;;  %v298_v1 = vsel %vm128_vm5, %v1694_v62, -inf }
 0x2c1   :  { %299 = vmax.xlane.f32.xlu0 %v298_v1 }
 0x2c2   :  { %v462_v2 = vpop.f32.mrf.mxu1 }
 0x2c3   :  { %v1700_v3 = vsel %vm70_vm4, %v462_v2, -1e+30 }
 0x2c4   :  { %v1410_v4 = vpop.f32.mrf.mxu1  ;;  %v473_v5 = vsel %vm128_vm5, %v1700_v3, -inf }
 0x2c5   :  { %474 = vmax.xlane.f32.xlu0 %v473_v5 }
 0x2c6   :  { %v465_v6 = vpop.f32.mrf.mxu1 }
 0x2c7   :  { %v1706_v7 = vsel %vm70_vm4, %v465_v6, -1e+30 }
 0x2c8   :  { %v1411_v8 = vpop.f32.mrf.mxu1  ;;  %v476_v9 = vsel %vm128_vm5, %v1706_v7, -inf }
 0x2c9   :  { %477 = vmax.xlane.f32.xlu1 %v476_v9 }
 0x2ca   :  { %v639_v11 = vpop.f32.mrf.mxu1 }
 0x2cb   :  { %v1714_v12 = vsel %vm70_vm4, %v639_v11, -1e+30 }
 0x2cc   :  { %v1422_v15 = vpop.f32.mrf.mxu1  ;;  %v650_v16 = vsel %vm128_vm5, %v1714_v12, -inf }
 0x2cd   :  { %651 = vmax.xlane.f32.xlu0 %v650_v16 }
 0x2ce   :  { %v642_v17 = vpop.f32.mrf.mxu1 }
 0x2cf   :  { %v1720_v18 = vsel %vm70_vm4, %v642_v17, -1e+30 }
 0x2d0   :  { %v653_v19 = vsel %vm128_vm5, %v1720_v18, -inf  ;;  %v1423_v20 = vpop.f32.mrf.mxu1 }
 0x2d1   :  { %654 = vmax.xlane.f32.xlu1 %v653_v19 }
 0x346   :  { %v297_v22 = vpop.xlane.xlu1 %296 }
 0x347   :  { %v1727_v25 = vmax.f32 %v1724_v21, %v297_v22 }
 0x349   :  { %v303_v29 = vsub.f32 %v1724_v21, %v1727_v25  ;;  %416 = vst.msk [vmem:[#allocation2] sm:$0xff] %vm337_vm7, %v1727_v25  ;;  %311 = vperm.xlu0 %1454, %v1727_v25  }
 0x34a   :  { %v300_v32 = vpop.xlane.xlu0 %299 }
 0x34b   :  { %v302_v33 = vmax.f32 %v294_v14, %v300_v32  ;;  %v305_v28 = vmul.f32 1.442695, %v303_v29 }
 0x34d   :  { %v304_v35 = vsub.f32 %v294_v14, %v302_v33  ;;  %417 = vst.msk [vmem:[#allocation2 + $0x8] sm:$0xff] %vm337_vm7, %v302_v33  ;;  %710 = vrot.lane.b32.xlu0 %v1647_v34, %s1526_s17  ;;  %316 = vperm.xlu1 %1455, %v302_v33  }
 0x34e   :  { %v475_v36 = vpop.xlane.xlu0 %474  ;;  %1458 = vset.pattern.permute.xlu0 %v1523_v23 }
 0x34f   :  { %v307_v44 = vmul.f32 1.442695, %v304_v35 }
 0x350   :  { %v471_v37 = vld [vmem:[#allocation2] sm:$0xff] }
 0x351   :  { %v479_v38 = vmax.f32 %v471_v37, %v475_v36  ;;  %1456 = vset.pattern.permute.xlu1 %v1528_v39 }
 0x352   :  { %v478_v40 = vpop.xlane.xlu1 %477 }
 0x353   :  { %593 = vst.msk [vmem:[#allocation2] sm:$0xff] %vm515_vm8, %v479_v38  ;;  %489 = vperm.xlu1 %1456, %v479_v38   ;;  %v481_v60 = vsub.f32 %v471_v37, %v479_v38 }
 0x354   :  { %v472_v41 = vld [vmem:[#allocation2 + $0x8] sm:$0xff] }
 0x355   :  { %v480_v42 = vmax.f32 %v472_v41, %v478_v40  ;;  %v483_v61 = vmul.f32 1.442695, %v481_v60 }
 0x356   :  { %v652_v46 = vpop.xlane.xlu0 %651 }
 0x357   :  { %v482_v45 = vsub.f32 %v472_v41, %v480_v42  ;;  %594 = vst.msk [vmem:[#allocation2 + $0x8] sm:$0xff] %vm515_vm8, %v480_v42  ;;  %494 = vperm.xlu1 %1456, %v480_v42   ;;  %1486 = vpow2.f32 %v483_v61 }
 0x358   :  { %1488 = vpow2.f32 %v141_v24  ;;  %v159_v24 = vld [vmem:[#allocation3] sm:$0xff] }
 0x359   :  { %1490 = vpow2.f32 %v305_v28  ;;  %v485_v63 = vmul.f32 1.442695, %v482_v45  ;;  %v160_v45 = vld [vmem:[#allocation3 + $0x8] sm:$0xff] }
 0x35a   :  { %v1740_v47 = vld [vmem:[#allocation2] sm:$0xff]  ;;  %v655_v50 = vpop.xlane.xlu1 %654  ;;  %1492 = vpow2.f32 %v307_v44 }
 0x35b   :  { %v1743_v48 = vmax.f32 %v1740_v47, %v652_v46  ;;  %356 = vrot.lane.b32.xlu1 %v1647_v34, %s1524_s1  ;;  %1494 = vpow2.f32 %v485_v63  ;;  %v175_v63 = vld [vmem:[#allocation4 + $0x8] sm:$0xff] }
 0x35c   :  { %1457 = vset.pattern.permute.xlu1 %v1529_v49 }
 0x35d   :  { %v658_v51 = vsub.f32 %v1740_v47, %v1743_v48  ;;  %770 = vst.msk [vmem:[#allocation2] sm:$0xff] %vm692_vm9, %v1743_v48 }
 0x35e   :  { %v1751_v52 = vld [vmem:[#allocation2 + $0x8] sm:$0xff] }
 0x35f   :  { %v1754_v54 = vmax.f32 %v1751_v52, %v655_v50  ;;  %666 = vperm.xlu1 %1457, %v1743_v48  }
 0x361   :  { %v659_v56 = vsub.f32 %v1751_v52, %v1754_v54  ;;  %771 = vst.msk [vmem:[#allocation2 + $0x8] sm:$0xff] %vm692_vm9, %v1754_v54 }
 0x363   :  { %671 = vperm.xlu1 %1457, %v1754_v54  }
 0x367   :  { %533 = vrot.lane.b32.xlu1 %v1647_v34, %s1525_s16 }
 0x368   :  { %1459 = vset.pattern.permute.xlu1 %v1523_v23  ;;  %v1774_v23 = vpop.eup %1484 }
 0x369   :  { %v1777_v34 = vpop.eup %1486 }
 0x36a   :  { %v1785_v1 = vpop.eup %1488 }
 0x36b   :  { %v1788_v2 = vpop.eup %1490  ;;  %v162_v46 = vmul.f32 %v1785_v1, %v160_v45 }
 0x36c   :  { %167 = vadd.xlane.f32.xlu0 %v166_v57  ;;  %v1792_v27 = vpop.eup %1492  ;;  %v174_v57 = vld [vmem:[#allocation4] sm:$0xff] }
 0x36d   :  { %v1795_v30 = vpop.eup %1494 }
 0x382   :  { %178 = vperm.xlu0 %1458, %v1774_v23  }
 0x386   :  { %1461 = vset.pattern.permute.xlu0 %v1528_v39 }
 0x387   :  { %522 = vperm.xlu0 %1461, %v1777_v34  }
 0x38b   :  { %164 = vadd.xlane.f32.xlu1 %v163_v26  ;;  %1463 = vset.pattern.permute.xlu0 %v1529_v49  ;;  %v161_v26 = vmul.f32 %v1774_v23, %v159_v24 }
 0x39c   :  { %183 = vperm.xlu1 %1459, %v1785_v1  }
 0x3a0   :  { %1460 = vset.pattern.permute.xlu1 %v1527_v10 }
 0x3a1   :  { %344 = vperm.xlu1 %1460, %v1788_v2  }
 0x3a5   :  { %349 = vperm.xlu1 %1460, %v1792_v27  }
 0x3a9   :  { %1462 = vset.pattern.permute.xlu1 %v1528_v39 }
 0x3aa   :  { %527 = vperm.xlu1 %1462, %v1795_v30  }
 0x3c4   :  { %v312_v31 = vpop.permute.xlu0 %311 }
 0x3c5   :  { %v319_v43 = vsub.f32 %v1688_v58, %v312_v31 }
 0x3c7   :  { %v321_v4 = vmul.f32 1.442695, %v319_v43 }
 0x3c8   :  { %v317_v5 = vpop.permute.xlu1 %316  ;;  %v711_v39 = vpop.permute.xlu0 %710 }
 0x3c9   :  { %1496 = vpow2.f32 %v321_v4  ;;  %v320_v6 = vsub.f32 %v1694_v62, %v317_v5 }
 0x3cb   :  { %v323_v8 = vmul.f32 1.442695, %v320_v6 }
 0x3cd   :  { %1498 = vpow2.f32 %v323_v8 }
 0x3ce   :  { %v490_v9 = vpop.permute.xlu1 %489 }
 0x3cf   :  { %v497_v10 = vsub.f32 %v1700_v3, %v490_v9 }
 0x3d1   :  { %v499_v11 = vmul.f32 1.442695, %v497_v10 }
 0x3d2   :  { %v495_v15 = vpop.permute.xlu1 %494 }
 0x3d3   :  { %1500 = vpow2.f32 %v499_v11  ;;  %v498_v16 = vsub.f32 %v1706_v7, %v495_v15 }
 0x3d5   :  { %v501_v17 = vmul.f32 1.442695, %v498_v16 }
 0x3d6   :  { %v1497_v19 = vpop.eup %1496  ;;  %v357_v20 = vpop.permute.xlu1 %356 }
 0x3d7   :  { %1502 = vpow2.f32 %v501_v17  ;;  %1401 = vmatpush3.bf16.msra.mxu0 %v357_v20  ;;  %v329_v58 = vsel %vm128_vm5, %v1497_v19, 0.0  ;;  %v662_v17 = vmul.f32 1.442695, %v659_v56 }
 0x3d8   :  { %330 = vadd.xlane.f32.xlu1 %v329_v58  ;;  %1412 = vmatprep.subr.bf16.mxu0 %v1520_v0 }
 0x3da   :  { %v1499_v62 = vpop.eup %1498  ;;  %v667_v21 = vpop.permute.xlu1 %666 }
 0x3db   :  { %v674_v22 = vsub.f32 %v1714_v12, %v667_v21  ;;  %v332_v3 = vsel %vm128_vm5, %v1499_v62, 0.0  ;;  %v354_v25 = vpack.c.bf16 %v1499_v62, %v1497_v19 }
 0x3dc   :  { %333 = vadd.xlane.f32.xlu0 %v332_v3 }
 0x3dd   :  { %1403 = vmatmul.mubr.msk.bf16.vlgmr.msra.gmra.mxu0 %vm128_vm5, %v354_v25  ;;  %v676_v7 = vmul.f32 1.442695, %v674_v22 }
 0x3de   :  { %v672_v29 = vpop.permute.xlu1 %671  ;;  %1414 = vmatprep.mubr.msk.bf16.mxu0 %vm1521_vm1, %v1520_v0 }
 0x3df   :  { %v675_v14 = vsub.f32 %v1720_v18, %v672_v29  ;;  %1504 = vpow2.f32 %v676_v7 }
 0x3e0   :  { %v1501_v32 = vpop.eup %1500 }
 0x3e1   :  { %v678_v33 = vmul.f32 1.442695, %v675_v14  ;;  %v507_v35 = vsel %vm128_vm5, %v1501_v32, 0.0 }
 0x3e2   :  { %508 = vadd.xlane.f32.xlu0 %v507_v35  ;;  %v534_v12 = vpop.permute.xlu1 %533 }
 0x3e3   :  { %1506 = vpow2.f32 %v678_v33  ;;  %1413 = vmatpush3.bf16.msra.mxu0 %v534_v12 }
 0x3e4   :  { %v1503_v36 = vpop.eup %1502  ;;  %1424 = vmatprep.subr.bf16.mxu0 %v1520_v0  ;;  %1508 = vpow2.f32 %v662_v17 }
 0x3e5   :  { %v510_v37 = vsel %vm128_vm5, %v1503_v36, 0.0  ;;  %v532_v38 = vpack.c.bf16 %v1503_v36, %v1501_v32 }
 0x3e6   :  { %511 = vadd.xlane.f32.xlu1 %v510_v37 }
 0x3e7   :  { %1415 = vmatmul.mubr.msk.bf16.vlgmr.msra.gmra.mxu0 %vm128_vm5, %v532_v38 }
 0x3e8   :  { %1425 = vmatpush3.bf16.msra.mxu0 %v711_v39  ;;  %1426 = vmatprep.mubr.msk.bf16.mxu0 %vm1521_vm1, %v1520_v0 }
 0x3ec   :  { %v1816_v18 = vpop.eup %1504 }
 0x3ed   :  { %v684_v39 = vsel %vm128_vm5, %v1816_v18, 0.0 }
 0x3f0   :  { %v1507_v40 = vpop.eup %1506 }
 0x3f1   :  { %v687_v41 = vsel %vm128_vm5, %v1507_v40, 0.0  ;;  %v709_v42 = vpack.c.bf16 %v1507_v40, %v1816_v18  ;;  %v1509_v3 = vpop.eup %1508  ;;  %v660_v40 = vmul.f32 1.442695, %v658_v51 }
 0x3f2   :  { %688 = vadd.xlane.f32.xlu1 %v687_v41 }
 0x3f3   :  { %1427 = vmatmul.mubr.msk.bf16.vlgmr.msra.gmra.mxu0 %vm128_vm5, %v709_v42  ;;  %1510 = vpow2.f32 %v660_v40 }
 0x3f5   :  { %v168_v49 = vpop.xlane.xlu0 %167 }
 0x3f6   :  { %v170_v50 = vadd.f32 %v168_v49, %v162_v46 }
 0x3f8   :  { %173 = vst.msk [vmem:[#allocation3 + $0x8] sm:$0xff] %vm171_vm6, %v170_v50 }
 0x3fd   :  { %v179_v59 = vpop.permute.xlu0 %178 }
 0x3fe   :  { %v186_v60 = vmul.f32 %v179_v59, %v174_v57 }
 0x3ff   :  { %v326_v10 = vld [vmem:[#allocation3 + $0x8] sm:$0xff] }
 0x400   :  { %v233_v61 = vadd.f32 %v1682_v53, %v186_v60  ;;  %v328_v15 = vmul.f32 %v1792_v27, %v326_v10  ;;  %v1511_v41 = vpop.eup %1510  ;;  %v1863_v10 = vshrl.u32 %v66_v13, 7 }
 0x402   :  { %235 = vst.msk [vmem:[#allocation4] sm:$0xff] %vm76_vm0, %v233_v61  ;;  %v1834_v23 = vpop.permute.xlu0 %522  ;;  %v939_v17 = vsub.s32 0, %v1863_v10  ;;  %v953_v13 = vsub.s32 2, %v1863_v10 }
 0x409   :  { %v340_v42 = vld [vmem:[#allocation4] sm:$0xff] }
 0x414   :  { %v165_v28 = vpop.xlane.xlu1 %164 }
 0x415   :  { %v169_v44 = vadd.f32 %v165_v28, %v161_v26 }
 0x417   :  { %172 = vst.msk [vmem:[#allocation3] sm:$0xff] %vm171_vm6, %v169_v44 }
 0x418   :  { %v184_v1 = vpop.permute.xlu1 %183 }
 0x419   :  { %v187_v31 = vmul.f32 %v184_v1, %v175_v63 }
 0x41b   :  { %v234_v43 = vadd.f32 %v1684_v55, %v187_v31 }
 0x41c   :  { %v345_v4 = vpop.permute.xlu1 %344 }
 0x41d   :  { %236 = vst.msk [vmem:[#allocation4 + $0x8] sm:$0xff] %vm76_vm0, %v234_v43  ;;  %v352_v45 = vmul.f32 %v345_v4, %v340_v42 }
 0x41e   :  { %v325_v6 = vld [vmem:[#allocation3] sm:$0xff] }
 0x41f   :  { %v327_v8 = vmul.f32 %v1788_v2, %v325_v6 }
 0x420   :  { %v1829_v5 = vpop.permute.xlu1 %349 }
 0x424   :  { %v341_v46 = vld [vmem:[#allocation4 + $0x8] sm:$0xff] }
 0x425   :  { %v1831_v53 = vpop.permute.xlu1 %527  ;;  %v353_v18 = vmul.f32 %v1829_v5, %v341_v46 }
 0x461   :  { %v331_v9 = vpop.xlane.xlu1 %330 }
 0x462   :  { %v335_v11 = vadd.f32 %v331_v9, %v327_v8 }
 0x464   :  { %338 = vst.msk [vmem:[#allocation3] sm:$0xff] %vm337_vm7, %v335_v11 }
 0x465   :  { %v334_v55 = vpop.xlane.xlu0 %333 }
 0x466   :  { %v336_v16 = vadd.f32 %v334_v55, %v328_v15 }
 0x468   :  { %339 = vst.msk [vmem:[#allocation3 + $0x8] sm:$0xff] %vm337_vm7, %v336_v16 }
 0x46b   :  { %v503_v19 = vld [vmem:[#allocation3] sm:$0xff]  ;;  %v509_v20 = vpop.xlane.xlu0 %508 }
 0x46c   :  { %v505_v2 = vmul.f32 %v1777_v34, %v503_v19  ;;  %v946_v19 = vsub.s32 1, %v1863_v10 }
 0x46e   :  { %v513_v58 = vadd.f32 %v509_v20, %v505_v2 }
 0x46f   :  { %v504_v62 = vld [vmem:[#allocation3 + $0x8] sm:$0xff]  ;;  %v512_v27 = vpop.xlane.xlu1 %511 }
 0x470   :  { %516 = vst.msk [vmem:[#allocation3] sm:$0xff] %vm515_vm8, %v513_v58  ;;  %v506_v21 = vmul.f32 %v1795_v30, %v504_v62  ;;  %v960_v62 = vsub.s32 3, %v1863_v10 }
 0x472   :  { %v514_v22 = vadd.f32 %v512_v27, %v506_v21 }
 0x474   :  { %517 = vst.msk [vmem:[#allocation3 + $0x8] sm:$0xff] %vm515_vm8, %v514_v22  ;;  %v967_v22 = vsub.s32 4, %v1863_v10 }
 0x477   :  { %v680_v61 = vld [vmem:[#allocation3] sm:$0xff] }
 0x478   :  { %v682_v24 = vmul.f32 %v1511_v41, %v680_v61 }
 0x47b   :  { %v681_v25 = vld [vmem:[#allocation3 + $0x8] sm:$0xff]  ;;  %v689_v52 = vpop.xlane.xlu1 %688 }
 0x47c   :  { %v683_v7 = vmul.f32 %v1509_v3, %v681_v25 }
 0x47e   :  { %v691_v54 = vadd.f32 %v689_v52, %v683_v7  ;;  %v981_v52 = vsub.s32 6, %v1863_v10 }
 0x480   :  { %694 = vst.msk [vmem:[#allocation3 + $0x8] sm:$0xff] %vm692_vm9, %v691_v54  ;;  %v988_v54 = vsub.s32 7, %v1863_v10 }
 0x487   :  { %v776_v16 = vld [vmem:[#allocation3 + $0x8] sm:$0xff] }
 0x49d   :  { %v396_v56 = vpop.f32.mrf.mxu0 }
 0x49e   :  { %405 = vrot.lane.b32.xlu0 %v396_v56, %s1530_s3 }
 0x49f   :  { %v1404_v34 = vpop.f32.mrf.mxu0 }
 0x4a1   :  { %v399_v29 = vpop.f32.mrf.mxu0 }
 0x4a2   :  { %407 = vrot.lane.b32.xlu0 %v399_v29, %s1530_s3 }
 0x4a3   :  { %v1405_v30 = vpop.f32.mrf.mxu0 }
 0x4a7   :  { %v573_v14 = vpop.f32.mrf.mxu0 }
 0x4a9   :  { %v1416_v32 = vpop.f32.mrf.mxu0 }
 0x4ab   :  { %v576_v33 = vpop.f32.mrf.mxu0 }
 0x4ac   :  { %584 = vrot.lane.b32.xlu1 %v576_v33, %s1531_s18 }
 0x4ad   :  { %v1417_v35 = vpop.f32.mrf.mxu0 }
 0x4b3   :  { %v750_v12 = vpop.f32.mrf.mxu0 }
 0x4b5   :  { %v1428_v36 = vpop.f32.mrf.mxu0 }
 0x4b7   :  { %v753_v37 = vpop.f32.mrf.mxu0 }
 0x4b8   :  { %761 = vrot.lane.b32.xlu1 %v753_v37, %s1532_s19 }
 0x4b9   :  { %v1429_v38 = vpop.f32.mrf.mxu0 }
 0x4c1   :  { %685 = vadd.xlane.f32.xlu0 %v684_v39 }
 0x4d7   :  { %582 = vrot.lane.b32.xlu0 %v573_v14, %s1531_s18 }
 0x4db   :  { %699 = vperm.xlu0 %1463, %v1511_v41  }
 0x4df   :  { %704 = vperm.xlu0 %1463, %v1509_v3   ;;  %v974_v3 = vsub.s32 5, %v1863_v10 }
 0x4e3   :  { %759 = vrot.lane.b32.xlu0 %v750_v12, %s1532_s19 }
 0x510   :  { %v406_v49 = vpop.permute.xlu0 %405 }
 0x511   :  { %v411_v50 = vadd.f32 %v406_v49, %v352_v45 }
 0x513   :  { %414 = vst.msk [vmem:[#allocation4] sm:$0xff] %vm413_vm11, %v411_v50 }
 0x514   :  { %v408_v57 = vpop.permute.xlu0 %407 }
 0x515   :  { %v412_v47 = vadd.f32 %v408_v57, %v353_v18 }
 0x517   :  { %415 = vst.msk [vmem:[#allocation4 + $0x8] sm:$0xff] %vm413_vm11, %v412_v47 }
 0x51a   :  { %v518_v28 = vld [vmem:[#allocation4] sm:$0xff] }
 0x51b   :  { %v530_v63 = vmul.f32 %v1834_v23, %v518_v28 }
 0x51e   :  { %v519_v48 = vld [vmem:[#allocation4 + $0x8] sm:$0xff]  ;;  %v585_v59 = vpop.permute.xlu1 %584 }
 0x51f   :  { %v531_v51 = vmul.f32 %v1831_v53, %v519_v48  ;;  %v1533_v48 = vmov 1983009808  }
 0x521   :  { %v589_v60 = vadd.f32 %v585_v59, %v531_v51  ;;  %v804_v51 = vunpack.c.l.s4 %v1533_v48 }
 0x523   :  { %592 = vst.msk [vmem:[#allocation4 + $0x8] sm:$0xff] %vm590_vm12, %v589_v60  ;;  %v805_v61 = vunpack.c.0.s8 %v804_v51 }
 0x52a   :  { %v696_v6 = vld [vmem:[#allocation4 + $0x8] sm:$0xff]  ;;  %v762_v9 = vpop.permute.xlu1 %761 }
 0x54a   :  { %v686_v26 = vpop.xlane.xlu0 %685 }
 0x54b   :  { %v690_v44 = vadd.f32 %v686_v26, %v682_v24  ;;  %v1534_v24 = vmov 1934713408  }
 0x54c   :  { %v836_v26 = vunpack.c.l.s4 %v1534_v24 }
 0x54d   :  { %693 = vst.msk [vmem:[#allocation3] sm:$0xff] %vm692_vm9, %v690_v44 }
 0x54e   :  { %v583_v1 = vpop.permute.xlu0 %582 }
 0x54f   :  { %v588_v31 = vadd.f32 %v583_v1, %v530_v63  ;;  %v1896_v63 = vsub.s32 %v805_v61, %v1863_v10  ;;  %v837_v1 = vunpack.c.0.s8 %v836_v26 }
 0x551   :  { %591 = vst.msk [vmem:[#allocation4] sm:$0xff] %vm590_vm12, %v588_v31 }
 0x554   :  { %v775_v43 = vld [vmem:[#allocation3] sm:$0xff] }
 0x555   :  { %1512 = vrcp.f32 %v775_v43 }
 0x556   :  { %v700_v4 = vpop.permute.xlu0 %699  ;;  %1514 = vrcp.f32 %v776_v16 }
 0x558   :  { %v695_v5 = vld [vmem:[#allocation4] sm:$0xff] }
 0x559   :  { %v707_v11 = vmul.f32 %v700_v4, %v695_v5 }
 0x55a   :  { %v705_v53 = vpop.permute.xlu0 %704 }
 0x55b   :  { %v708_v8 = vmul.f32 %v705_v53, %v696_v6 }
 0x55d   :  { %v766_v15 = vadd.f32 %v762_v9, %v708_v8 }
 0x55e   :  { %v760_v55 = vpop.permute.xlu0 %759 }
 0x55f   :  { %769 = vst.msk [vmem:[#allocation4 + $0x8] sm:$0xff] %vm767_vm13, %v766_v15  ;;  %v765_v23 = vadd.f32 %v760_v55, %v707_v11  ;;  %v1899_v55 = vsub.s32 %v837_v1, %v1863_v10 }
 0x561   :  { %768 = vst.msk [vmem:[#allocation4] sm:$0xff] %vm767_vm13, %v765_v23 }
 0x562   :  { %v1513_v2 = vpop.eup %1512 }
 0x563   :  { %v940_v20 = vrot.slane %v1513_v2, %v939_v17  ;;  %v947_v58 = vrot.slane %v1513_v2, %v946_v19  ;;  %v954_v21 = vrot.slane %v1513_v2, %v953_v13  ;;  %v961_v27 = vrot.slane %v1513_v2, %v960_v62  ;;  %v1515_v29 = vpop.eup %1514 }
 0x564   :  { %v968_v25 = vrot.slane %v1513_v2, %v967_v22  ;;  %v975_v7 = vrot.slane %v1513_v2, %v974_v3  ;;  %v982_v56 = vrot.slane %v1513_v2, %v981_v52  ;;  %v989_v34 = vrot.slane %v1513_v2, %v988_v54 }
 0x565   :  { %942 = vbcast.lane.b32.xlu0 %v940_v20, 256  ;;  %949 = vbcast.lane.b32.xlu1 %v947_v58, 256  ;;  %v996_v30 = vrot.slane %v1515_v29, %v939_v17  ;;  %v1003_v14 = vrot.slane %v1515_v29, %v946_v19  ;;  %v1010_v35 = vrot.slane %v1515_v29, %v953_v13 }
 0x566   :  { %v780_v33 = vld [vmem:[#allocation4 + $0x8] sm:$0xff]  ;;  %v1017_v12 = vrot.slane %v1515_v29, %v960_v62  ;;  %v1024_v36 = vrot.slane %v1515_v29, %v967_v22  ;;  %v1031_v37 = vrot.slane %v1515_v29, %v974_v3  ;;  %v1038_v38 = vrot.slane %v1515_v29, %v981_v52 }
 0x567   :  { %v1045_v39 = vrot.slane %v1515_v29, %v988_v54 }
 0x568   :  { %v779_v32 = vld [vmem:[#allocation4] sm:$0xff] }
 0x569   :  { %956 = vbcast.lane.b32.xlu0 %v954_v21, 256  ;;  %963 = vbcast.lane.b32.xlu1 %v961_v27, 256 }
 0x56d   :  { %970 = vbcast.lane.b32.xlu0 %v968_v25, 256  ;;  %977 = vbcast.lane.b32.xlu1 %v975_v7, 256 }
 0x571   :  { %984 = vbcast.lane.b32.xlu0 %v982_v56, 256  ;;  %991 = vbcast.lane.b32.xlu1 %v989_v34, 256 }
 0x575   :  { %998 = vbcast.lane.b32.xlu0 %v996_v30, 256  ;;  %1005 = vbcast.lane.b32.xlu1 %v1003_v14, 256 }
 0x579   :  { %783 = vrot.lane.b32.xlu0 %v779_v32, %s1524_s1  ;;  %785 = vrot.lane.b32.xlu1 %v780_v33, %s1524_s1 }
 0x57d   :  { %789 = vrot.lane.b32.xlu0 %v779_v32, %s1525_s16  ;;  %791 = vrot.lane.b32.xlu1 %v780_v33, %s1525_s16 }
 0x581   :  { %795 = vrot.lane.b32.xlu0 %v779_v32, %s1526_s17  ;;  %797 = vrot.lane.b32.xlu1 %v780_v33, %s1526_s17 }
 0x585   :  { %1012 = vbcast.lane.b32.xlu0 %v1010_v35, 256  ;;  %1019 = vbcast.lane.b32.xlu1 %v1017_v12, 256 }
 0x589   :  { %1026 = vbcast.lane.b32.xlu0 %v1024_v36, 256  ;;  %1033 = vbcast.lane.b32.xlu1 %v1031_v37, 256 }
 0x58d   :  { %1040 = vbcast.lane.b32.xlu0 %v1038_v38, 256  ;;  %1047 = vbcast.lane.b32.xlu1 %v1045_v39, 256 }
 0x5d7   :  { %v1879_v40 = vpop.permute.xlu0 %942  ;;  %v1881_v41 = vpop.permute.xlu1 %949 }
 0x5db   :  { %v1883_v42 = vpop.permute.xlu0 %956  ;;  %v1885_v45 = vpop.permute.xlu1 %963 }
 0x5df   :  { %v971_v46 = vpop.permute.xlu0 %970  ;;  %v1887_v49 = vpop.permute.xlu1 %977 }
 0x5e3   :  { %v985_v50 = vpop.permute.xlu0 %984  ;;  %v1889_v18 = vpop.permute.xlu1 %991 }
 0x5e7   :  { %v1891_v57 = vpop.permute.xlu0 %998  ;;  %v1893_v47 = vpop.permute.xlu1 %1005 }
 0x5eb   :  { %v784_v59 = vpop.permute.xlu0 %783  ;;  %v786_v60 = vpop.permute.xlu1 %785 }
 0x5ef   :  { %v790_v28 = vpop.permute.xlu0 %789  ;;  %v792_v44 = vpop.permute.xlu1 %791 }
 0x5f0   :  { %v801_v31 = vcombine.low %v779_v32, %v790_v28  ;;  %v802_v43 = vcombine.high %v779_v32, %v790_v28  ;;  %v869_v4 = vcombine.low %v780_v33, %v792_v44  ;;  %v870_v5 = vcombine.high %v780_v33, %v792_v44 }
 0x5f2   :  { %v809_v23 = vrot.slane %v801_v31, %v1896_v63  ;;  %v816_v16 = vrot.slane %v802_v43, %v1896_v63  ;;  %v877_v58 = vrot.slane %v869_v4, %v1896_v63  ;;  %v884_v13 = vrot.slane %v870_v5, %v1896_v63 }
 0x5f3   :  { %v796_v53 = vpop.permute.xlu0 %795  ;;  %v798_v6 = vpop.permute.xlu1 %797 }
 0x5f4   :  { %v817_v8 = vcombine.low %v784_v59, %v796_v53  ;;  %v818_v9 = vcombine.high %v784_v59, %v796_v53  ;;  %v885_v11 = vcombine.low %v786_v60, %v798_v6  ;;  %v886_v15 = vcombine.high %v786_v60, %v798_v6 }
 0x5f6   :  { %v825_v17 = vrot.slane %v817_v8, %v1896_v63  ;;  %v832_v19 = vrot.slane %v818_v9, %v1896_v63  ;;  %v893_v2 = vrot.slane %v885_v11, %v1896_v63  ;;  %v900_v20 = vrot.slane %v886_v15, %v1896_v63 }
 0x5f7   :  { %v1013_v62 = vpop.permute.xlu0 %1012  ;;  %v1020_v21 = vpop.permute.xlu1 %1019 }
 0x5f8   :  { %v833_v10 = vcombine.low %v809_v23, %v825_v17  ;;  %v834_v27 = vcombine.high %v809_v23, %v825_v17  ;;  %v849_v22 = vcombine.low %v816_v16, %v832_v19  ;;  %v850_v3 = vcombine.high %v816_v16, %v832_v19 }
 0x5f9   :  { %v901_v25 = vcombine.low %v877_v58, %v893_v2  ;;  %v902_v7 = vcombine.high %v877_v58, %v893_v2  ;;  %v917_v52 = vcombine.low %v884_v13, %v900_v20  ;;  %v918_v54 = vcombine.high %v884_v13, %v900_v20 }
 0x5fa   :  { %v841_v56 = vrot.slane %v833_v10, %v1899_v55  ;;  %v848_v34 = vrot.slane %v834_v27, %v1899_v55  ;;  %v857_v29 = vrot.slane %v849_v22, %v1899_v55  ;;  %v864_v30 = vrot.slane %v850_v3, %v1899_v55  ;;  %v1235_v22 = vld [vmem:[%s2000_s4 + $0x10] sm:$0xff]  ;;  %v1236_v3 = vld [vmem:[%s2000_s4 + $0x18] sm:$0xff] }
 0x5fb   :  { %v909_v14 = vrot.slane %v901_v25, %v1899_v55  ;;  %v916_v32 = vrot.slane %v902_v7, %v1899_v55  ;;  %v1027_v33 = vpop.permute.xlu0 %1026  ;;  %v925_v35 = vrot.slane %v917_v52, %v1899_v55  ;;  %v1034_v12 = vpop.permute.xlu1 %1033  ;;  %v932_v36 = vrot.slane %v918_v54, %v1899_v55 }
 0x5fc   :  { %v865_v37 = vcombine.high %v841_v56, %v1520_v0  ;;  %v866_v38 = vcombine.high %v848_v34, %v1520_v0  ;;  %v867_v39 = vcombine.high %v857_v29, %v1520_v0  ;;  %v868_v48 = vcombine.high %v864_v30, %v1520_v0 }
 0x5fd   :  { %v1049_v51 = vmul.f32 %v1879_v40, %v841_v56  ;;  %v1051_v59 = vmul.f32 %v1883_v42, %v848_v34  ;;  %v1053_v60 = vmul.f32 %v971_v46, %v857_v29  ;;  %v1055_v61 = vmul.f32 %v985_v50, %v864_v30 }
 0x5fe   :  { %v1050_v24 = vmul.f32 %v1881_v41, %v865_v37  ;;  %v1052_v26 = vmul.f32 %v1885_v45, %v866_v38  ;;  %v1054_v28 = vmul.f32 %v1887_v49, %v867_v39  ;;  %v1056_v44 = vmul.f32 %v1889_v18, %v868_v48 }
 0x5ff   :  { %v1065_v1 = vcombine.low %v1049_v51, %v1051_v59  ;;  %v1081_v31 = vcombine.low %v1053_v60, %v1055_v61  ;;  %v1057_v43 = vmul.f32 %v1891_v57, %v909_v14  ;;  %v1059_v4 = vmul.f32 %v1013_v62, %v916_v32  ;;  %v1041_v5 = vpop.permute.xlu0 %1040  ;;  %v1048_v49 = vpop.permute.xlu1 %1047 }
 0x600   :  { %v1073_v53 = vcombine.low %v1050_v24, %v1052_v26  ;;  %v1089_v40 = vcombine.low %v1054_v28, %v1056_v44  ;;  %v933_v42 = vcombine.high %v909_v14, %v1520_v0  ;;  %v934_v46 = vcombine.high %v916_v32, %v1520_v0 }
 0x601   :  { %v1133_v50 = vcombine.low %v1057_v43, %v1059_v4  ;;  %v1061_v41 = vmul.f32 %v1027_v33, %v925_v35  ;;  %v935_v45 = vcombine.high %v925_v35, %v1520_v0  ;;  %v1063_v6 = vmul.f32 %v1041_v5, %v932_v36  ;;  %v1233_v33 = vld [vmem:[%s2000_s4] sm:$0xff]  ;;  %v1234_v35 = vld [vmem:[%s2000_s4 + $0x8] sm:$0xff] }
 0x602   :  { %v1058_v18 = vmul.f32 %v1893_v47, %v933_v42  ;;  %v1060_v8 = vmul.f32 %v1020_v21, %v934_v46  ;;  %v936_v9 = vcombine.high %v932_v36, %v1520_v0  ;;  %v1072_v15 = vrot.slane %v1065_v1, %v1896_v63 }
 0x603   :  { %v1062_v57 = vmul.f32 %v1034_v12, %v935_v45  ;;  %v1149_v11 = vcombine.low %v1061_v41, %v1063_v6  ;;  %v1080_v23 = vrot.slane %v1073_v53, %v1896_v63  ;;  %v1088_v19 = vrot.slane %v1081_v31, %v1896_v63 }
 0x604   :  { %v1141_v16 = vcombine.low %v1058_v18, %v1060_v8  ;;  %v1064_v17 = vmul.f32 %v1048_v49, %v936_v9  ;;  %v1096_v2 = vrot.slane %v1089_v40, %v1896_v63  ;;  %v1140_v20 = vrot.slane %v1133_v50, %v1896_v63  ;;  %v1357_v8 = vld [vmem:[%s2001_s5] ss:$0 sm:$0xff] }
 0x605   :  { %v1156_v58 = vrot.slane %v1149_v11, %v1896_v63  ;;  %v1098_v47 = vcombine.high %v1072_v15, %v1080_v23  ;;  %v1097_v13 = vcombine.low %v1072_v15, %v1080_v23  ;;  %v1238_v7 = vpack.c.bf16 %v1236_v3, %v1235_v22 }
 0x606   :  { %v1148_v62 = vrot.slane %v1141_v16, %v1896_v63  ;;  %v1157_v21 = vcombine.low %v1062_v57, %v1064_v17  ;;  %v1114_v10 = vcombine.high %v1088_v19, %v1096_v2  ;;  %v1113_v27 = vcombine.low %v1088_v19, %v1096_v2  ;;  %v1291_v57 = vld [vmem:[%s2002_s0] sm:$0xff]  ;;  %v1292_v17 = vld [vmem:[%s2002_s0 + $0x8] sm:$0xff] }
 0x607   :  { %v1105_v25 = vrot.slane %v1097_v13, %v1899_v55  ;;  %v1112_v34 = vrot.slane %v1098_v47, %v1899_v55  ;;  %1431 = vmatpush3.bf16.msra.mxu1 %v1238_v7  ;;  %v1237_v39 = vpack.c.bf16 %v1234_v35, %v1233_v33  ;;  %v1359_v33 = vld [vmem:[%s2003_s6] ss:$0 sm:$0xff] }
 0x608   :  { %v1165_v52 = vcombine.low %v1140_v20, %v1148_v62  ;;  %v1166_v54 = vcombine.high %v1140_v20, %v1148_v62  ;;  %v1164_v56 = vrot.slane %v1157_v21, %v1896_v63  ;;  %v1128_v29 = vrot.slane %v1114_v10, %v1899_v55  ;;  %1432 = vmatprep.subr.bf16.mxu1 %v1520_v0 }
 0x609   :  { %v1121_v30 = vrot.slane %v1113_v27, %v1899_v55 }
 0x60a   :  { %v1181_v14 = vcombine.low %v1156_v58, %v1164_v56  ;;  %v1182_v32 = vcombine.high %v1156_v58, %v1164_v56  ;;  %v1180_v63 = vrot.slane %v1166_v54, %v1899_v55  ;;  %v1173_v37 = vrot.slane %v1165_v52, %v1899_v55 }
 0x60b   :  { %v1129_v12 = vcombine.low %v1105_v25, %v1121_v30  ;;  %v1131_v48 = vcombine.low %v1112_v34, %v1128_v29  ;;  %v1130_v51 = vcombine.high %v1105_v25, %v1121_v30  ;;  %1433 = vmatpush3.bf16.msra.mxu1 %v1237_v39  ;;  %v1132_v28 = vcombine.high %v1112_v34, %v1128_v29 }
 0x60c   :  { %v1196_v36 = vrot.slane %v1182_v32, %v1899_v55  ;;  %v1189_v38 = vrot.slane %v1181_v14, %v1899_v55 }
 0x60e   :  { %v1199_v0 = vcombine.low %v1180_v63, %v1196_v36  ;;  %v1198_v59 = vcombine.high %v1173_v37, %v1189_v38  ;;  %v1197_v60 = vcombine.low %v1173_v37, %v1189_v38  ;;  %v1200_v26 = vcombine.high %v1180_v63, %v1196_v36  ;;  %v1360_v63 = vld [vmem:[%s2004_s7] ss:$0 sm:$0xff] }
 0x610   :  { %v1469_v61 = vpack.i.bf16 %v1199_v0, %v1131_v48  ;;  %v1464_v24 = vpack.i.bf16 %v1198_v59, %v1130_v51  ;;  %v1474_v44 = vpack.i.bf16 %v1200_v26, %v1132_v28 }
 0x612   :  { %1470 = vrot.lane.b32.xlu1 %v1469_v61, %s1531_s18  ;;  %1465 = vrot.lane.b32.xlu0 %v1464_v24, %s1530_s3 }
 0x616   :  { %1475 = vrot.lane.b32.xlu0 %v1474_v44, %s1532_s19 }
 0x684   :  { %v1471_v1 = vpop.permute.xlu1 %1470  ;;  %v1466_v55 = vpop.permute.xlu0 %1465 }
 0x685   :  { %v1468_v31 = vunpack.i.h.bf16 %v1466_v55  ;;  %v1467_v43 = vunpack.i.l.bf16 %v1466_v55  ;;  %v1473_v4 = vunpack.i.h.bf16 %v1471_v1  ;;  %v1472_v5 = vunpack.i.l.bf16 %v1471_v1 }
 0x687   :  { %v1225_v53 = vsel %vm76_vm0, %v1129_v12, %v1467_v43  ;;  %v1226_v40 = vsel %vm76_vm0, %v1197_v60, %v1468_v31 }
 0x688   :  { %v1476_v42 = vpop.permute.xlu0 %1475  ;;  %v1227_v41 = vsel %vm128_vm5, %v1225_v53, %v1472_v5  ;;  %v1228_v45 = vsel %vm128_vm5, %v1226_v40, %v1473_v4 }
 0x689   :  { %v1478_v46 = vunpack.i.h.bf16 %v1476_v42  ;;  %v1477_v50 = vunpack.i.l.bf16 %v1476_v42 }
 0x68b   :  { %v1230_v6 = vsel %vm1229_vm14, %v1227_v41, %v1477_v50  ;;  %v1231_v49 = vsel %vm1229_vm14, %v1228_v45, %v1478_v46 }
 0x68c   :  { %v1232_v18 = vpack.c.bf16 %v1231_v49, %v1230_v6 }
 0x68e   :  { %1435 = vmatmul.mubr.msk.bf16.vlgmr.msra.gmra.mxu1 %vm39_vm10, %v1232_v18 }
 0x74e   :  { %v1284_v9 = vpop.f32.mrf.mxu1 }
 0x74f   :  { %v1285_v11 = vadd.f32 %v1357_v8, %v1284_v9 }
 0x750   :  { %v1436_v15 = vpop.f32.mrf.mxu1 }
 0x751   :  { %v1293_v23 = vadd.f32 %v1291_v57, %v1285_v11 }
 0x752   :  { %v1287_v16 = vpop.f32.mrf.mxu1 }
 0x753   :  { %v1288_v19 = vadd.f32 %v1357_v8, %v1287_v16  ;;  %v1295_v2 = vsel %vm39_vm10, %v1293_v23, 0.0 }
 0x754   :  { %v1437_v20 = vpop.f32.mrf.mxu1  ;;  %1296 = vadd.xlane.f32.xlu1 %v1295_v2 }
 0x755   :  { %v1294_v58 = vadd.f32 %v1292_v17, %v1288_v19 }
 0x757   :  { %v1298_v47 = vsel %vm39_vm10, %v1294_v58, 0.0 }
 0x758   :  { %1299 = vadd.xlane.f32.xlu0 %v1298_v47 }
 0x7dd   :  { %v1297_v13 = vpop.xlane.xlu1 %1296 }
 0x7de   :  { %v1302_v62 = vmul.f32 0.03125, %v1297_v13 }
 0x7e0   :  { %v1304_v21 = vsub.f32 %v1293_v23, %v1302_v62 }
 0x7e1   :  { %v1300_v10 = vpop.xlane.xlu0 %1299 }
 0x7e2   :  { %v1303_v27 = vmul.f32 0.03125, %v1300_v10  ;;  %v1306_v22 = vmul.f32 %v1304_v21, %v1304_v21 }
 0x7e4   :  { %v1305_v3 = vsub.f32 %v1294_v58, %v1303_v27  ;;  %v1308_v25 = vsel %vm39_vm10, %v1306_v22, 0.0 }
 0x7e5   :  { %1309 = vadd.xlane.f32.xlu0 %v1308_v25 }
 0x7e6   :  { %v1307_v7 = vmul.f32 %v1305_v3, %v1305_v3 }
 0x7e8   :  { %v1311_v52 = vsel %vm39_vm10, %v1307_v7, 0.0 }
 0x7e9   :  { %1312 = vadd.xlane.f32.xlu0 %v1311_v52 }
 0x86e   :  { %v1310_v54 = vpop.xlane.xlu0 %1309 }
 0x86f   :  { %v1314_v56 = vmul.f32 0.03125, %v1310_v54 }
 0x871   :  { %v1316_v34 = vadd.f32 1e-05, %v1314_v56 }
 0x872   :  { %v1313_v29 = vpop.xlane.xlu0 %1312 }
 0x873   :  { %1516 = vrsqrt.f32 %v1316_v34  ;;  %v1315_v30 = vmul.f32 0.03125, %v1313_v29 }
 0x875   :  { %v1317_v14 = vadd.f32 1e-05, %v1315_v30 }
 0x877   :  { %1518 = vrsqrt.f32 %v1317_v14 }
 0x880   :  { %v1517_v32 = vpop.eup %1516 }
 0x881   :  { %v1320_v35 = vmul.f32 %v1517_v32, %v1304_v21 }
 0x883   :  { %v1329_v12 = vmul.f32 %v1359_v33, %v1320_v35 }
 0x884   :  { %v1519_v36 = vpop.eup %1518 }
 0x885   :  { %v1338_v37 = vadd.f32 %v1360_v63, %v1329_v12  ;;  %v1321_v38 = vmul.f32 %v1519_v36, %v1305_v3 }
 0x887   :  { %1340 = vst.msk [vmem:[%s2005_s8] sm:$0xff] %vm39_vm10, %v1338_v37  ;;  %v1330_v39 = vmul.f32 %v1359_v33, %v1321_v38 }
 0x889   :  { %v1339_v48 = vadd.f32 %v1360_v63, %v1330_v39 }
 0x88b   :  { %1341 = vst.msk [vmem:[%s2005_s8 + $0x8] sm:$0xff] %vm39_vm10, %v1339_v48 }

// kernel: ppf_transformer.21
= control target key start
LH: loop header
LB: loop body
LE: loop exit
PB: predicated region body
PF: predicated region fallthrough
CT: control target
= control target key end

     0   :  { %vm45_vm0 = vcmask 261120   ;;  %v2963_v0 = vmov 0.0   ;;  %vm2964_vm1 = vmmov 0   ;;  %vm60_vm2 = vcmask 257024   ;;  %s2967_s27 = smov 64   ;;  %s2969_s30 = smov 112   ;;  %s3761_s5 = inlined_call_operand.vmem [shape: bf16[32,128], index: 5, kind: input, shape index: {}]   ;;  %s3762_s1 = inlined_call_operand.vmem [shape: f32[1,16,32], index: 1, kind: input, shape index: {}]   ;;  %s3763_s2 = inlined_call_operand.vmem [shape: f32[1,16,32], index: 2, kind: input, shape index: {}]   ;;  %s3764_s4 = inlined_call_operand.vmem [shape: bf16[1,16,16,32], index: 4, kind: input, shape index: {}]   ;;  %s3765_s3 = inlined_call_operand.vmem [shape: f32[1,16,32], index: 3, kind: input, shape index: {}]   ;;  %s3766_s6 = inlined_call_operand.vmem [shape: f32[32,32], index: 6, kind: input, shape index: {}]   ;;  %s3767_s7 = inlined_call_operand.vmem [shape: f32[1,32], index: 7, kind: input, shape index: {}]   ;;  %s3768_s0 = inlined_call_operand.vmem [shape: f32[1,16,32], index: 0, kind: input, shape index: {}]   ;;  %s3769_s8 = inlined_call_operand.vmem [shape: f32[1,32], index: 8, kind: input, shape index: {}]   ;;  %s3770_s9 = inlined_call_operand.vmem [shape: f32[1,32], index: 9, kind: input, shape index: {}]   ;;  %s3771_s10 = inlined_call_operand.vmem [shape: f32[1,16,32], index: 10, kind: output, shape index: {}]  }
   0x1   :  { %2700 = vmatprep.subr.bf16.mxu0 %v2963_v0  ;;  %v2904_v1 = vld [vmem:[%s3761_s5 + $0x8] sm:$0xff]   ;;  %2704 = vmatprep.mubr.msk.bf16.mxu0 %vm2964_vm1, %v2963_v0  ;;  %46 = vst.msk [vmem:[#allocation4] sm:$0xff] %vm45_vm0, %v2963_v0  ;;  %47 = vst.msk [vmem:[#allocation4 + $0x8] sm:$0xff] %vm45_vm0, %v2963_v0  ;;  %v2905_v2 = vld [vmem:[%s3761_s5] sm:$0xff]   ;;  %s2966_s5 = smov 96   ;;  %s2970_s11 = smov 104   ;;  %v148_v24 = vlaneseq }
   0x2   :  { %2708 = vmatprep.subr.bf16.mxu1 %v2963_v0  ;;  %2710 = vmatprep.mubr.msk.bf16.mxu1 %vm2964_vm1, %v2963_v0  ;;  %v48_v3 = vld [vmem:[%s3762_s1] sm:$0xff]  ;;  %v49_v4 = vld [vmem:[%s3762_s1 + $0x8] sm:$0xff]  ;;  %s2965_s1 = smov 32   ;;  %v2971_v22 = vmov 1983009808   ;;  %vm295_vm3 = vcmask 254976  }
   0x3   :  { %2701 = vmatpush3.bf16.msra.mxu0 %v2904_v1  ;;  %v50_v5 = vmul.f32 0.35355338, %v48_v3  ;;  %v51_v6 = vmul.f32 0.35355338, %v49_v4  ;;  %v314_v13 = vld [vmem:[%s3763_s2] sm:$0xff]  ;;  %v315_v14 = vld [vmem:[%s3763_s2 + $0x8] sm:$0xff]  ;;  %v146_v23 = vunpack.c.l.s4 %v2971_v22 }
   0x4   :  { %2702 = vmatprep.subr.bf16.mxu0 %v2963_v0  ;;  %v2907_v15 = vld [vmem:[%s3764_s4] sm:$0xff]   ;;  %v2908_v18 = vld [vmem:[%s3764_s4 + $0x8] sm:$0xff]   ;;  %v3083_v20 = vpack.c.bf16 %v315_v14, %v314_v13  ;;  %s2968_s2 = smov 120   ;;  %v2972_v25 = vmov 1934713408   ;;  %v3100_v28 = vshrl.u32 %v148_v24, 7 }
   0x5   :  { %v52_v7 = vpack.c.bf16 %v51_v6, %v50_v5  ;;  %v2644_v8 = vpack.c.bf16 %v50_v5, %v50_v5  ;;  %v2645_v9 = vpack.c.bf16 %v51_v6, %v51_v6  ;;  %v378_v17 = vsel %vm45_vm0, %v2907_v15, 0  ;;  %s2979_s21 = smov 16   ;;  %s2980_s22 = smov 24  }
   0x6   :  { %2709 = vmatpush3.bf16.xpose.msra.mxu1 %v378_v17  ;;  %v429_v19 = vsel %vm45_vm0, %v2908_v18, 0  ;;  %v178_v26 = vunpack.c.l.s4 %v2972_v25  ;;  %v147_v27 = vunpack.c.0.s8 %v146_v23  ;;  %v2910_v23 = vld [vmem:[%s3764_s4 + $0x18] sm:$0xff]   ;;  %vm1243_vm4 = vcmask 64512  }
   0x7   :  { %2703 = vmatpush3.bf16.msra.mxu0 %v2905_v2  ;;  %61 = vst.msk [vmem:[#allocation5] sm:$0xf] %vm60_vm2, %v2644_v8  ;;  %62 = vst.msk [vmem:[#allocation5 + $0x4] sm:$0xf] %vm60_vm2, %v2645_v9  ;;  %2720 = vmatprep.subr.bf16.mxu1 %v2963_v0  ;;  %vm40_vm5 = vcmask 31744   ;;  %vm1207_vm6 = vcmask 1041409  }
   0x8   :  { %2714 = vmatprep.subr.bf16.mxu0 %v2963_v0  ;;  %v179_v31 = vunpack.c.0.s8 %v178_v26  ;;  %v3103_v32 = vsub.s32 %v147_v27, %v3100_v28  ;;  %43 = vst.msk [vmem:[#allocation3] sm:$0xff] %vm40_vm5, %v2963_v0  ;;  %44 = vst.msk [vmem:[#allocation3 + $0x8] sm:$0xff] %vm40_vm5, %v2963_v0  ;;  %vm1210_vm7 = vcmask 1042434   ;;  %vm1213_vm8 = vcmask 1043459  }
   0x9   :  { %vm1216_vm9 = vcmask 1044484   ;;  %vm1219_vm10 = vcmask 1045509   ;;  %vm1222_vm11 = vcmask 1046534   ;;  %vm1225_vm12 = vcmask 1047559  }
   0xa   :  { %2705 = vmatmul.mubr.msk.bf16.vlgmr.msra.gmra.mxu0 %vm45_vm0, %v52_v7  ;;  %v3106_v39 = vsub.s32 %v179_v31, %v3100_v28  ;;  %vm1293_vm13 = vcmask 130048   ;;  %vm1336_vm14 = vcmask 7168   ;;  %vm1530_vm15 = vcmask 15368  }
   0xb   :  { %2716 = vmatprep.mubr.msk.bf16.mxu0 %vm2964_vm1, %v2963_v0  ;;  %2715 = vmatpush3.bf16.xpose.msra.mxu0 %v429_v19  ;;  %vm1736_vm2 = vcmask 23568  }
   0xc   :  { %2726 = vmatprep.subr.bf16.mxu0 %v2963_v0 }
   0xe   :  { %v3085_v21 = vld [vmem:[#allocation5] sm:$0xff]  }
  0xca   :  { %v116_v10 = vpop.f32.mrf.mxu0 }
  0xcb   :  { %137 = vrot.lane.b32.xlu1 %v116_v10, %s2965_s1  ;;  %125 = vrot.lane.b32.xlu0 %v116_v10, %s2966_s5 }
  0xcc   :  { %v2706_v11 = vpop.f32.mrf.mxu0 }
  0xcd   :  { %v2909_v11 = vld [vmem:[%s3764_s4 + $0x10] sm:$0xff]  }
  0xce   :  { %v3063_v12 = vpop.f32.mrf.mxu0  ;;  %v480_v22 = vsel %vm45_vm0, %v2909_v11, 0 }
  0xcf   :  { %131 = vrot.lane.b32.xlu0 %v116_v10, %s2967_s27  ;;  %127 = vrot.lane.b32.xlu1 %v3063_v12, %s2966_s5 }
  0xd0   :  { %v2707_v16 = vpop.f32.mrf.mxu0 }
  0xd3   :  { %133 = vrot.lane.b32.xlu0 %v3063_v12, %s2967_s27  ;;  %139 = vrot.lane.b32.xlu1 %v3063_v12, %s2965_s1 }
  0xd7   :  { %1407 = vrot.lane.b32.xlu0 %v3083_v20, %s2968_s2  ;;  %1404 = vrot.lane.b32.xlu1 %v3085_v21, %s2968_s2 }
  0xdb   :  { %1613 = vrot.lane.b32.xlu0 %v3083_v20, %s2969_s30  ;;  %1611 = vrot.lane.b32.xlu1 %v3085_v21, %s2969_s30 }
  0xdf   :  { %1818 = vrot.lane.b32.xlu0 %v3083_v20, %s2970_s11  ;;  %1816 = vrot.lane.b32.xlu1 %v3085_v21, %s2970_s11 }
 0x13d   :  { %v138_v29 = vpop.permute.xlu1 %137  ;;  %v126_v30 = vpop.permute.xlu0 %125 }
 0x13e   :  { %v159_v33 = vcombine.low %v126_v30, %v138_v29  ;;  %v160_v34 = vcombine.high %v126_v30, %v138_v29 }
 0x140   :  { %v167_v40 = vrot.slane %v159_v33, %v3103_v32  ;;  %v174_v41 = vrot.slane %v160_v34, %v3103_v32 }
 0x141   :  { %v132_v35 = vpop.permute.xlu0 %131  ;;  %v128_v36 = vpop.permute.xlu1 %127 }
 0x142   :  { %v143_v37 = vcombine.low %v116_v10, %v132_v35  ;;  %v144_v38 = vcombine.high %v116_v10, %v132_v35 }
 0x144   :  { %v151_v42 = vrot.slane %v143_v37, %v3103_v32  ;;  %v158_v43 = vrot.slane %v144_v38, %v3103_v32 }
 0x145   :  { %v134_v44 = vpop.permute.xlu0 %133  ;;  %v140_v45 = vpop.permute.xlu1 %139 }
 0x146   :  { %v175_v46 = vcombine.low %v151_v42, %v167_v40  ;;  %v176_v47 = vcombine.high %v151_v42, %v167_v40  ;;  %v191_v48 = vcombine.low %v158_v43, %v174_v41  ;;  %v192_v49 = vcombine.high %v158_v43, %v174_v41  ;;  %v2911_v42 = vld [vmem:[%s3764_s4 + $0x20] sm:$0xff]   ;;  %v2912_v43 = vld [vmem:[%s3764_s4 + $0x28] sm:$0xff]  }
 0x147   :  { %v211_v50 = vcombine.low %v3063_v12, %v134_v44  ;;  %v212_v51 = vcombine.high %v3063_v12, %v134_v44  ;;  %v227_v52 = vcombine.low %v128_v36, %v140_v45  ;;  %v228_v53 = vcombine.high %v128_v36, %v140_v45 }
 0x148   :  { %v183_v54 = vrot.slane %v175_v46, %v3106_v39  ;;  %v190_v55 = vrot.slane %v176_v47, %v3106_v39  ;;  %v199_v56 = vrot.slane %v191_v48, %v3106_v39  ;;  %v206_v57 = vrot.slane %v192_v49, %v3106_v39  ;;  %v2913_v48 = vld [vmem:[%s3764_s4 + $0x30] sm:$0xff]   ;;  %v2914_v49 = vld [vmem:[%s3764_s4 + $0x38] sm:$0xff]  }
 0x149   :  { %v219_v58 = vrot.slane %v211_v50, %v3103_v32  ;;  %v226_v59 = vrot.slane %v212_v51, %v3103_v32  ;;  %v235_v60 = vrot.slane %v227_v52, %v3103_v32  ;;  %v242_v61 = vrot.slane %v228_v53, %v3103_v32 }
 0x14a   :  { %v207_v62 = vcombine.high %v183_v54, %v2963_v0  ;;  %v208_v63 = vcombine.high %v190_v55, %v2963_v0  ;;  %v209_v1 = vcombine.high %v199_v56, %v2963_v0  ;;  %v210_v2 = vcombine.high %v206_v57, %v2963_v0 }
 0x14b   :  { %v279_v3 = vpack.c.bf16 %v183_v54, %v183_v54  ;;  %v281_v4 = vpack.c.bf16 %v190_v55, %v190_v55  ;;  %v283_v5 = vpack.c.bf16 %v199_v56, %v199_v56  ;;  %v285_v6 = vpack.c.bf16 %v206_v57, %v206_v57  ;;  %v2915_v54 = vld [vmem:[%s3764_s4 + $0x40] sm:$0xff]   ;;  %v2916_v55 = vld [vmem:[%s3764_s4 + $0x48] sm:$0xff]  }
 0x14c   :  { %v280_v7 = vpack.c.bf16 %v207_v62, %v207_v62  ;;  %v282_v8 = vpack.c.bf16 %v208_v63, %v208_v63  ;;  %v284_v9 = vpack.c.bf16 %v209_v1, %v209_v1  ;;  %v286_v10 = vpack.c.bf16 %v210_v2, %v210_v2 }
 0x14d   :  { %296 = vst.msk [vmem:[#allocation6] sm:$0x3] %vm295_vm3, %v279_v3  ;;  %298 = vst.msk [vmem:[#allocation6 + $0x4] sm:$0x3] %vm295_vm3, %v281_v4  ;;  %v243_v12 = vcombine.low %v219_v58, %v235_v60  ;;  %v244_v13 = vcombine.high %v219_v58, %v235_v60  ;;  %v259_v14 = vcombine.low %v226_v59, %v242_v61  ;;  %v531_v40 = vsel %vm45_vm0, %v2910_v23, 0  ;;  %v2917_v60 = vld [vmem:[%s3764_s4 + $0x50] sm:$0xff]  }
 0x14e   :  { %300 = vst.msk [vmem:[#allocation6 + $0x8] sm:$0x3] %vm295_vm3, %v283_v5  ;;  %302 = vst.msk [vmem:[#allocation6 + $0xc] sm:$0x3] %vm295_vm3, %v285_v6  ;;  %v260_v15 = vcombine.high %v226_v59, %v242_v61  ;;  %v582_v44 = vsel %vm45_vm0, %v2911_v42, 0  ;;  %v633_v46 = vsel %vm45_vm0, %v2912_v43, 0 }
 0x14f   :  { %297 = vst.msk [vmem:[#allocation6 + $0x2] sm:$0x3] %vm295_vm3, %v280_v7  ;;  %299 = vst.msk [vmem:[#allocation6 + $0x6] sm:$0x3] %vm295_vm3, %v282_v8  ;;  %v251_v16 = vrot.slane %v243_v12, %v3106_v39  ;;  %v258_v17 = vrot.slane %v244_v13, %v3106_v39  ;;  %v267_v18 = vrot.slane %v259_v14, %v3106_v39  ;;  %v684_v50 = vsel %vm45_vm0, %v2913_v48, 0  ;;  %v2918_v61 = vld [vmem:[%s3764_s4 + $0x58] sm:$0xff]  }
 0x150   :  { %301 = vst.msk [vmem:[#allocation6 + $0xa] sm:$0x3] %vm295_vm3, %v284_v9  ;;  %303 = vst.msk [vmem:[#allocation6 + $0xe] sm:$0x3] %vm295_vm3, %v286_v10  ;;  %v274_v19 = vrot.slane %v260_v15, %v3106_v39  ;;  %v735_v52 = vsel %vm45_vm0, %v2914_v49, 0  ;;  %v786_v56 = vsel %vm45_vm0, %v2915_v54, 0 }
 0x151   :  { %v275_v24 = vcombine.high %v251_v16, %v2963_v0  ;;  %v276_v25 = vcombine.high %v258_v17, %v2963_v0  ;;  %v277_v26 = vcombine.high %v267_v18, %v2963_v0  ;;  %v287_v29 = vpack.c.bf16 %v251_v16, %v251_v16  ;;  %v2919_v3 = vld [vmem:[%s3764_s4 + $0x60] sm:$0xff]   ;;  %v2920_v4 = vld [vmem:[%s3764_s4 + $0x68] sm:$0xff]   ;;  %v2921_v9 = vld [vmem:[%s3764_s4 + $0x70] sm:$0xff]  }
 0x152   :  { %v278_v27 = vcombine.high %v274_v19, %v2963_v0  ;;  %v289_v30 = vpack.c.bf16 %v258_v17, %v258_v17  ;;  %v291_v31 = vpack.c.bf16 %v267_v18, %v267_v18  ;;  %v293_v33 = vpack.c.bf16 %v274_v19, %v274_v19  ;;  %v2922_v10 = vld [vmem:[%s3764_s4 + $0x78] sm:$0xff]   ;;  %v1408_v18 = vpop.permute.xlu0 %1407 }
 0x153   :  { %v288_v34 = vpack.c.bf16 %v275_v24, %v275_v24  ;;  %v290_v35 = vpack.c.bf16 %v276_v25, %v276_v25  ;;  %v292_v36 = vpack.c.bf16 %v277_v26, %v277_v26  ;;  %304 = vst.msk [vmem:[#allocation6 + $0x10] sm:$0x3] %vm295_vm3, %v287_v29  ;;  %v837_v58 = vsel %vm45_vm0, %v2916_v55, 0 }
 0x154   :  { %v294_v37 = vpack.c.bf16 %v278_v27, %v278_v27  ;;  %306 = vst.msk [vmem:[#allocation6 + $0x14] sm:$0x3] %vm295_vm3, %v289_v30  ;;  %308 = vst.msk [vmem:[#allocation6 + $0x18] sm:$0x3] %vm295_vm3, %v291_v31  ;;  %v320_v38 = vld [vmem:[#allocation6] sm:$0x3] }
 0x155   :  { %310 = vst.msk [vmem:[#allocation6 + $0x1c] sm:$0x3] %vm295_vm3, %v293_v33  ;;  %305 = vst.msk [vmem:[#allocation6 + $0x12] sm:$0x3] %vm295_vm3, %v288_v34  ;;  %2711 = vmatmul.mubr.msk.bf16.vlgmr.msra.gmra.mxu1 %vm45_vm0, %v320_v38  ;;  %v322_v45 = vld [vmem:[#allocation6 + $0x4] sm:$0x3] }
 0x156   :  { %307 = vst.msk [vmem:[#allocation6 + $0x16] sm:$0x3] %vm295_vm3, %v290_v35  ;;  %309 = vst.msk [vmem:[#allocation6 + $0x1a] sm:$0x3] %vm295_vm3, %v292_v36  ;;  %v321_v41 = vld [vmem:[#allocation6 + $0x2] sm:$0x3]  ;;  %2721 = vmatpush3.bf16.xpose.msra.mxu1 %v480_v22  ;;  %2722 = vmatprep.mubr.msk.bf16.mxu1 %vm2964_vm1, %v2963_v0  ;;  %v1405_v22 = vpop.permute.xlu1 %1404 }
 0x157   :  { %311 = vst.msk [vmem:[#allocation6 + $0x1e] sm:$0x3] %vm295_vm3, %v294_v37  ;;  %2717 = vmatmul.mubr.msk.bf16.vlgmr.msra.gmra.mxu0 %vm45_vm0, %v321_v41  ;;  %2732 = vmatprep.subr.bf16.mxu1 %v2963_v0  ;;  %v323_v47 = vld [vmem:[#allocation6 + $0x6] sm:$0x3]  ;;  %v324_v51 = vld [vmem:[#allocation6 + $0x8] sm:$0x3] }
 0x158   :  { %2727 = vmatpush3.bf16.xpose.msra.mxu0 %v531_v40  ;;  %2728 = vmatprep.mubr.msk.bf16.mxu0 %vm2964_vm1, %v2963_v0  ;;  %v325_v53 = vld [vmem:[#allocation6 + $0xa] sm:$0x3]  ;;  %v326_v57 = vld [vmem:[#allocation6 + $0xc] sm:$0x3]  ;;  %v327_v59 = vld [vmem:[#allocation6 + $0xe] sm:$0x3] }
 0x159   :  { %2738 = vmatprep.subr.bf16.mxu0 %v2963_v0  ;;  %v888_v62 = vsel %vm45_vm0, %v2917_v60, 0  ;;  %v939_v1 = vsel %vm45_vm0, %v2918_v61, 0  ;;  %v990_v5 = vsel %vm45_vm0, %v2919_v3, 0  ;;  %v1041_v7 = vsel %vm45_vm0, %v2920_v4, 0 }
 0x15a   :  { %v328_v63 = vld [vmem:[#allocation6 + $0x10] sm:$0x3]  ;;  %v1092_v11 = vsel %vm45_vm0, %v2921_v9, 0  ;;  %v1143_v13 = vsel %vm45_vm0, %v2922_v10, 0  ;;  %v1248_v15 = vsel %vm1243_vm4, %v3083_v20, 0  ;;  %v1443_v19 = vsel %vm1243_vm4, %v1408_v18, 0  ;;  %v1614_v20 = vpop.permute.xlu0 %1613 }
 0x15b   :  { %v330_v6 = vld [vmem:[#allocation6 + $0x14] sm:$0x3]  ;;  %v332_v12 = vld [vmem:[#allocation6 + $0x18] sm:$0x3]  ;;  %v1649_v23 = vsel %vm1243_vm4, %v1614_v20, 0  ;;  %v2973_v27 = vmov -inf  }
 0x15c   :  { %v329_v2 = vld [vmem:[#allocation6 + $0x12] sm:$0x3]  ;;  %v334_v16 = vld [vmem:[#allocation6 + $0x1c] sm:$0x3]  ;;  %41 = vst.msk [vmem:[#allocation2] sm:$0xff] %vm40_vm5, %v2973_v27  ;;  %42 = vst.msk [vmem:[#allocation2 + $0x8] sm:$0xff] %vm40_vm5, %v2973_v27 }
 0x15d   :  { %2723 = vmatmul.mubr.msk.bf16.vlgmr.msra.gmra.mxu1 %vm45_vm0, %v322_v45  ;;  %v331_v8 = vld [vmem:[#allocation6 + $0x16] sm:$0x3]  ;;  %v333_v14 = vld [vmem:[#allocation6 + $0x1a] sm:$0x3]  ;;  %vm1941_vm3 = vcmask 31768   ;;  %vm1811_vm5 = vcmask 195712  }
 0x15e   :  { %2733 = vmatpush3.bf16.xpose.msra.mxu1 %v582_v44  ;;  %2734 = vmatprep.mubr.msk.bf16.mxu1 %vm2964_vm1, %v2963_v0  ;;  %v335_v17 = vld [vmem:[#allocation6 + $0x1e] sm:$0x3]  ;;  %v1819_v24 = vpop.permute.xlu0 %1818 }
 0x15f   :  { %2729 = vmatmul.mubr.msk.bf16.vlgmr.msra.gmra.mxu0 %vm45_vm0, %v323_v47  ;;  %2744 = vmatprep.subr.bf16.mxu1 %v2963_v0  ;;  %v1854_v25 = vsel %vm1243_vm4, %v1819_v24, 0 }
 0x160   :  { %2739 = vmatpush3.bf16.xpose.msra.mxu0 %v633_v46  ;;  %2740 = vmatprep.mubr.msk.bf16.mxu0 %vm2964_vm1, %v2963_v0 }
 0x161   :  { %2750 = vmatprep.subr.bf16.mxu0 %v2963_v0 }
 0x165   :  { %2735 = vmatmul.mubr.msk.bf16.vlgmr.msra.gmra.mxu1 %vm45_vm0, %v324_v51 }
 0x166   :  { %2745 = vmatpush3.bf16.xpose.msra.mxu1 %v684_v50  ;;  %2746 = vmatprep.mubr.msk.bf16.mxu1 %vm2964_vm1, %v2963_v0 }
 0x167   :  { %2741 = vmatmul.mubr.msk.bf16.vlgmr.msra.gmra.mxu0 %vm45_vm0, %v325_v53  ;;  %2756 = vmatprep.subr.bf16.mxu1 %v2963_v0 }
 0x168   :  { %2751 = vmatpush3.bf16.xpose.msra.mxu0 %v735_v52  ;;  %2752 = vmatprep.mubr.msk.bf16.mxu0 %vm2964_vm1, %v2963_v0 }
 0x169   :  { %2762 = vmatprep.subr.bf16.mxu0 %v2963_v0 }
 0x16d   :  { %2747 = vmatmul.mubr.msk.bf16.vlgmr.msra.gmra.mxu1 %vm45_vm0, %v326_v57 }
 0x16e   :  { %2757 = vmatpush3.bf16.xpose.msra.mxu1 %v786_v56  ;;  %2758 = vmatprep.mubr.msk.bf16.mxu1 %vm2964_vm1, %v2963_v0 }
 0x16f   :  { %2753 = vmatmul.mubr.msk.bf16.vlgmr.msra.gmra.mxu0 %vm45_vm0, %v327_v59  ;;  %2768 = vmatprep.subr.bf16.mxu1 %v2963_v0 }
 0x170   :  { %2763 = vmatpush3.bf16.xpose.msra.mxu0 %v837_v58  ;;  %2764 = vmatprep.mubr.msk.bf16.mxu0 %vm2964_vm1, %v2963_v0 }
 0x171   :  { %2774 = vmatprep.subr.bf16.mxu0 %v2963_v0 }
 0x175   :  { %2759 = vmatmul.mubr.msk.bf16.vlgmr.msra.gmra.mxu1 %vm45_vm0, %v328_v63 }
 0x176   :  { %2769 = vmatpush3.bf16.xpose.msra.mxu1 %v888_v62  ;;  %2770 = vmatprep.mubr.msk.bf16.mxu1 %vm2964_vm1, %v2963_v0 }
 0x177   :  { %2765 = vmatmul.mubr.msk.bf16.vlgmr.msra.gmra.mxu0 %vm45_vm0, %v329_v2  ;;  %2780 = vmatprep.subr.bf16.mxu1 %v2963_v0 }
 0x178   :  { %2775 = vmatpush3.bf16.xpose.msra.mxu0 %v939_v1  ;;  %2776 = vmatprep.mubr.msk.bf16.mxu0 %vm2964_vm1, %v2963_v0 }
 0x179   :  { %2786 = vmatprep.subr.bf16.mxu0 %v2963_v0 }
 0x17d   :  { %2771 = vmatmul.mubr.msk.bf16.vlgmr.msra.gmra.mxu1 %vm45_vm0, %v330_v6 }
 0x17e   :  { %2781 = vmatpush3.bf16.xpose.msra.mxu1 %v990_v5  ;;  %2782 = vmatprep.mubr.msk.bf16.mxu1 %vm2964_vm1, %v2963_v0 }
 0x17f   :  { %2777 = vmatmul.mubr.msk.bf16.vlgmr.msra.gmra.mxu0 %vm45_vm0, %v331_v8  ;;  %2792 = vmatprep.subr.bf16.mxu1 %v2963_v0 }
 0x180   :  { %2787 = vmatpush3.bf16.xpose.msra.mxu0 %v1041_v7  ;;  %2788 = vmatprep.mubr.msk.bf16.mxu0 %vm2964_vm1, %v2963_v0 }
 0x181   :  { %2798 = vmatprep.subr.bf16.mxu0 %v2963_v0 }
 0x185   :  { %2783 = vmatmul.mubr.msk.bf16.vlgmr.msra.gmra.mxu1 %vm45_vm0, %v332_v12 }
 0x186   :  { %2793 = vmatpush3.bf16.xpose.msra.mxu1 %v1092_v11  ;;  %2794 = vmatprep.mubr.msk.bf16.mxu1 %vm2964_vm1, %v2963_v0 }
 0x187   :  { %2789 = vmatmul.mubr.msk.bf16.vlgmr.msra.gmra.mxu0 %vm45_vm0, %v333_v14  ;;  %2804 = vmatprep.subr.bf16.mxu1 %v2963_v0 }
 0x188   :  { %2799 = vmatpush3.bf16.xpose.msra.mxu0 %v1143_v13  ;;  %2800 = vmatprep.mubr.msk.bf16.mxu0 %vm2964_vm1, %v2963_v0 }
 0x189   :  { %2810 = vmatprep.subr.bf16.mxu0 %v2963_v0 }
 0x18d   :  { %2795 = vmatmul.mubr.msk.bf16.vlgmr.msra.gmra.mxu1 %vm45_vm0, %v334_v16 }
 0x18e   :  { %2805 = vmatpush3.bf16.xpose.msra.mxu1 %v1248_v15  ;;  %2806 = vmatprep.mubr.msk.bf16.mxu1 %vm2964_vm1, %v2963_v0 }
 0x18f   :  { %2801 = vmatmul.mubr.msk.bf16.vlgmr.msra.gmra.mxu0 %vm45_vm0, %v335_v17  ;;  %2816 = vmatprep.subr.bf16.mxu1 %v2963_v0 }
 0x190   :  { %2812 = vmatprep.mubr.msk.bf16.mxu0 %vm2964_vm1, %v2963_v0 }
 0x195   :  { %2807 = vmatmul.mubr.msk.bf16.vlgmr.msra.gmra.mxu1 %vm1243_vm4, %v3085_v21  ;;  %v1612_v21 = vpop.permute.xlu1 %1611 }
 0x196   :  { %2817 = vmatpush3.bf16.xpose.msra.mxu1 %v1443_v19  ;;  %2818 = vmatprep.mubr.msk.bf16.mxu1 %vm2964_vm1, %v2963_v0 }
 0x197   :  { %2828 = vmatprep.subr.bf16.mxu1 %v2963_v0 }
 0x199   :  { %v1817_v26 = vpop.permute.xlu1 %1816 }
 0x19d   :  { %2819 = vmatmul.mubr.msk.bf16.vlgmr.msra.gmra.mxu1 %vm1243_vm4, %v1405_v22 }
 0x19e   :  { %2829 = vmatpush3.bf16.xpose.msra.mxu1 %v1649_v23  ;;  %2830 = vmatprep.mubr.msk.bf16.mxu1 %vm2964_vm1, %v2963_v0 }
 0x19f   :  { %2840 = vmatprep.subr.bf16.mxu1 %v2963_v0 }
 0x1a5   :  { %2831 = vmatmul.mubr.msk.bf16.vlgmr.msra.gmra.mxu1 %vm1243_vm4, %v1612_v21 }
 0x1a6   :  { %2841 = vmatpush3.bf16.xpose.msra.mxu1 %v1854_v25  ;;  %2842 = vmatprep.mubr.msk.bf16.mxu1 %vm2964_vm1, %v2963_v0 }
 0x1a7   :  { %2852 = vmatprep.subr.bf16.mxu1 %v2963_v0 }
 0x1ad   :  { %2843 = vmatmul.mubr.msk.bf16.vlgmr.msra.gmra.mxu1 %vm1243_vm4, %v1817_v26 }
 0x1ae   :  { %2856 = vmatprep.mubr.msk.bf16.mxu1 %vm2964_vm1, %v2963_v0 }
 0x215   :  { %v3292_v29 = vpop.f32.mrf.mxu1 }
 0x216   :  { %v1615_v31 = vrot.slane %v3292_v29, 2  ;;  %v1820_v33 = vrot.slane %v3292_v29, 3 }
 0x217   :  { %v3294_v30 = vpop.f32.mrf.mxu0  ;;  %v2712_v34 = vpop.f32.mrf.mxu1 }
 0x218   :  { %v1616_v35 = vrot.slane %v3294_v30, 1  ;;  %v1821_v36 = vrot.slane %v3294_v30, 2 }
 0x219   :  { %v2718_v37 = vpop.f32.mrf.mxu0  ;;  %v417_v38 = vpop.f32.mrf.mxu1 }
 0x21a   :  { %v1617_v40 = vsel %vm1207_vm6, %v1616_v35, %v1615_v31  ;;  %v1822_v41 = vsel %vm1207_vm6, %v1821_v36, %v1820_v33  ;;  %v1206_v35 = vrot.slane %v3294_v30, 7 }
 0x21b   :  { %v468_v42 = vpop.f32.mrf.mxu0  ;;  %v2713_v43 = vpop.f32.mrf.mxu1 }
 0x21c   :  { %v1208_v42 = vsel %vm1207_vm6, %v1206_v35, %v3292_v29 }
 0x21d   :  { %v2719_v44 = vpop.f32.mrf.mxu0  ;;  %v3302_v45 = vpop.f32.mrf.mxu1 }
 0x21e   :  { %v1618_v46 = vsel %vm1210_vm7, %v3302_v45, %v1617_v40  ;;  %v1823_v47 = vrot.slane %v3302_v45, 1  ;;  %v1209_v37 = vrot.slane %v3302_v45, 6 }
 0x21f   :  { %v3307_v48 = vpop.f32.mrf.mxu0  ;;  %v2724_v49 = vpop.f32.mrf.mxu1 }
 0x220   :  { %v1619_v50 = vrot.slane %v3307_v48, 7  ;;  %v1824_v51 = vsel %vm1210_vm7, %v1823_v47, %v1822_v41  ;;  %v1212_v43 = vrot.slane %v3307_v48, 5 }
 0x221   :  { %v2730_v52 = vpop.f32.mrf.mxu0  ;;  %v1825_v54 = vsel %vm1213_vm8, %v3307_v48, %v1824_v51  ;;  %v519_v55 = vpop.f32.mrf.mxu1 }
 0x222   :  { %v3312_v53 = vsel %vm1213_vm8, %v1619_v50, %v1618_v46  ;;  %v1211_v46 = vsel %vm1210_vm7, %v1209_v37, %v1208_v42 }
 0x223   :  { %v570_v56 = vpop.f32.mrf.mxu0  ;;  %v2725_v57 = vpop.f32.mrf.mxu1 }
 0x224   :  { %v1411_v56 = vrot.slane %v3302_v45, 7  ;;  %v1214_v57 = vsel %vm1213_vm8, %v1212_v43, %v1211_v46 }
 0x225   :  { %v2731_v58 = vpop.f32.mrf.mxu0  ;;  %v3316_v59 = vpop.f32.mrf.mxu1 }
 0x226   :  { %v1826_v60 = vrot.slane %v3316_v59, 7  ;;  %v1215_v47 = vrot.slane %v3316_v59, 4 }
 0x227   :  { %v3319_v61 = vpop.f32.mrf.mxu0  ;;  %v2736_v62 = vpop.f32.mrf.mxu1 }
 0x228   :  { %v1828_v63 = vrot.slane %v3319_v61, 6  ;;  %v1827_v2 = vsel %vm1216_vm9, %v1826_v60, %v1825_v54  ;;  %v1409_v54 = vrot.slane %v3292_v29, 1  ;;  %v1218_v58 = vrot.slane %v3319_v61, 3 }
 0x229   :  { %v2742_v1 = vpop.f32.mrf.mxu0  ;;  %v621_v3 = vpop.f32.mrf.mxu1 }
 0x22a   :  { %v3324_v4 = vsel %vm1219_vm10, %v1828_v63, %v1827_v2  ;;  %v1217_v3 = vsel %vm1216_vm9, %v1215_v47, %v1214_v57 }
 0x22b   :  { %v672_v5 = vpop.f32.mrf.mxu0  ;;  %v2737_v6 = vpop.f32.mrf.mxu1 }
 0x22c   :  { %v1410_v6 = vsel %vm1207_vm6, %v3294_v30, %v1409_v54  ;;  %v1621_v54 = vrot.slane %v3316_v59, 6 }
 0x22d   :  { %v2743_v7 = vpop.f32.mrf.mxu0  ;;  %v3326_v8 = vpop.f32.mrf.mxu1 }
 0x22e   :  { %v1221_v62 = vrot.slane %v3326_v8, 2  ;;  %v1413_v7 = vrot.slane %v3307_v48, 6 }
 0x22f   :  { %v3328_v9 = vpop.f32.mrf.mxu0  ;;  %v2748_v10 = vpop.f32.mrf.mxu1 }
 0x231   :  { %v2754_v11 = vpop.f32.mrf.mxu0  ;;  %v723_v12 = vpop.f32.mrf.mxu1 }
 0x232   :  { %v1412_v11 = vsel %vm1210_vm7, %v1411_v56, %v1410_v6  ;;  %v1415_v12 = vrot.slane %v3316_v59, 5 }
 0x233   :  { %v774_v13 = vpop.f32.mrf.mxu0  ;;  %v2749_v14 = vpop.f32.mrf.mxu1 }
 0x234   :  { %v1224_v13 = vrot.slane %v3328_v9, 1 }
 0x235   :  { %v2755_v15 = vpop.f32.mrf.mxu0  ;;  %v3330_v16 = vpop.f32.mrf.mxu1 }
 0x236   :  { %v1220_v15 = vsel %vm1219_vm10, %v1218_v58, %v1217_v3 }
 0x237   :  { %v3332_v17 = vpop.f32.mrf.mxu0  ;;  %v2760_v18 = vpop.f32.mrf.mxu1  ;;  %v1223_v48 = vsel %vm1222_vm11, %v1221_v62, %v1220_v15 }
 0x238   :  { %v1227_v49 = vrot.slane %v3332_v17, 7  ;;  %v1423_v18 = vrot.slane %v3330_v16, 1  ;;  %v1630_v6 = vrot.slane %v3332_v17, 1 }
 0x239   :  { %v2766_v19 = vpop.f32.mrf.mxu0  ;;  %v825_v20 = vpop.f32.mrf.mxu1 }
 0x23a   :  { %v1228_v63 = vsel %vm1207_vm6, %v1227_v49, %v3330_v16 }
 0x23b   :  { %v876_v22 = vpop.f32.mrf.mxu0  ;;  %v2761_v23 = vpop.f32.mrf.mxu1 }
 0x23d   :  { %v2767_v24 = vpop.f32.mrf.mxu0  ;;  %v3334_v21 = vpop.f32.mrf.mxu1 }
 0x23e   :  { %v1229_v51 = vrot.slane %v3334_v21, 6  ;;  %v1425_v22 = vrot.slane %v3334_v21, 7 }
 0x23f   :  { %v3336_v25 = vpop.f32.mrf.mxu0  ;;  %v2772_v26 = vpop.f32.mrf.mxu1 }
 0x240   :  { %v1231_v1 = vrot.slane %v3336_v25, 5  ;;  %v1230_v29 = vsel %vm1210_vm7, %v1229_v51, %v1228_v63  ;;  %v1427_v42 = vrot.slane %v3336_v25, 6  ;;  %v1633_v15 = vrot.slane %v3336_v25, 7 }
 0x241   :  { %v2778_v27 = vpop.f32.mrf.mxu0  ;;  %v927_v31 = vpop.f32.mrf.mxu1 }
 0x242   :  { %v1232_v19 = vsel %vm1213_vm8, %v1231_v1, %v1230_v29  ;;  %v1414_v27 = vsel %vm1213_vm8, %v1413_v7, %v1412_v11 }
 0x243   :  { %v978_v33 = vpop.f32.mrf.mxu0  ;;  %v2773_v34 = vpop.f32.mrf.mxu1  ;;  %v1416_v37 = vsel %vm1216_vm9, %v1415_v12, %v1414_v27 }
 0x244   :  { %v1417_v33 = vrot.slane %v3319_v61, 4  ;;  %v1419_v34 = vrot.slane %v3326_v8, 3 }
 0x245   :  { %v2779_v36 = vpop.f32.mrf.mxu0  ;;  %v3340_v38 = vpop.f32.mrf.mxu1 }
 0x246   :  { %v1233_v45 = vrot.slane %v3340_v38, 4  ;;  %v1226_v36 = vsel %vm1225_vm12, %v1224_v13, %v1223_v48  ;;  %v1429_v49 = vrot.slane %v3340_v38, 5  ;;  %v1418_v57 = vsel %vm1219_vm10, %v1417_v33, %v1416_v37 }
 0x247   :  { %v3342_v40 = vpop.f32.mrf.mxu0  ;;  %v2784_v41 = vpop.f32.mrf.mxu1  ;;  %v1420_v1 = vsel %vm1222_vm11, %v1419_v34, %v1418_v57  ;;  %v1622_v13 = vsel %vm1216_vm9, %v1621_v54, %v3312_v53  ;;  %v1835_v33 = vrot.slane %v3332_v17, 2 }
 0x248   :  { %v1235_v20 = vrot.slane %v3342_v40, 3  ;;  %v1234_v26 = vsel %vm1216_vm9, %v1233_v45, %v1232_v19  ;;  %v1424_v41 = vsel %vm1207_vm6, %v3332_v17, %v1423_v18  ;;  %v1623_v45 = vrot.slane %v3319_v61, 5 }
 0x249   :  { %v2790_v44 = vpop.f32.mrf.mxu0  ;;  %v1029_v50 = vpop.f32.mrf.mxu1  ;;  %v1426_v47 = vsel %vm1210_vm7, %v1425_v22, %v1424_v41  ;;  %v1837_v41 = vrot.slane %v3334_v21, 1  ;;  %v1830_v17 = vrot.slane %v3326_v8, 5 }
 0x24a   :  { %v1236_v46 = vsel %vm1219_vm10, %v1235_v20, %v1234_v26  ;;  %v1428_v58 = vsel %vm1213_vm8, %v1427_v42, %v1426_v47  ;;  %v1635_v20 = vrot.slane %v3340_v38, 6  ;;  %v1624_v53 = vsel %vm1219_vm10, %v1623_v45, %v1622_v13 }
 0x24b   :  { %v1080_v52 = vpop.f32.mrf.mxu0  ;;  %v2785_v55 = vpop.f32.mrf.mxu1  ;;  %v1430_v29 = vsel %vm1216_vm9, %v1429_v49, %v1428_v58 }
 0x24c   :  { %v1421_v55 = vrot.slane %v3328_v9, 2 }
 0x24d   :  { %v2791_v60 = vpop.f32.mrf.mxu0  ;;  %v3359_v2 = vpop.f32.mrf.mxu1 }
 0x24e   :  { %v1237_v23 = vrot.slane %v3359_v2, 2  ;;  %v1431_v60 = vrot.slane %v3342_v40, 4  ;;  %v1433_v3 = vrot.slane %v3359_v2, 3  ;;  %v1422_v11 = vsel %vm1225_vm12, %v1421_v55, %v1420_v1 }
 0x24f   :  { %v3364_v5 = vpop.f32.mrf.mxu0  ;;  %v2796_v10 = vpop.f32.mrf.mxu1  ;;  %v1639_v42 = vrot.slane %v3359_v2, 4  ;;  %v1842_v1 = vrot.slane %v3342_v40, 6  ;;  %v1844_v45 = vrot.slane %v3359_v2, 5 }
 0x250   :  { %v1239_v43 = vrot.slane %v3364_v5, 1  ;;  %v1238_v51 = vsel %vm1222_vm11, %v1237_v23, %v1236_v46  ;;  %v1625_v10 = vrot.slane %v3326_v8, 4  ;;  %v1435_v18 = vrot.slane %v3364_v5, 2 }
 0x251   :  { %v2802_v14 = vpop.f32.mrf.mxu0  ;;  %v1131_v30 = vpop.f32.mrf.mxu1  ;;  %v1432_v19 = vsel %vm1219_vm10, %v1431_v60, %v1430_v29  ;;  %v1834_v46 = vrot.slane %v3330_v16, 3 }
 0x252   :  { %v1240_v62 = vsel %vm1225_vm12, %v1239_v43, %v1238_v51  ;;  %v1629_v14 = vrot.slane %v3330_v16, 2  ;;  %v1434_v48 = vsel %vm1222_vm11, %v1433_v3, %v1432_v19  ;;  %v1840_v16 = vrot.slane %v3340_v38, 7 }
 0x253   :  { %v1182_v24 = vpop.f32.mrf.mxu0  ;;  %v2797_v31 = vpop.f32.mrf.mxu1  ;;  %v1836_v51 = vsel %vm1207_vm6, %v1835_v33, %v1834_v46  ;;  %v2974_v38 = vmov 0  }
 0x254   :  { %v1631_v22 = vsel %vm1207_vm6, %v1630_v6, %v1629_v14  ;;  %v1627_v24 = vrot.slane %v3328_v9, 3  ;;  %v1626_v31 = vsel %vm1222_vm11, %v1625_v10, %v1624_v53  ;;  %2879 = vset.pattern.permute.xlu0 %v2974_v38  ;;  %2878 = vset.pattern.permute.xlu1 %v2974_v38  ;;  %v1846_v10 = vrot.slane %v3364_v5, 4  ;;  %v1291_v53 = vld [vmem:[#allocation2] sm:$0xff] }
 0x255   :  { %v2803_v35 = vpop.f32.mrf.mxu0  ;;  %v1284_v44 = vpop.f32.mrf.mxu1  ;;  %v1632_v26 = vsel %vm1210_vm7, %v3334_v21, %v1631_v22  ;;  %v318_v22 = vld [vmem:[%s3765_s3 + $0x8] sm:$0xff]  ;;  %vm2016_vm6 = vcmask 261312  }
 0x256   :  { %v3392_v50 = vadd.f32 %v1284_v44, %v1226_v36  ;;  %v1634_v34 = vsel %vm1213_vm8, %v1633_v15, %v1632_v26  ;;  %v1637_v35 = vrot.slane %v3342_v40, 5  ;;  %v1436_v36 = vsel %vm1225_vm12, %v1435_v18, %v1434_v48  ;;  %v317_v48 = vld [vmem:[%s3765_s3] sm:$0xff]  ;;  %s2978_s3 = smov 8  }
 0x257   :  { %v2808_v52 = vpop.f32.mrf.mxu1  ;;  %v1636_v44 = vsel %vm1216_vm9, %v1635_v20, %v1634_v34  ;;  %v1628_v21 = vsel %vm1225_vm12, %v1627_v24, %v1626_v31 }
 0x258   :  { %v1294_v56 = vsel %vm1293_vm13, %v3392_v50, -inf  ;;  %v1641_v52 = vrot.slane %v3364_v5, 3  ;;  %v1638_v55 = vsel %vm1219_vm10, %v1637_v35, %v1636_v44 }
 0x259   :  { %v1287_v63 = vpop.f32.mrf.mxu1  ;;  %1295 = vmax.xlane.f32.xlu0 %v1294_v56  ;;  %v1838_v56 = vsel %vm1210_vm7, %v1837_v41, %v1836_v51  ;;  %v1640_v8 = vsel %vm1222_vm11, %v1639_v42, %v1638_v55  ;;  %v2976_v55 = vmov 2   ;;  %vm2478_vm7 = vcmask 195584  }
 0x25a   :  { %v3405_v59 = vadd.f32 %v1287_v63, %v1240_v62  ;;  %v1832_v62 = vrot.slane %v3328_v9, 4  ;;  %v1839_v63 = vsel %vm1213_vm8, %v3336_v25, %v1838_v56  ;;  %v1642_v3 = vsel %vm1225_vm12, %v1641_v52, %v1640_v8 }
 0x25b   :  { %v2809_v7 = vpop.f32.mrf.mxu1  ;;  %v1841_v9 = vsel %vm1216_vm9, %v1840_v16, %v1839_v63 }
 0x25c   :  { %v1297_v12 = vsel %vm1293_vm13, %v3405_v59, -inf  ;;  %v1831_v7 = vsel %vm1222_vm11, %v1830_v17, %v3324_v4  ;;  %v1843_v2 = vsel %vm1219_vm10, %v1842_v1, %v1841_v9  ;;  %v2977_v9 = vmov 3  }
 0x25d   :  { %v1479_v61 = vpop.f32.mrf.mxu1  ;;  %1298 = vmax.xlane.f32.xlu1 %v1297_v12  ;;  %v1845_v4 = vsel %vm1222_vm11, %v1844_v45, %v1843_v2 }
 0x25e   :  { %v3421_v30 = vadd.f32 %v1479_v61, %v1422_v11  ;;  %v1833_v11 = vsel %vm1225_vm12, %v1832_v62, %v1831_v7  ;;  %v1847_v18 = vsel %vm1225_vm12, %v1846_v10, %v1845_v4 }
 0x25f   :  { %v2820_v23 = vpop.f32.mrf.mxu1 }
 0x260   :  { %v1488_v27 = vsel %vm1293_vm13, %v3421_v30, -inf  ;;  %v3490_v23 = vpack.c.bf16 %v318_v22, %v317_v48 }
 0x261   :  { %v1482_v37 = vpop.f32.mrf.mxu1  ;;  %1489 = vmax.xlane.f32.xlu0 %v1488_v27  ;;  %v1292_v27 = vld [vmem:[#allocation2 + $0x8] sm:$0xff] }
 0x262   :  { %v3438_v43 = vadd.f32 %v1482_v37, %v1436_v36  ;;  %2811 = vmatpush3.bf16.msra.mxu0 %v3490_v23  ;;  %v2975_v36 = vmov 1  }
 0x263   :  { %v2821_v47 = vpop.f32.mrf.mxu1  ;;  %2822 = vmatprep.subr.bf16.mxu0 %v2963_v0 }
 0x264   :  { %v1491_v49 = vsel %vm1293_vm13, %v3438_v43, -inf }
 0x265   :  { %v1685_v54 = vpop.f32.mrf.mxu1  ;;  %1492 = vmax.xlane.f32.xlu0 %v1491_v49 }
 0x266   :  { %v3451_v57 = vadd.f32 %v1685_v54, %v1628_v21 }
 0x267   :  { %v2832_v58 = vpop.f32.mrf.mxu1 }
 0x268   :  { %v1694_v60 = vsel %vm1293_vm13, %v3451_v57, -inf }
 0x269   :  { %v1688_v29 = vpop.f32.mrf.mxu1  ;;  %1695 = vmax.xlane.f32.xlu1 %v1694_v60 }
 0x26a   :  { %v3463_v6 = vadd.f32 %v1688_v29, %v1642_v3 }
 0x26b   :  { %v2833_v25 = vpop.f32.mrf.mxu1 }
 0x26c   :  { %v1697_v40 = vsel %vm1293_vm13, %v3463_v6, -inf }
 0x26d   :  { %v1890_v12 = vpop.f32.mrf.mxu1  ;;  %1698 = vmax.xlane.f32.xlu0 %v1697_v40 }
 0x26e   :  { %v3474_v13 = vadd.f32 %v1890_v12, %v1833_v11 }
 0x26f   :  { %v2844_v14 = vpop.f32.mrf.mxu1 }
 0x270   :  { %v1899_v15 = vsel %vm1293_vm13, %v3474_v13, -inf }
 0x271   :  { %v1893_v61 = vpop.f32.mrf.mxu1  ;;  %1900 = vmax.xlane.f32.xlu1 %v1899_v15 }
 0x272   :  { %v3480_v19 = vadd.f32 %v1893_v61, %v1847_v18 }
 0x273   :  { %v2845_v5 = vpop.f32.mrf.mxu1 }
 0x274   :  { %v1902_v20 = vsel %vm1293_vm13, %v3480_v19, -inf }
 0x275   :  { %1903 = vmax.xlane.f32.xlu0 %v1902_v20 }
 0x2e2   :  { %v1296_v24 = vpop.xlane.xlu0 %1295 }
 0x2e3   :  { %v1300_v26 = vmax.f32 %v1291_v53, %v1296_v24 }
 0x2e5   :  { %v1302_v31 = vsub.f32 %v1291_v53, %v1300_v26  ;;  %1402 = vst.msk [vmem:[#allocation2] sm:$0xff] %vm1336_vm14, %v1300_v26  ;;  %1310 = vperm.xlu1 %2878, %v1300_v26  }
 0x2e6   :  { %v1299_v33 = vpop.xlane.xlu1 %1298 }
 0x2e7   :  { %v1304_v34 = vmul.f32 1.442695, %v1302_v31  ;;  %v1301_v35 = vmax.f32 %v1292_v27, %v1299_v33 }
 0x2e9   :  { %2923 = vpow2.f32 %v1304_v34  ;;  %1403 = vst.msk [vmem:[#allocation2 + $0x8] sm:$0xff] %vm1336_vm14, %v1301_v35  ;;  %1315 = vperm.xlu0 %2879, %v1301_v35   ;;  %2880 = vset.pattern.permute.xlu1 %v2975_v36  ;;  %v1303_v58 = vsub.f32 %v1292_v27, %v1301_v35 }
 0x2ea   :  { %v1490_v37 = vpop.xlane.xlu0 %1489 }
 0x2eb   :  { %v1306_v63 = vmul.f32 1.442695, %v1303_v58 }
 0x2ec   :  { %v1486_v41 = vld [vmem:[#allocation2] sm:$0xff] }
 0x2ed   :  { %v1494_v42 = vmax.f32 %v1486_v41, %v1490_v37  ;;  %1959 = vrot.lane.b32.xlu0 %v3490_v23, %s2970_s11 }
 0x2ee   :  { %v1493_v46 = vpop.xlane.xlu0 %1492 }
 0x2ef   :  { %v1496_v44 = vsub.f32 %v1486_v41, %v1494_v42  ;;  %1609 = vst.msk [vmem:[#allocation2] sm:$0xff] %vm1530_vm15, %v1494_v42  ;;  %1504 = vperm.xlu1 %2880, %v1494_v42  }
 0x2f0   :  { %v1487_v47 = vld [vmem:[#allocation2 + $0x8] sm:$0xff] }
 0x2f1   :  { %v1498_v17 = vmul.f32 1.442695, %v1496_v44  ;;  %v1495_v49 = vmax.f32 %v1487_v47, %v1493_v46 }
 0x2f2   :  { %v1696_v21 = vpop.xlane.xlu1 %1695 }
 0x2f3   :  { %2925 = vpow2.f32 %v1498_v17  ;;  %1610 = vst.msk [vmem:[#allocation2 + $0x8] sm:$0xff] %vm1530_vm15, %v1495_v49  ;;  %1509 = vperm.xlu1 %2880, %v1495_v49   ;;  %v1497_v3 = vsub.f32 %v1487_v47, %v1495_v49 }
 0x2f5   :  { %v1500_v40 = vmul.f32 1.442695, %v1497_v3 }
 0x2f6   :  { %v3501_v51 = vpop.eup %2923  ;;  %v1692_v52 = vld [vmem:[#allocation2] sm:$0xff]  ;;  %v1699_v16 = vpop.xlane.xlu0 %1698 }
 0x2f7   :  { %v1700_v54 = vmax.f32 %v1692_v52, %v1696_v21  ;;  %1343 = vperm.xlu0 %2879, %v3501_v51   ;;  %2881 = vset.pattern.permute.xlu1 %v2976_v55 }
 0x2f9   :  { %v1702_v56 = vsub.f32 %v1692_v52, %v1700_v54  ;;  %1814 = vst.msk [vmem:[#allocation2] sm:$0xff] %vm1736_vm2, %v1700_v54  ;;  %1710 = vperm.xlu1 %2881, %v1700_v54  }
 0x2fa   :  { %v1693_v8 = vld [vmem:[#allocation2 + $0x8] sm:$0xff]  ;;  %v1901_v45 = vpop.xlane.xlu1 %1900 }
 0x2fb   :  { %v1704_v60 = vmul.f32 1.442695, %v1702_v56  ;;  %v1701_v62 = vmax.f32 %v1693_v8, %v1699_v16  ;;  %2884 = vset.pattern.permute.xlu0 %v2975_v36 }
 0x2fd   :  { %2927 = vpow2.f32 %v1704_v60  ;;  %1815 = vst.msk [vmem:[#allocation2 + $0x8] sm:$0xff] %vm1736_vm2, %v1701_v62  ;;  %1715 = vperm.xlu1 %2881, %v1701_v62   ;;  %v1703_v12 = vsub.f32 %v1693_v8, %v1701_v62 }
 0x2fe   :  { %2929 = vpow2.f32 %v1306_v63  ;;  %v1904_v10 = vpop.xlane.xlu0 %1903 }
 0x2ff   :  { %2931 = vpow2.f32 %v1500_v40  ;;  %v1706_v14 = vmul.f32 1.442695, %v1703_v12 }
 0x300   :  { %v3507_v1 = vpop.eup %2925  ;;  %v3509_v29 = vld [vmem:[#allocation2] sm:$0xff] }
 0x301   :  { %v3512_v7 = vmax.f32 %v3509_v29, %v1901_v45  ;;  %1537 = vperm.xlu0 %2884, %v3507_v1   ;;  %1549 = vrot.lane.b32.xlu1 %v3490_v23, %s2968_s2  ;;  %2933 = vpow2.f32 %v1706_v14 }
 0x302   :  { %2882 = vset.pattern.permute.xlu1 %v2977_v9 }
 0x303   :  { %v1907_v25 = vsub.f32 %v3509_v29, %v3512_v7  ;;  %2019 = vst.msk [vmem:[#allocation2] sm:$0xff] %vm1941_vm3, %v3512_v7 }
 0x304   :  { %v3521_v11 = vld [vmem:[#allocation2 + $0x8] sm:$0xff] }
 0x305   :  { %v3524_v2 = vmax.f32 %v3521_v11, %v1904_v10  ;;  %1915 = vperm.xlu1 %2882, %v3512_v7   ;;  %2886 = vset.pattern.permute.xlu0 %v2976_v55 }
 0x307   :  { %v1908_v4 = vsub.f32 %v3521_v11, %v3524_v2  ;;  %2020 = vst.msk [vmem:[#allocation2 + $0x8] sm:$0xff] %vm1941_vm3, %v3524_v2 }
 0x309   :  { %1920 = vperm.xlu1 %2882, %v3524_v2  }
 0x30a   :  { %v3532_v15 = vpop.eup %2927 }
 0x30b   :  { %1743 = vperm.xlu0 %2886, %v3532_v15   ;;  %v3538_v18 = vpop.eup %2929 }
 0x30c   :  { %v3541_v61 = vpop.eup %2931 }
 0x30d   :  { %1754 = vrot.lane.b32.xlu1 %v3490_v23, %s2969_s30 }
 0x30e   :  { %2883 = vset.pattern.permute.xlu1 %v2974_v38  ;;  %v3545_v5 = vpop.eup %2933 }
 0x30f   :  { %2888 = vset.pattern.permute.xlu0 %v2977_v9 }
 0x311   :  { %1348 = vperm.xlu1 %2883, %v3538_v18  }
 0x315   :  { %2885 = vset.pattern.permute.xlu1 %v2975_v36 }
 0x316   :  { %1542 = vperm.xlu1 %2885, %v3541_v61  }
 0x31a   :  { %2887 = vset.pattern.permute.xlu1 %v2976_v55 }
 0x31b   :  { %1748 = vperm.xlu1 %2887, %v3545_v5  }
 0x360   :  { %v1311_v20 = vpop.permute.xlu1 %1310 }
 0x361   :  { %v1318_v48 = vsub.f32 %v3392_v50, %v1311_v20 }
 0x363   :  { %v1320_v38 = vmul.f32 1.442695, %v1318_v48 }
 0x364   :  { %v1316_v22 = vpop.permute.xlu0 %1315 }
 0x365   :  { %2935 = vpow2.f32 %v1320_v38  ;;  %v1319_v23 = vsub.f32 %v3405_v59, %v1316_v22  ;;  %v1324_v22 = vld [vmem:[#allocation3] sm:$0xff] }
 0x367   :  { %v1322_v53 = vmul.f32 1.442695, %v1319_v23  ;;  %v1326_v23 = vmul.f32 %v3501_v51, %v1324_v22 }
 0x368   :  { %v1960_v45 = vpop.permute.xlu0 %1959 }
 0x369   :  { %2937 = vpow2.f32 %v1322_v53 }
 0x36a   :  { %v1505_v24 = vpop.permute.xlu1 %1504 }
 0x36b   :  { %v1512_v26 = vsub.f32 %v3421_v30, %v1505_v24 }
 0x36d   :  { %v1514_v27 = vmul.f32 1.442695, %v1512_v26  ;;  %v1325_v26 = vld [vmem:[#allocation3 + $0x8] sm:$0xff] }
 0x36e   :  { %v1510_v31 = vpop.permute.xlu1 %1509 }
 0x36f   :  { %2939 = vpow2.f32 %v1514_v27  ;;  %v1513_v33 = vsub.f32 %v3438_v43, %v1510_v31  ;;  %v1327_v31 = vmul.f32 %v3538_v18, %v1325_v26 }
 0x371   :  { %v1516_v34 = vmul.f32 1.442695, %v1513_v33 }
 0x372   :  { %v2936_v35 = vpop.eup %2935  ;;  %v1344_v20 = vpop.permute.xlu0 %1343 }
 0x373   :  { %2941 = vpow2.f32 %v1516_v34  ;;  %v1328_v50 = vsel %vm1293_vm13, %v2936_v35, 0.0 }
 0x374   :  { %1329 = vadd.xlane.f32.xlu1 %v1328_v50  ;;  %v1711_v36 = vpop.permute.xlu1 %1710 }
 0x375   :  { %v1718_v37 = vsub.f32 %v3451_v57, %v1711_v36 }
 0x376   :  { %v2938_v59 = vpop.eup %2937 }
 0x377   :  { %v1720_v41 = vmul.f32 1.442695, %v1718_v37  ;;  %v1331_v42 = vsel %vm1293_vm13, %v2938_v59, 0.0  ;;  %v1353_v44 = vpack.c.bf16 %v2938_v59, %v2936_v35 }
 0x378   :  { %1332 = vadd.xlane.f32.xlu0 %v1331_v42  ;;  %v1716_v30 = vpop.permute.xlu1 %1715  ;;  %v1909_v42 = vmul.f32 1.442695, %v1907_v25 }
 0x379   :  { %2943 = vpow2.f32 %v1720_v41  ;;  %v1719_v46 = vsub.f32 %v3463_v6, %v1716_v30  ;;  %2813 = vmatmul.mubr.msk.bf16.vlgmr.msra.gmra.mxu0 %vm1293_vm13, %v1353_v44 }
 0x37a   :  { %2824 = vmatprep.mubr.msk.bf16.mxu0 %vm2964_vm1, %v2963_v0 }
 0x37b   :  { %v1722_v43 = vmul.f32 1.442695, %v1719_v46 }
 0x37c   :  { %v2940_v47 = vpop.eup %2939  ;;  %v1550_v17 = vpop.permute.xlu1 %1549 }
 0x37d   :  { %2945 = vpow2.f32 %v1722_v43  ;;  %2823 = vmatpush3.bf16.msra.mxu0 %v1550_v17  ;;  %v1522_v57 = vsel %vm1293_vm13, %v2940_v47, 0.0  ;;  %v3580_v48 = vpop.permute.xlu0 %1537 }
 0x37e   :  { %1523 = vadd.xlane.f32.xlu1 %v1522_v57  ;;  %2834 = vmatprep.subr.bf16.mxu0 %v2963_v0 }
 0x380   :  { %v2942_v49 = vpop.eup %2941  ;;  %v1916_v52 = vpop.permute.xlu1 %1915 }
 0x381   :  { %v1923_v21 = vsub.f32 %v3474_v13, %v1916_v52  ;;  %v1525_v6 = vsel %vm1293_vm13, %v2942_v49, 0.0  ;;  %v1547_v54 = vpack.c.bf16 %v2942_v49, %v2940_v47  ;;  %v1339_v52 = vld [vmem:[#allocation4] sm:$0xff] }
 0x382   :  { %1526 = vadd.xlane.f32.xlu0 %v1525_v6 }
 0x383   :  { %v1925_v55 = vmul.f32 1.442695, %v1923_v21  ;;  %2825 = vmatmul.mubr.msk.bf16.vlgmr.msra.gmra.mxu0 %vm1293_vm13, %v1547_v54  ;;  %v1340_v21 = vld [vmem:[#allocation4 + $0x8] sm:$0xff] }
 0x384   :  { %v1921_v56 = vpop.permute.xlu1 %1920  ;;  %2836 = vmatprep.mubr.msk.bf16.mxu0 %vm2964_vm1, %v2963_v0 }
 0x385   :  { %2947 = vpow2.f32 %v1925_v55  ;;  %v1924_v16 = vsub.f32 %v3480_v19, %v1921_v56 }
 0x386   :  { %v2944_v8 = vpop.eup %2943  ;;  %v3585_v53 = vpop.permute.xlu0 %1743 }
 0x387   :  { %v1927_v58 = vmul.f32 1.442695, %v1924_v16  ;;  %v1728_v60 = vsel %vm1293_vm13, %v2944_v8, 0.0 }
 0x388   :  { %1729 = vadd.xlane.f32.xlu1 %v1728_v60  ;;  %v1755_v13 = vpop.permute.xlu1 %1754  ;;  %v1911_v60 = vmul.f32 1.442695, %v1908_v4  ;;  %v2188_v4 = vsub.s32 0, %v3100_v28 }
 0x389   :  { %2949 = vpow2.f32 %v1927_v58  ;;  %2835 = vmatpush3.bf16.msra.mxu0 %v1755_v13 }
 0x38a   :  { %v2946_v62 = vpop.eup %2945  ;;  %2846 = vmatprep.subr.bf16.mxu0 %v2963_v0  ;;  %2951 = vpow2.f32 %v1909_v42  ;;  %v2237_v42 = vsub.s32 7, %v3100_v28 }
 0x38b   :  { %v1731_v63 = vsel %vm1293_vm13, %v2946_v62, 0.0  ;;  %v1753_v3 = vpack.c.bf16 %v2946_v62, %v2944_v8  ;;  %2953 = vpow2.f32 %v1911_v60 }
 0x38c   :  { %1732 = vadd.xlane.f32.xlu0 %v1731_v63  ;;  %v1349_v12 = vpop.permute.xlu1 %1348 }
 0x38d   :  { %2837 = vmatmul.mubr.msk.bf16.vlgmr.msra.gmra.mxu0 %vm1293_vm13, %v1753_v3  ;;  %v1352_v56 = vmul.f32 %v1349_v12, %v1340_v21 }
 0x38e   :  { %2847 = vmatpush3.bf16.msra.mxu0 %v1960_v45  ;;  %2848 = vmatprep.mubr.msk.bf16.mxu0 %vm2964_vm1, %v2963_v0  ;;  %vm1606_vm1 = vcmask 130112  }
 0x391   :  { %v3578_v14 = vpop.permute.xlu1 %1542 }
 0x392   :  { %v2948_v19 = vpop.eup %2947 }
 0x393   :  { %v1933_v9 = vsel %vm1293_vm13, %v2948_v19, 0.0 }
 0x394   :  { %1934 = vadd.xlane.f32.xlu1 %v1933_v9 }
 0x396   :  { %v3574_v40 = vpop.eup %2949  ;;  %v3582_v38 = vpop.permute.xlu1 %1748 }
 0x397   :  { %v1958_v10 = vpack.c.bf16 %v3574_v40, %v2948_v19  ;;  %v2952_v29 = vpop.eup %2951 }
 0x398   :  { %v3610_v2 = vpop.eup %2953 }
 0x399   :  { %2849 = vmatmul.mubr.msk.bf16.vlgmr.msra.gmra.mxu0 %vm1293_vm13, %v1958_v10 }
 0x3fd   :  { %v1330_v24 = vpop.xlane.xlu1 %1329 }
 0x3fe   :  { %v1334_v27 = vadd.f32 %v1330_v24, %v1326_v23  ;;  %v2202_v23 = vsub.s32 2, %v3100_v28 }
 0x400   :  { %1337 = vst.msk [vmem:[#allocation3] sm:$0xff] %vm1336_vm14, %v1334_v27 }
 0x401   :  { %v1333_v33 = vpop.xlane.xlu0 %1332 }
 0x402   :  { %v1335_v34 = vadd.f32 %v1333_v33, %v1327_v31  ;;  %v2216_v31 = vsub.s32 4, %v3100_v28 }
 0x404   :  { %1338 = vst.msk [vmem:[#allocation3 + $0x8] sm:$0xff] %vm1336_vm14, %v1335_v34  ;;  %v2230_v34 = vsub.s32 6, %v3100_v28 }
 0x407   :  { %v1518_v35 = vld [vmem:[#allocation3] sm:$0xff]  ;;  %v1524_v36 = vpop.xlane.xlu1 %1523 }
 0x408   :  { %v1520_v50 = vmul.f32 %v3507_v1, %v1518_v35 }
 0x40a   :  { %v1528_v37 = vadd.f32 %v1524_v36, %v1520_v50  ;;  %v1936_v50 = vsel %vm1293_vm13, %v3574_v40, 0.0  ;;  %v2195_v36 = vsub.s32 1, %v3100_v28 }
 0x40b   :  { %v1519_v59 = vld [vmem:[#allocation3 + $0x8] sm:$0xff]  ;;  %v1527_v41 = vpop.xlane.xlu0 %1526 }
 0x40c   :  { %1531 = vst.msk [vmem:[#allocation3] sm:$0xff] %vm1530_vm15, %v1528_v37  ;;  %v1521_v51 = vmul.f32 %v3541_v61, %v1519_v59  ;;  %v2209_v59 = vsub.s32 3, %v3100_v28 }
 0x40e   :  { %v1529_v18 = vadd.f32 %v1527_v41, %v1521_v51  ;;  %v2223_v41 = vsub.s32 5, %v3100_v28 }
 0x410   :  { %1532 = vst.msk [vmem:[#allocation3 + $0x8] sm:$0xff] %vm1530_vm15, %v1529_v18 }
 0x411   :  { %v1730_v1 = vpop.xlane.xlu1 %1729 }
 0x413   :  { %v1724_v44 = vld [vmem:[#allocation3] sm:$0xff] }
 0x414   :  { %v1726_v30 = vmul.f32 %v3532_v15, %v1724_v44  ;;  %v1351_v15 = vmul.f32 %v1344_v20, %v1339_v52 }
 0x415   :  { %v1733_v61 = vpop.xlane.xlu0 %1732 }
 0x416   :  { %v1734_v46 = vadd.f32 %v1730_v1, %v1726_v30 }
 0x417   :  { %v1725_v43 = vld [vmem:[#allocation3 + $0x8] sm:$0xff] }
 0x418   :  { %1737 = vst.msk [vmem:[#allocation3] sm:$0xff] %vm1736_vm2, %v1734_v46  ;;  %v1727_v47 = vmul.f32 %v3545_v5, %v1725_v43 }
 0x41a   :  { %v1735_v17 = vadd.f32 %v1733_v61, %v1727_v47 }
 0x41c   :  { %1738 = vst.msk [vmem:[#allocation3 + $0x8] sm:$0xff] %vm1736_vm2, %v1735_v17 }
 0x41d   :  { %v1935_v57 = vpop.xlane.xlu1 %1934 }
 0x41f   :  { %v1929_v7 = vld [vmem:[#allocation3] sm:$0xff] }
 0x420   :  { %v1931_v25 = vmul.f32 %v2952_v29, %v1929_v7 }
 0x422   :  { %v1939_v49 = vadd.f32 %v1935_v57, %v1931_v25 }
 0x424   :  { %1942 = vst.msk [vmem:[#allocation3] sm:$0xff] %vm1941_vm3, %v1939_v49 }
 0x42b   :  { %v2024_v63 = vld [vmem:[#allocation3] sm:$0xff] }
 0x42c   :  { %2955 = vrcp.f32 %v2024_v63 }
 0x439   :  { %v1391_v6 = vpop.f32.mrf.mxu0  ;;  %v2956_v10 = vpop.eup %2955 }
 0x43a   :  { %v1398_v54 = vadd.f32 %v1391_v6, %v1351_v15  ;;  %v2189_v22 = vrot.slane %v2956_v10, %v2188_v4  ;;  %v2203_v27 = vrot.slane %v2956_v10, %v2202_v23  ;;  %v2217_v33 = vrot.slane %v2956_v10, %v2216_v31 }
 0x43b   :  { %v2814_v55 = vpop.f32.mrf.mxu0  ;;  %v2231_v35 = vrot.slane %v2956_v10, %v2230_v34  ;;  %v2196_v37 = vrot.slane %v2956_v10, %v2195_v36  ;;  %v2210_v51 = vrot.slane %v2956_v10, %v2209_v59  ;;  %v2224_v40 = vrot.slane %v2956_v10, %v2223_v41 }
 0x43c   :  { %1400 = vst.msk [vmem:[#allocation4] sm:$0xff] %vm1243_vm4, %v1398_v54  ;;  %v2238_v18 = vrot.slane %v2956_v10, %v2237_v42 }
 0x43d   :  { %v1394_v5 = vpop.f32.mrf.mxu0 }
 0x43e   :  { %v1399_v16 = vadd.f32 %v1394_v5, %v1352_v56 }
 0x43f   :  { %v2815_v8 = vpop.f32.mrf.mxu0 }
 0x440   :  { %1401 = vst.msk [vmem:[#allocation4 + $0x8] sm:$0xff] %vm1243_vm4, %v1399_v16 }
 0x443   :  { %v1589_v58 = vpop.f32.mrf.mxu0  ;;  %v1533_v44 = vld [vmem:[#allocation4] sm:$0xff] }
 0x444   :  { %1598 = vrot.lane.b32.xlu1 %v1589_v58, %s2978_s3  ;;  %v1545_v30 = vmul.f32 %v3580_v48, %v1533_v44 }
 0x445   :  { %v2826_v13 = vpop.f32.mrf.mxu0 }
 0x447   :  { %v1592_v62 = vpop.f32.mrf.mxu0  ;;  %v1534_v46 = vld [vmem:[#allocation4 + $0x8] sm:$0xff] }
 0x448   :  { %1600 = vrot.lane.b32.xlu1 %v1592_v62, %s2978_s3  ;;  %v1546_v47 = vmul.f32 %v3578_v14, %v1534_v46  ;;  %v1930_v14 = vld [vmem:[#allocation3 + $0x8] sm:$0xff] }
 0x449   :  { %v2827_v3 = vpop.f32.mrf.mxu0  ;;  %v1932_v54 = vmul.f32 %v3610_v2, %v1930_v14 }
 0x44d   :  { %v1794_v45 = vpop.f32.mrf.mxu0 }
 0x44e   :  { %1803 = vrot.lane.b32.xlu0 %v1794_v45, %s2979_s21 }
 0x44f   :  { %v2838_v19 = vpop.f32.mrf.mxu0 }
 0x451   :  { %v1797_v9 = vpop.f32.mrf.mxu0 }
 0x452   :  { %1948 = vperm.xlu0 %2888, %v2952_v29  }
 0x453   :  { %v2839_v11 = vpop.f32.mrf.mxu0 }
 0x456   :  { %1953 = vperm.xlu0 %2888, %v3610_v2  }
 0x459   :  { %v1999_v12 = vpop.f32.mrf.mxu0 }
 0x45a   :  { %2008 = vrot.lane.b32.xlu0 %v1999_v12, %s2980_s22 }
 0x45b   :  { %v2850_v20 = vpop.f32.mrf.mxu0 }
 0x45d   :  { %v2002_v24 = vpop.f32.mrf.mxu0 }
 0x45e   :  { %2191 = vbcast.lane.b32.xlu0 %v2189_v22, 256 }
 0x45f   :  { %v2851_v26 = vpop.f32.mrf.mxu0 }
 0x462   :  { %2205 = vbcast.lane.b32.xlu0 %v2203_v27, 256 }
 0x466   :  { %2219 = vbcast.lane.b32.xlu0 %v2217_v33, 256 }
 0x46a   :  { %2233 = vbcast.lane.b32.xlu0 %v2231_v35, 256 }
 0x46c   :  { %1937 = vadd.xlane.f32.xlu1 %v1936_v50 }
 0x47d   :  { %1805 = vrot.lane.b32.xlu1 %v1797_v9, %s2979_s21 }
 0x481   :  { %2010 = vrot.lane.b32.xlu1 %v2002_v24, %s2980_s22 }
 0x485   :  { %2198 = vbcast.lane.b32.xlu1 %v2196_v37, 256 }
 0x489   :  { %2212 = vbcast.lane.b32.xlu1 %v2210_v51, 256 }
 0x48d   :  { %2226 = vbcast.lane.b32.xlu1 %v2224_v40, 256 }
 0x491   :  { %2240 = vbcast.lane.b32.xlu1 %v2238_v18, 256 }
 0x4b6   :  { %v1599_v1 = vpop.permute.xlu1 %1598 }
 0x4b7   :  { %v1604_v43 = vadd.f32 %v1599_v1, %v1545_v30 }
 0x4b9   :  { %1607 = vst.msk [vmem:[#allocation4] sm:$0xff] %vm1606_vm1, %v1604_v43 }
 0x4ba   :  { %v1601_v61 = vpop.permute.xlu1 %1600 }
 0x4bb   :  { %v1605_v17 = vadd.f32 %v1601_v61, %v1546_v47 }
 0x4bd   :  { %1608 = vst.msk [vmem:[#allocation4 + $0x8] sm:$0xff] %vm1606_vm1, %v1605_v17 }
 0x4c0   :  { %v1739_v29 = vld [vmem:[#allocation4] sm:$0xff]  ;;  %v1804_v25 = vpop.permute.xlu0 %1803 }
 0x4c1   :  { %v1751_v7 = vmul.f32 %v3585_v53, %v1739_v29 }
 0x4c3   :  { %v1809_v57 = vadd.f32 %v1804_v25, %v1751_v7 }
 0x4c4   :  { %v1740_v56 = vld [vmem:[#allocation4 + $0x8] sm:$0xff] }
 0x4c5   :  { %1812 = vst.msk [vmem:[#allocation4] sm:$0xff] %vm1811_vm5, %v1809_v57  ;;  %v1752_v5 = vmul.f32 %v3582_v38, %v1740_v56 }
 0x4cc   :  { %v1944_v48 = vld [vmem:[#allocation4] sm:$0xff] }
 0x4cd   :  { %v1949_v49 = vpop.permute.xlu0 %1948 }
 0x4ce   :  { %v1956_v15 = vmul.f32 %v1949_v49, %v1944_v48 }
 0x4d1   :  { %v1954_v52 = vpop.permute.xlu0 %1953 }
 0x4d5   :  { %v2009_v21 = vpop.permute.xlu0 %2008 }
 0x4d6   :  { %v2014_v6 = vadd.f32 %v2009_v21, %v1956_v15 }
 0x4d8   :  { %2017 = vst.msk [vmem:[#allocation4] sm:$0xff] %vm2016_vm6, %v2014_v6 }
 0x4d9   :  { %v2192_v22 = vpop.permute.xlu0 %2191 }
 0x4dd   :  { %v2206_v24 = vpop.permute.xlu0 %2205 }
 0x4df   :  { %v2028_v38 = vld [vmem:[#allocation4] sm:$0xff] }
 0x4e1   :  { %v2220_v27 = vpop.permute.xlu0 %2219 }
 0x4f5   :  { %v1938_v55 = vpop.xlane.xlu1 %1937 }
 0x4f6   :  { %v1940_v53 = vadd.f32 %v1938_v55, %v1932_v54 }
 0x4f8   :  { %1943 = vst.msk [vmem:[#allocation3 + $0x8] sm:$0xff] %vm1941_vm3, %v1940_v53 }
 0x4f9   :  { %v1806_v16 = vpop.permute.xlu1 %1805 }
 0x4fa   :  { %v1810_v8 = vadd.f32 %v1806_v16, %v1752_v5 }
 0x4fc   :  { %1813 = vst.msk [vmem:[#allocation4 + $0x8] sm:$0xff] %vm1811_vm5, %v1810_v8 }
 0x4fd   :  { %v2011_v62 = vpop.permute.xlu1 %2010 }
 0x4ff   :  { %v2025_v58 = vld [vmem:[#allocation3 + $0x8] sm:$0xff] }
 0x500   :  { %2957 = vrcp.f32 %v2025_v58 }
 0x503   :  { %v1945_v60 = vld [vmem:[#allocation4 + $0x8] sm:$0xff] }
 0x504   :  { %v1957_v13 = vmul.f32 %v1954_v52, %v1945_v60 }
 0x506   :  { %v2015_v63 = vadd.f32 %v2011_v62, %v1957_v13 }
 0x508   :  { %2018 = vst.msk [vmem:[#allocation4 + $0x8] sm:$0xff] %vm2016_vm6, %v2015_v63 }
 0x50d   :  { %v2958_v3 = vpop.eup %2957 }
 0x50e   :  { %v2245_v45 = vrot.slane %v2958_v3, %v2188_v4  ;;  %v2252_v19 = vrot.slane %v2958_v3, %v2195_v36  ;;  %v2259_v11 = vrot.slane %v2958_v3, %v2202_v23  ;;  %v2266_v2 = vrot.slane %v2958_v3, %v2209_v59  ;;  %v2199_v23 = vpop.permute.xlu1 %2198 }
 0x50f   :  { %v2029_v9 = vld [vmem:[#allocation4 + $0x8] sm:$0xff]  ;;  %v2273_v4 = vrot.slane %v2958_v3, %v2216_v31  ;;  %v2280_v10 = vrot.slane %v2958_v3, %v2223_v41  ;;  %v2287_v12 = vrot.slane %v2958_v3, %v2230_v34  ;;  %v2294_v20 = vrot.slane %v2958_v3, %v2237_v42  ;;  %v2234_v31 = vpop.permute.xlu0 %2233 }
 0x510   :  { %2247 = vbcast.lane.b32.xlu0 %v2245_v45, 256  ;;  %2254 = vbcast.lane.b32.xlu1 %v2252_v19, 256 }
 0x512   :  { %v2213_v26 = vpop.permute.xlu1 %2212 }
 0x514   :  { %2032 = vrot.lane.b32.xlu0 %v2028_v38, %s2968_s2  ;;  %2034 = vrot.lane.b32.xlu1 %v2029_v9, %s2968_s2 }
 0x516   :  { %v2227_v33 = vpop.permute.xlu1 %2226 }
 0x518   :  { %2038 = vrot.lane.b32.xlu0 %v2028_v38, %s2969_s30  ;;  %2040 = vrot.lane.b32.xlu1 %v2029_v9, %s2969_s30 }
 0x51a   :  { %v2241_v35 = vpop.permute.xlu1 %2240 }
 0x51c   :  { %2044 = vrot.lane.b32.xlu0 %v2028_v38, %s2970_s11  ;;  %2046 = vrot.lane.b32.xlu1 %v2029_v9, %s2970_s11 }
 0x520   :  { %2261 = vbcast.lane.b32.xlu0 %v2259_v11, 256  ;;  %2268 = vbcast.lane.b32.xlu1 %v2266_v2, 256 }
 0x524   :  { %2275 = vbcast.lane.b32.xlu0 %v2273_v4, 256  ;;  %2282 = vbcast.lane.b32.xlu1 %v2280_v10, 256 }
 0x528   :  { %2289 = vbcast.lane.b32.xlu0 %v2287_v12, 256  ;;  %2296 = vbcast.lane.b32.xlu1 %v2294_v20, 256 }
 0x582   :  { %v2248_v50 = vpop.permute.xlu0 %2247  ;;  %v3670_v36 = vpop.permute.xlu1 %2254 }
 0x586   :  { %v2033_v37 = vpop.permute.xlu0 %2032  ;;  %v2035_v59 = vpop.permute.xlu1 %2034 }
 0x58a   :  { %v2039_v51 = vpop.permute.xlu0 %2038  ;;  %v2041_v34 = vpop.permute.xlu1 %2040 }
 0x58b   :  { %v2050_v41 = vcombine.low %v2028_v38, %v2039_v51  ;;  %v2051_v28 = vcombine.high %v2028_v38, %v2039_v51  ;;  %v2118_v40 = vcombine.low %v2029_v9, %v2041_v34  ;;  %v2119_v42 = vcombine.high %v2029_v9, %v2041_v34 }
 0x58d   :  { %v2058_v47 = vrot.slane %v2050_v41, %v3103_v32  ;;  %v2065_v61 = vrot.slane %v2051_v28, %v3103_v32  ;;  %v2126_v57 = vrot.slane %v2118_v40, %v3103_v32  ;;  %v2133_v49 = vrot.slane %v2119_v42, %v3103_v32 }
 0x58e   :  { %v2045_v18 = vpop.permute.xlu0 %2044  ;;  %v2047_v44 = vpop.permute.xlu1 %2046 }
 0x58f   :  { %v2066_v30 = vcombine.low %v2033_v37, %v2045_v18  ;;  %v2067_v1 = vcombine.high %v2033_v37, %v2045_v18  ;;  %v2134_v46 = vcombine.low %v2035_v59, %v2047_v44  ;;  %v2135_v43 = vcombine.high %v2035_v59, %v2047_v44 }
 0x591   :  { %v2074_v17 = vrot.slane %v2066_v30, %v3103_v32  ;;  %v2081_v29 = vrot.slane %v2067_v1, %v3103_v32  ;;  %v2142_v7 = vrot.slane %v2134_v46, %v3103_v32  ;;  %v2149_v25 = vrot.slane %v2135_v43, %v3103_v32 }
 0x592   :  { %v2262_v48 = vpop.permute.xlu0 %2261  ;;  %v2269_v52 = vpop.permute.xlu1 %2268 }
 0x593   :  { %v2082_v15 = vcombine.low %v2058_v47, %v2074_v17  ;;  %v2083_v21 = vcombine.high %v2058_v47, %v2074_v17  ;;  %v2098_v6 = vcombine.low %v2065_v61, %v2081_v29  ;;  %v2099_v14 = vcombine.high %v2065_v61, %v2081_v29 }
 0x594   :  { %v2150_v54 = vcombine.low %v2126_v57, %v2142_v7  ;;  %v2151_v55 = vcombine.high %v2126_v57, %v2142_v7  ;;  %v2166_v56 = vcombine.low %v2133_v49, %v2149_v25  ;;  %v2167_v53 = vcombine.high %v2133_v49, %v2149_v25 }
 0x595   :  { %v2090_v5 = vrot.slane %v2082_v15, %v3106_v39  ;;  %v2097_v16 = vrot.slane %v2083_v21, %v3106_v39  ;;  %v2106_v8 = vrot.slane %v2098_v6, %v3106_v39  ;;  %v2113_v58 = vrot.slane %v2099_v14, %v3106_v39  ;;  %v2484_v6 = vld [vmem:[%s3766_s6 + $0x10] sm:$0xff]  ;;  %v2485_v14 = vld [vmem:[%s3766_s6 + $0x18] sm:$0xff] }
 0x596   :  { %v2158_v60 = vrot.slane %v2150_v54, %v3106_v39  ;;  %v2165_v13 = vrot.slane %v2151_v55, %v3106_v39  ;;  %v2276_v62 = vpop.permute.xlu0 %2275  ;;  %v2174_v63 = vrot.slane %v2166_v56, %v3106_v39  ;;  %v2283_v3 = vpop.permute.xlu1 %2282  ;;  %v2181_v45 = vrot.slane %v2167_v53, %v3106_v39 }
 0x597   :  { %v2114_v19 = vcombine.high %v2090_v5, %v2963_v0  ;;  %v2115_v38 = vcombine.high %v2097_v16, %v2963_v0  ;;  %v2116_v9 = vcombine.high %v2106_v8, %v2963_v0  ;;  %v2117_v11 = vcombine.high %v2113_v58, %v2963_v0 }
 0x598   :  { %v2298_v2 = vmul.f32 %v2192_v22, %v2090_v5  ;;  %v2300_v4 = vmul.f32 %v2206_v24, %v2097_v16  ;;  %v2302_v10 = vmul.f32 %v2220_v27, %v2106_v8  ;;  %v2304_v12 = vmul.f32 %v2234_v31, %v2113_v58 }
 0x599   :  { %v2299_v20 = vmul.f32 %v2199_v23, %v2114_v19  ;;  %v2301_v37 = vmul.f32 %v2213_v26, %v2115_v38  ;;  %v2303_v59 = vmul.f32 %v2227_v33, %v2116_v9  ;;  %v2305_v51 = vmul.f32 %v2241_v35, %v2117_v11 }
 0x59a   :  { %v2314_v34 = vcombine.low %v2298_v2, %v2300_v4  ;;  %v2330_v41 = vcombine.low %v2302_v10, %v2304_v12  ;;  %v2306_v28 = vmul.f32 %v2248_v50, %v2158_v60  ;;  %v2308_v40 = vmul.f32 %v2262_v48, %v2165_v13  ;;  %v2290_v42 = vpop.permute.xlu0 %2289  ;;  %v2297_v23 = vpop.permute.xlu1 %2296 }
 0x59b   :  { %v2322_v18 = vcombine.low %v2299_v20, %v2301_v37  ;;  %v2338_v44 = vcombine.low %v2303_v59, %v2305_v51  ;;  %v2182_v30 = vcombine.high %v2158_v60, %v2963_v0  ;;  %v2183_v1 = vcombine.high %v2165_v13, %v2963_v0 }
 0x59c   :  { %v2382_v46 = vcombine.low %v2306_v28, %v2308_v40  ;;  %v2310_v22 = vmul.f32 %v2276_v62, %v2174_v63  ;;  %v2184_v24 = vcombine.high %v2174_v63, %v2963_v0  ;;  %v2312_v27 = vmul.f32 %v2290_v42, %v2181_v45  ;;  %v2482_v62 = vld [vmem:[%s3766_s6] sm:$0xff]  ;;  %v2483_v63 = vld [vmem:[%s3766_s6 + $0x8] sm:$0xff] }
 0x59d   :  { %v2307_v26 = vmul.f32 %v3670_v36, %v2182_v30  ;;  %v2309_v33 = vmul.f32 %v2269_v52, %v2183_v1  ;;  %v2185_v31 = vcombine.high %v2181_v45, %v2963_v0  ;;  %v2321_v43 = vrot.slane %v2314_v34, %v3103_v32 }
 0x59e   :  { %v2311_v35 = vmul.f32 %v2283_v3, %v2184_v24  ;;  %v2398_v50 = vcombine.low %v2310_v22, %v2312_v27  ;;  %v2329_v47 = vrot.slane %v2322_v18, %v3103_v32  ;;  %v2337_v29 = vrot.slane %v2330_v41, %v3103_v32 }
 0x59f   :  { %v2390_v61 = vcombine.low %v2307_v26, %v2309_v33  ;;  %v2313_v17 = vmul.f32 %v2297_v23, %v2185_v31  ;;  %v2345_v7 = vrot.slane %v2338_v44, %v3103_v32  ;;  %v2389_v25 = vrot.slane %v2382_v46, %v3103_v32  ;;  %v2640_v33 = vld [vmem:[%s3767_s7] ss:$0 sm:$0xff] }
 0x5a0   :  { %v2405_v57 = vrot.slane %v2398_v50, %v3103_v32  ;;  %v2347_v36 = vcombine.high %v2321_v43, %v2329_v47  ;;  %v2346_v49 = vcombine.low %v2321_v43, %v2329_v47  ;;  %v2487_v55 = vpack.c.bf16 %v2485_v14, %v2484_v6 }
 0x5a1   :  { %v2397_v48 = vrot.slane %v2390_v61, %v3103_v32  ;;  %v2406_v52 = vcombine.low %v2311_v35, %v2313_v17  ;;  %v2363_v15 = vcombine.high %v2337_v29, %v2345_v7  ;;  %v2362_v21 = vcombine.low %v2337_v29, %v2345_v7  ;;  %v2539_v35 = vld [vmem:[%s3768_s0] sm:$0xff]  ;;  %v2540_v17 = vld [vmem:[%s3768_s0 + $0x8] sm:$0xff] }
 0x5a2   :  { %v2354_v54 = vrot.slane %v2346_v49, %v3106_v39  ;;  %v2361_v16 = vrot.slane %v2347_v36, %v3106_v39  ;;  %2853 = vmatpush3.bf16.msra.mxu1 %v2487_v55  ;;  %v2486_v9 = vpack.c.bf16 %v2483_v63, %v2482_v62  ;;  %v2642_v62 = vld [vmem:[%s3769_s8] ss:$0 sm:$0xff] }
 0x5a3   :  { %v2414_v56 = vcombine.low %v2389_v25, %v2397_v48  ;;  %v2415_v53 = vcombine.high %v2389_v25, %v2397_v48  ;;  %v2413_v5 = vrot.slane %v2406_v52, %v3103_v32  ;;  %v2377_v8 = vrot.slane %v2363_v15, %v3106_v39  ;;  %2854 = vmatprep.subr.bf16.mxu1 %v2963_v0 }
 0x5a4   :  { %v2370_v58 = vrot.slane %v2362_v21, %v3106_v39 }
 0x5a5   :  { %v2430_v60 = vcombine.low %v2405_v57, %v2413_v5  ;;  %v2431_v13 = vcombine.high %v2405_v57, %v2413_v5  ;;  %v2429_v32 = vrot.slane %v2415_v53, %v3106_v39  ;;  %v2422_v19 = vrot.slane %v2414_v56, %v3106_v39 }
 0x5a6   :  { %v2378_v3 = vcombine.low %v2354_v54, %v2370_v58  ;;  %v2380_v11 = vcombine.low %v2361_v16, %v2377_v8  ;;  %v2379_v2 = vcombine.high %v2354_v54, %v2370_v58  ;;  %2855 = vmatpush3.bf16.msra.mxu1 %v2486_v9  ;;  %v2381_v59 = vcombine.high %v2361_v16, %v2377_v8 }
 0x5a7   :  { %v2445_v45 = vrot.slane %v2431_v13, %v3106_v39  ;;  %v2438_v38 = vrot.slane %v2430_v60, %v3106_v39 }
 0x5a9   :  { %v2448_v0 = vcombine.low %v2429_v32, %v2445_v45  ;;  %v2447_v4 = vcombine.high %v2422_v19, %v2438_v38  ;;  %v2446_v10 = vcombine.low %v2422_v19, %v2438_v38  ;;  %v2449_v37 = vcombine.high %v2429_v32, %v2445_v45  ;;  %v2643_v32 = vld [vmem:[%s3770_s9] ss:$0 sm:$0xff] }
 0x5ab   :  { %v2894_v12 = vpack.i.bf16 %v2448_v0, %v2380_v11  ;;  %v2889_v20 = vpack.i.bf16 %v2447_v4, %v2379_v2  ;;  %v2899_v51 = vpack.i.bf16 %v2449_v37, %v2381_v59 }
 0x5ad   :  { %2895 = vrot.lane.b32.xlu1 %v2894_v12, %s2979_s21  ;;  %2890 = vrot.lane.b32.xlu0 %v2889_v20, %s2978_s3 }
 0x5b1   :  { %2900 = vrot.lane.b32.xlu0 %v2899_v51, %s2980_s22 }
 0x61f   :  { %v2896_v34 = vpop.permute.xlu1 %2895  ;;  %v2891_v39 = vpop.permute.xlu0 %2890 }
 0x620   :  { %v2893_v41 = vunpack.i.h.bf16 %v2891_v39  ;;  %v2892_v28 = vunpack.i.l.bf16 %v2891_v39  ;;  %v2898_v40 = vunpack.i.h.bf16 %v2896_v34  ;;  %v2897_v42 = vunpack.i.l.bf16 %v2896_v34 }
 0x622   :  { %v2474_v18 = vsel %vm1243_vm4, %v2378_v3, %v2892_v28  ;;  %v2475_v44 = vsel %vm1243_vm4, %v2446_v10, %v2893_v41 }
 0x623   :  { %v2901_v30 = vpop.permute.xlu0 %2900  ;;  %v2476_v22 = vsel %vm1293_vm13, %v2474_v18, %v2897_v42  ;;  %v2477_v24 = vsel %vm1293_vm13, %v2475_v44, %v2898_v40 }
 0x624   :  { %v2903_v1 = vunpack.i.h.bf16 %v2901_v30  ;;  %v2902_v46 = vunpack.i.l.bf16 %v2901_v30 }
 0x626   :  { %v2479_v27 = vsel %vm2478_vm7, %v2476_v22, %v2902_v46  ;;  %v2480_v23 = vsel %vm2478_vm7, %v2477_v24, %v2903_v1 }
 0x627   :  { %v2481_v26 = vpack.c.bf16 %v2480_v23, %v2479_v27 }
 0x629   :  { %2857 = vmatmul.mubr.msk.bf16.vlgmr.msra.gmra.mxu1 %vm45_vm0, %v2481_v26 }
 0x6e9   :  { %v2532_v31 = vpop.f32.mrf.mxu1 }
 0x6ea   :  { %v2533_v50 = vadd.f32 %v2640_v33, %v2532_v31 }
 0x6eb   :  { %v2858_v43 = vpop.f32.mrf.mxu1 }
 0x6ec   :  { %v2541_v47 = vadd.f32 %v2539_v35, %v2533_v50 }
 0x6ed   :  { %v2535_v61 = vpop.f32.mrf.mxu1 }
 0x6ee   :  { %v2536_v29 = vadd.f32 %v2640_v33, %v2535_v61  ;;  %v2543_v7 = vsel %vm45_vm0, %v2541_v47, 0.0 }
 0x6ef   :  { %v2859_v25 = vpop.f32.mrf.mxu1  ;;  %2544 = vadd.xlane.f32.xlu1 %v2543_v7 }
 0x6f0   :  { %v2542_v57 = vadd.f32 %v2540_v17, %v2536_v29 }
 0x6f2   :  { %v2546_v36 = vsel %vm45_vm0, %v2542_v57, 0.0 }
 0x6f3   :  { %2547 = vadd.xlane.f32.xlu0 %v2546_v36 }
 0x778   :  { %v2545_v49 = vpop.xlane.xlu1 %2544 }
 0x779   :  { %v2550_v48 = vmul.f32 0.03125, %v2545_v49 }
 0x77b   :  { %v2552_v52 = vsub.f32 %v2541_v47, %v2550_v48 }
 0x77c   :  { %v2548_v15 = vpop.xlane.xlu0 %2547 }
 0x77d   :  { %v2551_v21 = vmul.f32 0.03125, %v2548_v15  ;;  %v2554_v6 = vmul.f32 %v2552_v52, %v2552_v52 }
 0x77f   :  { %v2553_v14 = vsub.f32 %v2542_v57, %v2551_v21  ;;  %v2556_v54 = vsel %vm45_vm0, %v2554_v6, 0.0 }
 0x780   :  { %2557 = vadd.xlane.f32.xlu0 %v2556_v54 }
 0x781   :  { %v2555_v55 = vmul.f32 %v2553_v14, %v2553_v14 }
 0x783   :  { %v2559_v56 = vsel %vm45_vm0, %v2555_v55, 0.0 }
 0x784   :  { %2560 = vadd.xlane.f32.xlu0 %v2559_v56 }
 0x809   :  { %v2558_v53 = vpop.xlane.xlu0 %2557 }
 0x80a   :  { %v2562_v5 = vmul.f32 0.03125, %v2558_v53 }
 0x80c   :  { %v2564_v16 = vadd.f32 1e-05, %v2562_v5 }
 0x80d   :  { %v2561_v8 = vpop.xlane.xlu0 %2560 }
 0x80e   :  { %2959 = vrsqrt.f32 %v2564_v16  ;;  %v2563_v58 = vmul.f32 0.03125, %v2561_v8 }
 0x810   :  { %v2565_v60 = vadd.f32 1e-05, %v2563_v58 }
 0x812   :  { %2961 = vrsqrt.f32 %v2565_v60 }
 0x81b   :  { %v2960_v13 = vpop.eup %2959 }
 0x81c   :  { %v2568_v63 = vmul.f32 %v2960_v13, %v2552_v52 }
 0x81e   :  { %v2577_v3 = vmul.f32 %v2642_v62, %v2568_v63 }
 0x81f   :  { %v2962_v45 = vpop.eup %2961 }
 0x820   :  { %v2586_v19 = vadd.f32 %v2643_v32, %v2577_v3  ;;  %v2569_v38 = vmul.f32 %v2962_v45, %v2553_v14 }
 0x822   :  { %2588 = vst.msk [vmem:[%s3771_s10] sm:$0xff] %vm45_vm0, %v2586_v19  ;;  %v2578_v9 = vmul.f32 %v2642_v62, %v2569_v38 }
 0x824   :  { %v2587_v11 = vadd.f32 %v2643_v32, %v2578_v9 }
 0x826   :  { %2589 = vst.msk [vmem:[%s3771_s10 + $0x8] sm:$0xff] %vm45_vm0, %v2587_v11 }

// kernel: ppf_transformer.32
= control target key start
LH: loop header
LB: loop body
LE: loop exit
PB: predicated region body
PF: predicated region fallthrough
CT: control target
= control target key end

     0   :  { %v1506_v0 = vmov 0.0   ;;  %vm70_vm0 = vcmask 64512   ;;  %vm1507_vm1 = vmmov 0   ;;  %vm54_vm2 = vcmask 257024   ;;  %s1511_s16 = smov 112   ;;  %s1512_s17 = smov 104   ;;  %s1956_s2 = inlined_call_operand.vmem [shape: f32[1,16,32], index: 2, kind: input, shape index: {}]   ;;  %s1957_s1 = inlined_call_operand.vmem [shape: f32[1,16,32], index: 1, kind: input, shape index: {}]   ;;  %s1958_s3 = inlined_call_operand.vmem [shape: f32[1,16,32], index: 3, kind: input, shape index: {}]   ;;  %s1959_s4 = inlined_call_operand.vmem [shape: f32[32,32], index: 4, kind: input, shape index: {}]   ;;  %s1960_s5 = inlined_call_operand.vmem [shape: f32[1,32], index: 5, kind: input, shape index: {}]   ;;  %s1961_s0 = inlined_call_operand.vmem [shape: f32[1,16,32], index: 0, kind: input, shape index: {}]   ;;  %s1962_s6 = inlined_call_operand.vmem [shape: f32[1,32], index: 6, kind: input, shape index: {}]   ;;  %s1963_s7 = inlined_call_operand.vmem [shape: f32[1,32], index: 7, kind: input, shape index: {}]   ;;  %s1964_s8 = inlined_call_operand.vmem [shape: f32[1,16,32], index: 8, kind: output, shape index: {}]  }
   0x1   :  { %1368 = vmatprep.subr.bf16.mxu0 %v1506_v0  ;;  %v59_v1 = vld [vmem:[%s1956_s2] sm:$0xff]  ;;  %v60_v2 = vld [vmem:[%s1956_s2 + $0x8] sm:$0xff]  ;;  %1370 = vmatprep.mubr.msk.bf16.mxu0 %vm1507_vm1, %v1506_v0  ;;  %vm34_vm3 = vcmask 31744   ;;  %v1508_v12 = vmov -inf   ;;  %vm120_vm4 = vcmask 130048   ;;  %v1509_v19 = vmov 0  }
   0x2   :  { %v42_v3 = vld [vmem:[%s1957_s1] sm:$0xff]  ;;  %v61_v4 = vpack.c.bf16 %v60_v2, %v59_v1  ;;  %v43_v5 = vld [vmem:[%s1957_s1 + $0x8] sm:$0xff]  ;;  %1374 = vmatprep.subr.bf16.mxu1 %v1506_v0  ;;  %1376 = vmatprep.mubr.msk.bf16.mxu1 %vm1507_vm1, %v1506_v0  ;;  %35 = vst.msk [vmem:[#allocation2] sm:$0xff] %vm34_vm3, %v1508_v12  ;;  %36 = vst.msk [vmem:[#allocation2 + $0x8] sm:$0xff] %vm34_vm3, %v1508_v12  ;;  %s1510_s1 = smov 120   ;;  %vm163_vm5 = vcmask 7168  }
   0x3   :  { %v44_v6 = vmul.f32 0.35355338, %v42_v3  ;;  %v45_v7 = vmul.f32 0.35355338, %v43_v5  ;;  %37 = vst.msk [vmem:[#allocation3] sm:$0xff] %vm34_vm3, %v1506_v0  ;;  %38 = vst.msk [vmem:[#allocation3 + $0x8] sm:$0xff] %vm34_vm3, %v1506_v0  ;;  %1439 = vset.pattern.permute.xlu1 %v1509_v19 }
   0x4   :  { %v75_v8 = vsel %vm70_vm0, %v61_v4, 0  ;;  %v62_v28 = vld [vmem:[%s1958_s3] sm:$0xff]  ;;  %v63_v29 = vld [vmem:[%s1958_s3 + $0x8] sm:$0xff]  ;;  %v1513_v1 = vmov 1   ;;  %vm327_vm6 = vcmask 15368   ;;  %vm503_vm7 = vcmask 23568  }
   0x5   :  { %v1347_v9 = vpack.c.bf16 %v44_v6, %v44_v6  ;;  %1369 = vmatpush3.bf16.xpose.msra.mxu0 %v75_v8  ;;  %v1348_v10 = vpack.c.bf16 %v45_v7, %v45_v7  ;;  %v1621_v30 = vpack.c.bf16 %v63_v29, %v62_v28  ;;  %1440 = vset.pattern.permute.xlu0 %v1513_v1  ;;  %vm678_vm8 = vcmask 31768   ;;  %s1516_s3 = smov 8   ;;  %s1517_s18 = smov 16  }
   0x6   :  { %1386 = vmatprep.subr.bf16.mxu0 %v1506_v0  ;;  %vm39_vm9 = vcmask 261120   ;;  %s1518_s19 = smov 24   ;;  %vm403_vm10 = vcmask 130112   ;;  %vm578_vm11 = vcmask 195712   ;;  %vm753_vm12 = vcmask 261312  }
   0x7   :  { %55 = vst.msk [vmem:[#allocation5] sm:$0xf] %vm54_vm2, %v1347_v9  ;;  %56 = vst.msk [vmem:[#allocation5 + $0x4] sm:$0xf] %vm54_vm2, %v1348_v10  ;;  %1375 = vmatpush3.bf16.msra.mxu1 %v1621_v30  ;;  %vm1215_vm13 = vcmask 195584  }
   0x8   :  { %1380 = vmatprep.subr.bf16.mxu1 %v1506_v0  ;;  %40 = vst.msk [vmem:[#allocation4] sm:$0xff] %vm39_vm9, %v1506_v0  ;;  %41 = vst.msk [vmem:[#allocation4 + $0x8] sm:$0xff] %vm39_vm9, %v1506_v0 }
   0x9   :  { %v1595_v20 = vld [vmem:[#allocation2] sm:$0xff]  ;;  %v1600_v23 = vld [vmem:[#allocation2 + $0x8] sm:$0xff] }
   0xe   :  { %v1465_v11 = vld [vmem:[#allocation5] sm:$0xff]  }
   0xf   :  { %1371 = vmatmul.mubr.msk.bf16.vlgmr.msra.gmra.mxu0 %vm70_vm0, %v1465_v11 }
  0x10   :  { %1388 = vmatprep.mubr.msk.bf16.mxu0 %vm1507_vm1, %v1506_v0 }
  0xcf   :  { %v111_v13 = vpop.f32.mrf.mxu0 }
  0xd0   :  { %v121_v14 = vsel %vm120_vm4, %v111_v13, -inf }
  0xd1   :  { %122 = vmax.xlane.f32.xlu0 %v121_v14  ;;  %v1372_v15 = vpop.f32.mrf.mxu0 }
  0xd3   :  { %v114_v16 = vpop.f32.mrf.mxu0 }
  0xd4   :  { %v124_v17 = vsel %vm120_vm4, %v114_v16, -inf }
  0xd5   :  { %125 = vmax.xlane.f32.xlu0 %v124_v17  ;;  %v1373_v18 = vpop.f32.mrf.mxu0 }
  0xeb   :  { %234 = vrot.lane.b32.xlu0 %v61_v4, %s1510_s1 }
 0x15a   :  { %v123_v21 = vpop.xlane.xlu0 %122 }
 0x15b   :  { %v1598_v22 = vmax.f32 %v1595_v20, %v123_v21 }
 0x15d   :  { %v129_v24 = vsub.f32 %v1595_v20, %v1598_v22  ;;  %229 = vst.msk [vmem:[#allocation2] sm:$0xff] %vm163_vm5, %v1598_v22  ;;  %137 = vperm.xlu1 %1439, %v1598_v22  }
 0x15e   :  { %v126_v25 = vpop.xlane.xlu0 %125 }
 0x15f   :  { %v1608_v26 = vmax.f32 %v1600_v23, %v126_v25  ;;  %v1514_v25 = vmov 2  }
 0x161   :  { %v130_v27 = vsub.f32 %v1600_v23, %v1608_v26  ;;  %230 = vst.msk [vmem:[#allocation2 + $0x8] sm:$0xff] %vm163_vm5, %v1608_v26  ;;  %142 = vperm.xlu1 %1439, %v1608_v26  }
 0x162   :  { %v235_v37 = vpop.permute.xlu0 %234 }
 0x163   :  { %v240_v41 = vsel %vm70_vm0, %v235_v37, 0  ;;  %v133_v20 = vmul.f32 1.442695, %v130_v27 }
 0x164   :  { %v1684_v9 = vld [vmem:[#allocation2] sm:$0xff] }
 0x165   :  { %231 = vrot.lane.b32.xlu1 %v1465_v11, %s1510_s1 }
 0x166   :  { %1441 = vset.pattern.permute.xlu1 %v1513_v1 }
 0x169   :  { %410 = vrot.lane.b32.xlu1 %v61_v4, %s1511_s16 }
 0x16d   :  { %408 = vrot.lane.b32.xlu1 %v1465_v11, %s1511_s16 }
 0x171   :  { %585 = vrot.lane.b32.xlu1 %v61_v4, %s1512_s17 }
 0x175   :  { %583 = vrot.lane.b32.xlu1 %v1465_v11, %s1512_s17 }
 0x1d8   :  { %v138_v31 = vpop.permute.xlu1 %137 }
 0x1d9   :  { %v145_v32 = vsub.f32 %v111_v13, %v138_v31  ;;  %v284_v13 = vld [vmem:[#allocation2 + $0x8] sm:$0xff] }
 0x1db   :  { %v147_v33 = vmul.f32 1.442695, %v145_v32 }
 0x1dc   :  { %v143_v34 = vpop.permute.xlu1 %142 }
 0x1dd   :  { %v146_v35 = vsub.f32 %v114_v16, %v143_v34  ;;  %1466 = vpow2.f32 %v147_v33 }
 0x1df   :  { %v149_v36 = vmul.f32 1.442695, %v146_v35 }
 0x1e0   :  { %v232_v38 = vpop.permute.xlu1 %231 }
 0x1e1   :  { %1468 = vpow2.f32 %v149_v36  ;;  %v1515_v36 = vmov 3  }
 0x1e4   :  { %v411_v43 = vpop.permute.xlu1 %410 }
 0x1e5   :  { %v416_v45 = vsel %vm70_vm0, %v411_v43, 0 }
 0x1e8   :  { %v409_v44 = vpop.permute.xlu1 %408 }
 0x1ea   :  { %v1630_v39 = vpop.eup %1466 }
 0x1eb   :  { %v155_v22 = vsel %vm120_vm4, %v1630_v39, 0.0 }
 0x1ec   :  { %v586_v46 = vpop.permute.xlu1 %585 }
 0x1ed   :  { %v591_v47 = vsel %vm70_vm0, %v586_v46, 0 }
 0x1ee   :  { %v1632_v40 = vpop.eup %1468 }
 0x1ef   :  { %v180_v42 = vpack.c.bf16 %v1632_v40, %v1630_v39 }
 0x1f0   :  { %v584_v48 = vpop.permute.xlu1 %583 }
 0x1f1   :  { %1377 = vmatmul.mubr.msk.bf16.vlgmr.msra.gmra.mxu1 %vm120_vm4, %v180_v42 }
 0x1f2   :  { %1381 = vmatpush3.bf16.xpose.msra.mxu1 %v240_v41  ;;  %1382 = vmatprep.mubr.msk.bf16.mxu1 %vm1507_vm1, %v1506_v0 }
 0x1f3   :  { %1392 = vmatprep.subr.bf16.mxu1 %v1506_v0 }
 0x1f9   :  { %1383 = vmatmul.mubr.msk.bf16.vlgmr.msra.gmra.mxu1 %vm70_vm0, %v232_v38 }
 0x1fa   :  { %1393 = vmatpush3.bf16.xpose.msra.mxu1 %v416_v45  ;;  %1394 = vmatprep.mubr.msk.bf16.mxu1 %vm1507_vm1, %v1506_v0  ;;  %v131_v45 = vmul.f32 1.442695, %v129_v24 }
 0x1fb   :  { %1404 = vmatprep.subr.bf16.mxu1 %v1506_v0 }
 0x1fc   :  { %1470 = vpow2.f32 %v131_v45 }
 0x201   :  { %1395 = vmatmul.mubr.msk.bf16.vlgmr.msra.gmra.mxu1 %vm70_vm0, %v409_v44  ;;  %v158_v44 = vsel %vm120_vm4, %v1632_v40, 0.0 }
 0x202   :  { %1405 = vmatpush3.bf16.xpose.msra.mxu1 %v591_v47  ;;  %1406 = vmatprep.mubr.msk.bf16.mxu1 %vm1507_vm1, %v1506_v0 }
 0x203   :  { %1416 = vmatprep.subr.bf16.mxu1 %v1506_v0 }
 0x209   :  { %1407 = vmatmul.mubr.msk.bf16.vlgmr.msra.gmra.mxu1 %vm70_vm0, %v584_v48 }
 0x20a   :  { %1420 = vmatprep.mubr.msk.bf16.mxu1 %vm1507_vm1, %v1506_v0 }
 0x2b1   :  { %v1654_v49 = vpop.f32.mrf.mxu1 }
 0x2b3   :  { %v1378_v50 = vpop.f32.mrf.mxu1 }
 0x2b5   :  { %v1656_v51 = vpop.f32.mrf.mxu1 }
 0x2b7   :  { %v1379_v52 = vpop.f32.mrf.mxu1 }
 0x2b9   :  { %v1658_v53 = vpop.f32.mrf.mxu1 }
 0x2ba   :  { %v285_v54 = vsel %vm120_vm4, %v1658_v53, -inf }
 0x2bb   :  { %286 = vmax.xlane.f32.xlu1 %v285_v54  ;;  %v1384_v55 = vpop.f32.mrf.mxu1 }
 0x2bd   :  { %v1662_v56 = vpop.f32.mrf.mxu1 }
 0x2be   :  { %v288_v57 = vsel %vm120_vm4, %v1662_v56, -inf }
 0x2bf   :  { %289 = vmax.xlane.f32.xlu0 %v288_v57  ;;  %v1385_v58 = vpop.f32.mrf.mxu1 }
 0x2c1   :  { %v1666_v59 = vpop.f32.mrf.mxu1 }
 0x2c2   :  { %v461_v60 = vsel %vm120_vm4, %v1666_v59, -inf }
 0x2c3   :  { %v1396_v61 = vpop.f32.mrf.mxu1  ;;  %462 = vmax.xlane.f32.xlu0 %v461_v60 }
 0x2c5   :  { %v1670_v62 = vpop.f32.mrf.mxu1 }
 0x2c6   :  { %v464_v63 = vsel %vm120_vm4, %v1670_v62, -inf }
 0x2c7   :  { %465 = vmax.xlane.f32.xlu1 %v464_v63  ;;  %v1397_v2 = vpop.f32.mrf.mxu1 }
 0x2c9   :  { %v1676_v3 = vpop.f32.mrf.mxu1 }
 0x2ca   :  { %v636_v4 = vsel %vm120_vm4, %v1676_v3, -inf }
 0x2cb   :  { %637 = vmax.xlane.f32.xlu0 %v636_v4  ;;  %v1408_v5 = vpop.f32.mrf.mxu1 }
 0x2cd   :  { %v1680_v6 = vpop.f32.mrf.mxu1 }
 0x2ce   :  { %v639_v7 = vsel %vm120_vm4, %v1680_v6, -inf }
 0x2cf   :  { %640 = vmax.xlane.f32.xlu1 %v639_v7  ;;  %v1409_v8 = vpop.f32.mrf.mxu1 }
 0x344   :  { %v287_v10 = vpop.xlane.xlu1 %286 }
 0x345   :  { %v1687_v11 = vmax.f32 %v1684_v9, %v287_v10 }
 0x347   :  { %v293_v12 = vsub.f32 %v1684_v9, %v1687_v11  ;;  %406 = vst.msk [vmem:[#allocation2] sm:$0xff] %vm327_vm6, %v1687_v11  ;;  %301 = vperm.xlu0 %1440, %v1687_v11  }
 0x348   :  { %v290_v14 = vpop.xlane.xlu0 %289 }
 0x349   :  { %v292_v15 = vmax.f32 %v284_v13, %v290_v14  ;;  %v295_v24 = vmul.f32 1.442695, %v293_v12 }
 0x34b   :  { %v294_v16 = vsub.f32 %v284_v13, %v292_v15  ;;  %407 = vst.msk [vmem:[#allocation2 + $0x8] sm:$0xff] %vm327_vm6, %v292_v15  ;;  %696 = vrot.lane.b32.xlu0 %v1621_v30, %s1512_s17  ;;  %306 = vperm.xlu1 %1441, %v292_v15  }
 0x34c   :  { %v463_v17 = vpop.xlane.xlu0 %462  ;;  %1444 = vset.pattern.permute.xlu0 %v1509_v19 }
 0x34d   :  { %v297_v40 = vmul.f32 1.442695, %v294_v16 }
 0x34e   :  { %v459_v18 = vld [vmem:[#allocation2] sm:$0xff] }
 0x34f   :  { %v467_v21 = vmax.f32 %v459_v18, %v463_v17  ;;  %1442 = vset.pattern.permute.xlu1 %v1514_v25 }
 0x350   :  { %v466_v28 = vpop.xlane.xlu1 %465 }
 0x351   :  { %581 = vst.msk [vmem:[#allocation2] sm:$0xff] %vm503_vm7, %v467_v21  ;;  %477 = vperm.xlu1 %1442, %v467_v21   ;;  %v469_v46 = vsub.f32 %v459_v18, %v467_v21 }
 0x352   :  { %v460_v29 = vld [vmem:[#allocation2 + $0x8] sm:$0xff] }
 0x353   :  { %v468_v31 = vmax.f32 %v460_v29, %v466_v28  ;;  %v471_v47 = vmul.f32 1.442695, %v469_v46 }
 0x354   :  { %v638_v33 = vpop.xlane.xlu0 %637 }
 0x355   :  { %v470_v32 = vsub.f32 %v460_v29, %v468_v31  ;;  %582 = vst.msk [vmem:[#allocation2 + $0x8] sm:$0xff] %vm503_vm7, %v468_v31  ;;  %482 = vperm.xlu1 %1442, %v468_v31   ;;  %1472 = vpow2.f32 %v471_v47  ;;  %v152_v31 = vld [vmem:[#allocation3 + $0x8] sm:$0xff]  ;;  %v151_v47 = vld [vmem:[#allocation3] sm:$0xff] }
 0x356   :  { %1474 = vpow2.f32 %v133_v20 }
 0x357   :  { %1476 = vpow2.f32 %v295_v24  ;;  %v473_v48 = vmul.f32 1.442695, %v470_v32 }
 0x358   :  { %v1700_v34 = vld [vmem:[#allocation2] sm:$0xff]  ;;  %v641_v37 = vpop.xlane.xlu1 %640  ;;  %1478 = vpow2.f32 %v297_v40  ;;  %v167_v40 = vld [vmem:[#allocation4 + $0x8] sm:$0xff] }
 0x359   :  { %v1703_v35 = vmax.f32 %v1700_v34, %v638_v33  ;;  %346 = vrot.lane.b32.xlu1 %v1621_v30, %s1510_s1  ;;  %1480 = vpow2.f32 %v473_v48 }
 0x35a   :  { %1443 = vset.pattern.permute.xlu1 %v1515_v36 }
 0x35b   :  { %v644_v38 = vsub.f32 %v1700_v34, %v1703_v35  ;;  %756 = vst.msk [vmem:[#allocation2] sm:$0xff] %vm678_vm8, %v1703_v35 }
 0x35c   :  { %v1711_v41 = vld [vmem:[#allocation2 + $0x8] sm:$0xff] }
 0x35d   :  { %v1714_v42 = vmax.f32 %v1711_v41, %v641_v37  ;;  %652 = vperm.xlu1 %1443, %v1703_v35   ;;  %v166_v37 = vld [vmem:[#allocation4] sm:$0xff] }
 0x35f   :  { %v645_v43 = vsub.f32 %v1711_v41, %v1714_v42  ;;  %757 = vst.msk [vmem:[#allocation2 + $0x8] sm:$0xff] %vm678_vm8, %v1714_v42 }
 0x361   :  { %657 = vperm.xlu1 %1443, %v1714_v42  }
 0x365   :  { %521 = vrot.lane.b32.xlu1 %v1621_v30, %s1511_s16 }
 0x366   :  { %1445 = vset.pattern.permute.xlu1 %v1509_v19  ;;  %v1734_v19 = vpop.eup %1470 }
 0x367   :  { %v1737_v30 = vpop.eup %1472  ;;  %v153_v20 = vmul.f32 %v1734_v19, %v151_v47 }
 0x368   :  { %v1745_v50 = vpop.eup %1474 }
 0x369   :  { %v1748_v52 = vpop.eup %1476  ;;  %v154_v32 = vmul.f32 %v1745_v50, %v152_v31 }
 0x36a   :  { %159 = vadd.xlane.f32.xlu0 %v158_v44  ;;  %v1752_v23 = vpop.eup %1478 }
 0x36b   :  { %v1755_v26 = vpop.eup %1480 }
 0x380   :  { %170 = vperm.xlu0 %1444, %v1734_v19  }
 0x384   :  { %1447 = vset.pattern.permute.xlu0 %v1514_v25 }
 0x385   :  { %510 = vperm.xlu0 %1447, %v1737_v30  }
 0x389   :  { %156 = vadd.xlane.f32.xlu1 %v155_v22  ;;  %1449 = vset.pattern.permute.xlu0 %v1515_v36 }
 0x39a   :  { %175 = vperm.xlu1 %1445, %v1745_v50  }
 0x39e   :  { %1446 = vset.pattern.permute.xlu1 %v1513_v1 }
 0x39f   :  { %334 = vperm.xlu1 %1446, %v1748_v52  }
 0x3a3   :  { %339 = vperm.xlu1 %1446, %v1752_v23  }
 0x3a7   :  { %1448 = vset.pattern.permute.xlu1 %v1514_v25 }
 0x3a8   :  { %515 = vperm.xlu1 %1448, %v1755_v26  }
 0x3c2   :  { %v302_v27 = vpop.permute.xlu0 %301 }
 0x3c3   :  { %v309_v39 = vsub.f32 %v1658_v53, %v302_v27 }
 0x3c5   :  { %v311_v54 = vmul.f32 1.442695, %v309_v39 }
 0x3c6   :  { %v307_v55 = vpop.permute.xlu1 %306  ;;  %v697_v21 = vpop.permute.xlu0 %696 }
 0x3c7   :  { %1482 = vpow2.f32 %v311_v54  ;;  %v310_v57 = vsub.f32 %v1662_v56, %v307_v55 }
 0x3c9   :  { %v313_v58 = vmul.f32 1.442695, %v310_v57 }
 0x3cb   :  { %1484 = vpow2.f32 %v313_v58 }
 0x3cc   :  { %v478_v60 = vpop.permute.xlu1 %477 }
 0x3cd   :  { %v485_v61 = vsub.f32 %v1666_v59, %v478_v60 }
 0x3cf   :  { %v487_v63 = vmul.f32 1.442695, %v485_v61 }
 0x3d0   :  { %v483_v1 = vpop.permute.xlu1 %482 }
 0x3d1   :  { %1486 = vpow2.f32 %v487_v63  ;;  %v486_v2 = vsub.f32 %v1670_v62, %v483_v1 }
 0x3d3   :  { %v489_v4 = vmul.f32 1.442695, %v486_v2  ;;  %v648_v2 = vmul.f32 1.442695, %v645_v43 }
 0x3d4   :  { %v1483_v5 = vpop.eup %1482  ;;  %v347_v7 = vpop.permute.xlu1 %346 }
 0x3d5   :  { %1488 = vpow2.f32 %v489_v4  ;;  %1387 = vmatpush3.bf16.msra.mxu0 %v347_v7  ;;  %v319_v53 = vsel %vm120_vm4, %v1483_v5, 0.0 }
 0x3d6   :  { %320 = vadd.xlane.f32.xlu1 %v319_v53  ;;  %1398 = vmatprep.subr.bf16.mxu0 %v1506_v0 }
 0x3d8   :  { %v1485_v56 = vpop.eup %1484  ;;  %v653_v8 = vpop.permute.xlu1 %652 }
 0x3d9   :  { %v660_v9 = vsub.f32 %v1676_v3, %v653_v8  ;;  %v322_v59 = vsel %vm120_vm4, %v1485_v56, 0.0  ;;  %v344_v10 = vpack.c.bf16 %v1485_v56, %v1483_v5 }
 0x3da   :  { %323 = vadd.xlane.f32.xlu0 %v322_v59 }
 0x3db   :  { %1389 = vmatmul.mubr.msk.bf16.vlgmr.msra.gmra.mxu0 %vm120_vm4, %v344_v10  ;;  %v662_v62 = vmul.f32 1.442695, %v660_v9 }
 0x3dc   :  { %v658_v11 = vpop.permute.xlu1 %657  ;;  %1400 = vmatprep.mubr.msk.bf16.mxu0 %vm1507_vm1, %v1506_v0 }
 0x3dd   :  { %v661_v12 = vsub.f32 %v1680_v6, %v658_v11  ;;  %1490 = vpow2.f32 %v662_v62 }
 0x3de   :  { %v1487_v13 = vpop.eup %1486 }
 0x3df   :  { %v664_v14 = vmul.f32 1.442695, %v661_v12  ;;  %v495_v15 = vsel %vm120_vm4, %v1487_v13, 0.0 }
 0x3e0   :  { %496 = vadd.xlane.f32.xlu0 %v495_v15  ;;  %v522_v3 = vpop.permute.xlu1 %521 }
 0x3e1   :  { %1492 = vpow2.f32 %v664_v14  ;;  %1399 = vmatpush3.bf16.msra.mxu0 %v522_v3 }
 0x3e2   :  { %v1489_v16 = vpop.eup %1488  ;;  %1410 = vmatprep.subr.bf16.mxu0 %v1506_v0  ;;  %1494 = vpow2.f32 %v648_v2 }
 0x3e3   :  { %v498_v17 = vsel %vm120_vm4, %v1489_v16, 0.0  ;;  %v520_v18 = vpack.c.bf16 %v1489_v16, %v1487_v13 }
 0x3e4   :  { %499 = vadd.xlane.f32.xlu1 %v498_v17 }
 0x3e5   :  { %1401 = vmatmul.mubr.msk.bf16.vlgmr.msra.gmra.mxu0 %vm120_vm4, %v520_v18 }
 0x3e6   :  { %1411 = vmatpush3.bf16.msra.mxu0 %v697_v21  ;;  %1412 = vmatprep.mubr.msk.bf16.mxu0 %vm1507_vm1, %v1506_v0  ;;  %v646_v21 = vmul.f32 1.442695, %v644_v38 }
 0x3e8   :  { %1496 = vpow2.f32 %v646_v21 }
 0x3ea   :  { %v1776_v6 = vpop.eup %1490 }
 0x3eb   :  { %v670_v18 = vsel %vm120_vm4, %v1776_v6, 0.0 }
 0x3ee   :  { %v1493_v25 = vpop.eup %1492 }
 0x3ef   :  { %v673_v28 = vsel %vm120_vm4, %v1493_v25, 0.0  ;;  %v695_v29 = vpack.c.bf16 %v1493_v25, %v1776_v6  ;;  %v1495_v9 = vpop.eup %1494 }
 0x3f0   :  { %674 = vadd.xlane.f32.xlu1 %v673_v28 }
 0x3f1   :  { %1413 = vmatmul.mubr.msk.bf16.vlgmr.msra.gmra.mxu0 %vm120_vm4, %v695_v29 }
 0x3f3   :  { %v160_v33 = vpop.xlane.xlu0 %159 }
 0x3f4   :  { %v162_v36 = vadd.f32 %v160_v33, %v154_v32 }
 0x3f5   :  { %v1497_v25 = vpop.eup %1496 }
 0x3f6   :  { %165 = vst.msk [vmem:[#allocation3 + $0x8] sm:$0xff] %vm163_vm5, %v162_v36 }
 0x3fb   :  { %v171_v44 = vpop.permute.xlu0 %170 }
 0x3fc   :  { %v178_v45 = vmul.f32 %v171_v44, %v166_v37 }
 0x3fd   :  { %v316_v60 = vld [vmem:[#allocation3 + $0x8] sm:$0xff] }
 0x3fe   :  { %v225_v46 = vadd.f32 %v1654_v49, %v178_v45  ;;  %v318_v63 = vmul.f32 %v1752_v23, %v316_v60 }
 0x400   :  { %227 = vst.msk [vmem:[#allocation4] sm:$0xff] %vm70_vm0, %v225_v46  ;;  %v1794_v19 = vpop.permute.xlu0 %510 }
 0x407   :  { %v330_v28 = vld [vmem:[#allocation4] sm:$0xff] }
 0x412   :  { %v157_v22 = vpop.xlane.xlu1 %156 }
 0x413   :  { %v161_v24 = vadd.f32 %v157_v22, %v153_v20 }
 0x415   :  { %164 = vst.msk [vmem:[#allocation3] sm:$0xff] %vm163_vm5, %v161_v24 }
 0x416   :  { %v176_v48 = vpop.permute.xlu1 %175 }
 0x417   :  { %v179_v50 = vmul.f32 %v176_v48, %v167_v40 }
 0x419   :  { %v226_v27 = vadd.f32 %v1656_v51, %v179_v50 }
 0x41a   :  { %v335_v39 = vpop.permute.xlu1 %334 }
 0x41b   :  { %228 = vst.msk [vmem:[#allocation4 + $0x8] sm:$0xff] %vm70_vm0, %v226_v27  ;;  %v342_v29 = vmul.f32 %v335_v39, %v330_v28  ;;  %v792_v39 = vlaneseq }
 0x41c   :  { %v315_v55 = vld [vmem:[#allocation3] sm:$0xff] }
 0x41d   :  { %v317_v57 = vmul.f32 %v1748_v52, %v315_v55 }
 0x41e   :  { %v1789_v54 = vpop.permute.xlu1 %339 }
 0x422   :  { %v331_v31 = vld [vmem:[#allocation4 + $0x8] sm:$0xff] }
 0x423   :  { %v1791_v49 = vpop.permute.xlu1 %515  ;;  %v343_v6 = vmul.f32 %v1789_v54, %v331_v31 }
 0x45f   :  { %v321_v58 = vpop.xlane.xlu1 %320 }
 0x460   :  { %v325_v61 = vadd.f32 %v321_v58, %v317_v57 }
 0x462   :  { %328 = vst.msk [vmem:[#allocation3] sm:$0xff] %vm327_vm6, %v325_v61 }
 0x463   :  { %v324_v51 = vpop.xlane.xlu0 %323 }
 0x464   :  { %v326_v1 = vadd.f32 %v324_v51, %v318_v63  ;;  %v1822_v63 = vshrl.u32 %v792_v39, 7 }
 0x466   :  { %329 = vst.msk [vmem:[#allocation3 + $0x8] sm:$0xff] %vm327_vm6, %v326_v1  ;;  %v925_v2 = vsub.s32 0, %v1822_v63 }
 0x469   :  { %v491_v4 = vld [vmem:[#allocation3] sm:$0xff]  ;;  %v497_v5 = vpop.xlane.xlu0 %496 }
 0x46a   :  { %v493_v52 = vmul.f32 %v1737_v30, %v491_v4  ;;  %v932_v4 = vsub.s32 1, %v1822_v63 }
 0x46c   :  { %v501_v7 = vadd.f32 %v497_v5, %v493_v52 }
 0x46d   :  { %v492_v53 = vld [vmem:[#allocation3 + $0x8] sm:$0xff]  ;;  %v500_v23 = vpop.xlane.xlu1 %499 }
 0x46e   :  { %504 = vst.msk [vmem:[#allocation3] sm:$0xff] %vm503_vm7, %v501_v7  ;;  %v494_v56 = vmul.f32 %v1755_v26, %v492_v53  ;;  %v939_v53 = vsub.s32 2, %v1822_v63 }
 0x470   :  { %v502_v8 = vadd.f32 %v500_v23, %v494_v56  ;;  %v946_v56 = vsub.s32 3, %v1822_v63 }
 0x472   :  { %505 = vst.msk [vmem:[#allocation3 + $0x8] sm:$0xff] %vm503_vm7, %v502_v8 }
 0x475   :  { %v666_v45 = vld [vmem:[#allocation3] sm:$0xff] }
 0x476   :  { %v668_v46 = vmul.f32 %v1497_v25, %v666_v45 }
 0x479   :  { %v667_v59 = vld [vmem:[#allocation3 + $0x8] sm:$0xff]  ;;  %v675_v41 = vpop.xlane.xlu1 %674 }
 0x47a   :  { %v669_v10 = vmul.f32 %v1495_v9, %v667_v59  ;;  %v960_v59 = vsub.s32 5, %v1822_v63 }
 0x47c   :  { %v677_v42 = vadd.f32 %v675_v41, %v669_v10 }
 0x47e   :  { %680 = vst.msk [vmem:[#allocation3 + $0x8] sm:$0xff] %vm678_vm8, %v677_v42  ;;  %v967_v42 = vsub.s32 6, %v1822_v63 }
 0x485   :  { %v762_v1 = vld [vmem:[#allocation3 + $0x8] sm:$0xff] }
 0x49b   :  { %v386_v43 = vpop.f32.mrf.mxu0 }
 0x49c   :  { %395 = vrot.lane.b32.xlu0 %v386_v43, %s1516_s3  ;;  %v974_v43 = vsub.s32 7, %v1822_v63 }
 0x49d   :  { %v1390_v30 = vpop.f32.mrf.mxu0 }
 0x49f   :  { %v389_v62 = vpop.f32.mrf.mxu0 }
 0x4a0   :  { %397 = vrot.lane.b32.xlu0 %v389_v62, %s1516_s3 }
 0x4a1   :  { %v1391_v26 = vpop.f32.mrf.mxu0 }
 0x4a5   :  { %v561_v11 = vpop.f32.mrf.mxu0 }
 0x4a7   :  { %v1402_v12 = vpop.f32.mrf.mxu0 }
 0x4a9   :  { %v564_v13 = vpop.f32.mrf.mxu0 }
 0x4aa   :  { %572 = vrot.lane.b32.xlu1 %v564_v13, %s1517_s18 }
 0x4ab   :  { %v1403_v14 = vpop.f32.mrf.mxu0 }
 0x4b1   :  { %v736_v15 = vpop.f32.mrf.mxu0 }
 0x4b3   :  { %v1414_v3 = vpop.f32.mrf.mxu0 }
 0x4b5   :  { %v739_v16 = vpop.f32.mrf.mxu0 }
 0x4b6   :  { %747 = vrot.lane.b32.xlu1 %v739_v16, %s1518_s19 }
 0x4b7   :  { %v1415_v17 = vpop.f32.mrf.mxu0 }
 0x4bf   :  { %671 = vadd.xlane.f32.xlu0 %v670_v18 }
 0x4d5   :  { %570 = vrot.lane.b32.xlu0 %v561_v11, %s1517_s18 }
 0x4d9   :  { %685 = vperm.xlu0 %1449, %v1497_v25  }
 0x4dd   :  { %690 = vperm.xlu0 %1449, %v1495_v9   ;;  %v953_v9 = vsub.s32 4, %v1822_v63 }
 0x4e1   :  { %745 = vrot.lane.b32.xlu0 %v736_v15, %s1518_s19 }
 0x50e   :  { %v396_v32 = vpop.permute.xlu0 %395 }
 0x50f   :  { %v401_v33 = vadd.f32 %v396_v32, %v342_v29 }
 0x511   :  { %404 = vst.msk [vmem:[#allocation4] sm:$0xff] %vm403_vm10, %v401_v33 }
 0x512   :  { %v398_v36 = vpop.permute.xlu0 %397 }
 0x513   :  { %v402_v34 = vadd.f32 %v398_v36, %v343_v6 }
 0x515   :  { %405 = vst.msk [vmem:[#allocation4 + $0x8] sm:$0xff] %vm403_vm10, %v402_v34 }
 0x518   :  { %v506_v20 = vld [vmem:[#allocation4] sm:$0xff] }
 0x519   :  { %v518_v24 = vmul.f32 %v1794_v19, %v506_v20 }
 0x51c   :  { %v507_v35 = vld [vmem:[#allocation4 + $0x8] sm:$0xff]  ;;  %v573_v37 = vpop.permute.xlu1 %572 }
 0x51d   :  { %v519_v38 = vmul.f32 %v1791_v49, %v507_v35 }
 0x51f   :  { %v577_v44 = vadd.f32 %v573_v37, %v519_v38  ;;  %v1519_v38 = vmov 1983009808  }
 0x520   :  { %v790_v37 = vunpack.c.l.s4 %v1519_v38 }
 0x521   :  { %580 = vst.msk [vmem:[#allocation4 + $0x8] sm:$0xff] %vm578_vm11, %v577_v44 }
 0x528   :  { %v682_v55 = vld [vmem:[#allocation4 + $0x8] sm:$0xff]  ;;  %v748_v58 = vpop.permute.xlu1 %747 }
 0x548   :  { %v672_v47 = vpop.xlane.xlu0 %671 }
 0x549   :  { %v676_v22 = vadd.f32 %v672_v47, %v668_v46  ;;  %v791_v46 = vunpack.c.0.s8 %v790_v37  ;;  %v1520_v47 = vmov 1934713408  }
 0x54a   :  { %v822_v20 = vunpack.c.l.s4 %v1520_v47 }
 0x54b   :  { %679 = vst.msk [vmem:[#allocation3] sm:$0xff] %vm678_vm8, %v676_v22 }
 0x54c   :  { %v571_v40 = vpop.permute.xlu0 %570 }
 0x54d   :  { %v576_v48 = vadd.f32 %v571_v40, %v518_v24  ;;  %v1855_v40 = vsub.s32 %v791_v46, %v1822_v63 }
 0x54f   :  { %579 = vst.msk [vmem:[#allocation4] sm:$0xff] %vm578_vm11, %v576_v48  ;;  %v823_v48 = vunpack.c.0.s8 %v822_v20 }
 0x552   :  { %v761_v50 = vld [vmem:[#allocation3] sm:$0xff] }
 0x553   :  { %1498 = vrcp.f32 %v761_v50 }
 0x554   :  { %v686_v27 = vpop.permute.xlu0 %685  ;;  %1500 = vrcp.f32 %v762_v1 }
 0x556   :  { %v681_v54 = vld [vmem:[#allocation4] sm:$0xff] }
 0x557   :  { %v693_v60 = vmul.f32 %v686_v27, %v681_v54 }
 0x558   :  { %v691_v49 = vpop.permute.xlu0 %690 }
 0x559   :  { %v694_v57 = vmul.f32 %v691_v49, %v682_v55 }
 0x55b   :  { %v752_v61 = vadd.f32 %v748_v58, %v694_v57 }
 0x55c   :  { %v746_v51 = vpop.permute.xlu0 %745 }
 0x55d   :  { %755 = vst.msk [vmem:[#allocation4 + $0x8] sm:$0xff] %vm753_vm12, %v752_v61  ;;  %v751_v19 = vadd.f32 %v746_v51, %v693_v60  ;;  %v1858_v51 = vsub.s32 %v823_v48, %v1822_v63 }
 0x55f   :  { %754 = vst.msk [vmem:[#allocation4] sm:$0xff] %vm753_vm12, %v751_v19 }
 0x560   :  { %v1499_v52 = vpop.eup %1498 }
 0x561   :  { %v926_v5 = vrot.slane %v1499_v52, %v925_v2  ;;  %v933_v7 = vrot.slane %v1499_v52, %v932_v4  ;;  %v940_v23 = vrot.slane %v1499_v52, %v939_v53  ;;  %v947_v8 = vrot.slane %v1499_v52, %v946_v56  ;;  %v1501_v26 = vpop.eup %1500 }
 0x562   :  { %v954_v10 = vrot.slane %v1499_v52, %v953_v9  ;;  %v961_v41 = vrot.slane %v1499_v52, %v960_v59  ;;  %v968_v30 = vrot.slane %v1499_v52, %v967_v42  ;;  %v975_v62 = vrot.slane %v1499_v52, %v974_v43 }
 0x563   :  { %928 = vbcast.lane.b32.xlu0 %v926_v5, 256  ;;  %935 = vbcast.lane.b32.xlu1 %v933_v7, 256  ;;  %v982_v11 = vrot.slane %v1501_v26, %v925_v2  ;;  %v989_v12 = vrot.slane %v1501_v26, %v932_v4  ;;  %v996_v15 = vrot.slane %v1501_v26, %v939_v53 }
 0x564   :  { %v766_v14 = vld [vmem:[#allocation4 + $0x8] sm:$0xff]  ;;  %v1003_v3 = vrot.slane %v1501_v26, %v946_v56  ;;  %v1010_v16 = vrot.slane %v1501_v26, %v953_v9  ;;  %v1017_v17 = vrot.slane %v1501_v26, %v960_v59  ;;  %v1024_v18 = vrot.slane %v1501_v26, %v967_v42 }
 0x565   :  { %v1031_v21 = vrot.slane %v1501_v26, %v974_v43 }
 0x566   :  { %v765_v13 = vld [vmem:[#allocation4] sm:$0xff] }
 0x567   :  { %942 = vbcast.lane.b32.xlu0 %v940_v23, 256  ;;  %949 = vbcast.lane.b32.xlu1 %v947_v8, 256 }
 0x56b   :  { %956 = vbcast.lane.b32.xlu0 %v954_v10, 256  ;;  %963 = vbcast.lane.b32.xlu1 %v961_v41, 256 }
 0x56f   :  { %970 = vbcast.lane.b32.xlu0 %v968_v30, 256  ;;  %977 = vbcast.lane.b32.xlu1 %v975_v62, 256 }
 0x573   :  { %984 = vbcast.lane.b32.xlu0 %v982_v11, 256  ;;  %991 = vbcast.lane.b32.xlu1 %v989_v12, 256 }
 0x577   :  { %769 = vrot.lane.b32.xlu0 %v765_v13, %s1510_s1  ;;  %771 = vrot.lane.b32.xlu1 %v766_v14, %s1510_s1 }
 0x57b   :  { %775 = vrot.lane.b32.xlu0 %v765_v13, %s1511_s16  ;;  %777 = vrot.lane.b32.xlu1 %v766_v14, %s1511_s16 }
 0x57f   :  { %781 = vrot.lane.b32.xlu0 %v765_v13, %s1512_s17  ;;  %783 = vrot.lane.b32.xlu1 %v766_v14, %s1512_s17 }
 0x583   :  { %998 = vbcast.lane.b32.xlu0 %v996_v15, 256  ;;  %1005 = vbcast.lane.b32.xlu1 %v1003_v3, 256 }
 0x587   :  { %1012 = vbcast.lane.b32.xlu0 %v1010_v16, 256  ;;  %1019 = vbcast.lane.b32.xlu1 %v1017_v17, 256 }
 0x58b   :  { %1026 = vbcast.lane.b32.xlu0 %v1024_v18, 256  ;;  %1033 = vbcast.lane.b32.xlu1 %v1031_v21, 256 }
 0x5d5   :  { %v1838_v25 = vpop.permute.xlu0 %928  ;;  %v1840_v28 = vpop.permute.xlu1 %935 }
 0x5d9   :  { %v1842_v29 = vpop.permute.xlu0 %942  ;;  %v1844_v31 = vpop.permute.xlu1 %949 }
 0x5dd   :  { %v957_v32 = vpop.permute.xlu0 %956  ;;  %v1846_v33 = vpop.permute.xlu1 %963 }
 0x5e1   :  { %v971_v6 = vpop.permute.xlu0 %970  ;;  %v1848_v36 = vpop.permute.xlu1 %977 }
 0x5e5   :  { %v1850_v34 = vpop.permute.xlu0 %984  ;;  %v1852_v35 = vpop.permute.xlu1 %991 }
 0x5e9   :  { %v770_v44 = vpop.permute.xlu0 %769  ;;  %v772_v45 = vpop.permute.xlu1 %771 }
 0x5ed   :  { %v776_v22 = vpop.permute.xlu0 %775  ;;  %v778_v24 = vpop.permute.xlu1 %777 }
 0x5ee   :  { %v787_v50 = vcombine.low %v765_v13, %v776_v22  ;;  %v788_v27 = vcombine.high %v765_v13, %v776_v22  ;;  %v855_v39 = vcombine.low %v766_v14, %v778_v24  ;;  %v856_v54 = vcombine.high %v766_v14, %v778_v24 }
 0x5f0   :  { %v795_v19 = vrot.slane %v787_v50, %v1855_v40  ;;  %v802_v1 = vrot.slane %v788_v27, %v1855_v40  ;;  %v863_v7 = vrot.slane %v855_v39, %v1855_v40  ;;  %v870_v53 = vrot.slane %v856_v54, %v1855_v40 }
 0x5f1   :  { %v782_v49 = vpop.permute.xlu0 %781  ;;  %v784_v55 = vpop.permute.xlu1 %783 }
 0x5f2   :  { %v803_v57 = vcombine.low %v770_v44, %v782_v49  ;;  %v804_v58 = vcombine.high %v770_v44, %v782_v49  ;;  %v871_v60 = vcombine.low %v772_v45, %v784_v55  ;;  %v872_v61 = vcombine.high %v772_v45, %v784_v55 }
 0x5f4   :  { %v811_v2 = vrot.slane %v803_v57, %v1855_v40  ;;  %v818_v4 = vrot.slane %v804_v58, %v1855_v40  ;;  %v879_v52 = vrot.slane %v871_v60, %v1855_v40  ;;  %v886_v5 = vrot.slane %v872_v61, %v1855_v40 }
 0x5f5   :  { %v999_v56 = vpop.permute.xlu0 %998  ;;  %v1006_v23 = vpop.permute.xlu1 %1005 }
 0x5f6   :  { %v819_v63 = vcombine.low %v795_v19, %v811_v2  ;;  %v820_v8 = vcombine.high %v795_v19, %v811_v2  ;;  %v835_v9 = vcombine.low %v802_v1, %v818_v4  ;;  %v836_v59 = vcombine.high %v802_v1, %v818_v4 }
 0x5f7   :  { %v887_v10 = vcombine.low %v863_v7, %v879_v52  ;;  %v888_v41 = vcombine.high %v863_v7, %v879_v52  ;;  %v903_v42 = vcombine.low %v870_v53, %v886_v5  ;;  %v904_v43 = vcombine.high %v870_v53, %v886_v5 }
 0x5f8   :  { %v827_v30 = vrot.slane %v819_v63, %v1858_v51  ;;  %v834_v62 = vrot.slane %v820_v8, %v1858_v51  ;;  %v843_v26 = vrot.slane %v835_v9, %v1858_v51  ;;  %v850_v11 = vrot.slane %v836_v59, %v1858_v51  ;;  %v1221_v9 = vld [vmem:[%s1959_s4 + $0x10] sm:$0xff]  ;;  %v1222_v59 = vld [vmem:[%s1959_s4 + $0x18] sm:$0xff] }
 0x5f9   :  { %v895_v12 = vrot.slane %v887_v10, %v1858_v51  ;;  %v902_v13 = vrot.slane %v888_v41, %v1858_v51  ;;  %v1013_v14 = vpop.permute.xlu0 %1012  ;;  %v911_v15 = vrot.slane %v903_v42, %v1858_v51  ;;  %v1020_v3 = vpop.permute.xlu1 %1019  ;;  %v918_v16 = vrot.slane %v904_v43, %v1858_v51 }
 0x5fa   :  { %v851_v17 = vcombine.high %v827_v30, %v1506_v0  ;;  %v852_v18 = vcombine.high %v834_v62, %v1506_v0  ;;  %v853_v21 = vcombine.high %v843_v26, %v1506_v0  ;;  %v854_v38 = vcombine.high %v850_v11, %v1506_v0 }
 0x5fb   :  { %v1035_v37 = vmul.f32 %v1838_v25, %v827_v30  ;;  %v1037_v44 = vmul.f32 %v1842_v29, %v834_v62  ;;  %v1039_v45 = vmul.f32 %v957_v32, %v843_v26  ;;  %v1041_v46 = vmul.f32 %v971_v6, %v850_v11 }
 0x5fc   :  { %v1036_v47 = vmul.f32 %v1840_v28, %v851_v17  ;;  %v1038_v20 = vmul.f32 %v1844_v31, %v852_v18  ;;  %v1040_v22 = vmul.f32 %v1846_v33, %v853_v21  ;;  %v1042_v24 = vmul.f32 %v1848_v36, %v854_v38 }
 0x5fd   :  { %v1051_v48 = vcombine.low %v1035_v37, %v1037_v44  ;;  %v1067_v50 = vcombine.low %v1039_v45, %v1041_v46  ;;  %v1043_v27 = vmul.f32 %v1850_v34, %v895_v12  ;;  %v1045_v39 = vmul.f32 %v999_v56, %v902_v13  ;;  %v1027_v54 = vpop.permute.xlu0 %1026  ;;  %v1034_v33 = vpop.permute.xlu1 %1033 }
 0x5fe   :  { %v1059_v49 = vcombine.low %v1036_v47, %v1038_v20  ;;  %v1075_v25 = vcombine.low %v1040_v22, %v1042_v24  ;;  %v919_v29 = vcombine.high %v895_v12, %v1506_v0  ;;  %v920_v32 = vcombine.high %v902_v13, %v1506_v0 }
 0x5ff   :  { %v1119_v6 = vcombine.low %v1043_v27, %v1045_v39  ;;  %v1047_v28 = vmul.f32 %v1013_v14, %v911_v15  ;;  %v921_v31 = vcombine.high %v911_v15, %v1506_v0  ;;  %v1049_v55 = vmul.f32 %v1027_v54, %v918_v16  ;;  %v1219_v14 = vld [vmem:[%s1959_s4] sm:$0xff]  ;;  %v1220_v15 = vld [vmem:[%s1959_s4 + $0x8] sm:$0xff] }
 0x600   :  { %v1044_v36 = vmul.f32 %v1852_v35, %v919_v29  ;;  %v1046_v57 = vmul.f32 %v1006_v23, %v920_v32  ;;  %v922_v58 = vcombine.high %v918_v16, %v1506_v0  ;;  %v1058_v61 = vrot.slane %v1051_v48, %v1855_v40 }
 0x601   :  { %v1048_v34 = vmul.f32 %v1020_v3, %v921_v31  ;;  %v1135_v60 = vcombine.low %v1047_v28, %v1049_v55  ;;  %v1066_v19 = vrot.slane %v1059_v49, %v1855_v40  ;;  %v1074_v4 = vrot.slane %v1067_v50, %v1855_v40 }
 0x602   :  { %v1127_v1 = vcombine.low %v1044_v36, %v1046_v57  ;;  %v1050_v2 = vmul.f32 %v1034_v33, %v922_v58  ;;  %v1082_v52 = vrot.slane %v1075_v25, %v1855_v40  ;;  %v1126_v5 = vrot.slane %v1119_v6, %v1855_v40  ;;  %v1343_v57 = vld [vmem:[%s1960_s5] ss:$0 sm:$0xff] }
 0x603   :  { %v1142_v7 = vrot.slane %v1135_v60, %v1855_v40  ;;  %v1084_v35 = vcombine.high %v1058_v61, %v1066_v19  ;;  %v1083_v53 = vcombine.low %v1058_v61, %v1066_v19  ;;  %v1224_v41 = vpack.c.bf16 %v1222_v59, %v1221_v9 }
 0x604   :  { %v1134_v56 = vrot.slane %v1127_v1, %v1855_v40  ;;  %v1143_v23 = vcombine.low %v1048_v34, %v1050_v2  ;;  %v1100_v63 = vcombine.high %v1074_v4, %v1082_v52  ;;  %v1099_v8 = vcombine.low %v1074_v4, %v1082_v52  ;;  %v1277_v34 = vld [vmem:[%s1961_s0] sm:$0xff]  ;;  %v1278_v2 = vld [vmem:[%s1961_s0 + $0x8] sm:$0xff] }
 0x605   :  { %v1091_v10 = vrot.slane %v1083_v53, %v1858_v51  ;;  %v1098_v62 = vrot.slane %v1084_v35, %v1858_v51  ;;  %1417 = vmatpush3.bf16.msra.mxu1 %v1224_v41  ;;  %v1223_v21 = vpack.c.bf16 %v1220_v15, %v1219_v14  ;;  %v1345_v14 = vld [vmem:[%s1962_s6] ss:$0 sm:$0xff] }
 0x606   :  { %v1151_v42 = vcombine.low %v1126_v5, %v1134_v56  ;;  %v1152_v43 = vcombine.high %v1126_v5, %v1134_v56  ;;  %v1150_v30 = vrot.slane %v1143_v23, %v1855_v40  ;;  %v1114_v26 = vrot.slane %v1100_v63, %v1858_v51  ;;  %1418 = vmatprep.subr.bf16.mxu1 %v1506_v0 }
 0x607   :  { %v1107_v11 = vrot.slane %v1099_v8, %v1858_v51 }
 0x608   :  { %v1167_v12 = vcombine.low %v1142_v7, %v1150_v30  ;;  %v1168_v13 = vcombine.high %v1142_v7, %v1150_v30  ;;  %v1166_v40 = vrot.slane %v1152_v43, %v1858_v51  ;;  %v1159_v17 = vrot.slane %v1151_v42, %v1858_v51 }
 0x609   :  { %v1115_v3 = vcombine.low %v1091_v10, %v1107_v11  ;;  %v1117_v38 = vcombine.low %v1098_v62, %v1114_v26  ;;  %v1116_v37 = vcombine.high %v1091_v10, %v1107_v11  ;;  %1419 = vmatpush3.bf16.msra.mxu1 %v1223_v21  ;;  %v1118_v22 = vcombine.high %v1098_v62, %v1114_v26 }
 0x60a   :  { %v1182_v16 = vrot.slane %v1168_v13, %v1858_v51  ;;  %v1175_v18 = vrot.slane %v1167_v12, %v1858_v51 }
 0x60c   :  { %v1185_v0 = vcombine.low %v1166_v40, %v1182_v16  ;;  %v1184_v44 = vcombine.high %v1159_v17, %v1175_v18  ;;  %v1183_v45 = vcombine.low %v1159_v17, %v1175_v18  ;;  %v1186_v20 = vcombine.high %v1166_v40, %v1182_v16  ;;  %v1346_v40 = vld [vmem:[%s1963_s7] ss:$0 sm:$0xff] }
 0x60e   :  { %v1455_v46 = vpack.i.bf16 %v1185_v0, %v1117_v38  ;;  %v1450_v47 = vpack.i.bf16 %v1184_v44, %v1116_v37  ;;  %v1460_v24 = vpack.i.bf16 %v1186_v20, %v1118_v22 }
 0x610   :  { %1456 = vrot.lane.b32.xlu1 %v1455_v46, %s1517_s18  ;;  %1451 = vrot.lane.b32.xlu0 %v1450_v47, %s1516_s3 }
 0x614   :  { %1461 = vrot.lane.b32.xlu0 %v1460_v24, %s1518_s19 }
 0x682   :  { %v1457_v48 = vpop.permute.xlu1 %1456  ;;  %v1452_v51 = vpop.permute.xlu0 %1451 }
 0x683   :  { %v1454_v50 = vunpack.i.h.bf16 %v1452_v51  ;;  %v1453_v27 = vunpack.i.l.bf16 %v1452_v51  ;;  %v1459_v39 = vunpack.i.h.bf16 %v1457_v48  ;;  %v1458_v54 = vunpack.i.l.bf16 %v1457_v48 }
 0x685   :  { %v1211_v49 = vsel %vm70_vm0, %v1115_v3, %v1453_v27  ;;  %v1212_v25 = vsel %vm70_vm0, %v1183_v45, %v1454_v50 }
 0x686   :  { %v1462_v29 = vpop.permute.xlu0 %1461  ;;  %v1213_v28 = vsel %vm120_vm4, %v1211_v49, %v1458_v54  ;;  %v1214_v31 = vsel %vm120_vm4, %v1212_v25, %v1459_v39 }
 0x687   :  { %v1464_v32 = vunpack.i.h.bf16 %v1462_v29  ;;  %v1463_v6 = vunpack.i.l.bf16 %v1462_v29 }
 0x689   :  { %v1216_v55 = vsel %vm1215_vm13, %v1213_v28, %v1463_v6  ;;  %v1217_v33 = vsel %vm1215_vm13, %v1214_v31, %v1464_v32 }
 0x68a   :  { %v1218_v36 = vpack.c.bf16 %v1217_v33, %v1216_v55 }
 0x68c   :  { %1421 = vmatmul.mubr.msk.bf16.vlgmr.msra.gmra.mxu1 %vm39_vm9, %v1218_v36 }
 0x74c   :  { %v1270_v58 = vpop.f32.mrf.mxu1 }
 0x74d   :  { %v1271_v60 = vadd.f32 %v1343_v57, %v1270_v58 }
 0x74e   :  { %v1422_v61 = vpop.f32.mrf.mxu1 }
 0x74f   :  { %v1279_v19 = vadd.f32 %v1277_v34, %v1271_v60 }
 0x750   :  { %v1273_v1 = vpop.f32.mrf.mxu1 }
 0x751   :  { %v1274_v4 = vadd.f32 %v1343_v57, %v1273_v1  ;;  %v1281_v52 = vsel %vm39_vm9, %v1279_v19, 0.0 }
 0x752   :  { %v1423_v5 = vpop.f32.mrf.mxu1  ;;  %1282 = vadd.xlane.f32.xlu1 %v1281_v52 }
 0x753   :  { %v1280_v7 = vadd.f32 %v1278_v2, %v1274_v4 }
 0x755   :  { %v1284_v35 = vsel %vm39_vm9, %v1280_v7, 0.0 }
 0x756   :  { %1285 = vadd.xlane.f32.xlu0 %v1284_v35 }
 0x7db   :  { %v1283_v53 = vpop.xlane.xlu1 %1282 }
 0x7dc   :  { %v1288_v56 = vmul.f32 0.03125, %v1283_v53 }
 0x7de   :  { %v1290_v23 = vsub.f32 %v1279_v19, %v1288_v56 }
 0x7df   :  { %v1286_v63 = vpop.xlane.xlu0 %1285 }
 0x7e0   :  { %v1289_v8 = vmul.f32 0.03125, %v1286_v63  ;;  %v1292_v9 = vmul.f32 %v1290_v23, %v1290_v23 }
 0x7e2   :  { %v1291_v59 = vsub.f32 %v1280_v7, %v1289_v8  ;;  %v1294_v10 = vsel %vm39_vm9, %v1292_v9, 0.0 }
 0x7e3   :  { %1295 = vadd.xlane.f32.xlu0 %v1294_v10 }
 0x7e4   :  { %v1293_v41 = vmul.f32 %v1291_v59, %v1291_v59 }
 0x7e6   :  { %v1297_v42 = vsel %vm39_vm9, %v1293_v41, 0.0 }
 0x7e7   :  { %1298 = vadd.xlane.f32.xlu0 %v1297_v42 }
 0x86c   :  { %v1296_v43 = vpop.xlane.xlu0 %1295 }
 0x86d   :  { %v1300_v30 = vmul.f32 0.03125, %v1296_v43 }
 0x86f   :  { %v1302_v62 = vadd.f32 1e-05, %v1300_v30 }
 0x870   :  { %v1299_v26 = vpop.xlane.xlu0 %1298 }
 0x871   :  { %1502 = vrsqrt.f32 %v1302_v62  ;;  %v1301_v11 = vmul.f32 0.03125, %v1299_v26 }
 0x873   :  { %v1303_v12 = vadd.f32 1e-05, %v1301_v11 }
 0x875   :  { %1504 = vrsqrt.f32 %v1303_v12 }
 0x87e   :  { %v1503_v13 = vpop.eup %1502 }
 0x87f   :  { %v1306_v15 = vmul.f32 %v1503_v13, %v1290_v23 }
 0x881   :  { %v1315_v3 = vmul.f32 %v1345_v14, %v1306_v15 }
 0x882   :  { %v1505_v16 = vpop.eup %1504 }
 0x883   :  { %v1324_v17 = vadd.f32 %v1346_v40, %v1315_v3  ;;  %v1307_v18 = vmul.f32 %v1505_v16, %v1291_v59 }
 0x885   :  { %1326 = vst.msk [vmem:[%s1964_s8] sm:$0xff] %vm39_vm9, %v1324_v17  ;;  %v1316_v21 = vmul.f32 %v1345_v14, %v1307_v18 }
 0x887   :  { %v1325_v38 = vadd.f32 %v1346_v40, %v1316_v21 }
 0x889   :  { %1327 = vst.msk [vmem:[%s1964_s8 + $0x8] sm:$0xff] %vm39_vm9, %v1325_v38 }

// kernel: ppf_transformer.35
= control target key start
LH: loop header
LB: loop body
LE: loop exit
PB: predicated region body
PF: predicated region fallthrough
CT: control target
= control target key end

     0   :  { %v135_v3 = vmov 0.0   ;;  %vm136_vm0 = vmmov 0   ;;  %s184_s0 = inlined_call_operand.vmem [shape: f32[16,32], index: 0, kind: input, shape index: {}]   ;;  %s185_s1 = inlined_call_operand.vmem [shape: f32[32,32], index: 1, kind: input, shape index: {}]   ;;  %s186_s2 = inlined_call_operand.vmem [shape: f32[1,32], index: 2, kind: input, shape index: {}]   ;;  %s187_s3 = inlined_call_operand.hbm [shape: f32[16,32], index: 3, kind: output, shape index: {}]  }
   0x1   :  { %v21_v0 = vld [vmem:[%s185_s1 + $0x10] sm:$0xff]  ;;  %v22_v1 = vld [vmem:[%s185_s1 + $0x18] sm:$0xff]  ;;  %v19_v2 = vld [vmem:[%s185_s1] sm:$0xff]  ;;  %100 = vmatprep.subr.bf16.mxu0 %v135_v3  ;;  %104 = vmatprep.mubr.msk.bf16.mxu0 %vm136_vm0, %v135_v3 }
   0x2   :  { %v24_v4 = vpack.c.bf16 %v22_v1, %v21_v0  ;;  %v20_v5 = vld [vmem:[%s185_s1 + $0x8] sm:$0xff] }
   0x3   :  { %8 = vsyncpa [#allocation3], 0  ;;  %v23_v6 = vpack.c.bf16 %v20_v5, %v19_v2  ;;  %v16_v7 = vld [vmem:[%s184_s0] sm:$0xff]  ;;  %v17_v8 = vld [vmem:[%s184_s0 + $0x8] sm:$0xff]  ;;  %vm32_vm1 = vcmask 261120   ;;  %s137_s25 = smov [#allocation2]  }
   0x4   :  { %101 = vmatpush3.bf16.msra.mxu0 %v24_v4  ;;  %v18_v9 = vpack.c.bf16 %v17_v8, %v16_v7  ;;  %v95_v10 = vld [vmem:[%s186_s2] ss:$0 sm:$0xff]  ;;  %s84_s26 = sshll.u32 %s137_s25, 4  ;;  %s85_s26 = int_to_ptr.vmem [resolvable:$true] %s84_s26 }
   0x5   :  { %102 = vmatprep.subr.bf16.mxu0 %v135_v3  ;;  %s113_s0 = scalar_lea.vmem %s85_s26, 256  ;;  %p118_p1 = scmp.lt.s32.totalorder %s85_s26, %s85_s26 }
   0x6   :  { %p114_p0 = scmp.ne.s32.totalorder %s85_s26, %s113_s0  ;;  %p119_p2 = scmp.lt.s32.totalorder %s113_s0, %s113_s0 }
   0x8   :  { %103 = vmatpush3.bf16.msra.mxu0 %v23_v6  ;;  %p120_p3 = por %p119_p2, %p118_p1 }
   0xa   :  { %p121_p4 = pnand %p120_p3, %p114_p0 }
   0xb   :  { %105 = vmatmul.mubr.msk.bf16.vlgmr.msra.gmra.mxu0 %vm32_vm1, %v18_v9 }
  0xcb   :  { %v70_v11 = vpop.f32.mrf.mxu0 }
  0xcc   :  { %v71_v12 = vadd.f32 %v95_v10, %v70_v11 }
  0xcd   :  { %v106_v13 = vpop.f32.mrf.mxu0 }
  0xce   :  { %77 = vst.msk [vmem:[#allocation2] sm:$0xff] %vm32_vm1, %v71_v12 }
  0xcf   :  { %v73_v14 = vpop.f32.mrf.mxu0 }
  0xd0   :  { %v74_v15 = vadd.f32 %v95_v10, %v73_v14 }
  0xd1   :  { %v107_v16 = vpop.f32.mrf.mxu0 }
  0xd2   :  { %78 = vst.msk [vmem:[#allocation2 + $0x8] sm:$0xff] %vm32_vm1, %v74_v15 }
  0xd3   :  { %124 = shalt.err (!%p121_p4)
}
  0xd4   :  { %s138_s27 = smov 128   ;;  %s139_s2 = smov 8  }
  0xd5   :  { %90 = dma.vmem_to_hbm [thread:$0]  %s85_s26, 256, %s187_s3, [#allocation3], %s138_s27, %s138_s27, %s139_s2  }
  0xd6   :  { %133 = dma.done.wait [#allocation3], 256  }
  0xd7   :  { %134 = vsyncadd [#allocation3], 4294967040 }
  0xd8   :  { %94 = vsyncpa [#allocation3], 1 }

</bundles_post_ra>
